<compile_context>
chip_gen: v7x
topology: tpu7x:2x2x1
jax: 0.10.0
libtpu: 0.0.40
codegen_flags: <defaults>
</compile_context>

<pallas_src>
import functools

import jax
import jax.numpy as jnp
from jax.experimental import pallas as pl
from jax.experimental.pallas import tpu as pltpu

H = W = 20            # spatial size dictated by fc1 = Linear(20*20*8, 100)
C1, C2 = 4, 8         # conv output channels
K1, K2 = 3, 5         # conv kernel sizes
P1, P2 = 1, 2         # "same" paddings
HID1, HID2, NOUT = 100, 20, 2

TB = 16               # batch tile: TB*H = 320 MXU rows per conv matmul


# ------------------------------ fused kernel ------------------------------

def _cnn_dvn_kernel(x_ref, w1b_ref, b1_ref, w2b_ref, b2_ref, wc_ref, bc_ref,
                    out_ref, xpad1_ref, xpad2_ref, h2_ref, *, tb):
    f32 = jnp.float32
    rows = H * tb                               # matmul M dimension per tap

    # ---- conv1 input: zero only the height-pad rows, copy the batch tile ----
    # scratch row layout: row = h_padded * tb + b ; lane = w  (width pad is
    # folded into the banded weights so lanes stay dense/aligned)
    xpad1_ref[0:P1 * tb, :] = jnp.zeros((P1 * tb, W), f32)
    xpad1_ref[(P1 + H) * tb:(2 * P1 + H) * tb, :] = jnp.zeros((P1 * tb, W), f32)
    xpad1_ref[P1 * tb:(P1 + H) * tb, :] = x_ref[0]

    # ---- conv2 input scratch: zero only its height-pad rows ----
    xpad2_ref[0:P2 * tb, :] = jnp.zeros((P2 * tb, W * C1), f32)
    xpad2_ref[(P2 + H) * tb:(2 * P2 + H) * tb, :] = jnp.zeros((P2 * tb, W * C1), f32)

    # ---- conv1 + ReLU on the MXU: K1 banded matmuls of (320, 20) @ (20, 80),
    # ---- accumulated straight into conv2's padded-input scratch ----
    body2 = slice(P2 * tb, (P2 + H) * tb)
    xpad2_ref[body2, :] = jnp.dot(xpad1_ref[0:rows, :], w1b_ref[0],
                                  preferred_element_type=f32)
    for kh in range(1, K1):
        xpad2_ref[body2, :] += jnp.dot(xpad1_ref[kh * tb:kh * tb + rows, :],
                                       w1b_ref[kh], preferred_element_type=f32)
    xpad2_ref[body2, :] = jnp.maximum(xpad2_ref[body2, :] + b1_ref[...], 0.0)

    # ---- conv2 + ReLU on the MXU: K2 banded matmuls of (320, 80) @ (80, 160),
    # ---- accumulated into a VMEM scratch (keeps vreg pressure low) ----
    h2_ref[...] = jnp.dot(xpad2_ref[0:rows, :], w2b_ref[0],
                          preferred_element_type=f32)
    for kh in range(1, K2):
        h2_ref[...] += jnp.dot(xpad2_ref[kh * tb:kh * tb + rows, :],
                               w2b_ref[kh], preferred_element_type=f32)
    h2_ref[...] = jnp.maximum(h2_ref[...] + b2_ref[...], 0.0)

    # ---- flatten + dropout(eval: identity) + folded fc1@fc2@fc3 ----
    # wc was pre-folded offline to (H, W*C2, NOUT) in the kernel's (h, w, c)
    # feature order, so the whole fc stack is H accumulated (TB,160)@(160,2) dots.
    # TODO(synk): nn.Dropout() is identity in eval mode; training-mode p=0.5
    # stochastic masking is not implemented.
    acc = jnp.zeros((tb, NOUT), f32)
    for hh in range(H):
        acc = acc + jnp.dot(h2_ref[hh * tb:(hh + 1) * tb, :], wc_ref[hh],
                            preferred_element_type=f32)
    logits = acc + bc_ref[...]

    # ---- softmax (torch.nn.Softmax() on 2-D => dim=1), exact division ----
    m = jnp.max(logits, axis=-1, keepdims=True)
    e = jnp.exp(logits - m)
    out_ref[...] = e / jnp.sum(e, axis=-1, keepdims=True)


# --------------------------- parameter handling ---------------------------

def init_params(key):
    """Random parameters in PyTorch layouts: conv (O,I,KH,KW), linear (out,in)."""
    ks = jax.random.split(key, 10)

    def uni(k, shape, fan_in):
        bound = 1.0 / (fan_in ** 0.5)
        return jax.random.uniform(k, shape, jnp.float32, -bound, bound)

    return {
        "conv1_w": uni(ks[0], (C1, 1, K1, K1), 1 * K1 * K1),
        "conv1_b": uni(ks[1], (C1,), 1 * K1 * K1),
        "conv2_w": uni(ks[2], (C2, C1, K2, K2), C1 * K2 * K2),
        "conv2_b": uni(ks[3], (C2,), C1 * K2 * K2),
        "fc1_w": uni(ks[4], (HID1, H * W * C2), H * W * C2),
        "fc1_b": uni(ks[5], (HID1,), H * W * C2),
        "fc2_w": uni(ks[6], (HID2, HID1), HID1),
        "fc2_b": uni(ks[7], (HID2,), HID1),
        "fc3_w": uni(ks[8], (NOUT, HID2), HID2),
        "fc3_b": uni(ks[9], (NOUT,), HID2),
    }


def _banded_conv_weight(w_oikk, pad):
    """(Cout,Cin,K,K) torch conv weight -> (K, W*Cin, W*Cout) banded matrices.

    band[kh, j_in*Cin + ci, j_out*Cout + co] = w[co, ci, kh, j_in - j_out + pad]
    when that tap index is in [0, K) (zero otherwise), so for every row offset
    kh the conv is a single lane-dense MXU matmul that contracts width and
    input channels simultaneously.  Width "same"-padding is folded into the
    zero band structure; only height padding is done at runtime.
    """
    cout, cin, k, _ = w_oikk.shape
    w_k = jnp.transpose(w_oikk, (2, 3, 1, 0))                 # (kh, kw, ci, co)
    j_in = jnp.arange(W)[:, None]
    j_out = jnp.arange(W)[None, :]
    kw = j_in - j_out + pad                                   # (W, W)
    valid = (kw >= 0) & (kw < k)
    vals = w_k[:, jnp.clip(kw, 0, k - 1), :, :]               # (k, W, W, ci, co)
    vals = jnp.where(valid[None, :, :, None, None], vals, 0.0)
    return jnp.transpose(vals, (0, 1, 3, 2, 4)).reshape(k, W * cin, W * cout)


def prepare_params(p):
    """One-time (offline) repacking of torch-layout params into kernel layout."""
    # torch flattens conv2 output as (c, h, w); kernel rows are per-h with
    # lane = w*C2 + c -> permute fc1's input axis to (h, w, c) order.
    fc1w_hwc = jnp.transpose(p["fc1_w"].reshape(HID1, C2, H, W),
                             (2, 3, 1, 0)).reshape(H, W * C2, HID1)
    # Fold fc1 -> fc2 -> fc3 into one affine map (no nonlinearity in between;
    # dropout is identity in eval mode).
    w23 = p["fc2_w"].T @ p["fc3_w"].T                                   # (100, 2)
    wc = (fc1w_hwc.reshape(H * W * C2, HID1) @ w23).reshape(H, W * C2, NOUT)
    bc = (p["fc1_b"] @ p["fc2_w"].T + p["fc2_b"]) @ p["fc3_w"].T + p["fc3_b"]
    return {
        "w1b": _banded_conv_weight(p["conv1_w"], P1),              # (3, 20, 80)
        "b1": jnp.tile(p["conv1_b"], W).reshape(1, W * C1),        # lane = w*4 + co
        "w2b": _banded_conv_weight(p["conv2_w"], P2),              # (5, 80, 160)
        "b2": jnp.tile(p["conv2_b"], W).reshape(1, W * C2),        # lane = w*8 + co
        "wc": wc,                                                  # (20, 160, 2)
        "bc": bc.reshape(1, NOUT),
    }


# --------------------------------- forward ---------------------------------

@jax.jit
def cnn_dvn_forward(x_nchw, kp):
    """x_nchw: (B, 1, 20, 20) float32 -> softmax probabilities (B, 2)."""
    b = x_nchw.shape[0]
    n_t = pl.cdiv(b, TB)
    b_pad = n_t * TB
    x = x_nchw.reshape(b, H, W)
    if b_pad != b:
        x = jnp.pad(x, ((0, b_pad - b), (0, 0), (0, 0)))
    # pack each batch tile to rows (h*TB + b), lane = w: batch sits on the
    # 8-aligned sublane axis so the kernel needs no reshapes/transposes.
    xp = x.reshape(n_t, TB, H, W).transpose(0, 2, 1, 3).reshape(n_t, H * TB, W)

    kernel = functools.partial(_cnn_dvn_kernel, tb=TB)
    out = pl.pallas_call(
        kernel,
        out_shape=jax.ShapeDtypeStruct((b_pad, NOUT), jnp.float32),
        grid=(n_t,),
        in_specs=[
            pl.BlockSpec((1, H * TB, W), lambda i: (i, 0, 0)),          # x batch tile
            pl.BlockSpec((K1, W, W * C1), lambda i: (0, 0, 0)),         # banded conv1 w
            pl.BlockSpec((1, W * C1), lambda i: (0, 0)),                # conv1 bias
            pl.BlockSpec((K2, W * C1, W * C2), lambda i: (0, 0, 0)),    # banded conv2 w
            pl.BlockSpec((1, W * C2), lambda i: (0, 0)),                # conv2 bias
            pl.BlockSpec((H, W * C2, NOUT), lambda i: (0, 0, 0)),       # folded fc weight
            pl.BlockSpec((1, NOUT), lambda i: (0, 0)),                  # folded fc bias
        ],
        out_specs=pl.BlockSpec((TB, NOUT), lambda i: (i, 0)),
        scratch_shapes=[
            pltpu.VMEM(((H + 2 * P1) * TB, W), jnp.float32),        # conv1 h-padded input
            pltpu.VMEM(((H + 2 * P2) * TB, W * C1), jnp.float32),   # conv2 h-padded input
            pltpu.VMEM((H * TB, W * C2), jnp.float32),              # conv2 output
        ],
        compiler_params=pltpu.CompilerParams(
            dimension_semantics=("parallel",)),
    )(xp, kp["w1b"], kp["b1"], kp["w2b"], kp["b2"], kp["wc"], kp["bc"])
    return out[:b]


# -------------------------- pure-JAX reference -----------------------------

def _reference_forward(x_nchw, p):
    y = jax.lax.conv_general_dilated(
        x_nchw, p["conv1_w"], window_strides=(1, 1),
        padding=((P1, P1), (P1, P1)), dimension_numbers=("NCHW", "OIHW", "NCHW"))
    y = jnp.maximum(y + p["conv1_b"][None, :, None, None], 0.0)
    y = jax.lax.conv_general_dilated(
        y, p["conv2_w"], window_strides=(1, 1),
        padding=((P2, P2), (P2, P2)), dimension_numbers=("NCHW", "OIHW", "NCHW"))
    y = jnp.maximum(y + p["conv2_b"][None, :, None, None], 0.0)
    y = y.reshape(y.shape[0], -1)                # torch CHW flatten order
    y = y @ p["fc1_w"].T + p["fc1_b"]            # dropout = identity (eval)
    y = y @ p["fc2_w"].T + p["fc2_b"]
    y = y @ p["fc3_w"].T + p["fc3_b"]
    return jax.nn.softmax(y, axis=-1)


if __name__ == "__main__":
    key = jax.random.PRNGKey(0)
    k_x, k_p = jax.random.split(key)
    x = jax.random.normal(k_x, (2, 1, H, W), dtype=jnp.float32)

    params = init_params(k_p)
    kparams = prepare_params(params)             # one-time offline weight repack/fold

    out = jax.block_until_ready(cnn_dvn_forward(x, kparams))

    assert out.shape == (2, NOUT), out.shape
    assert bool(jnp.all(jnp.isfinite(out)))
    # exact softmax division -> rows sum to ~1
    assert bool(jnp.all(jnp.abs(jnp.sum(out, axis=-1) - 1.0) < 1e-3))

    # validate against the pure-JAX/XLA reference of the torch module
    ref = jax.block_until_ready(_reference_forward(x, params))
    max_err = float(jnp.max(jnp.abs(out - ref)))
    assert max_err < 2e-2, f"mismatch vs reference: max abs err = {max_err}"

    print("KERNEL_OK")
</pallas_src>

<mosaic_0001>
module attributes {stable_mosaic.version = 11 : i64} {
  func.func @_cnn_dvn_kernel(%arg0: i32, %arg1: memref<1x320x20xf32, #tpu.memory_space<vmem>>, %arg2: memref<3x20x80xf32, #tpu.memory_space<vmem>>, %arg3: memref<1x80xf32, #tpu.memory_space<vmem>>, %arg4: memref<5x80x160xf32, #tpu.memory_space<vmem>>, %arg5: memref<1x160xf32, #tpu.memory_space<vmem>>, %arg6: memref<20x160x2xf32, #tpu.memory_space<vmem>>, %arg7: memref<1x2xf32, #tpu.memory_space<vmem>>, %arg8: memref<16x2xf32, #tpu.memory_space<vmem>>, %arg9: memref<352x20xf32, #tpu.memory_space<vmem>>, %arg10: memref<384x80xf32, #tpu.memory_space<vmem>>, %arg11: memref<320x160xf32, #tpu.memory_space<vmem>>) attributes {dimension_semantics = [#tpu.dimension_semantics<parallel>], iteration_bounds = array<i64: 1>, scalar_prefetch = 0 : i64, scratch_operands = 3 : i64, tpu.core_type = #tpu.core_type<tc>, window_params = [{transform_indices = @transform_0, window_bounds = array<i64: 1, 320, 20>}, {pipeline_mode = #tpu.pipeline_mode<synchronous>, transform_indices = @transform_1, window_bounds = array<i64: 3, 20, 80>}, {pipeline_mode = #tpu.pipeline_mode<synchronous>, transform_indices = @transform_2, window_bounds = array<i64: 1, 80>}, {pipeline_mode = #tpu.pipeline_mode<synchronous>, transform_indices = @transform_3, window_bounds = array<i64: 5, 80, 160>}, {pipeline_mode = #tpu.pipeline_mode<synchronous>, transform_indices = @transform_4, window_bounds = array<i64: 1, 160>}, {pipeline_mode = #tpu.pipeline_mode<synchronous>, transform_indices = @transform_5, window_bounds = array<i64: 20, 160, 2>}, {pipeline_mode = #tpu.pipeline_mode<synchronous>, transform_indices = @transform_6, window_bounds = array<i64: 1, 2>}, {transform_indices = @transform_7, window_bounds = array<i64: 16, 2>}]} {
    %cst = arith.constant 0.000000e+00 : f32
    %0 = vector.broadcast %cst : f32 to vector<16x20xf32>
    %c0 = arith.constant 0 : index
    %c0_0 = arith.constant 0 : index
    %1 = vector.load %arg9[%c0, %c0_0] : memref<352x20xf32, #tpu.memory_space<vmem>>, vector<16x20xf32>
    tpu.vector_store %arg9[%c0, %c0_0], %0 {strides = array<i32>} : memref<352x20xf32, #tpu.memory_space<vmem>>, vector<16x20xf32>,
    %cst_1 = arith.constant 0.000000e+00 : f32
    %2 = vector.broadcast %cst_1 : f32 to vector<16x20xf32>
    %c336 = arith.constant 336 : index
    %c0_2 = arith.constant 0 : index
    %3 = vector.load %arg9[%c336, %c0_2] : memref<352x20xf32, #tpu.memory_space<vmem>>, vector<16x20xf32>
    tpu.vector_store %arg9[%c336, %c0_2], %2 {strides = array<i32>} : memref<352x20xf32, #tpu.memory_space<vmem>>, vector<16x20xf32>,
    %c0_3 = arith.constant 0 : index
    %c0_4 = arith.constant 0 : index
    %c0_5 = arith.constant 0 : index
    %4 = vector.load %arg1[%c0_3, %c0_4, %c0_5] : memref<1x320x20xf32, #tpu.memory_space<vmem>>, vector<1x320x20xf32>
    %5 = vector.shape_cast %4 : vector<1x320x20xf32> to vector<320x20xf32>
    %c16 = arith.constant 16 : index
    %c0_6 = arith.constant 0 : index
    %6 = vector.load %arg9[%c16, %c0_6] : memref<352x20xf32, #tpu.memory_space<vmem>>, vector<320x20xf32>
    tpu.vector_store %arg9[%c16, %c0_6], %5 {strides = array<i32>} : memref<352x20xf32, #tpu.memory_space<vmem>>, vector<320x20xf32>,
    %cst_7 = arith.constant 0.000000e+00 : f32
    %7 = vector.broadcast %cst_7 : f32 to vector<32x80xf32>
    %c0_8 = arith.constant 0 : index
    %c0_9 = arith.constant 0 : index
    %8 = vector.load %arg10[%c0_8, %c0_9] : memref<384x80xf32, #tpu.memory_space<vmem>>, vector<32x80xf32>
    tpu.vector_store %arg10[%c0_8, %c0_9], %7 {strides = array<i32>} : memref<384x80xf32, #tpu.memory_space<vmem>>, vector<32x80xf32>,
    %cst_10 = arith.constant 0.000000e+00 : f32
    %9 = vector.broadcast %cst_10 : f32 to vector<32x80xf32>
    %c352 = arith.constant 352 : index
    %c0_11 = arith.constant 0 : index
    %10 = vector.load %arg10[%c352, %c0_11] : memref<384x80xf32, #tpu.memory_space<vmem>>, vector<32x80xf32>
    tpu.vector_store %arg10[%c352, %c0_11], %9 {strides = array<i32>} : memref<384x80xf32, #tpu.memory_space<vmem>>, vector<32x80xf32>,
    %c0_12 = arith.constant 0 : index
    %c0_13 = arith.constant 0 : index
    %11 = vector.load %arg9[%c0_12, %c0_13] : memref<352x20xf32, #tpu.memory_space<vmem>>, vector<320x20xf32>
    %c0_14 = arith.constant 0 : index
    %c0_15 = arith.constant 0 : index
    %c0_16 = arith.constant 0 : index
    %12 = vector.load %arg2[%c0_14, %c0_15, %c0_16] : memref<3x20x80xf32, #tpu.memory_space<vmem>>, vector<1x20x80xf32>
    %13 = vector.shape_cast %12 : vector<1x20x80xf32> to vector<20x80xf32>
    %cst_17 = arith.constant dense<0.000000e+00> : vector<320x80xf32>
    %14 = tpu.matmul %11, %13, %cst_17 {dimension_numbers = #tpu.dot_dimension_numbers<[1], [0], [0], [1], [0, 0, 1, 1], [], []>} : vector<320x20xf32>, vector<20x80xf32>, vector<320x80xf32> -> vector<320x80xf32>
    %c32 = arith.constant 32 : index
    %c0_18 = arith.constant 0 : index
    %15 = vector.load %arg10[%c32, %c0_18] : memref<384x80xf32, #tpu.memory_space<vmem>>, vector<320x80xf32>
    tpu.vector_store %arg10[%c32, %c0_18], %14 {strides = array<i32>} : memref<384x80xf32, #tpu.memory_space<vmem>>, vector<320x80xf32>,
    %c32_19 = arith.constant 32 : index
    %c0_20 = arith.constant 0 : index
    %16 = vector.load %arg10[%c32_19, %c0_20] : memref<384x80xf32, #tpu.memory_space<vmem>>, vector<320x80xf32>
    %c16_21 = arith.constant 16 : index
    %c0_22 = arith.constant 0 : index
    %17 = vector.load %arg9[%c16_21, %c0_22] : memref<352x20xf32, #tpu.memory_space<vmem>>, vector<320x20xf32>
    %c1 = arith.constant 1 : index
    %c0_23 = arith.constant 0 : index
    %c0_24 = arith.constant 0 : index
    %18 = vector.load %arg2[%c1, %c0_23, %c0_24] : memref<3x20x80xf32, #tpu.memory_space<vmem>>, vector<1x20x80xf32>
    %19 = vector.shape_cast %18 : vector<1x20x80xf32> to vector<20x80xf32>
    %cst_25 = arith.constant dense<0.000000e+00> : vector<320x80xf32>
    %20 = tpu.matmul %17, %19, %cst_25 {dimension_numbers = #tpu.dot_dimension_numbers<[1], [0], [0], [1], [0, 0, 1, 1], [], []>} : vector<320x20xf32>, vector<20x80xf32>, vector<320x80xf32> -> vector<320x80xf32>
    %21 = arith.addf %16, %20 : vector<320x80xf32>
    %c32_26 = arith.constant 32 : index
    %c0_27 = arith.constant 0 : index
    %22 = vector.load %arg10[%c32_26, %c0_27] : memref<384x80xf32, #tpu.memory_space<vmem>>, vector<320x80xf32>
    tpu.vector_store %arg10[%c32_26, %c0_27], %21 {strides = array<i32>} : memref<384x80xf32, #tpu.memory_space<vmem>>, vector<320x80xf32>,
    %c32_28 = arith.constant 32 : index
    %c0_29 = arith.constant 0 : index
    %23 = vector.load %arg10[%c32_28, %c0_29] : memref<384x80xf32, #tpu.memory_space<vmem>>, vector<320x80xf32>
    %c32_30 = arith.constant 32 : index
    %c0_31 = arith.constant 0 : index
    %24 = vector.load %arg9[%c32_30, %c0_31] : memref<352x20xf32, #tpu.memory_space<vmem>>, vector<320x20xf32>
    %c2 = arith.constant 2 : index
    %c0_32 = arith.constant 0 : index
    %c0_33 = arith.constant 0 : index
    %25 = vector.load %arg2[%c2, %c0_32, %c0_33] : memref<3x20x80xf32, #tpu.memory_space<vmem>>, vector<1x20x80xf32>
    %26 = vector.shape_cast %25 : vector<1x20x80xf32> to vector<20x80xf32>
    %cst_34 = arith.constant dense<0.000000e+00> : vector<320x80xf32>
    %27 = tpu.matmul %24, %26, %cst_34 {dimension_numbers = #tpu.dot_dimension_numbers<[1], [0], [0], [1], [0, 0, 1, 1], [], []>} : vector<320x20xf32>, vector<20x80xf32>, vector<320x80xf32> -> vector<320x80xf32>
    %28 = arith.addf %23, %27 : vector<320x80xf32>
    %c32_35 = arith.constant 32 : index
    %c0_36 = arith.constant 0 : index
    %29 = vector.load %arg10[%c32_35, %c0_36] : memref<384x80xf32, #tpu.memory_space<vmem>>, vector<320x80xf32>
    tpu.vector_store %arg10[%c32_35, %c0_36], %28 {strides = array<i32>} : memref<384x80xf32, #tpu.memory_space<vmem>>, vector<320x80xf32>,
    %c32_37 = arith.constant 32 : index
    %c0_38 = arith.constant 0 : index
    %30 = vector.load %arg10[%c32_37, %c0_38] : memref<384x80xf32, #tpu.memory_space<vmem>>, vector<320x80xf32>
    %c0_39 = arith.constant 0 : index
    %c0_40 = arith.constant 0 : index
    %31 = vector.load %arg3[%c0_39, %c0_40] : memref<1x80xf32, #tpu.memory_space<vmem>>, vector<1x80xf32>
    %32 = vector.broadcast %31 : vector<1x80xf32> to vector<320x80xf32>
    %33 = arith.addf %30, %32 : vector<320x80xf32>
    %cst_41 = arith.constant 0.000000e+00 : f32
    %34 = vector.broadcast %cst_41 : f32 to vector<320x80xf32>
    %35 = arith.maximumf %33, %34 : vector<320x80xf32>
    %c32_42 = arith.constant 32 : index
    %c0_43 = arith.constant 0 : index
    %36 = vector.load %arg10[%c32_42, %c0_43] : memref<384x80xf32, #tpu.memory_space<vmem>>, vector<320x80xf32>
    tpu.vector_store %arg10[%c32_42, %c0_43], %35 {strides = array<i32>} : memref<384x80xf32, #tpu.memory_space<vmem>>, vector<320x80xf32>,
    %c0_44 = arith.constant 0 : index
    %c0_45 = arith.constant 0 : index
    %37 = vector.load %arg10[%c0_44, %c0_45] : memref<384x80xf32, #tpu.memory_space<vmem>>, vector<320x80xf32>
    %c0_46 = arith.constant 0 : index
    %c0_47 = arith.constant 0 : index
    %c0_48 = arith.constant 0 : index
    %38 = vector.load %arg4[%c0_46, %c0_47, %c0_48] : memref<5x80x160xf32, #tpu.memory_space<vmem>>, vector<1x80x160xf32>
    %39 = vector.shape_cast %38 : vector<1x80x160xf32> to vector<80x160xf32>
    %cst_49 = arith.constant dense<0.000000e+00> : vector<320x160xf32>
    %40 = tpu.matmul %37, %39, %cst_49 {dimension_numbers = #tpu.dot_dimension_numbers<[1], [0], [0], [1], [0, 0, 1, 1], [], []>} : vector<320x80xf32>, vector<80x160xf32>, vector<320x160xf32> -> vector<320x160xf32>
    %c0_50 = arith.constant 0 : index
    %c0_51 = arith.constant 0 : index
    %41 = vector.load %arg11[%c0_50, %c0_51] : memref<320x160xf32, #tpu.memory_space<vmem>>, vector<320x160xf32>
    tpu.vector_store %arg11[%c0_50, %c0_51], %40 {strides = array<i32>} : memref<320x160xf32, #tpu.memory_space<vmem>>, vector<320x160xf32>,
    %c0_52 = arith.constant 0 : index
    %c0_53 = arith.constant 0 : index
    %42 = vector.load %arg11[%c0_52, %c0_53] : memref<320x160xf32, #tpu.memory_space<vmem>>, vector<320x160xf32>
    %c16_54 = arith.constant 16 : index
    %c0_55 = arith.constant 0 : index
    %43 = vector.load %arg10[%c16_54, %c0_55] : memref<384x80xf32, #tpu.memory_space<vmem>>, vector<320x80xf32>
    %c1_56 = arith.constant 1 : index
    %c0_57 = arith.constant 0 : index
    %c0_58 = arith.constant 0 : index
    %44 = vector.load %arg4[%c1_56, %c0_57, %c0_58] : memref<5x80x160xf32, #tpu.memory_space<vmem>>, vector<1x80x160xf32>
    %45 = vector.shape_cast %44 : vector<1x80x160xf32> to vector<80x160xf32>
    %cst_59 = arith.constant dense<0.000000e+00> : vector<320x160xf32>
    %46 = tpu.matmul %43, %45, %cst_59 {dimension_numbers = #tpu.dot_dimension_numbers<[1], [0], [0], [1], [0, 0, 1, 1], [], []>} : vector<320x80xf32>, vector<80x160xf32>, vector<320x160xf32> -> vector<320x160xf32>
    %47 = arith.addf %42, %46 : vector<320x160xf32>
    %c0_60 = arith.constant 0 : index
    %c0_61 = arith.constant 0 : index
    %48 = vector.load %arg11[%c0_60, %c0_61] : memref<320x160xf32, #tpu.memory_space<vmem>>, vector<320x160xf32>
    tpu.vector_store %arg11[%c0_60, %c0_61], %47 {strides = array<i32>} : memref<320x160xf32, #tpu.memory_space<vmem>>, vector<320x160xf32>,
    %c0_62 = arith.constant 0 : index
    %c0_63 = arith.constant 0 : index
    %49 = vector.load %arg11[%c0_62, %c0_63] : memref<320x160xf32, #tpu.memory_space<vmem>>, vector<320x160xf32>
    %c32_64 = arith.constant 32 : index
    %c0_65 = arith.constant 0 : index
    %50 = vector.load %arg10[%c32_64, %c0_65] : memref<384x80xf32, #tpu.memory_space<vmem>>, vector<320x80xf32>
    %c2_66 = arith.constant 2 : index
    %c0_67 = arith.constant 0 : index
    %c0_68 = arith.constant 0 : index
    %51 = vector.load %arg4[%c2_66, %c0_67, %c0_68] : memref<5x80x160xf32, #tpu.memory_space<vmem>>, vector<1x80x160xf32>
    %52 = vector.shape_cast %51 : vector<1x80x160xf32> to vector<80x160xf32>
    %cst_69 = arith.constant dense<0.000000e+00> : vector<320x160xf32>
    %53 = tpu.matmul %50, %52, %cst_69 {dimension_numbers = #tpu.dot_dimension_numbers<[1], [0], [0], [1], [0, 0, 1, 1], [], []>} : vector<320x80xf32>, vector<80x160xf32>, vector<320x160xf32> -> vector<320x160xf32>
    %54 = arith.addf %49, %53 : vector<320x160xf32>
    %c0_70 = arith.constant 0 : index
    %c0_71 = arith.constant 0 : index
    %55 = vector.load %arg11[%c0_70, %c0_71] : memref<320x160xf32, #tpu.memory_space<vmem>>, vector<320x160xf32>
    tpu.vector_store %arg11[%c0_70, %c0_71], %54 {strides = array<i32>} : memref<320x160xf32, #tpu.memory_space<vmem>>, vector<320x160xf32>,
    %c0_72 = arith.constant 0 : index
    %c0_73 = arith.constant 0 : index
    %56 = vector.load %arg11[%c0_72, %c0_73] : memref<320x160xf32, #tpu.memory_space<vmem>>, vector<320x160xf32>
    %c48 = arith.constant 48 : index
    %c0_74 = arith.constant 0 : index
    %57 = vector.load %arg10[%c48, %c0_74] : memref<384x80xf32, #tpu.memory_space<vmem>>, vector<320x80xf32>
    %c3 = arith.constant 3 : index
    %c0_75 = arith.constant 0 : index
    %c0_76 = arith.constant 0 : index
    %58 = vector.load %arg4[%c3, %c0_75, %c0_76] : memref<5x80x160xf32, #tpu.memory_space<vmem>>, vector<1x80x160xf32>
    %59 = vector.shape_cast %58 : vector<1x80x160xf32> to vector<80x160xf32>
    %cst_77 = arith.constant dense<0.000000e+00> : vector<320x160xf32>
    %60 = tpu.matmul %57, %59, %cst_77 {dimension_numbers = #tpu.dot_dimension_numbers<[1], [0], [0], [1], [0, 0, 1, 1], [], []>} : vector<320x80xf32>, vector<80x160xf32>, vector<320x160xf32> -> vector<320x160xf32>
    %61 = arith.addf %56, %60 : vector<320x160xf32>
    %c0_78 = arith.constant 0 : index
    %c0_79 = arith.constant 0 : index
    %62 = vector.load %arg11[%c0_78, %c0_79] : memref<320x160xf32, #tpu.memory_space<vmem>>, vector<320x160xf32>
    tpu.vector_store %arg11[%c0_78, %c0_79], %61 {strides = array<i32>} : memref<320x160xf32, #tpu.memory_space<vmem>>, vector<320x160xf32>,
    %c0_80 = arith.constant 0 : index
    %c0_81 = arith.constant 0 : index
    %63 = vector.load %arg11[%c0_80, %c0_81] : memref<320x160xf32, #tpu.memory_space<vmem>>, vector<320x160xf32>
    %c64 = arith.constant 64 : index
    %c0_82 = arith.constant 0 : index
    %64 = vector.load %arg10[%c64, %c0_82] : memref<384x80xf32, #tpu.memory_space<vmem>>, vector<320x80xf32>
    %c4 = arith.constant 4 : index
    %c0_83 = arith.constant 0 : index
    %c0_84 = arith.constant 0 : index
    %65 = vector.load %arg4[%c4, %c0_83, %c0_84] : memref<5x80x160xf32, #tpu.memory_space<vmem>>, vector<1x80x160xf32>
    %66 = vector.shape_cast %65 : vector<1x80x160xf32> to vector<80x160xf32>
    %cst_85 = arith.constant dense<0.000000e+00> : vector<320x160xf32>
    %67 = tpu.matmul %64, %66, %cst_85 {dimension_numbers = #tpu.dot_dimension_numbers<[1], [0], [0], [1], [0, 0, 1, 1], [], []>} : vector<320x80xf32>, vector<80x160xf32>, vector<320x160xf32> -> vector<320x160xf32>
    %68 = arith.addf %63, %67 : vector<320x160xf32>
    %c0_86 = arith.constant 0 : index
    %c0_87 = arith.constant 0 : index
    %69 = vector.load %arg11[%c0_86, %c0_87] : memref<320x160xf32, #tpu.memory_space<vmem>>, vector<320x160xf32>
    tpu.vector_store %arg11[%c0_86, %c0_87], %68 {strides = array<i32>} : memref<320x160xf32, #tpu.memory_space<vmem>>, vector<320x160xf32>,
    %c0_88 = arith.constant 0 : index
    %c0_89 = arith.constant 0 : index
    %70 = vector.load %arg11[%c0_88, %c0_89] : memref<320x160xf32, #tpu.memory_space<vmem>>, vector<320x160xf32>
    %c0_90 = arith.constant 0 : index
    %c0_91 = arith.constant 0 : index
    %71 = vector.load %arg5[%c0_90, %c0_91] : memref<1x160xf32, #tpu.memory_space<vmem>>, vector<1x160xf32>
    %72 = vector.broadcast %71 : vector<1x160xf32> to vector<320x160xf32>
    %73 = arith.addf %70, %72 : vector<320x160xf32>
    %cst_92 = arith.constant 0.000000e+00 : f32
    %74 = vector.broadcast %cst_92 : f32 to vector<320x160xf32>
    %75 = arith.maximumf %73, %74 : vector<320x160xf32>
    %c0_93 = arith.constant 0 : index
    %c0_94 = arith.constant 0 : index
    %76 = vector.load %arg11[%c0_93, %c0_94] : memref<320x160xf32, #tpu.memory_space<vmem>>, vector<320x160xf32>
    tpu.vector_store %arg11[%c0_93, %c0_94], %75 {strides = array<i32>} : memref<320x160xf32, #tpu.memory_space<vmem>>, vector<320x160xf32>,
    %cst_95 = arith.constant 0.000000e+00 : f32
    %77 = vector.broadcast %cst_95 : f32 to vector<16x2xf32>
    %c0_96 = arith.constant 0 : index
    %c0_97 = arith.constant 0 : index
    %78 = vector.load %arg11[%c0_96, %c0_97] : memref<320x160xf32, #tpu.memory_space<vmem>>, vector<16x160xf32>
    %c0_98 = arith.constant 0 : index
    %c0_99 = arith.constant 0 : index
    %c0_100 = arith.constant 0 : index
    %79 = vector.load %arg6[%c0_98, %c0_99, %c0_100] : memref<20x160x2xf32, #tpu.memory_space<vmem>>, vector<1x160x2xf32>
    %80 = vector.shape_cast %79 : vector<1x160x2xf32> to vector<160x2xf32>
    %cst_101 = arith.constant dense<0.000000e+00> : vector<16x2xf32>
    %81 = tpu.matmul %78, %80, %cst_101 {dimension_numbers = #tpu.dot_dimension_numbers<[1], [0], [0], [1], [0, 0, 1, 1], [], []>} : vector<16x160xf32>, vector<160x2xf32>, vector<16x2xf32> -> vector<16x2xf32>
    %82 = arith.addf %77, %81 : vector<16x2xf32>
    %c16_102 = arith.constant 16 : index
    %c0_103 = arith.constant 0 : index
    %83 = vector.load %arg11[%c16_102, %c0_103] : memref<320x160xf32, #tpu.memory_space<vmem>>, vector<16x160xf32>
    %c1_104 = arith.constant 1 : index
    %c0_105 = arith.constant 0 : index
    %c0_106 = arith.constant 0 : index
    %84 = vector.load %arg6[%c1_104, %c0_105, %c0_106] : memref<20x160x2xf32, #tpu.memory_space<vmem>>, vector<1x160x2xf32>
    %85 = vector.shape_cast %84 : vector<1x160x2xf32> to vector<160x2xf32>
    %cst_107 = arith.constant dense<0.000000e+00> : vector<16x2xf32>
    %86 = tpu.matmul %83, %85, %cst_107 {dimension_numbers = #tpu.dot_dimension_numbers<[1], [0], [0], [1], [0, 0, 1, 1], [], []>} : vector<16x160xf32>, vector<160x2xf32>, vector<16x2xf32> -> vector<16x2xf32>
    %87 = arith.addf %82, %86 : vector<16x2xf32>
    %c32_108 = arith.constant 32 : index
    %c0_109 = arith.constant 0 : index
    %88 = vector.load %arg11[%c32_108, %c0_109] : memref<320x160xf32, #tpu.memory_space<vmem>>, vector<16x160xf32>
    %c2_110 = arith.constant 2 : index
    %c0_111 = arith.constant 0 : index
    %c0_112 = arith.constant 0 : index
    %89 = vector.load %arg6[%c2_110, %c0_111, %c0_112] : memref<20x160x2xf32, #tpu.memory_space<vmem>>, vector<1x160x2xf32>
    %90 = vector.shape_cast %89 : vector<1x160x2xf32> to vector<160x2xf32>
    %cst_113 = arith.constant dense<0.000000e+00> : vector<16x2xf32>
    %91 = tpu.matmul %88, %90, %cst_113 {dimension_numbers = #tpu.dot_dimension_numbers<[1], [0], [0], [1], [0, 0, 1, 1], [], []>} : vector<16x160xf32>, vector<160x2xf32>, vector<16x2xf32> -> vector<16x2xf32>
    %92 = arith.addf %87, %91 : vector<16x2xf32>
    %c48_114 = arith.constant 48 : index
    %c0_115 = arith.constant 0 : index
    %93 = vector.load %arg11[%c48_114, %c0_115] : memref<320x160xf32, #tpu.memory_space<vmem>>, vector<16x160xf32>
    %c3_116 = arith.constant 3 : index
    %c0_117 = arith.constant 0 : index
    %c0_118 = arith.constant 0 : index
    %94 = vector.load %arg6[%c3_116, %c0_117, %c0_118] : memref<20x160x2xf32, #tpu.memory_space<vmem>>, vector<1x160x2xf32>
    %95 = vector.shape_cast %94 : vector<1x160x2xf32> to vector<160x2xf32>
    %cst_119 = arith.constant dense<0.000000e+00> : vector<16x2xf32>
    %96 = tpu.matmul %93, %95, %cst_119 {dimension_numbers = #tpu.dot_dimension_numbers<[1], [0], [0], [1], [0, 0, 1, 1], [], []>} : vector<16x160xf32>, vector<160x2xf32>, vector<16x2xf32> -> vector<16x2xf32>
    %97 = arith.addf %92, %96 : vector<16x2xf32>
    %c64_120 = arith.constant 64 : index
    %c0_121 = arith.constant 0 : index
    %98 = vector.load %arg11[%c64_120, %c0_121] : memref<320x160xf32, #tpu.memory_space<vmem>>, vector<16x160xf32>
    %c4_122 = arith.constant 4 : index
    %c0_123 = arith.constant 0 : index
    %c0_124 = arith.constant 0 : index
    %99 = vector.load %arg6[%c4_122, %c0_123, %c0_124] : memref<20x160x2xf32, #tpu.memory_space<vmem>>, vector<1x160x2xf32>
    %100 = vector.shape_cast %99 : vector<1x160x2xf32> to vector<160x2xf32>
    %cst_125 = arith.constant dense<0.000000e+00> : vector<16x2xf32>
    %101 = tpu.matmul %98, %100, %cst_125 {dimension_numbers = #tpu.dot_dimension_numbers<[1], [0], [0], [1], [0, 0, 1, 1], [], []>} : vector<16x160xf32>, vector<160x2xf32>, vector<16x2xf32> -> vector<16x2xf32>
    %102 = arith.addf %97, %101 : vector<16x2xf32>
    %c80 = arith.constant 80 : index
    %c0_126 = arith.constant 0 : index
    %103 = vector.load %arg11[%c80, %c0_126] : memref<320x160xf32, #tpu.memory_space<vmem>>, vector<16x160xf32>
    %c5 = arith.constant 5 : index
    %c0_127 = arith.constant 0 : index
    %c0_128 = arith.constant 0 : index
    %104 = vector.load %arg6[%c5, %c0_127, %c0_128] : memref<20x160x2xf32, #tpu.memory_space<vmem>>, vector<1x160x2xf32>
    %105 = vector.shape_cast %104 : vector<1x160x2xf32> to vector<160x2xf32>
    %cst_129 = arith.constant dense<0.000000e+00> : vector<16x2xf32>
    %106 = tpu.matmul %103, %105, %cst_129 {dimension_numbers = #tpu.dot_dimension_numbers<[1], [0], [0], [1], [0, 0, 1, 1], [], []>} : vector<16x160xf32>, vector<160x2xf32>, vector<16x2xf32> -> vector<16x2xf32>
    %107 = arith.addf %102, %106 : vector<16x2xf32>
    %c96 = arith.constant 96 : index
    %c0_130 = arith.constant 0 : index
    %108 = vector.load %arg11[%c96, %c0_130] : memref<320x160xf32, #tpu.memory_space<vmem>>, vector<16x160xf32>
    %c6 = arith.constant 6 : index
    %c0_131 = arith.constant 0 : index
    %c0_132 = arith.constant 0 : index
    %109 = vector.load %arg6[%c6, %c0_131, %c0_132] : memref<20x160x2xf32, #tpu.memory_space<vmem>>, vector<1x160x2xf32>
    %110 = vector.shape_cast %109 : vector<1x160x2xf32> to vector<160x2xf32>
    %cst_133 = arith.constant dense<0.000000e+00> : vector<16x2xf32>
    %111 = tpu.matmul %108, %110, %cst_133 {dimension_numbers = #tpu.dot_dimension_numbers<[1], [0], [0], [1], [0, 0, 1, 1], [], []>} : vector<16x160xf32>, vector<160x2xf32>, vector<16x2xf32> -> vector<16x2xf32>
    %112 = arith.addf %107, %111 : vector<16x2xf32>
    %c112 = arith.constant 112 : index
    %c0_134 = arith.constant 0 : index
    %113 = vector.load %arg11[%c112, %c0_134] : memref<320x160xf32, #tpu.memory_space<vmem>>, vector<16x160xf32>
    %c7 = arith.constant 7 : index
    %c0_135 = arith.constant 0 : index
    %c0_136 = arith.constant 0 : index
    %114 = vector.load %arg6[%c7, %c0_135, %c0_136] : memref<20x160x2xf32, #tpu.memory_space<vmem>>, vector<1x160x2xf32>
    %115 = vector.shape_cast %114 : vector<1x160x2xf32> to vector<160x2xf32>
    %cst_137 = arith.constant dense<0.000000e+00> : vector<16x2xf32>
    %116 = tpu.matmul %113, %115, %cst_137 {dimension_numbers = #tpu.dot_dimension_numbers<[1], [0], [0], [1], [0, 0, 1, 1], [], []>} : vector<16x160xf32>, vector<160x2xf32>, vector<16x2xf32> -> vector<16x2xf32>
    %117 = arith.addf %112, %116 : vector<16x2xf32>
    %c128 = arith.constant 128 : index
    %c0_138 = arith.constant 0 : index
    %118 = vector.load %arg11[%c128, %c0_138] : memref<320x160xf32, #tpu.memory_space<vmem>>, vector<16x160xf32>
    %c8 = arith.constant 8 : index
    %c0_139 = arith.constant 0 : index
    %c0_140 = arith.constant 0 : index
    %119 = vector.load %arg6[%c8, %c0_139, %c0_140] : memref<20x160x2xf32, #tpu.memory_space<vmem>>, vector<1x160x2xf32>
    %120 = vector.shape_cast %119 : vector<1x160x2xf32> to vector<160x2xf32>
    %cst_141 = arith.constant dense<0.000000e+00> : vector<16x2xf32>
    %121 = tpu.matmul %118, %120, %cst_141 {dimension_numbers = #tpu.dot_dimension_numbers<[1], [0], [0], [1], [0, 0, 1, 1], [], []>} : vector<16x160xf32>, vector<160x2xf32>, vector<16x2xf32> -> vector<16x2xf32>
    %122 = arith.addf %117, %121 : vector<16x2xf32>
    %c144 = arith.constant 144 : index
    %c0_142 = arith.constant 0 : index
    %123 = vector.load %arg11[%c144, %c0_142] : memref<320x160xf32, #tpu.memory_space<vmem>>, vector<16x160xf32>
    %c9 = arith.constant 9 : index
    %c0_143 = arith.constant 0 : index
    %c0_144 = arith.constant 0 : index
    %124 = vector.load %arg6[%c9, %c0_143, %c0_144] : memref<20x160x2xf32, #tpu.memory_space<vmem>>, vector<1x160x2xf32>
    %125 = vector.shape_cast %124 : vector<1x160x2xf32> to vector<160x2xf32>
    %cst_145 = arith.constant dense<0.000000e+00> : vector<16x2xf32>
    %126 = tpu.matmul %123, %125, %cst_145 {dimension_numbers = #tpu.dot_dimension_numbers<[1], [0], [0], [1], [0, 0, 1, 1], [], []>} : vector<16x160xf32>, vector<160x2xf32>, vector<16x2xf32> -> vector<16x2xf32>
    %127 = arith.addf %122, %126 : vector<16x2xf32>
    %c160 = arith.constant 160 : index
    %c0_146 = arith.constant 0 : index
    %128 = vector.load %arg11[%c160, %c0_146] : memref<320x160xf32, #tpu.memory_space<vmem>>, vector<16x160xf32>
    %c10 = arith.constant 10 : index
    %c0_147 = arith.constant 0 : index
    %c0_148 = arith.constant 0 : index
    %129 = vector.load %arg6[%c10, %c0_147, %c0_148] : memref<20x160x2xf32, #tpu.memory_space<vmem>>, vector<1x160x2xf32>
    %130 = vector.shape_cast %129 : vector<1x160x2xf32> to vector<160x2xf32>
    %cst_149 = arith.constant dense<0.000000e+00> : vector<16x2xf32>
    %131 = tpu.matmul %128, %130, %cst_149 {dimension_numbers = #tpu.dot_dimension_numbers<[1], [0], [0], [1], [0, 0, 1, 1], [], []>} : vector<16x160xf32>, vector<160x2xf32>, vector<16x2xf32> -> vector<16x2xf32>
    %132 = arith.addf %127, %131 : vector<16x2xf32>
    %c176 = arith.constant 176 : index
    %c0_150 = arith.constant 0 : index
    %133 = vector.load %arg11[%c176, %c0_150] : memref<320x160xf32, #tpu.memory_space<vmem>>, vector<16x160xf32>
    %c11 = arith.constant 11 : index
    %c0_151 = arith.constant 0 : index
    %c0_152 = arith.constant 0 : index
    %134 = vector.load %arg6[%c11, %c0_151, %c0_152] : memref<20x160x2xf32, #tpu.memory_space<vmem>>, vector<1x160x2xf32>
    %135 = vector.shape_cast %134 : vector<1x160x2xf32> to vector<160x2xf32>
    %cst_153 = arith.constant dense<0.000000e+00> : vector<16x2xf32>
    %136 = tpu.matmul %133, %135, %cst_153 {dimension_numbers = #tpu.dot_dimension_numbers<[1], [0], [0], [1], [0, 0, 1, 1], [], []>} : vector<16x160xf32>, vector<160x2xf32>, vector<16x2xf32> -> vector<16x2xf32>
    %137 = arith.addf %132, %136 : vector<16x2xf32>
    %c192 = arith.constant 192 : index
    %c0_154 = arith.constant 0 : index
    %138 = vector.load %arg11[%c192, %c0_154] : memref<320x160xf32, #tpu.memory_space<vmem>>, vector<16x160xf32>
    %c12 = arith.constant 12 : index
    %c0_155 = arith.constant 0 : index
    %c0_156 = arith.constant 0 : index
    %139 = vector.load %arg6[%c12, %c0_155, %c0_156] : memref<20x160x2xf32, #tpu.memory_space<vmem>>, vector<1x160x2xf32>
    %140 = vector.shape_cast %139 : vector<1x160x2xf32> to vector<160x2xf32>
    %cst_157 = arith.constant dense<0.000000e+00> : vector<16x2xf32>
    %141 = tpu.matmul %138, %140, %cst_157 {dimension_numbers = #tpu.dot_dimension_numbers<[1], [0], [0], [1], [0, 0, 1, 1], [], []>} : vector<16x160xf32>, vector<160x2xf32>, vector<16x2xf32> -> vector<16x2xf32>
    %142 = arith.addf %137, %141 : vector<16x2xf32>
    %c208 = arith.constant 208 : index
    %c0_158 = arith.constant 0 : index
    %143 = vector.load %arg11[%c208, %c0_158] : memref<320x160xf32, #tpu.memory_space<vmem>>, vector<16x160xf32>
    %c13 = arith.constant 13 : index
    %c0_159 = arith.constant 0 : index
    %c0_160 = arith.constant 0 : index
    %144 = vector.load %arg6[%c13, %c0_159, %c0_160] : memref<20x160x2xf32, #tpu.memory_space<vmem>>, vector<1x160x2xf32>
    %145 = vector.shape_cast %144 : vector<1x160x2xf32> to vector<160x2xf32>
    %cst_161 = arith.constant dense<0.000000e+00> : vector<16x2xf32>
    %146 = tpu.matmul %143, %145, %cst_161 {dimension_numbers = #tpu.dot_dimension_numbers<[1], [0], [0], [1], [0, 0, 1, 1], [], []>} : vector<16x160xf32>, vector<160x2xf32>, vector<16x2xf32> -> vector<16x2xf32>
    %147 = arith.addf %142, %146 : vector<16x2xf32>
    %c224 = arith.constant 224 : index
    %c0_162 = arith.constant 0 : index
    %148 = vector.load %arg11[%c224, %c0_162] : memref<320x160xf32, #tpu.memory_space<vmem>>, vector<16x160xf32>
    %c14 = arith.constant 14 : index
    %c0_163 = arith.constant 0 : index
    %c0_164 = arith.constant 0 : index
    %149 = vector.load %arg6[%c14, %c0_163, %c0_164] : memref<20x160x2xf32, #tpu.memory_space<vmem>>, vector<1x160x2xf32>
    %150 = vector.shape_cast %149 : vector<1x160x2xf32> to vector<160x2xf32>
    %cst_165 = arith.constant dense<0.000000e+00> : vector<16x2xf32>
    %151 = tpu.matmul %148, %150, %cst_165 {dimension_numbers = #tpu.dot_dimension_numbers<[1], [0], [0], [1], [0, 0, 1, 1], [], []>} : vector<16x160xf32>, vector<160x2xf32>, vector<16x2xf32> -> vector<16x2xf32>
    %152 = arith.addf %147, %151 : vector<16x2xf32>
    %c240 = arith.constant 240 : index
    %c0_166 = arith.constant 0 : index
    %153 = vector.load %arg11[%c240, %c0_166] : memref<320x160xf32, #tpu.memory_space<vmem>>, vector<16x160xf32>
    %c15 = arith.constant 15 : index
    %c0_167 = arith.constant 0 : index
    %c0_168 = arith.constant 0 : index
    %154 = vector.load %arg6[%c15, %c0_167, %c0_168] : memref<20x160x2xf32, #tpu.memory_space<vmem>>, vector<1x160x2xf32>
    %155 = vector.shape_cast %154 : vector<1x160x2xf32> to vector<160x2xf32>
    %cst_169 = arith.constant dense<0.000000e+00> : vector<16x2xf32>
    %156 = tpu.matmul %153, %155, %cst_169 {dimension_numbers = #tpu.dot_dimension_numbers<[1], [0], [0], [1], [0, 0, 1, 1], [], []>} : vector<16x160xf32>, vector<160x2xf32>, vector<16x2xf32> -> vector<16x2xf32>
    %157 = arith.addf %152, %156 : vector<16x2xf32>
    %c256 = arith.constant 256 : index
    %c0_170 = arith.constant 0 : index
    %158 = vector.load %arg11[%c256, %c0_170] : memref<320x160xf32, #tpu.memory_space<vmem>>, vector<16x160xf32>
    %c16_171 = arith.constant 16 : index
    %c0_172 = arith.constant 0 : index
    %c0_173 = arith.constant 0 : index
    %159 = vector.load %arg6[%c16_171, %c0_172, %c0_173] : memref<20x160x2xf32, #tpu.memory_space<vmem>>, vector<1x160x2xf32>
    %160 = vector.shape_cast %159 : vector<1x160x2xf32> to vector<160x2xf32>
    %cst_174 = arith.constant dense<0.000000e+00> : vector<16x2xf32>
    %161 = tpu.matmul %158, %160, %cst_174 {dimension_numbers = #tpu.dot_dimension_numbers<[1], [0], [0], [1], [0, 0, 1, 1], [], []>} : vector<16x160xf32>, vector<160x2xf32>, vector<16x2xf32> -> vector<16x2xf32>
    %162 = arith.addf %157, %161 : vector<16x2xf32>
    %c272 = arith.constant 272 : index
    %c0_175 = arith.constant 0 : index
    %163 = vector.load %arg11[%c272, %c0_175] : memref<320x160xf32, #tpu.memory_space<vmem>>, vector<16x160xf32>
    %c17 = arith.constant 17 : index
    %c0_176 = arith.constant 0 : index
    %c0_177 = arith.constant 0 : index
    %164 = vector.load %arg6[%c17, %c0_176, %c0_177] : memref<20x160x2xf32, #tpu.memory_space<vmem>>, vector<1x160x2xf32>
    %165 = vector.shape_cast %164 : vector<1x160x2xf32> to vector<160x2xf32>
    %cst_178 = arith.constant dense<0.000000e+00> : vector<16x2xf32>
    %166 = tpu.matmul %163, %165, %cst_178 {dimension_numbers = #tpu.dot_dimension_numbers<[1], [0], [0], [1], [0, 0, 1, 1], [], []>} : vector<16x160xf32>, vector<160x2xf32>, vector<16x2xf32> -> vector<16x2xf32>
    %167 = arith.addf %162, %166 : vector<16x2xf32>
    %c288 = arith.constant 288 : index
    %c0_179 = arith.constant 0 : index
    %168 = vector.load %arg11[%c288, %c0_179] : memref<320x160xf32, #tpu.memory_space<vmem>>, vector<16x160xf32>
    %c18 = arith.constant 18 : index
    %c0_180 = arith.constant 0 : index
    %c0_181 = arith.constant 0 : index
    %169 = vector.load %arg6[%c18, %c0_180, %c0_181] : memref<20x160x2xf32, #tpu.memory_space<vmem>>, vector<1x160x2xf32>
    %170 = vector.shape_cast %169 : vector<1x160x2xf32> to vector<160x2xf32>
    %cst_182 = arith.constant dense<0.000000e+00> : vector<16x2xf32>
    %171 = tpu.matmul %168, %170, %cst_182 {dimension_numbers = #tpu.dot_dimension_numbers<[1], [0], [0], [1], [0, 0, 1, 1], [], []>} : vector<16x160xf32>, vector<160x2xf32>, vector<16x2xf32> -> vector<16x2xf32>
    %172 = arith.addf %167, %171 : vector<16x2xf32>
    %c304 = arith.constant 304 : index
    %c0_183 = arith.constant 0 : index
    %173 = vector.load %arg11[%c304, %c0_183] : memref<320x160xf32, #tpu.memory_space<vmem>>, vector<16x160xf32>
    %c19 = arith.constant 19 : index
    %c0_184 = arith.constant 0 : index
    %c0_185 = arith.constant 0 : index
    %174 = vector.load %arg6[%c19, %c0_184, %c0_185] : memref<20x160x2xf32, #tpu.memory_space<vmem>>, vector<1x160x2xf32>
    %175 = vector.shape_cast %174 : vector<1x160x2xf32> to vector<160x2xf32>
    %cst_186 = arith.constant dense<0.000000e+00> : vector<16x2xf32>
    %176 = tpu.matmul %173, %175, %cst_186 {dimension_numbers = #tpu.dot_dimension_numbers<[1], [0], [0], [1], [0, 0, 1, 1], [], []>} : vector<16x160xf32>, vector<160x2xf32>, vector<16x2xf32> -> vector<16x2xf32>
    %177 = arith.addf %172, %176 : vector<16x2xf32>
    %c0_187 = arith.constant 0 : index
    %c0_188 = arith.constant 0 : index
    %178 = vector.load %arg7[%c0_187, %c0_188] : memref<1x2xf32, #tpu.memory_space<vmem>>, vector<1x2xf32>
    %179 = vector.broadcast %178 : vector<1x2xf32> to vector<16x2xf32>
    %180 = arith.addf %177, %179 : vector<16x2xf32>
    %cst_189 = arith.constant dense<0xFF800000> : vector<16xf32>
    %181 = vector.multi_reduction <maximumf>, %180, %cst_189 [1] : vector<16x2xf32> to vector<16xf32>
    %182 = vector.shape_cast %181 : vector<16xf32> to vector<16x1xf32>
    %183 = vector.broadcast %182 : vector<16x1xf32> to vector<16x2xf32>
    %184 = arith.subf %180, %183 : vector<16x2xf32>
    %185 = math.exp %184 : vector<16x2xf32>
    %cst_190 = arith.constant dense<0.000000e+00> : vector<16xf32>
    %186 = vector.multi_reduction <add>, %185, %cst_190 [1] : vector<16x2xf32> to vector<16xf32>
    %187 = vector.shape_cast %186 : vector<16xf32> to vector<16x1xf32>
    %188 = vector.broadcast %187 : vector<16x1xf32> to vector<16x2xf32>
    %189 = arith.divf %185, %188 : vector<16x2xf32>
    %c0_191 = arith.constant 0 : index
    %c0_192 = arith.constant 0 : index
    %190 = vector.load %arg8[%c0_191, %c0_192] : memref<16x2xf32, #tpu.memory_space<vmem>>, vector<16x2xf32>
    tpu.vector_store %arg8[%c0_191, %c0_192], %189 {strides = array<i32>} : memref<16x2xf32, #tpu.memory_space<vmem>>, vector<16x2xf32>,
    return
  }
  func.func @transform_0(%arg0: i32) -> (i32, i32, i32) {
    %c0_i32 = arith.constant 0 : i32
    %c0_i32_0 = arith.constant 0 : i32
    %c0_i32_1 = arith.constant 0 : i32
    return %arg0, %c0_i32, %c0_i32_0 : i32, i32, i32
  }
  func.func @transform_1(%arg0: i32) -> (i32, i32, i32) {
    %c0_i32 = arith.constant 0 : i32
    %c0_i32_0 = arith.constant 0 : i32
    %c0_i32_1 = arith.constant 0 : i32
    %c0_i32_2 = arith.constant 0 : i32
    return %c0_i32, %c0_i32_0, %c0_i32_1 : i32, i32, i32
  }
  func.func @transform_2(%arg0: i32) -> (i32, i32) {
    %c0_i32 = arith.constant 0 : i32
    %c0_i32_0 = arith.constant 0 : i32
    %c0_i32_1 = arith.constant 0 : i32
    return %c0_i32, %c0_i32_0 : i32, i32
  }
  func.func @transform_3(%arg0: i32) -> (i32, i32, i32) {
    %c0_i32 = arith.constant 0 : i32
    %c0_i32_0 = arith.constant 0 : i32
    %c0_i32_1 = arith.constant 0 : i32
    %c0_i32_2 = arith.constant 0 : i32
    return %c0_i32, %c0_i32_0, %c0_i32_1 : i32, i32, i32
  }
  func.func @transform_4(%arg0: i32) -> (i32, i32) {
    %c0_i32 = arith.constant 0 : i32
    %c0_i32_0 = arith.constant 0 : i32
    %c0_i32_1 = arith.constant 0 : i32
    return %c0_i32, %c0_i32_0 : i32, i32
  }
  func.func @transform_5(%arg0: i32) -> (i32, i32, i32) {
    %c0_i32 = arith.constant 0 : i32
    %c0_i32_0 = arith.constant 0 : i32
    %c0_i32_1 = arith.constant 0 : i32
    %c0_i32_2 = arith.constant 0 : i32
    return %c0_i32, %c0_i32_0, %c0_i32_1 : i32, i32, i32
  }
  func.func @transform_6(%arg0: i32) -> (i32, i32) {
    %c0_i32 = arith.constant 0 : i32
    %c0_i32_0 = arith.constant 0 : i32
    %c0_i32_1 = arith.constant 0 : i32
    return %c0_i32, %c0_i32_0 : i32, i32
  }
  func.func @transform_7(%arg0: i32) -> (i32, i32) {
    %c0_i32 = arith.constant 0 : i32
    %c0_i32_0 = arith.constant 0 : i32
    return %arg0, %c0_i32 : i32, i32
  }
}

</mosaic_0001>

<bundles_post_ra>
// kernel: cnn_dvn_forward.1
= control target key start
LH: loop header
LB: loop body
LE: loop exit
PB: predicated region body
PF: predicated region fallthrough
CT: control target
= control target key end

     0   :  { %vm26_vm0 = vcmask 162816   ;;  %v9738_v3 = vmov 0.0   ;;  %vm283_vm1 = vcmask 1043456   ;;  %vm111_vm2 = vcmask 654336   ;;  %s13310_s1 = inlined_call_operand.vmem [shape: f32[3,20,80], index: 1, kind: input, shape index: {}]   ;;  %s13311_s0 = inlined_call_operand.vmem [shape: f32[1,320,20], index: 0, kind: input, shape index: {}]   ;;  %s13312_s3 = inlined_call_operand.vmem [shape: f32[5,80,160], index: 3, kind: input, shape index: {}]   ;;  %s13313_s2 = inlined_call_operand.vmem [shape: f32[1,80], index: 2, kind: input, shape index: {}]   ;;  %s13314_s5 = inlined_call_operand.vmem [shape: f32[20,160,2], index: 5, kind: input, shape index: {}]   ;;  %s13315_s4 = inlined_call_operand.vmem [shape: f32[1,160], index: 4, kind: input, shape index: {}]   ;;  %s13316_s6 = inlined_call_operand.vmem [shape: f32[1,2], index: 6, kind: input, shape index: {}]   ;;  %s13317_s7 = inlined_call_operand.vmem [shape: f32[16,2], index: 7, kind: output, shape index: {}]  }
   0x1   :  { %v160_v0 = vld [vmem:[%s13310_s1] sm:$0xff]  ;;  %v161_v1 = vld [vmem:[%s13310_s1 + $0x8] sm:$0xff]  ;;  %v162_v2 = vld [vmem:[%s13310_s1 + $0x10] sm:$0xf]  ;;  %27 = vst.msk [vmem:[#allocation2] sm:$0xff] %vm26_vm0, %v9738_v3  ;;  %vm2349_vm3 = vcmask 261120  }
   0x2   :  { %28 = vst.msk [vmem:[#allocation2 + $0x8] sm:$0xff] %vm26_vm0, %v9738_v3  ;;  %29 = vst.msk [vmem:[#allocation2 + $0x150] sm:$0xff] %vm26_vm0, %v9738_v3  ;;  %v9016_v4 = vpack.c.bf16 %v161_v1, %v160_v0  ;;  %v7943_v5 = vld [vmem:[%s13310_s1 + $0x30] sm:$0xff]  ;;  %v7944_v6 = vld [vmem:[%s13310_s1 + $0x38] sm:$0xff]  ;;  %vm7829_vm4 = vcmask 15360  }
   0x3   :  { %30 = vst.msk [vmem:[#allocation2 + $0x158] sm:$0xff] %vm26_vm0, %v9738_v3  ;;  %v7899_v7 = vld [vmem:[%s13310_s1 + $0x18] sm:$0xff]  ;;  %v7900_v8 = vld [vmem:[%s13310_s1 + $0x20] sm:$0xff]  ;;  %v32_v10 = vld [vmem:[%s13311_s0 + $0x8] sm:$0xff]  ;;  %v9024_v18 = vpack.c.bf16 %v7944_v6, %v7943_v5 }
   0x4   :  { %v31_v9 = vld [vmem:[%s13311_s0] sm:$0xff]  ;;  %9017 = vmatprep.subr.bf16.mxu0 %v9016_v4  ;;  %v9020_v11 = vpack.c.bf16 %v7900_v8, %v7899_v7  ;;  %72 = vst.msk [vmem:[#allocation2 + $0x18] sm:$0xff] %vm26_vm0, %v32_v10  ;;  %v7901_v12 = vld [vmem:[%s13310_s1 + $0x28] sm:$0xf]  ;;  %v33_v13 = vld [vmem:[%s13311_s0 + $0x10] sm:$0xff] }
   0x5   :  { %71 = vst.msk [vmem:[#allocation2 + $0x10] sm:$0xff] %vm26_vm0, %v31_v9  ;;  %v34_v14 = vld [vmem:[%s13311_s0 + $0x18] sm:$0xff]  ;;  %9019 = vmatpush3.bf16.msra.mxu0 %v9016_v4  ;;  %73 = vst.msk [vmem:[#allocation2 + $0x20] sm:$0xff] %vm26_vm0, %v33_v13  ;;  %v35_v15 = vld [vmem:[%s13311_s0 + $0x20] sm:$0xff] }
   0x6   :  { %74 = vst.msk [vmem:[#allocation2 + $0x28] sm:$0xff] %vm26_vm0, %v34_v14  ;;  %v36_v16 = vld [vmem:[%s13311_s0 + $0x28] sm:$0xff]  ;;  %v37_v17 = vld [vmem:[%s13311_s0 + $0x30] sm:$0xff]  ;;  %8822 = vmatprep.subr.msk.mxu0 %vm283_vm1, %v162_v2  ;;  %9021 = vmatprep.subr.bf16.mxu1 %v9020_v11  ;;  %75 = vst.msk [vmem:[#allocation2 + $0x30] sm:$0xff] %vm26_vm0, %v35_v15 }
   0x7   :  { %76 = vst.msk [vmem:[#allocation2 + $0x38] sm:$0xff] %vm26_vm0, %v36_v16  ;;  %77 = vst.msk [vmem:[#allocation2 + $0x40] sm:$0xff] %vm26_vm0, %v37_v17  ;;  %v38_v19 = vld [vmem:[%s13311_s0 + $0x38] sm:$0xff]  ;;  %v39_v20 = vld [vmem:[%s13311_s0 + $0x40] sm:$0xff]  ;;  %9023 = vmatpush3.bf16.msra.mxu1 %v9020_v11 }
   0x8   :  { %v40_v21 = vld [vmem:[%s13311_s0 + $0x48] sm:$0xff]  ;;  %78 = vst.msk [vmem:[#allocation2 + $0x48] sm:$0xff] %vm26_vm0, %v38_v19  ;;  %79 = vst.msk [vmem:[#allocation2 + $0x50] sm:$0xff] %vm26_vm0, %v39_v20  ;;  %v41_v22 = vld [vmem:[%s13311_s0 + $0x50] sm:$0xff]  ;;  %8888 = vmatprep.subr.msk.mxu1 %vm283_vm1, %v7901_v12 }
   0x9   :  { %80 = vst.msk [vmem:[#allocation2 + $0x58] sm:$0xff] %vm26_vm0, %v40_v21  ;;  %v42_v23 = vld [vmem:[%s13311_s0 + $0x58] sm:$0xff]  ;;  %v43_v24 = vld [vmem:[%s13311_s0 + $0x60] sm:$0xff]  ;;  %v120_v25 = vld [vmem:[#allocation2] sm:$0xff]  ;;  %8823 = vmatpush3.msk.msra.mxu0 %vm283_vm1, %v162_v2 }
   0xa   :  { %v121_v26 = vld [vmem:[#allocation2 + $0x8] sm:$0xff]  ;;  %81 = vst.msk [vmem:[#allocation2 + $0x60] sm:$0xff] %vm26_vm0, %v41_v22  ;;  %82 = vst.msk [vmem:[#allocation2 + $0x68] sm:$0xff] %vm26_vm0, %v42_v23  ;;  %v44_v27 = vld [vmem:[%s13311_s0 + $0x68] sm:$0xff]  ;;  %8824 = vmatprep.mubr.msk.f32.mxu0 %vm26_vm0, %v120_v25  ;;  %9025 = vmatprep.subr.bf16.mxu0 %v9024_v18 }
   0xb   :  { %83 = vst.msk [vmem:[#allocation2 + $0x70] sm:$0xff] %vm26_vm0, %v43_v24  ;;  %84 = vst.msk [vmem:[#allocation2 + $0x78] sm:$0xff] %vm26_vm0, %v44_v27  ;;  %v45_v28 = vld [vmem:[%s13311_s0 + $0x70] sm:$0xff]  ;;  %v46_v29 = vld [vmem:[%s13311_s0 + $0x78] sm:$0xff]  ;;  %8825 = vmatmul.mubr.msk.f32.vlgmr.msra.gmra.mrb[0].mxu0 %vm26_vm0, %v121_v26  ;;  %8889 = vmatpush3.msk.msra.mxu1 %vm283_vm1, %v7901_v12 }
   0xc   :  { %v47_v30 = vld [vmem:[%s13311_s0 + $0x80] sm:$0xff]  ;;  %85 = vst.msk [vmem:[#allocation2 + $0x80] sm:$0xff] %vm26_vm0, %v45_v28  ;;  %86 = vst.msk [vmem:[#allocation2 + $0x88] sm:$0xff] %vm26_vm0, %v46_v29  ;;  %v48_v31 = vld [vmem:[%s13311_s0 + $0x88] sm:$0xff]  ;;  %9027 = vmatpush3.bf16.msra.mxu0 %v9024_v18 }
   0xd   :  { %87 = vst.msk [vmem:[#allocation2 + $0x90] sm:$0xff] %vm26_vm0, %v47_v30  ;;  %v49_v32 = vld [vmem:[%s13311_s0 + $0x90] sm:$0xff]  ;;  %v50_v33 = vld [vmem:[%s13311_s0 + $0x98] sm:$0xff]  ;;  %v123_v35 = vld [vmem:[#allocation2 + $0x18] sm:$0xff] }
   0xe   :  { %v122_v34 = vld [vmem:[#allocation2 + $0x10] sm:$0xff]  ;;  %88 = vst.msk [vmem:[#allocation2 + $0x98] sm:$0xff] %vm26_vm0, %v48_v31  ;;  %89 = vst.msk [vmem:[#allocation2 + $0xa0] sm:$0xff] %vm26_vm0, %v49_v32  ;;  %v7945_v36 = vld [vmem:[%s13310_s1 + $0x40] sm:$0xf] }
   0xf   :  { %90 = vst.msk [vmem:[#allocation2 + $0xa8] sm:$0xff] %vm26_vm0, %v50_v33  ;;  %8827 = vmatprep.mubr.msk.f32.mxu0 %vm26_vm0, %v122_v34  ;;  %v9902_v37 = vld [vmem:[#allocation2 + $0x20] sm:$0xff]  ;;  %8890 = vmatprep.mubr.msk.f32.mxu1 %vm26_vm0, %v122_v34  ;;  %v51_v38 = vld [vmem:[%s13311_s0 + $0xa0] sm:$0xff]  ;;  %v9916_v39 = vld [vmem:[#allocation2 + $0x28] sm:$0xff] }
  0x10   :  { %8891 = vmatmul.mubr.msk.f32.vlgmr.msra.gmra.mrb[0].mxu1 %vm26_vm0, %v123_v35  ;;  %8954 = vmatprep.subr.msk.mxu0 %vm283_vm1, %v7945_v36  ;;  %91 = vst.msk [vmem:[#allocation2 + $0xb0] sm:$0xff] %vm26_vm0, %v51_v38  ;;  %v9919_v40 = vld [vmem:[#allocation2 + $0x30] sm:$0xff]  ;;  %v52_v41 = vld [vmem:[%s13311_s0 + $0xa8] sm:$0xff]  ;;  %v53_v42 = vld [vmem:[%s13311_s0 + $0xb0] sm:$0xff] }
  0x11   :  { %8828 = vmatmul.mubr.msk.f32.gmra.mrb[2].mxu0 %vm26_vm0, %v123_v35  ;;  %8893 = vmatprep.mubr.msk.f32.mxu1 %vm26_vm0, %v9902_v37  ;;  %92 = vst.msk [vmem:[#allocation2 + $0xb8] sm:$0xff] %vm26_vm0, %v52_v41  ;;  %93 = vst.msk [vmem:[#allocation2 + $0xc0] sm:$0xff] %vm26_vm0, %v53_v42  ;;  %v9933_v43 = vld [vmem:[#allocation2 + $0x38] sm:$0xff]  ;;  %v54_v44 = vld [vmem:[%s13311_s0 + $0xb8] sm:$0xff] }
  0x12   :  { %8830 = vmatprep.mubr.msk.f32.mxu0 %vm26_vm0, %v9902_v37  ;;  %8955 = vmatpush3.msk.msra.mxu0 %vm283_vm1, %v7945_v36  ;;  %v55_v45 = vld [vmem:[%s13311_s0 + $0xc0] sm:$0xff]  ;;  %v56_v46 = vld [vmem:[%s13311_s0 + $0xc8] sm:$0xff]  ;;  %94 = vst.msk [vmem:[#allocation2 + $0xc8] sm:$0xff] %vm26_vm0, %v54_v44  ;;  %v57_v48 = vld [vmem:[%s13311_s0 + $0xd0] sm:$0xff] }
  0x13   :  { %v9948_v47 = vld [vmem:[#allocation2 + $0x40] sm:$0xff]  ;;  %95 = vst.msk [vmem:[#allocation2 + $0xd0] sm:$0xff] %vm26_vm0, %v55_v45  ;;  %96 = vst.msk [vmem:[#allocation2 + $0xd8] sm:$0xff] %vm26_vm0, %v56_v46  ;;  %v58_v49 = vld [vmem:[%s13311_s0 + $0xd8] sm:$0xff] }
  0x14   :  { %8894 = vmatmul.mubr.msk.f32.gmra.mrb[2].mxu1 %vm26_vm0, %v9916_v39  ;;  %v9959_v50 = vld [vmem:[#allocation2 + $0x48] sm:$0xff]  ;;  %97 = vst.msk [vmem:[#allocation2 + $0xe0] sm:$0xff] %vm26_vm0, %v57_v48  ;;  %98 = vst.msk [vmem:[#allocation2 + $0xe8] sm:$0xff] %vm26_vm0, %v58_v49  ;;  %v59_v51 = vld [vmem:[%s13311_s0 + $0xe0] sm:$0xff] }
  0x15   :  { %8831 = vmatmul.mubr.msk.f32.gmra.mrb[4].mxu0 %vm26_vm0, %v9916_v39  ;;  %8896 = vmatprep.mubr.msk.f32.mxu1 %vm26_vm0, %v9919_v40  ;;  %v60_v52 = vld [vmem:[%s13311_s0 + $0xe8] sm:$0xff]  ;;  %v61_v53 = vld [vmem:[%s13311_s0 + $0xf0] sm:$0xff]  ;;  %99 = vst.msk [vmem:[#allocation2 + $0xf0] sm:$0xff] %vm26_vm0, %v59_v51  ;;  %v62_v54 = vld [vmem:[%s13311_s0 + $0xf8] sm:$0xff] }
  0x16   :  { %8833 = vmatprep.mubr.msk.f32.mxu0 %vm26_vm0, %v9919_v40  ;;  %100 = vst.msk [vmem:[#allocation2 + $0xf8] sm:$0xff] %vm26_vm0, %v60_v52  ;;  %101 = vst.msk [vmem:[#allocation2 + $0x100] sm:$0xff] %vm26_vm0, %v61_v53  ;;  %v63_v55 = vld [vmem:[%s13311_s0 + $0x100] sm:$0xff]  ;;  %v64_v56 = vld [vmem:[%s13311_s0 + $0x108] sm:$0xff] }
  0x17   :  { %102 = vst.msk [vmem:[#allocation2 + $0x108] sm:$0xff] %vm26_vm0, %v62_v54  ;;  %103 = vst.msk [vmem:[#allocation2 + $0x110] sm:$0xff] %vm26_vm0, %v63_v55  ;;  %v65_v57 = vld [vmem:[%s13311_s0 + $0x110] sm:$0xff]  ;;  %v66_v58 = vld [vmem:[%s13311_s0 + $0x118] sm:$0xff] }
  0x18   :  { %8897 = vmatmul.mubr.msk.f32.gmra.mrb[4].mxu1 %vm26_vm0, %v9933_v43  ;;  %104 = vst.msk [vmem:[#allocation2 + $0x118] sm:$0xff] %vm26_vm0, %v64_v56  ;;  %v67_v59 = vld [vmem:[%s13311_s0 + $0x120] sm:$0xff]  ;;  %v10004_v60 = vld [vmem:[#allocation2 + $0x50] sm:$0xff]  ;;  %105 = vst.msk [vmem:[#allocation2 + $0x120] sm:$0xff] %vm26_vm0, %v65_v57 }
  0x19   :  { %8834 = vmatmul.mubr.msk.f32.gmra.mrb[6].mxu0 %vm26_vm0, %v9933_v43  ;;  %8899 = vmatprep.mubr.msk.f32.mxu1 %vm26_vm0, %v9948_v47  ;;  %106 = vst.msk [vmem:[#allocation2 + $0x128] sm:$0xff] %vm26_vm0, %v66_v58  ;;  %107 = vst.msk [vmem:[#allocation2 + $0x130] sm:$0xff] %vm26_vm0, %v67_v59  ;;  %v68_v61 = vld [vmem:[%s13311_s0 + $0x128] sm:$0xff]  ;;  %v69_v62 = vld [vmem:[%s13311_s0 + $0x130] sm:$0xff] }
  0x1a   :  { %8836 = vmatprep.mubr.msk.f32.mxu0 %vm26_vm0, %v9948_v47  ;;  %108 = vst.msk [vmem:[#allocation2 + $0x138] sm:$0xff] %vm26_vm0, %v68_v61  ;;  %v70_v63 = vld [vmem:[%s13311_s0 + $0x138] sm:$0xff]  ;;  %109 = vst.msk [vmem:[#allocation2 + $0x140] sm:$0xff] %vm26_vm0, %v69_v62  ;;  %v10029_v0 = vld [vmem:[#allocation2 + $0x58] sm:$0xff] }
  0x1b   :  { %110 = vst.msk [vmem:[#allocation2 + $0x148] sm:$0xff] %vm26_vm0, %v70_v63  ;;  %v10031_v1 = vld [vmem:[#allocation2 + $0x60] sm:$0xff]  ;;  %v10041_v2 = vld [vmem:[#allocation2 + $0x68] sm:$0xff]  ;;  %v10043_v4 = vld [vmem:[#allocation2 + $0x70] sm:$0xff] }
  0x1c   :  { %8900 = vmatmul.mubr.msk.f32.gmra.mrb[6].mxu1 %vm26_vm0, %v9959_v50  ;;  %v10053_v5 = vld [vmem:[#allocation2 + $0x78] sm:$0xff]  ;;  %v10055_v6 = vld [vmem:[#allocation2 + $0x80] sm:$0xff]  ;;  %v10065_v7 = vld [vmem:[#allocation2 + $0x88] sm:$0xff]  ;;  %112 = vst.msk [vmem:[#allocation3] sm:$0xff] %vm111_vm2, %v9738_v3 }
  0x1d   :  { %8837 = vmatmul.mubr.msk.f32.gmra.mrb[8].mxu0 %vm26_vm0, %v9959_v50  ;;  %8902 = vmatprep.mubr.msk.f32.mxu1 %vm26_vm0, %v10004_v60  ;;  %113 = vst.msk [vmem:[#allocation3 + $0x8] sm:$0xff] %vm111_vm2, %v9738_v3  ;;  %114 = vst.msk [vmem:[#allocation3 + $0x10] sm:$0xff] %vm111_vm2, %v9738_v3  ;;  %v10083_v8 = vld [vmem:[#allocation2 + $0x90] sm:$0xff]  ;;  %v10093_v9 = vld [vmem:[#allocation2 + $0x98] sm:$0xff] }
  0x1e   :  { %8839 = vmatprep.mubr.msk.f32.mxu0 %vm26_vm0, %v10004_v60  ;;  %115 = vst.msk [vmem:[#allocation3 + $0x18] sm:$0xff] %vm111_vm2, %v9738_v3  ;;  %116 = vst.msk [vmem:[#allocation3 + $0x160] sm:$0xff] %vm111_vm2, %v9738_v3  ;;  %v10095_v10 = vld [vmem:[#allocation2 + $0xa0] sm:$0xff]  ;;  %v10105_v11 = vld [vmem:[#allocation2 + $0xa8] sm:$0xff] }
  0x1f   :  { %117 = vst.msk [vmem:[#allocation3 + $0x168] sm:$0xff] %vm111_vm2, %v9738_v3  ;;  %118 = vst.msk [vmem:[#allocation3 + $0x170] sm:$0xff] %vm111_vm2, %v9738_v3  ;;  %v10107_v12 = vld [vmem:[#allocation2 + $0xb0] sm:$0xff]  ;;  %v10117_v13 = vld [vmem:[#allocation2 + $0xb8] sm:$0xff] }
  0x20   :  { %8903 = vmatmul.mubr.msk.f32.gmra.mrb[8].mxu1 %vm26_vm0, %v10029_v0  ;;  %119 = vst.msk [vmem:[#allocation3 + $0x178] sm:$0xff] %vm111_vm2, %v9738_v3  ;;  %v10119_v14 = vld [vmem:[#allocation2 + $0xc0] sm:$0xff]  ;;  %v10129_v15 = vld [vmem:[#allocation2 + $0xc8] sm:$0xff]  ;;  %v10131_v16 = vld [vmem:[#allocation2 + $0xd0] sm:$0xff] }
  0x21   :  { %8840 = vmatmul.mubr.msk.f32.gmra.mrb[10].mxu0 %vm26_vm0, %v10029_v0  ;;  %8905 = vmatprep.mubr.msk.f32.mxu1 %vm26_vm0, %v10031_v1  ;;  %v10141_v17 = vld [vmem:[#allocation2 + $0xd8] sm:$0xff]  ;;  %v10143_v18 = vld [vmem:[#allocation2 + $0xe0] sm:$0xff]  ;;  %v10153_v19 = vld [vmem:[#allocation2 + $0xe8] sm:$0xff] }
  0x22   :  { %8842 = vmatprep.mubr.msk.f32.mxu0 %vm26_vm0, %v10031_v1  ;;  %v10155_v20 = vld [vmem:[#allocation2 + $0xf0] sm:$0xff]  ;;  %v10165_v21 = vld [vmem:[#allocation2 + $0xf8] sm:$0xff]  ;;  %v10167_v22 = vld [vmem:[#allocation2 + $0x100] sm:$0xff] }
  0x23   :  { %v10177_v23 = vld [vmem:[#allocation2 + $0x108] sm:$0xff]  ;;  %v10179_v24 = vld [vmem:[#allocation2 + $0x110] sm:$0xff]  ;;  %v10189_v25 = vld [vmem:[#allocation2 + $0x118] sm:$0xff] }
  0x24   :  { %8906 = vmatmul.mubr.msk.f32.gmra.mrb[10].mxu1 %vm26_vm0, %v10041_v2  ;;  %v10191_v26 = vld [vmem:[#allocation2 + $0x120] sm:$0xff]  ;;  %v10201_v27 = vld [vmem:[#allocation2 + $0x128] sm:$0xff]  ;;  %v10203_v28 = vld [vmem:[#allocation2 + $0x130] sm:$0xff] }
  0x25   :  { %8843 = vmatmul.mubr.msk.f32.gmra.mrb[12].mxu0 %vm26_vm0, %v10041_v2  ;;  %8908 = vmatprep.mubr.msk.f32.mxu1 %vm26_vm0, %v10043_v4  ;;  %v10213_v29 = vld [vmem:[#allocation2 + $0x138] sm:$0xff]  ;;  %v10215_v30 = vld [vmem:[#allocation2 + $0x140] sm:$0xff]  ;;  %v10223_v31 = vld [vmem:[#allocation2 + $0x148] sm:$0xff] }
  0x26   :  { %8845 = vmatprep.mubr.msk.f32.mxu0 %vm26_vm0, %v10043_v4  ;;  %v1904_v32 = vld [vmem:[%s13312_s3 + $0x8] sm:$0xff]  ;;  %v1906_v33 = vld [vmem:[%s13312_s3 + $0x18] sm:$0xff]  ;;  %v1903_v34 = vld [vmem:[%s13312_s3] sm:$0xff] }
  0x27   :  { %v9028_v35 = vpack.c.bf16 %v1906_v33, %v1904_v32  ;;  %v1905_v36 = vld [vmem:[%s13312_s3 + $0x10] sm:$0xff]  ;;  %v1908_v38 = vld [vmem:[%s13312_s3 + $0x28] sm:$0xff]  ;;  %v1907_v41 = vld [vmem:[%s13312_s3 + $0x20] sm:$0xff] }
  0x28   :  { %8909 = vmatmul.mubr.msk.f32.gmra.mrb[12].mxu1 %vm26_vm0, %v10053_v5  ;;  %v1909_v42 = vld [vmem:[%s13312_s3 + $0x30] sm:$0xff]  ;;  %v1912_v44 = vld [vmem:[%s13312_s3 + $0x48] sm:$0xff]  ;;  %v1914_v45 = vld [vmem:[%s13312_s3 + $0x58] sm:$0xff] }
  0x29   :  { %8846 = vmatmul.mubr.msk.f32.gmra.mrb[14].mxu0 %vm26_vm0, %v10053_v5  ;;  %8911 = vmatprep.mubr.msk.f32.mxu1 %vm26_vm0, %v10055_v6  ;;  %v9036_v46 = vpack.c.bf16 %v1914_v45, %v1912_v44  ;;  %v1913_v48 = vld [vmem:[%s13312_s3 + $0x50] sm:$0xff]  ;;  %v1918_v51 = vld [vmem:[%s13312_s3 + $0x78] sm:$0xff]  ;;  %v1915_v53 = vld [vmem:[%s13312_s3 + $0x60] sm:$0xff] }
  0x2a   :  { %8848 = vmatprep.mubr.msk.f32.mxu0 %vm26_vm0, %v10055_v6  ;;  %9029 = vmatprep.subr.bf16.mxu1 %v9028_v35  ;;  %v1917_v54 = vld [vmem:[%s13312_s3 + $0x70] sm:$0xff]  ;;  %v8029_v56 = vld [vmem:[%s13312_s3 + $0xa8] sm:$0xff]  ;;  %v8031_v57 = vld [vmem:[%s13312_s3 + $0xb8] sm:$0xff] }
  0x2b   :  { %v9042_v55 = vpack.c.bf16 %v1917_v54, %v1915_v53  ;;  %v9048_v58 = vpack.c.bf16 %v8031_v57, %v8029_v56  ;;  %v8028_v59 = vld [vmem:[%s13312_s3 + $0xa0] sm:$0xff]  ;;  %v1222_v61 = vld [vmem:[#allocation2 + $0x150] sm:$0xff]  ;;  %v8033_v63 = vld [vmem:[%s13312_s3 + $0xc8] sm:$0xff] }
  0x2c   :  { %8912 = vmatmul.mubr.msk.f32.gmra.mrb[14].mxu1 %vm26_vm0, %v10065_v7  ;;  %v1865_v32 = vld [vmem:[#allocation3 + $0x10] sm:$0xff]  ;;  %v1864_v33 = vld [vmem:[#allocation3 + $0x8] sm:$0xff]  ;;  %v8089_v35 = vld [vmem:[%s13312_s3 + $0x148] sm:$0xff] }
  0x2d   :  { %8849 = vmatmul.mubr.msk.f32.gmra.mrb[16].mxu0 %vm26_vm0, %v10065_v7  ;;  %8914 = vmatprep.mubr.msk.f32.mxu1 %vm26_vm0, %v10083_v8  ;;  %v8092_v54 = vld [vmem:[%s13312_s3 + $0x160] sm:$0xff] }
  0x2e   :  { %8851 = vmatprep.mubr.msk.f32.mxu0 %vm26_vm0, %v10083_v8  ;;  %9049 = vmatprep.subr.bf16.mxu0 %v9048_v58 }
  0x30   :  { %8915 = vmatmul.mubr.msk.f32.gmra.mrb[16].mxu1 %vm26_vm0, %v10093_v9 }
  0x31   :  { %8852 = vmatmul.mubr.msk.f32.gmra.mrb[18].mxu0 %vm26_vm0, %v10093_v9  ;;  %8917 = vmatprep.mubr.msk.f32.mxu1 %vm26_vm0, %v10095_v10 }
  0x32   :  { %8854 = vmatprep.mubr.msk.f32.mxu0 %vm26_vm0, %v10095_v10 }
  0x34   :  { %8918 = vmatmul.mubr.msk.f32.gmra.mrb[18].mxu1 %vm26_vm0, %v10105_v11 }
  0x35   :  { %8855 = vmatmul.mubr.msk.f32.gmra.mrb[20].mxu0 %vm26_vm0, %v10105_v11  ;;  %8920 = vmatprep.mubr.msk.f32.mxu1 %vm26_vm0, %v10107_v12 }
  0x36   :  { %8857 = vmatprep.mubr.msk.f32.mxu0 %vm26_vm0, %v10107_v12 }
  0x38   :  { %8921 = vmatmul.mubr.msk.f32.gmra.mrb[20].mxu1 %vm26_vm0, %v10117_v13 }
  0x39   :  { %8858 = vmatmul.mubr.msk.f32.gmra.mrb[22].mxu0 %vm26_vm0, %v10117_v13  ;;  %8923 = vmatprep.mubr.msk.f32.mxu1 %vm26_vm0, %v10119_v14 }
  0x3a   :  { %8860 = vmatprep.mubr.msk.f32.mxu0 %vm26_vm0, %v10119_v14 }
  0x3c   :  { %8924 = vmatmul.mubr.msk.f32.gmra.mrb[22].mxu1 %vm26_vm0, %v10129_v15 }
  0x3d   :  { %8861 = vmatmul.mubr.msk.f32.gmra.mrb[24].mxu0 %vm26_vm0, %v10129_v15  ;;  %8926 = vmatprep.mubr.msk.f32.mxu1 %vm26_vm0, %v10131_v16 }
  0x3e   :  { %8863 = vmatprep.mubr.msk.f32.mxu0 %vm26_vm0, %v10131_v16 }
  0x40   :  { %8927 = vmatmul.mubr.msk.f32.gmra.mrb[24].mxu1 %vm26_vm0, %v10141_v17 }
  0x41   :  { %8864 = vmatmul.mubr.msk.f32.gmra.mrb[26].mxu0 %vm26_vm0, %v10141_v17  ;;  %8929 = vmatprep.mubr.msk.f32.mxu1 %vm26_vm0, %v10143_v18 }
  0x42   :  { %8866 = vmatprep.mubr.msk.f32.mxu0 %vm26_vm0, %v10143_v18 }
  0x44   :  { %8930 = vmatmul.mubr.msk.f32.gmra.mrb[26].mxu1 %vm26_vm0, %v10153_v19 }
  0x45   :  { %8867 = vmatmul.mubr.msk.f32.gmra.mrb[28].mxu0 %vm26_vm0, %v10153_v19  ;;  %8932 = vmatprep.mubr.msk.f32.mxu1 %vm26_vm0, %v10155_v20 }
  0x46   :  { %8869 = vmatprep.mubr.msk.f32.mxu0 %vm26_vm0, %v10155_v20 }
  0x48   :  { %8933 = vmatmul.mubr.msk.f32.gmra.mrb[28].mxu1 %vm26_vm0, %v10165_v21 }
  0x49   :  { %8870 = vmatmul.mubr.msk.f32.gmra.mrb[30].mxu0 %vm26_vm0, %v10165_v21  ;;  %8935 = vmatprep.mubr.msk.f32.mxu1 %vm26_vm0, %v10167_v22 }
  0x4a   :  { %8872 = vmatprep.mubr.msk.f32.mxu0 %vm26_vm0, %v10167_v22 }
  0x4c   :  { %8936 = vmatmul.mubr.msk.f32.gmra.mrb[30].mxu1 %vm26_vm0, %v10177_v23 }
  0x4d   :  { %8873 = vmatmul.mubr.msk.f32.gmra.mrb[32].mxu0 %vm26_vm0, %v10177_v23  ;;  %8938 = vmatprep.mubr.msk.f32.mxu1 %vm26_vm0, %v10179_v24 }
  0x4e   :  { %8875 = vmatprep.mubr.msk.f32.mxu0 %vm26_vm0, %v10179_v24 }
  0x50   :  { %8939 = vmatmul.mubr.msk.f32.gmra.mrb[32].mxu1 %vm26_vm0, %v10189_v25 }
  0x51   :  { %8876 = vmatmul.mubr.msk.f32.gmra.mrb[34].mxu0 %vm26_vm0, %v10189_v25  ;;  %8941 = vmatprep.mubr.msk.f32.mxu1 %vm26_vm0, %v10191_v26 }
  0x52   :  { %8878 = vmatprep.mubr.msk.f32.mxu0 %vm26_vm0, %v10191_v26 }
  0x54   :  { %8942 = vmatmul.mubr.msk.f32.gmra.mrb[34].mxu1 %vm26_vm0, %v10201_v27 }
  0x55   :  { %8879 = vmatmul.mubr.msk.f32.gmra.mrb[36].mxu0 %vm26_vm0, %v10201_v27  ;;  %8944 = vmatprep.mubr.msk.f32.mxu1 %vm26_vm0, %v10203_v28 }
  0x56   :  { %8881 = vmatprep.mubr.msk.f32.mxu0 %vm26_vm0, %v10203_v28 }
  0x58   :  { %8945 = vmatmul.mubr.msk.f32.gmra.mrb[36].mxu1 %vm26_vm0, %v10213_v29 }
  0x59   :  { %8882 = vmatmul.mubr.msk.f32.gmra.mrb[38].mxu0 %vm26_vm0, %v10213_v29  ;;  %8947 = vmatprep.mubr.msk.f32.mxu1 %vm26_vm0, %v10215_v30 }
  0x5a   :  { %8956 = vmatprep.mubr.msk.f32.mxu0 %vm26_vm0, %v9902_v37  ;;  %v9030_v37 = vpack.c.bf16 %v1905_v36, %v1903_v34  ;;  %v1866_v34 = vld [vmem:[#allocation3 + $0x18] sm:$0xff]  ;;  %v8091_v36 = vld [vmem:[%s13312_s3 + $0x158] sm:$0xff] }
  0x5c   :  { %8948 = vmatmul.mubr.msk.f32.gmra.mrb[38].mxu1 %vm26_vm0, %v10223_v31 }
  0x5d   :  { %8957 = vmatmul.mubr.msk.f32.vlgmr.msra.gmra.mrb[40].mxu0 %vm26_vm0, %v9916_v39  ;;  %2107 = vmatprep.mubr.f32.mxu1 %v9738_v3  ;;  %v1910_v39 = vld [vmem:[%s13312_s3 + $0x38] sm:$0xff] }
  0x5e   :  { %8959 = vmatprep.mubr.msk.f32.mxu0 %vm26_vm0, %v9919_v40  ;;  %9031 = vmatpush1.bf16.msra.mxu1 %v9030_v37  ;;  %v9032_v40 = vpack.c.bf16 %v1910_v39, %v1908_v38  ;;  %v9068_v37 = vpack.c.bf16 %v8091_v36, %v8089_v35  ;;  %v8088_v38 = vld [vmem:[%s13312_s3 + $0x140] sm:$0xff]  ;;  %v8090_v39 = vld [vmem:[%s13312_s3 + $0x150] sm:$0xff] }
  0x60   :  { %9033 = vmatprep.subr.bf16.mxu1 %v9032_v40  ;;  %v9070_v40 = vpack.c.bf16 %v8090_v39, %v8088_v38 }
  0x61   :  { %8960 = vmatmul.mubr.msk.f32.gmra.mrb[42].mxu0 %vm26_vm0, %v9933_v43  ;;  %v9034_v43 = vpack.c.bf16 %v1909_v42, %v1907_v41 }
  0x62   :  { %8962 = vmatprep.mubr.msk.f32.mxu0 %vm26_vm0, %v9948_v47  ;;  %v1911_v47 = vld [vmem:[%s13312_s3 + $0x40] sm:$0xff] }
  0x63   :  { %9035 = vmatpush1.bf16.msra.mxu1 %v9034_v43  ;;  %v9038_v49 = vpack.c.bf16 %v1913_v48, %v1911_v47  ;;  %v8093_v48 = vld [vmem:[%s13312_s3 + $0x168] sm:$0xff] }
  0x64   :  { %9037 = vmatprep.subr.bf16.mxu1 %v9036_v46 }
  0x65   :  { %8963 = vmatmul.mubr.msk.f32.gmra.mrb[44].mxu0 %vm26_vm0, %v9959_v50  ;;  %v1916_v50 = vld [vmem:[%s13312_s3 + $0x68] sm:$0xff] }
  0x66   :  { %8965 = vmatprep.mubr.msk.f32.mxu0 %vm26_vm0, %v10004_v60  ;;  %v9040_v52 = vpack.c.bf16 %v1918_v51, %v1916_v50  ;;  %v8030_v60 = vld [vmem:[%s13312_s3 + $0xb0] sm:$0xff] }
  0x67   :  { %9039 = vmatpush1.bf16.msra.mxu1 %v9038_v49  ;;  %v9050_v62 = vpack.c.bf16 %v8030_v60, %v8028_v59  ;;  %v8095_v49 = vld [vmem:[%s13312_s3 + $0x178] sm:$0xff] }
  0x68   :  { %9041 = vmatprep.subr.bf16.mxu1 %v9040_v52  ;;  %v9072_v53 = vpack.c.bf16 %v8095_v49, %v8093_v48 }
  0x69   :  { %8966 = vmatmul.mubr.msk.f32.gmra.mrb[46].mxu0 %vm26_vm0, %v10029_v0  ;;  %v8035_v0 = vld [vmem:[%s13312_s3 + $0xd8] sm:$0xff] }
  0x6a   :  { %8968 = vmatprep.mubr.msk.f32.mxu0 %vm26_vm0, %v10031_v1  ;;  %v1223_v1 = vld [vmem:[#allocation2 + $0x158] sm:$0xff]  ;;  %9051 = vmatpush1.bf16.msra.mxu0 %v9050_v62 }
  0x6b   :  { %9043 = vmatpush1.bf16.msra.mxu1 %v9042_v55  ;;  %v8094_v55 = vld [vmem:[%s13312_s3 + $0x170] sm:$0xff] }
  0x6c   :  { %v9074_v59 = vpack.c.bf16 %v8094_v55, %v8092_v54  ;;  %v8097_v55 = vld [vmem:[%s13312_s3 + $0x188] sm:$0xff] }
  0x6d   :  { %8969 = vmatmul.mubr.msk.f32.gmra.mrb[48].mxu0 %vm26_vm0, %v10041_v2  ;;  %v9052_v2 = vpack.c.bf16 %v8035_v0, %v8033_v63 }
  0x6e   :  { %8971 = vmatprep.mubr.msk.f32.mxu0 %vm26_vm0, %v10043_v4  ;;  %v8032_v4 = vld [vmem:[%s13312_s3 + $0xc0] sm:$0xff] }
  0x6f   :  { %9053 = vmatprep.subr.bf16.mxu0 %v9052_v2 }
  0x71   :  { %8972 = vmatmul.mubr.msk.f32.gmra.mrb[50].mxu0 %vm26_vm0, %v10053_v5  ;;  %v8034_v5 = vld [vmem:[%s13312_s3 + $0xd0] sm:$0xff] }
  0x72   :  { %8974 = vmatprep.mubr.msk.f32.mxu0 %vm26_vm0, %v10055_v6  ;;  %v9054_v6 = vpack.c.bf16 %v8034_v5, %v8032_v4 }
  0x74   :  { %9055 = vmatpush1.bf16.msra.mxu0 %v9054_v6 }
  0x75   :  { %8975 = vmatmul.mubr.msk.f32.gmra.mrb[52].mxu0 %vm26_vm0, %v10065_v7  ;;  %v8037_v7 = vld [vmem:[%s13312_s3 + $0xe8] sm:$0xff] }
  0x76   :  { %8977 = vmatprep.mubr.msk.f32.mxu0 %vm26_vm0, %v10083_v8  ;;  %v8039_v8 = vld [vmem:[%s13312_s3 + $0xf8] sm:$0xff] }
  0x79   :  { %8978 = vmatmul.mubr.msk.f32.gmra.mrb[54].mxu0 %vm26_vm0, %v10093_v9  ;;  %v9056_v9 = vpack.c.bf16 %v8039_v8, %v8037_v7 }
  0x7a   :  { %8980 = vmatprep.mubr.msk.f32.mxu0 %vm26_vm0, %v10095_v10  ;;  %v8036_v10 = vld [vmem:[%s13312_s3 + $0xe0] sm:$0xff] }
  0x7b   :  { %9057 = vmatprep.subr.bf16.mxu0 %v9056_v9 }
  0x7d   :  { %8981 = vmatmul.mubr.msk.f32.gmra.mrb[56].mxu0 %vm26_vm0, %v10105_v11  ;;  %v8038_v11 = vld [vmem:[%s13312_s3 + $0xf0] sm:$0xff] }
  0x7e   :  { %8983 = vmatprep.mubr.msk.f32.mxu0 %vm26_vm0, %v10107_v12  ;;  %v1920_v12 = vld [vmem:[%s13312_s3 + $0x88] sm:$0xff] }
  0x81   :  { %8984 = vmatmul.mubr.msk.f32.gmra.mrb[58].mxu0 %vm26_vm0, %v10117_v13  ;;  %v1922_v13 = vld [vmem:[%s13312_s3 + $0x98] sm:$0xff] }
  0x82   :  { %8986 = vmatprep.mubr.msk.f32.mxu0 %vm26_vm0, %v10119_v14  ;;  %v9058_v14 = vpack.c.bf16 %v8038_v11, %v8036_v10 }
  0x84   :  { %9059 = vmatpush1.bf16.msra.mxu0 %v9058_v14 }
  0x85   :  { %8987 = vmatmul.mubr.msk.f32.gmra.mrb[60].mxu0 %vm26_vm0, %v10129_v15  ;;  %v9044_v15 = vpack.c.bf16 %v1922_v13, %v1920_v12 }
  0x86   :  { %8989 = vmatprep.mubr.msk.f32.mxu0 %vm26_vm0, %v10131_v16  ;;  %v1919_v16 = vld [vmem:[%s13312_s3 + $0x80] sm:$0xff] }
  0x87   :  { %9045 = vmatprep.subr.bf16.mxu1 %v9044_v15 }
  0x89   :  { %8990 = vmatmul.mubr.msk.f32.gmra.mrb[62].mxu0 %vm26_vm0, %v10141_v17  ;;  %v1921_v17 = vld [vmem:[%s13312_s3 + $0x90] sm:$0xff] }
  0x8a   :  { %8992 = vmatprep.mubr.msk.f32.mxu0 %vm26_vm0, %v10143_v18  ;;  %v9046_v18 = vpack.c.bf16 %v1921_v17, %v1919_v16 }
  0x8c   :  { %9047 = vmatpush1.bf16.msra.mxu1 %v9046_v18 }
  0x8d   :  { %8993 = vmatmul.mubr.msk.f32.gmra.mrb[64].mxu0 %vm26_vm0, %v10153_v19  ;;  %v8041_v19 = vld [vmem:[%s13312_s3 + $0x108] sm:$0xff]  ;;  %9069 = vmatprep.subr.bf16.mxu1 %v9068_v37 }
  0x8e   :  { %8995 = vmatprep.mubr.msk.f32.mxu0 %vm26_vm0, %v10155_v20  ;;  %v8043_v20 = vld [vmem:[%s13312_s3 + $0x118] sm:$0xff] }
  0x91   :  { %8996 = vmatmul.mubr.msk.f32.gmra.mrb[66].mxu0 %vm26_vm0, %v10165_v21  ;;  %v9060_v21 = vpack.c.bf16 %v8043_v20, %v8041_v19 }
  0x92   :  { %8998 = vmatprep.mubr.msk.f32.mxu0 %vm26_vm0, %v10167_v22  ;;  %v8040_v22 = vld [vmem:[%s13312_s3 + $0x100] sm:$0xff] }
  0x93   :  { %9061 = vmatprep.subr.bf16.mxu0 %v9060_v21 }
  0x95   :  { %8999 = vmatmul.mubr.msk.f32.gmra.mrb[68].mxu0 %vm26_vm0, %v10177_v23  ;;  %v8042_v23 = vld [vmem:[%s13312_s3 + $0x110] sm:$0xff] }
  0x96   :  { %9001 = vmatprep.mubr.msk.f32.mxu0 %vm26_vm0, %v10179_v24  ;;  %v9062_v24 = vpack.c.bf16 %v8042_v23, %v8040_v22 }
  0x98   :  { %9063 = vmatpush1.bf16.msra.mxu0 %v9062_v24 }
  0x99   :  { %9002 = vmatmul.mubr.msk.f32.gmra.mrb[70].mxu0 %vm26_vm0, %v10189_v25  ;;  %v8045_v25 = vld [vmem:[%s13312_s3 + $0x128] sm:$0xff] }
  0x9a   :  { %9004 = vmatprep.mubr.msk.f32.mxu0 %vm26_vm0, %v10191_v26  ;;  %v8047_v26 = vld [vmem:[%s13312_s3 + $0x138] sm:$0xff] }
  0x9d   :  { %9005 = vmatmul.mubr.msk.f32.gmra.mrb[72].mxu0 %vm26_vm0, %v10201_v27  ;;  %v9064_v27 = vpack.c.bf16 %v8047_v26, %v8045_v25 }
  0x9e   :  { %9007 = vmatprep.mubr.msk.f32.mxu0 %vm26_vm0, %v10203_v28  ;;  %v8044_v28 = vld [vmem:[%s13312_s3 + $0x120] sm:$0xff] }
  0x9f   :  { %9065 = vmatprep.subr.bf16.mxu0 %v9064_v27 }
  0xa1   :  { %9008 = vmatmul.mubr.msk.f32.gmra.mrb[74].mxu0 %vm26_vm0, %v10213_v29  ;;  %v8046_v29 = vld [vmem:[%s13312_s3 + $0x130] sm:$0xff] }
  0xa2   :  { %9010 = vmatprep.mubr.msk.f32.mxu0 %vm26_vm0, %v10215_v30  ;;  %v9066_v30 = vpack.c.bf16 %v8046_v29, %v8044_v28 }
  0xa4   :  { %9067 = vmatpush1.bf16.msra.mxu0 %v9066_v30 }
  0xa5   :  { %9011 = vmatmul.mubr.msk.f32.gmra.mrb[76].mxu0 %vm26_vm0, %v10223_v31  ;;  %v1863_v31 = vld [vmem:[#allocation3] sm:$0xff] }
  0xa6   :  { %9013 = vmatprep.mubr.msk.f32.mxu0 %vm26_vm0, %v1222_v61  ;;  %7988 = vmatmul.mubr.msk.f32.vlgmr.msra.gmra.mrb[40].mxu1 %vm111_vm2, %v1863_v31 }
  0xa7   :  { %2113 = vmatprep.mubr.f32.mxu1 %v9738_v3  ;;  %9071 = vmatpush1.bf16.msra.mxu1 %v9070_v40 }
  0xa8   :  { %9073 = vmatprep.subr.bf16.mxu1 %v9072_v53 }
  0xa9   :  { %9014 = vmatmul.mubr.msk.f32.gmra.mrb[78].mxu0 %vm26_vm0, %v1223_v1 }
  0xaa   :  { %2754 = vmatprep.mubr.f32.mxu0 %v9738_v3  ;;  %7989 = vmatmul.mubr.msk.f32.gmra.mrb[42].mxu1 %vm111_vm2, %v1864_v33 }
  0xab   :  { %2119 = vmatprep.mubr.f32.mxu1 %v9738_v3  ;;  %9075 = vmatpush1.bf16.msra.mxu1 %v9074_v59 }
  0xad   :  { %8048 = vmatmul.mubr.msk.f32.vlgmr.msra.gmra.mrb[80].mxu0 %vm111_vm2, %v1865_v32 }
  0xae   :  { %2760 = vmatprep.mubr.f32.mxu0 %v9738_v3  ;;  %7990 = vmatmul.mubr.msk.f32.gmra.mrb[44].mxu1 %vm111_vm2, %v1865_v32 }
  0xaf   :  { %2125 = vmatprep.mubr.f32.mxu1 %v9738_v3 }
  0xb1   :  { %8049 = vmatmul.mubr.msk.f32.gmra.mrb[82].mxu0 %vm111_vm2, %v1866_v34 }
  0xb2   :  { %2766 = vmatprep.mubr.f32.mxu0 %v9738_v3  ;;  %7991 = vmatmul.mubr.msk.f32.gmra.mrb[46].mxu1 %vm111_vm2, %v1866_v34 }
  0xb3   :  { %2131 = vmatprep.mubr.f32.mxu1 %v9738_v3 }
  0xde   :  { %v8826_v41 = vpop.f32.mrb[0].mxu0 }
  0xdf   :  { %553 = vst.msk [vmem:[#allocation3 + $0x28] sm:$0xff] %vm111_vm2, %v8826_v41  ;;  %v353_v42 = vpop.f32.mrb[1].mxu0 }
  0xe0   :  { %552 = vst.msk [vmem:[#allocation3 + $0x20] sm:$0xff] %vm111_vm2, %v353_v42 }
  0xe3   :  { %v8892_v43 = vpop.f32.mrb[0].mxu1 }
  0xe4   :  { %v8829_v44 = vpop.f32.mrb[2].mxu0  ;;  %v865_v45 = vpop.f32.mrb[1].mxu1 }
  0xe5   :  { %555 = vst.msk [vmem:[#allocation3 + $0x38] sm:$0xff] %vm111_vm2, %v8829_v44  ;;  %v363_v46 = vpop.f32.mrb[3].mxu0 }
  0xe6   :  { %554 = vst.msk [vmem:[#allocation3 + $0x30] sm:$0xff] %vm111_vm2, %v363_v46  ;;  %v593_v51 = vld [vmem:[#allocation3 + $0x28] sm:$0xff] }
  0xe7   :  { %v8895_v47 = vpop.f32.mrb[2].mxu1  ;;  %v1065_v56 = vadd.f32 %v8892_v43, %v593_v51  ;;  %v592_v58 = vld [vmem:[#allocation3 + $0x20] sm:$0xff] }
  0xe8   :  { %v8832_v50 = vpop.f32.mrb[4].mxu0  ;;  %v875_v52 = vpop.f32.mrb[3].mxu1  ;;  %v1064_v60 = vadd.f32 %v865_v45, %v592_v58 }
  0xe9   :  { %557 = vst.msk [vmem:[#allocation3 + $0x48] sm:$0xff] %vm111_vm2, %v8832_v50  ;;  %v373_v57 = vpop.f32.mrb[5].mxu0  ;;  %1105 = vst.msk [vmem:[#allocation3 + $0x28] sm:$0xff] %vm111_vm2, %v1065_v56  ;;  %v8099_v56 = vld [vmem:[%s13312_s3 + $0x198] sm:$0xff] }
  0xea   :  { %556 = vst.msk [vmem:[#allocation3 + $0x40] sm:$0xff] %vm111_vm2, %v373_v57  ;;  %1104 = vst.msk [vmem:[#allocation3 + $0x20] sm:$0xff] %vm111_vm2, %v1064_v60  ;;  %v9076_v60 = vpack.c.bf16 %v8099_v56, %v8097_v55 }
  0xeb   :  { %v8898_v61 = vpop.f32.mrb[4].mxu1 }
  0xec   :  { %v8835_v62 = vpop.f32.mrb[6].mxu0  ;;  %v595_v63 = vld [vmem:[#allocation3 + $0x38] sm:$0xff]  ;;  %v885_v0 = vpop.f32.mrb[5].mxu1  ;;  %9077 = vmatprep.subr.bf16.mxu1 %v9076_v60 }
  0xed   :  { %559 = vst.msk [vmem:[#allocation3 + $0x58] sm:$0xff] %vm111_vm2, %v8835_v62  ;;  %v1067_v1 = vadd.f32 %v8895_v47, %v595_v63  ;;  %v383_v2 = vpop.f32.mrb[7].mxu0  ;;  %v594_v4 = vld [vmem:[#allocation3 + $0x30] sm:$0xff]  ;;  %v8098_v62 = vld [vmem:[%s13312_s3 + $0x190] sm:$0xff] }
  0xee   :  { %558 = vst.msk [vmem:[#allocation3 + $0x50] sm:$0xff] %vm111_vm2, %v383_v2  ;;  %v1066_v5 = vadd.f32 %v875_v52, %v594_v4 }
  0xef   :  { %1107 = vst.msk [vmem:[#allocation3 + $0x38] sm:$0xff] %vm111_vm2, %v1067_v1  ;;  %v8901_v6 = vpop.f32.mrb[6].mxu1 }
  0xf0   :  { %1106 = vst.msk [vmem:[#allocation3 + $0x30] sm:$0xff] %vm111_vm2, %v1066_v5  ;;  %v8838_v7 = vpop.f32.mrb[8].mxu0  ;;  %v597_v8 = vld [vmem:[#allocation3 + $0x48] sm:$0xff]  ;;  %v895_v9 = vpop.f32.mrb[7].mxu1 }
  0xf1   :  { %561 = vst.msk [vmem:[#allocation3 + $0x68] sm:$0xff] %vm111_vm2, %v8838_v7  ;;  %v1069_v10 = vadd.f32 %v8898_v61, %v597_v8  ;;  %v393_v11 = vpop.f32.mrb[9].mxu0  ;;  %v596_v12 = vld [vmem:[#allocation3 + $0x40] sm:$0xff]  ;;  %v8096_v61 = vld [vmem:[%s13312_s3 + $0x180] sm:$0xff] }
  0xf2   :  { %560 = vst.msk [vmem:[#allocation3 + $0x60] sm:$0xff] %vm111_vm2, %v393_v11  ;;  %v1068_v13 = vadd.f32 %v885_v0, %v596_v12  ;;  %v9078_v2 = vpack.c.bf16 %v8098_v62, %v8096_v61 }
  0xf3   :  { %1109 = vst.msk [vmem:[#allocation3 + $0x48] sm:$0xff] %vm111_vm2, %v1069_v10  ;;  %v8904_v14 = vpop.f32.mrb[8].mxu1 }
  0xf4   :  { %1108 = vst.msk [vmem:[#allocation3 + $0x40] sm:$0xff] %vm111_vm2, %v1068_v13  ;;  %v8841_v15 = vpop.f32.mrb[10].mxu0  ;;  %v599_v16 = vld [vmem:[#allocation3 + $0x58] sm:$0xff]  ;;  %v905_v17 = vpop.f32.mrb[9].mxu1  ;;  %9079 = vmatpush1.bf16.msra.mxu1 %v9078_v2 }
  0xf5   :  { %563 = vst.msk [vmem:[#allocation3 + $0x78] sm:$0xff] %vm111_vm2, %v8841_v15  ;;  %v1071_v18 = vadd.f32 %v8901_v6, %v599_v16  ;;  %v403_v19 = vpop.f32.mrb[11].mxu0  ;;  %v598_v20 = vld [vmem:[#allocation3 + $0x50] sm:$0xff] }
  0xf6   :  { %562 = vst.msk [vmem:[#allocation3 + $0x70] sm:$0xff] %vm111_vm2, %v403_v19  ;;  %v1070_v21 = vadd.f32 %v895_v9, %v598_v20 }
  0xf7   :  { %1111 = vst.msk [vmem:[#allocation3 + $0x58] sm:$0xff] %vm111_vm2, %v1071_v18  ;;  %v8907_v22 = vpop.f32.mrb[10].mxu1 }
  0xf8   :  { %1110 = vst.msk [vmem:[#allocation3 + $0x50] sm:$0xff] %vm111_vm2, %v1070_v21  ;;  %v8844_v23 = vpop.f32.mrb[12].mxu0  ;;  %v601_v24 = vld [vmem:[#allocation3 + $0x68] sm:$0xff]  ;;  %v915_v25 = vpop.f32.mrb[11].mxu1 }
  0xf9   :  { %565 = vst.msk [vmem:[#allocation3 + $0x88] sm:$0xff] %vm111_vm2, %v8844_v23  ;;  %v1073_v26 = vadd.f32 %v8904_v14, %v601_v24  ;;  %v413_v27 = vpop.f32.mrb[13].mxu0  ;;  %v600_v28 = vld [vmem:[#allocation3 + $0x60] sm:$0xff] }
  0xfa   :  { %564 = vst.msk [vmem:[#allocation3 + $0x80] sm:$0xff] %vm111_vm2, %v413_v27  ;;  %v1072_v29 = vadd.f32 %v905_v17, %v600_v28 }
  0xfb   :  { %1113 = vst.msk [vmem:[#allocation3 + $0x68] sm:$0xff] %vm111_vm2, %v1073_v26  ;;  %v8910_v30 = vpop.f32.mrb[12].mxu1 }
  0xfc   :  { %1112 = vst.msk [vmem:[#allocation3 + $0x60] sm:$0xff] %vm111_vm2, %v1072_v29  ;;  %v8847_v31 = vpop.f32.mrb[14].mxu0  ;;  %v603_v32 = vld [vmem:[#allocation3 + $0x78] sm:$0xff]  ;;  %v925_v33 = vpop.f32.mrb[13].mxu1 }
  0xfd   :  { %567 = vst.msk [vmem:[#allocation3 + $0x98] sm:$0xff] %vm111_vm2, %v8847_v31  ;;  %v1075_v34 = vadd.f32 %v8907_v22, %v603_v32  ;;  %v423_v35 = vpop.f32.mrb[15].mxu0  ;;  %v602_v36 = vld [vmem:[#allocation3 + $0x70] sm:$0xff] }
  0xfe   :  { %566 = vst.msk [vmem:[#allocation3 + $0x90] sm:$0xff] %vm111_vm2, %v423_v35  ;;  %v1074_v37 = vadd.f32 %v915_v25, %v602_v36 }
  0xff   :  { %1115 = vst.msk [vmem:[#allocation3 + $0x78] sm:$0xff] %vm111_vm2, %v1075_v34  ;;  %v8913_v38 = vpop.f32.mrb[14].mxu1  ;;  %v8103_v34 = vld [vmem:[%s13312_s3 + $0x1b8] sm:$0xff] }
 0x100   :  { %1114 = vst.msk [vmem:[#allocation3 + $0x70] sm:$0xff] %vm111_vm2, %v1074_v37  ;;  %v8850_v39 = vpop.f32.mrb[16].mxu0  ;;  %v605_v40 = vld [vmem:[#allocation3 + $0x88] sm:$0xff]  ;;  %v935_v41 = vpop.f32.mrb[15].mxu1 }
 0x101   :  { %569 = vst.msk [vmem:[#allocation3 + $0xa8] sm:$0xff] %vm111_vm2, %v8850_v39  ;;  %v1077_v42 = vadd.f32 %v8910_v30, %v605_v40  ;;  %v433_v43 = vpop.f32.mrb[17].mxu0  ;;  %v604_v44 = vld [vmem:[#allocation3 + $0x80] sm:$0xff]  ;;  %v8100_v39 = vld [vmem:[%s13312_s3 + $0x1a0] sm:$0xff]  ;;  %v8102_v40 = vld [vmem:[%s13312_s3 + $0x1b0] sm:$0xff] }
 0x102   :  { %568 = vst.msk [vmem:[#allocation3 + $0xa0] sm:$0xff] %vm111_vm2, %v433_v43  ;;  %v1076_v45 = vadd.f32 %v925_v33, %v604_v44  ;;  %v8101_v33 = vld [vmem:[%s13312_s3 + $0x1a8] sm:$0xff] }
 0x103   :  { %1117 = vst.msk [vmem:[#allocation3 + $0x88] sm:$0xff] %vm111_vm2, %v1077_v42  ;;  %v8916_v46 = vpop.f32.mrb[16].mxu1  ;;  %v9082_v42 = vpack.c.bf16 %v8102_v40, %v8100_v39 }
 0x104   :  { %1116 = vst.msk [vmem:[#allocation3 + $0x80] sm:$0xff] %vm111_vm2, %v1076_v45  ;;  %v8853_v47 = vpop.f32.mrb[18].mxu0  ;;  %v607_v48 = vld [vmem:[#allocation3 + $0x98] sm:$0xff]  ;;  %v945_v49 = vpop.f32.mrb[17].mxu1 }
 0x105   :  { %571 = vst.msk [vmem:[#allocation3 + $0xb8] sm:$0xff] %vm111_vm2, %v8853_v47  ;;  %v1079_v50 = vadd.f32 %v8913_v38, %v607_v48  ;;  %v443_v51 = vpop.f32.mrb[19].mxu0  ;;  %v606_v52 = vld [vmem:[#allocation3 + $0x90] sm:$0xff]  ;;  %v9080_v38 = vpack.c.bf16 %v8103_v34, %v8101_v33  ;;  %v1147_v33 = vld [vmem:[#allocation3 + $0x38] sm:$0xff] }
 0x106   :  { %570 = vst.msk [vmem:[#allocation3 + $0xb0] sm:$0xff] %vm111_vm2, %v443_v51  ;;  %v1078_v53 = vadd.f32 %v935_v41, %v606_v52 }
 0x107   :  { %1119 = vst.msk [vmem:[#allocation3 + $0x98] sm:$0xff] %vm111_vm2, %v1079_v50  ;;  %v8919_v54 = vpop.f32.mrb[18].mxu1  ;;  %9081 = vmatprep.subr.bf16.mxu1 %v9080_v38  ;;  %v1146_v38 = vld [vmem:[#allocation3 + $0x30] sm:$0xff] }
 0x108   :  { %1118 = vst.msk [vmem:[#allocation3 + $0x90] sm:$0xff] %vm111_vm2, %v1078_v53  ;;  %v8856_v57 = vpop.f32.mrb[20].mxu0  ;;  %v609_v58 = vld [vmem:[#allocation3 + $0xa8] sm:$0xff]  ;;  %v955_v59 = vpop.f32.mrb[19].mxu1  ;;  %9083 = vmatpush1.bf16.msra.mxu1 %v9082_v42  ;;  %v10570_v42 = vld [vmem:[%s13313_s2] ss:$0 sm:$0xff] }
 0x109   :  { %573 = vst.msk [vmem:[#allocation3 + $0xc8] sm:$0xff] %vm111_vm2, %v8856_v57  ;;  %v1081_v63 = vadd.f32 %v8916_v46, %v609_v58  ;;  %v453_v0 = vpop.f32.mrb[21].mxu0  ;;  %v608_v1 = vld [vmem:[#allocation3 + $0xa0] sm:$0xff] }
 0x10a   :  { %572 = vst.msk [vmem:[#allocation3 + $0xc0] sm:$0xff] %vm111_vm2, %v453_v0  ;;  %v1080_v4 = vadd.f32 %v945_v49, %v608_v1 }
 0x10b   :  { %1121 = vst.msk [vmem:[#allocation3 + $0xa8] sm:$0xff] %vm111_vm2, %v1081_v63  ;;  %v8922_v5 = vpop.f32.mrb[20].mxu1 }
 0x10c   :  { %1120 = vst.msk [vmem:[#allocation3 + $0xa0] sm:$0xff] %vm111_vm2, %v1080_v4  ;;  %v8859_v6 = vpop.f32.mrb[22].mxu0  ;;  %v611_v7 = vld [vmem:[#allocation3 + $0xb8] sm:$0xff]  ;;  %v965_v8 = vpop.f32.mrb[21].mxu1 }
 0x10d   :  { %575 = vst.msk [vmem:[#allocation3 + $0xd8] sm:$0xff] %vm111_vm2, %v8859_v6  ;;  %v1083_v9 = vadd.f32 %v8919_v54, %v611_v7  ;;  %v463_v10 = vpop.f32.mrb[23].mxu0  ;;  %v610_v11 = vld [vmem:[#allocation3 + $0xb0] sm:$0xff] }
 0x10e   :  { %574 = vst.msk [vmem:[#allocation3 + $0xd0] sm:$0xff] %vm111_vm2, %v463_v10  ;;  %v1082_v12 = vadd.f32 %v955_v59, %v610_v11 }
 0x10f   :  { %1123 = vst.msk [vmem:[#allocation3 + $0xb8] sm:$0xff] %vm111_vm2, %v1083_v9  ;;  %v8925_v13 = vpop.f32.mrb[22].mxu1 }
 0x110   :  { %1122 = vst.msk [vmem:[#allocation3 + $0xb0] sm:$0xff] %vm111_vm2, %v1082_v12  ;;  %v8862_v14 = vpop.f32.mrb[24].mxu0  ;;  %v613_v15 = vld [vmem:[#allocation3 + $0xc8] sm:$0xff]  ;;  %v975_v16 = vpop.f32.mrb[23].mxu1 }
 0x111   :  { %577 = vst.msk [vmem:[#allocation3 + $0xe8] sm:$0xff] %vm111_vm2, %v8862_v14  ;;  %v1085_v17 = vadd.f32 %v8922_v5, %v613_v15  ;;  %v473_v18 = vpop.f32.mrb[25].mxu0  ;;  %v612_v19 = vld [vmem:[#allocation3 + $0xc0] sm:$0xff] }
 0x112   :  { %576 = vst.msk [vmem:[#allocation3 + $0xe0] sm:$0xff] %vm111_vm2, %v473_v18  ;;  %v1084_v20 = vadd.f32 %v965_v8, %v612_v19 }
 0x113   :  { %1125 = vst.msk [vmem:[#allocation3 + $0xc8] sm:$0xff] %vm111_vm2, %v1085_v17  ;;  %v8928_v21 = vpop.f32.mrb[24].mxu1 }
 0x114   :  { %1124 = vst.msk [vmem:[#allocation3 + $0xc0] sm:$0xff] %vm111_vm2, %v1084_v20  ;;  %v8865_v22 = vpop.f32.mrb[26].mxu0  ;;  %v615_v23 = vld [vmem:[#allocation3 + $0xd8] sm:$0xff]  ;;  %v985_v24 = vpop.f32.mrb[25].mxu1 }
 0x115   :  { %579 = vst.msk [vmem:[#allocation3 + $0xf8] sm:$0xff] %vm111_vm2, %v8865_v22  ;;  %v1087_v25 = vadd.f32 %v8925_v13, %v615_v23  ;;  %v483_v26 = vpop.f32.mrb[27].mxu0  ;;  %v614_v27 = vld [vmem:[#allocation3 + $0xd0] sm:$0xff]  ;;  %v1145_v22 = vld [vmem:[#allocation3 + $0x28] sm:$0xff] }
 0x116   :  { %578 = vst.msk [vmem:[#allocation3 + $0xf0] sm:$0xff] %vm111_vm2, %v483_v26  ;;  %v1086_v28 = vadd.f32 %v975_v16, %v614_v27 }
 0x117   :  { %1127 = vst.msk [vmem:[#allocation3 + $0xd8] sm:$0xff] %vm111_vm2, %v1087_v25  ;;  %v8931_v29 = vpop.f32.mrb[26].mxu1 }
 0x118   :  { %1126 = vst.msk [vmem:[#allocation3 + $0xd0] sm:$0xff] %vm111_vm2, %v1086_v28  ;;  %v8868_v30 = vpop.f32.mrb[28].mxu0  ;;  %v617_v31 = vld [vmem:[#allocation3 + $0xe8] sm:$0xff]  ;;  %v995_v32 = vpop.f32.mrb[27].mxu1  ;;  %v1144_v28 = vld [vmem:[#allocation3 + $0x20] sm:$0xff] }
 0x119   :  { %581 = vst.msk [vmem:[#allocation3 + $0x108] sm:$0xff] %vm111_vm2, %v8868_v30  ;;  %v1089_v35 = vadd.f32 %v8928_v21, %v617_v31  ;;  %v493_v36 = vpop.f32.mrb[29].mxu0  ;;  %v616_v37 = vld [vmem:[#allocation3 + $0xe0] sm:$0xff] }
 0x11a   :  { %580 = vst.msk [vmem:[#allocation3 + $0x100] sm:$0xff] %vm111_vm2, %v493_v36  ;;  %v1088_v41 = vadd.f32 %v985_v24, %v616_v37 }
 0x11b   :  { %1129 = vst.msk [vmem:[#allocation3 + $0xe8] sm:$0xff] %vm111_vm2, %v1089_v35  ;;  %v8934_v43 = vpop.f32.mrb[28].mxu1 }
 0x11c   :  { %1128 = vst.msk [vmem:[#allocation3 + $0xe0] sm:$0xff] %vm111_vm2, %v1088_v41  ;;  %v8871_v44 = vpop.f32.mrb[30].mxu0  ;;  %v619_v45 = vld [vmem:[#allocation3 + $0xf8] sm:$0xff]  ;;  %v1005_v46 = vpop.f32.mrb[29].mxu1 }
 0x11d   :  { %583 = vst.msk [vmem:[#allocation3 + $0x118] sm:$0xff] %vm111_vm2, %v8871_v44  ;;  %v1091_v47 = vadd.f32 %v8931_v29, %v619_v45  ;;  %v503_v48 = vpop.f32.mrb[31].mxu0  ;;  %v618_v49 = vld [vmem:[#allocation3 + $0xf0] sm:$0xff]  ;;  %v8105_v45 = vld [vmem:[%s13312_s3 + $0x1c8] sm:$0xff] }
 0x11e   :  { %582 = vst.msk [vmem:[#allocation3 + $0x110] sm:$0xff] %vm111_vm2, %v503_v48  ;;  %v1090_v50 = vadd.f32 %v995_v32, %v618_v49  ;;  %v1148_v49 = vld [vmem:[#allocation3 + $0x40] sm:$0xff] }
 0x11f   :  { %1131 = vst.msk [vmem:[#allocation3 + $0xf8] sm:$0xff] %vm111_vm2, %v1091_v47  ;;  %v8937_v51 = vpop.f32.mrb[30].mxu1  ;;  %v8104_v47 = vld [vmem:[%s13312_s3 + $0x1c0] sm:$0xff] }
 0x120   :  { %1130 = vst.msk [vmem:[#allocation3 + $0xf0] sm:$0xff] %vm111_vm2, %v1090_v50  ;;  %v8874_v52 = vpop.f32.mrb[32].mxu0  ;;  %v621_v53 = vld [vmem:[#allocation3 + $0x108] sm:$0xff]  ;;  %v1015_v54 = vpop.f32.mrb[31].mxu1 }
 0x121   :  { %585 = vst.msk [vmem:[#allocation3 + $0x128] sm:$0xff] %vm111_vm2, %v8874_v52  ;;  %v1093_v55 = vadd.f32 %v8934_v43, %v621_v53  ;;  %v513_v56 = vpop.f32.mrb[33].mxu0  ;;  %v620_v57 = vld [vmem:[#allocation3 + $0x100] sm:$0xff]  ;;  %v1149_v43 = vld [vmem:[#allocation3 + $0x48] sm:$0xff] }
 0x122   :  { %584 = vst.msk [vmem:[#allocation3 + $0x120] sm:$0xff] %vm111_vm2, %v513_v56  ;;  %v1092_v58 = vadd.f32 %v1005_v46, %v620_v57  ;;  %v8107_v46 = vld [vmem:[%s13312_s3 + $0x1d8] sm:$0xff]  ;;  %v8106_v52 = vld [vmem:[%s13312_s3 + $0x1d0] sm:$0xff] }
 0x123   :  { %1133 = vst.msk [vmem:[#allocation3 + $0x108] sm:$0xff] %vm111_vm2, %v1093_v55  ;;  %v8940_v59 = vpop.f32.mrb[32].mxu1  ;;  %v9086_v55 = vpack.c.bf16 %v8106_v52, %v8104_v47  ;;  %v1159_v52 = vld [vmem:[#allocation3 + $0x98] sm:$0xff] }
 0x124   :  { %1132 = vst.msk [vmem:[#allocation3 + $0x100] sm:$0xff] %vm111_vm2, %v1092_v58  ;;  %v8877_v60 = vpop.f32.mrb[34].mxu0  ;;  %v623_v61 = vld [vmem:[#allocation3 + $0x118] sm:$0xff]  ;;  %v1025_v62 = vpop.f32.mrb[33].mxu1 }
 0x125   :  { %587 = vst.msk [vmem:[#allocation3 + $0x138] sm:$0xff] %vm111_vm2, %v8877_v60  ;;  %v1095_v63 = vadd.f32 %v8937_v51, %v623_v61  ;;  %v523_v0 = vpop.f32.mrb[35].mxu0  ;;  %v622_v1 = vld [vmem:[#allocation3 + $0x110] sm:$0xff]  ;;  %v9084_v51 = vpack.c.bf16 %v8107_v46, %v8105_v45  ;;  %v8148_v46 = vld [vmem:[%s13312_s3 + $0x1e0] sm:$0xff] }
 0x126   :  { %586 = vst.msk [vmem:[#allocation3 + $0x130] sm:$0xff] %vm111_vm2, %v523_v0  ;;  %v1094_v2 = vadd.f32 %v1015_v54, %v622_v1 }
 0x127   :  { %1135 = vst.msk [vmem:[#allocation3 + $0x118] sm:$0xff] %vm111_vm2, %v1095_v63  ;;  %v8943_v4 = vpop.f32.mrb[34].mxu1  ;;  %9085 = vmatprep.subr.bf16.mxu1 %v9084_v51  ;;  %v1150_v63 = vld [vmem:[#allocation3 + $0x50] sm:$0xff] }
 0x128   :  { %1134 = vst.msk [vmem:[#allocation3 + $0x110] sm:$0xff] %vm111_vm2, %v1094_v2  ;;  %v8880_v5 = vpop.f32.mrb[36].mxu0  ;;  %v625_v6 = vld [vmem:[#allocation3 + $0x128] sm:$0xff]  ;;  %v1035_v7 = vpop.f32.mrb[35].mxu1  ;;  %9087 = vmatpush1.bf16.msra.mxu1 %v9086_v55 }
 0x129   :  { %589 = vst.msk [vmem:[#allocation3 + $0x148] sm:$0xff] %vm111_vm2, %v8880_v5  ;;  %v1097_v8 = vadd.f32 %v8940_v59, %v625_v6  ;;  %v533_v9 = vpop.f32.mrb[37].mxu0  ;;  %v624_v10 = vld [vmem:[#allocation3 + $0x120] sm:$0xff]  ;;  %v1151_v59 = vld [vmem:[#allocation3 + $0x58] sm:$0xff] }
 0x12a   :  { %588 = vst.msk [vmem:[#allocation3 + $0x140] sm:$0xff] %vm111_vm2, %v533_v9  ;;  %v1096_v11 = vadd.f32 %v1025_v62, %v624_v10 }
 0x12b   :  { %1137 = vst.msk [vmem:[#allocation3 + $0x128] sm:$0xff] %vm111_vm2, %v1097_v8  ;;  %v8946_v12 = vpop.f32.mrb[36].mxu1  ;;  %v1153_v8 = vld [vmem:[#allocation3 + $0x68] sm:$0xff] }
 0x12c   :  { %1136 = vst.msk [vmem:[#allocation3 + $0x120] sm:$0xff] %vm111_vm2, %v1096_v11  ;;  %v8883_v13 = vpop.f32.mrb[38].mxu0  ;;  %v627_v14 = vld [vmem:[#allocation3 + $0x138] sm:$0xff]  ;;  %v1045_v15 = vpop.f32.mrb[37].mxu1 }
 0x12d   :  { %591 = vst.msk [vmem:[#allocation3 + $0x158] sm:$0xff] %vm111_vm2, %v8883_v13  ;;  %v1099_v16 = vadd.f32 %v8943_v4, %v627_v14  ;;  %v543_v17 = vpop.f32.mrb[39].mxu0  ;;  %v626_v18 = vld [vmem:[#allocation3 + $0x130] sm:$0xff] }
 0x12e   :  { %590 = vst.msk [vmem:[#allocation3 + $0x150] sm:$0xff] %vm111_vm2, %v543_v17  ;;  %v1098_v19 = vadd.f32 %v1035_v7, %v626_v18 }
 0x12f   :  { %1139 = vst.msk [vmem:[#allocation3 + $0x138] sm:$0xff] %vm111_vm2, %v1099_v16  ;;  %v8949_v20 = vpop.f32.mrb[38].mxu1 }
 0x130   :  { %1138 = vst.msk [vmem:[#allocation3 + $0x130] sm:$0xff] %vm111_vm2, %v1098_v19  ;;  %v629_v21 = vld [vmem:[#allocation3 + $0x148] sm:$0xff]  ;;  %v8958_v23 = vpop.f32.mrb[40].mxu0  ;;  %v1055_v24 = vpop.f32.mrb[39].mxu1 }
 0x131   :  { %v1101_v25 = vadd.f32 %v8946_v12, %v629_v21  ;;  %v1617_v26 = vadd.f32 %v8958_v23, %v1145_v22  ;;  %v628_v27 = vld [vmem:[#allocation3 + $0x140] sm:$0xff]  ;;  %v1417_v29 = vpop.f32.mrb[41].mxu0 }
 0x132   :  { %v1100_v30 = vadd.f32 %v1045_v15, %v628_v27  ;;  %v1616_v31 = vadd.f32 %v1417_v29, %v1144_v28  ;;  %v1152_v12 = vld [vmem:[#allocation3 + $0x60] sm:$0xff] }
 0x133   :  { %1141 = vst.msk [vmem:[#allocation3 + $0x148] sm:$0xff] %vm111_vm2, %v1101_v25  ;;  %1657 = vst.msk [vmem:[#allocation3 + $0x28] sm:$0xff] %vm111_vm2, %v1617_v26 }
 0x134   :  { %1140 = vst.msk [vmem:[#allocation3 + $0x140] sm:$0xff] %vm111_vm2, %v1100_v30  ;;  %1656 = vst.msk [vmem:[#allocation3 + $0x20] sm:$0xff] %vm111_vm2, %v1616_v31  ;;  %v631_v32 = vld [vmem:[#allocation3 + $0x158] sm:$0xff]  ;;  %v8961_v34 = vpop.f32.mrb[42].mxu0 }
 0x135   :  { %v1103_v35 = vadd.f32 %v8949_v20, %v631_v32  ;;  %v1619_v36 = vadd.f32 %v8961_v34, %v1147_v33  ;;  %v630_v37 = vld [vmem:[#allocation3 + $0x150] sm:$0xff]  ;;  %v1427_v39 = vpop.f32.mrb[43].mxu0  ;;  %v1155_v20 = vld [vmem:[#allocation3 + $0x78] sm:$0xff]  ;;  %v1157_v33 = vld [vmem:[#allocation3 + $0x88] sm:$0xff] }
 0x136   :  { %v1102_v40 = vadd.f32 %v1055_v24, %v630_v37  ;;  %v1618_v41 = vadd.f32 %v1427_v39, %v1146_v38  ;;  %v1154_v24 = vld [vmem:[#allocation3 + $0x70] sm:$0xff]  ;;  %v1156_v37 = vld [vmem:[#allocation3 + $0x80] sm:$0xff] }
 0x137   :  { %1143 = vst.msk [vmem:[#allocation3 + $0x158] sm:$0xff] %vm111_vm2, %v1103_v35  ;;  %1659 = vst.msk [vmem:[#allocation3 + $0x38] sm:$0xff] %vm111_vm2, %v1619_v36  ;;  %v8149_v39 = vld [vmem:[%s13312_s3 + $0x1e8] sm:$0xff] }
 0x138   :  { %1142 = vst.msk [vmem:[#allocation3 + $0x150] sm:$0xff] %vm111_vm2, %v1102_v40  ;;  %1658 = vst.msk [vmem:[#allocation3 + $0x30] sm:$0xff] %vm111_vm2, %v1618_v41  ;;  %v8964_v44 = vpop.f32.mrb[44].mxu0  ;;  %v8151_v40 = vld [vmem:[%s13312_s3 + $0x1f8] sm:$0xff] }
 0x139   :  { %v1621_v48 = vadd.f32 %v8964_v44, %v1149_v43  ;;  %v1437_v50 = vpop.f32.mrb[45].mxu0  ;;  %v9088_v45 = vpack.c.bf16 %v8151_v40, %v8149_v39 }
 0x13a   :  { %v1697_v53 = vld [vmem:[#allocation3 + $0x28] sm:$0xff]  ;;  %v1620_v54 = vadd.f32 %v1437_v50, %v1148_v49 }
 0x13b   :  { %v1744_v56 = vadd.f32 %v10570_v42, %v1697_v53  ;;  %v1696_v57 = vld [vmem:[#allocation3 + $0x20] sm:$0xff]  ;;  %1661 = vst.msk [vmem:[#allocation3 + $0x48] sm:$0xff] %vm111_vm2, %v1621_v48  ;;  %v8150_v50 = vld [vmem:[%s13312_s3 + $0x1f0] sm:$0xff]  ;;  %9089 = vmatprep.subr.bf16.mxu0 %v9088_v45 }
 0x13c   :  { %v1743_v58 = vadd.f32 %v10570_v42, %v1696_v57  ;;  %1660 = vst.msk [vmem:[#allocation3 + $0x40] sm:$0xff] %vm111_vm2, %v1620_v54  ;;  %v8967_v60 = vpop.f32.mrb[46].mxu0  ;;  %v9090_v54 = vpack.c.bf16 %v8150_v50, %v8148_v46  ;;  %v1158_v57 = vld [vmem:[#allocation3 + $0x90] sm:$0xff]  ;;  %v8162_v46 = vld [vmem:[%s13312_s3 + $0x250] sm:$0xff] }
 0x13d   :  { %v1784_v61 = vmax.f32 %v1744_v56, 0.0  ;;  %v1623_v62 = vadd.f32 %v8967_v60, %v1151_v59  ;;  %v1447_v0 = vpop.f32.mrb[47].mxu0  ;;  %v8153_v59 = vld [vmem:[%s13312_s3 + $0x208] sm:$0xff]  ;;  %v8155_v60 = vld [vmem:[%s13312_s3 + $0x218] sm:$0xff] }
 0x13e   :  { %v1783_v1 = vmax.f32 %v1743_v58, 0.0  ;;  %v1699_v2 = vld [vmem:[#allocation3 + $0x38] sm:$0xff]  ;;  %v1622_v4 = vadd.f32 %v1447_v0, %v1150_v63  ;;  %v9092_v0 = vpack.c.bf16 %v8155_v60, %v8153_v59  ;;  %9091 = vmatpush1.bf16.msra.mxu0 %v9090_v54  ;;  %v8165_v59 = vld [vmem:[%s13312_s3 + $0x268] sm:$0xff]  ;;  %v8167_v60 = vld [vmem:[%s13312_s3 + $0x278] sm:$0xff] }
 0x13f   :  { %1824 = vst.msk [vmem:[#allocation3 + $0x28] sm:$0xff] %vm111_vm2, %v1784_v61  ;;  %v1746_v5 = vadd.f32 %v10570_v42, %v1699_v2  ;;  %v1698_v6 = vld [vmem:[#allocation3 + $0x30] sm:$0xff]  ;;  %1663 = vst.msk [vmem:[#allocation3 + $0x58] sm:$0xff] %vm111_vm2, %v1623_v62 }
 0x140   :  { %1823 = vst.msk [vmem:[#allocation3 + $0x20] sm:$0xff] %vm111_vm2, %v1783_v1  ;;  %v1745_v7 = vadd.f32 %v10570_v42, %v1698_v6  ;;  %1662 = vst.msk [vmem:[#allocation3 + $0x50] sm:$0xff] %vm111_vm2, %v1622_v4  ;;  %v8970_v9 = vpop.f32.mrb[48].mxu0  ;;  %v8152_v1 = vld [vmem:[%s13312_s3 + $0x200] sm:$0xff]  ;;  %v8154_v6 = vld [vmem:[%s13312_s3 + $0x210] sm:$0xff]  ;;  %9093 = vmatprep.subr.bf16.mxu0 %v9092_v0  ;;  %v9104_v0 = vpack.c.bf16 %v8167_v60, %v8165_v59 }
 0x141   :  { %v1786_v10 = vmax.f32 %v1746_v5, 0.0  ;;  %v1625_v11 = vadd.f32 %v8970_v9, %v1153_v8  ;;  %v1457_v13 = vpop.f32.mrb[49].mxu0  ;;  %v1161_v8 = vld [vmem:[#allocation3 + $0xa8] sm:$0xff] }
 0x142   :  { %v1785_v14 = vmax.f32 %v1745_v7, 0.0  ;;  %v1701_v15 = vld [vmem:[#allocation3 + $0x48] sm:$0xff]  ;;  %v1624_v16 = vadd.f32 %v1457_v13, %v1152_v12  ;;  %v1160_v13 = vld [vmem:[#allocation3 + $0xa0] sm:$0xff] }
 0x143   :  { %1826 = vst.msk [vmem:[#allocation3 + $0x38] sm:$0xff] %vm111_vm2, %v1786_v10  ;;  %v1748_v17 = vadd.f32 %v10570_v42, %v1701_v15  ;;  %v1700_v18 = vld [vmem:[#allocation3 + $0x40] sm:$0xff]  ;;  %1665 = vst.msk [vmem:[#allocation3 + $0x68] sm:$0xff] %vm111_vm2, %v1625_v11  ;;  %v9094_v10 = vpack.c.bf16 %v8154_v6, %v8152_v1  ;;  %v8164_v1 = vld [vmem:[%s13312_s3 + $0x260] sm:$0xff] }
 0x144   :  { %1825 = vst.msk [vmem:[#allocation3 + $0x30] sm:$0xff] %vm111_vm2, %v1785_v14  ;;  %v1747_v19 = vadd.f32 %v10570_v42, %v1700_v18  ;;  %1664 = vst.msk [vmem:[#allocation3 + $0x60] sm:$0xff] %vm111_vm2, %v1624_v16  ;;  %v8973_v21 = vpop.f32.mrb[50].mxu0  ;;  %v8157_v15 = vld [vmem:[%s13312_s3 + $0x228] sm:$0xff]  ;;  %v8159_v16 = vld [vmem:[%s13312_s3 + $0x238] sm:$0xff] }
 0x145   :  { %v1788_v22 = vmax.f32 %v1748_v17, 0.0  ;;  %v1627_v23 = vadd.f32 %v8973_v21, %v1155_v20  ;;  %v1467_v25 = vpop.f32.mrb[51].mxu0  ;;  %v9096_v20 = vpack.c.bf16 %v8159_v16, %v8157_v15  ;;  %v8156_v21 = vld [vmem:[%s13312_s3 + $0x220] sm:$0xff]  ;;  %9095 = vmatpush1.bf16.msra.mxu0 %v9094_v10 }
 0x146   :  { %v1787_v26 = vmax.f32 %v1747_v19, 0.0  ;;  %v1703_v27 = vld [vmem:[#allocation3 + $0x58] sm:$0xff]  ;;  %v1626_v28 = vadd.f32 %v1467_v25, %v1154_v24  ;;  %v10630_v49 = vld [vmem:[#allocation3 + $0x28] sm:$0xff] }
 0x147   :  { %1828 = vst.msk [vmem:[#allocation3 + $0x48] sm:$0xff] %vm111_vm2, %v1788_v22  ;;  %v1750_v29 = vadd.f32 %v10570_v42, %v1703_v27  ;;  %v1702_v30 = vld [vmem:[#allocation3 + $0x50] sm:$0xff]  ;;  %1667 = vst.msk [vmem:[#allocation3 + $0x78] sm:$0xff] %vm111_vm2, %v1627_v23  ;;  %v10607_v31 = vld [vmem:[#allocation3 + $0x20] sm:$0xff]  ;;  %9097 = vmatprep.subr.bf16.mxu0 %v9096_v20 }
 0x148   :  { %1827 = vst.msk [vmem:[#allocation3 + $0x40] sm:$0xff] %vm111_vm2, %v1787_v26  ;;  %v1749_v32 = vadd.f32 %v10570_v42, %v1702_v30  ;;  %1666 = vst.msk [vmem:[#allocation3 + $0x70] sm:$0xff] %vm111_vm2, %v1626_v28  ;;  %v8976_v34 = vpop.f32.mrb[52].mxu0  ;;  %7992 = vmatmul.mubr.msk.f32.gmra.mrb[48].mxu1 %vm111_vm2, %v10607_v31  ;;  %8050 = vmatmul.mubr.msk.f32.gmra.mrb[84].mxu0 %vm111_vm2, %v10607_v31  ;;  %v8158_v25 = vld [vmem:[%s13312_s3 + $0x230] sm:$0xff]  ;;  %v1163_v27 = vld [vmem:[#allocation3 + $0xb8] sm:$0xff] }
 0x149   :  { %v1790_v35 = vmax.f32 %v1750_v29, 0.0  ;;  %v1629_v36 = vadd.f32 %v8976_v34, %v1157_v33  ;;  %v1477_v38 = vpop.f32.mrb[53].mxu0  ;;  %2137 = vmatprep.mubr.f32.mxu1 %v9738_v3  ;;  %2772 = vmatprep.mubr.f32.mxu0 %v9738_v3  ;;  %v9098_v29 = vpack.c.bf16 %v8158_v25, %v8156_v21  ;;  %v1162_v33 = vld [vmem:[#allocation3 + $0xb0] sm:$0xff] }
 0x14a   :  { %v1789_v41 = vmax.f32 %v1749_v32, 0.0  ;;  %v1705_v43 = vld [vmem:[#allocation3 + $0x68] sm:$0xff]  ;;  %v1628_v44 = vadd.f32 %v1477_v38, %v1156_v37  ;;  %v10682_v24 = vld [vmem:[#allocation3 + $0x38] sm:$0xff] }
 0x14b   :  { %1830 = vst.msk [vmem:[#allocation3 + $0x58] sm:$0xff] %vm111_vm2, %v1790_v35  ;;  %v1752_v47 = vadd.f32 %v10570_v42, %v1705_v43  ;;  %v1704_v48 = vld [vmem:[#allocation3 + $0x60] sm:$0xff]  ;;  %1669 = vst.msk [vmem:[#allocation3 + $0x88] sm:$0xff] %vm111_vm2, %v1629_v36  ;;  %v10656_v5 = vld [vmem:[#allocation3 + $0x30] sm:$0xff]  ;;  %9099 = vmatpush1.bf16.msra.mxu0 %v9098_v29 }
 0x14c   :  { %1829 = vst.msk [vmem:[#allocation3 + $0x50] sm:$0xff] %vm111_vm2, %v1789_v41  ;;  %v1751_v51 = vadd.f32 %v10570_v42, %v1704_v48  ;;  %1668 = vst.msk [vmem:[#allocation3 + $0x80] sm:$0xff] %vm111_vm2, %v1628_v44  ;;  %v8979_v53 = vpop.f32.mrb[54].mxu0  ;;  %7993 = vmatmul.mubr.msk.f32.gmra.mrb[50].mxu1 %vm111_vm2, %v10630_v49  ;;  %8051 = vmatmul.mubr.msk.f32.gmra.mrb[86].mxu0 %vm111_vm2, %v10630_v49  ;;  %v8161_v35 = vld [vmem:[%s13312_s3 + $0x248] sm:$0xff]  ;;  %v8163_v36 = vld [vmem:[%s13312_s3 + $0x258] sm:$0xff] }
 0x14d   :  { %v1792_v55 = vmax.f32 %v1752_v47, 0.0  ;;  %v1631_v56 = vadd.f32 %v8979_v53, %v1159_v52  ;;  %v1487_v58 = vpop.f32.mrb[55].mxu0  ;;  %2143 = vmatprep.mubr.f32.mxu1 %v9738_v3  ;;  %2778 = vmatprep.mubr.f32.mxu0 %v9738_v3  ;;  %v9100_v40 = vpack.c.bf16 %v8163_v36, %v8161_v35  ;;  %v8160_v41 = vld [vmem:[%s13312_s3 + $0x240] sm:$0xff]  ;;  %v1165_v48 = vld [vmem:[#allocation3 + $0xc8] sm:$0xff]  ;;  %v8211_v52 = vld [vmem:[%s13312_s3 + $0x298] sm:$0xff] }
 0x14e   :  { %v1791_v61 = vmax.f32 %v1751_v51, 0.0  ;;  %v1707_v62 = vld [vmem:[#allocation3 + $0x78] sm:$0xff]  ;;  %v1630_v63 = vadd.f32 %v1487_v58, %v1158_v57  ;;  %v8209_v51 = vld [vmem:[%s13312_s3 + $0x288] sm:$0xff]  ;;  %v9102_v53 = vpack.c.bf16 %v8162_v46, %v8160_v41  ;;  %v10740_v6 = vld [vmem:[#allocation3 + $0x48] sm:$0xff] }
 0x14f   :  { %1832 = vst.msk [vmem:[#allocation3 + $0x68] sm:$0xff] %vm111_vm2, %v1792_v55  ;;  %v1754_v2 = vadd.f32 %v10570_v42, %v1707_v62  ;;  %v1706_v4 = vld [vmem:[#allocation3 + $0x70] sm:$0xff]  ;;  %1671 = vst.msk [vmem:[#allocation3 + $0x98] sm:$0xff] %vm111_vm2, %v1631_v56  ;;  %v10708_v45 = vld [vmem:[#allocation3 + $0x40] sm:$0xff]  ;;  %v9108_v58 = vpack.c.bf16 %v8211_v52, %v8209_v51  ;;  %9101 = vmatprep.subr.bf16.mxu0 %v9100_v40 }
 0x150   :  { %1831 = vst.msk [vmem:[#allocation3 + $0x60] sm:$0xff] %vm111_vm2, %v1791_v61  ;;  %v1753_v7 = vadd.f32 %v10570_v42, %v1706_v4  ;;  %1670 = vst.msk [vmem:[#allocation3 + $0x90] sm:$0xff] %vm111_vm2, %v1630_v63  ;;  %v8982_v9 = vpop.f32.mrb[56].mxu0  ;;  %7994 = vmatmul.mubr.msk.f32.gmra.mrb[52].mxu1 %vm111_vm2, %v10656_v5  ;;  %8052 = vmatmul.mubr.msk.f32.gmra.mrb[88].mxu0 %vm111_vm2, %v10656_v5  ;;  %v1164_v56 = vld [vmem:[#allocation3 + $0xc0] sm:$0xff] }
 0x151   :  { %v1794_v11 = vmax.f32 %v1754_v2, 0.0  ;;  %v1633_v12 = vadd.f32 %v8982_v9, %v1161_v8  ;;  %v1497_v14 = vpop.f32.mrb[57].mxu0  ;;  %2149 = vmatprep.mubr.f32.mxu1 %v9738_v3  ;;  %2784 = vmatprep.mubr.f32.mxu0 %v9738_v3  ;;  %v1167_v9 = vld [vmem:[#allocation3 + $0xd8] sm:$0xff] }
 0x152   :  { %v1793_v17 = vmax.f32 %v1753_v7, 0.0  ;;  %v1709_v18 = vld [vmem:[#allocation3 + $0x88] sm:$0xff]  ;;  %v1632_v19 = vadd.f32 %v1497_v14, %v1160_v13  ;;  %9109 = vmatprep.subr.bf16.mxu1 %v9108_v58  ;;  %9103 = vmatpush1.bf16.msra.mxu0 %v9102_v53  ;;  %v1166_v14 = vld [vmem:[#allocation3 + $0xd0] sm:$0xff]  ;;  %v10771_v36 = vld [vmem:[#allocation3 + $0x58] sm:$0xff] }
 0x153   :  { %1834 = vst.msk [vmem:[#allocation3 + $0x78] sm:$0xff] %vm111_vm2, %v1794_v11  ;;  %v1756_v22 = vadd.f32 %v10570_v42, %v1709_v18  ;;  %v1708_v23 = vld [vmem:[#allocation3 + $0x80] sm:$0xff]  ;;  %1673 = vst.msk [vmem:[#allocation3 + $0xa8] sm:$0xff] %vm111_vm2, %v1633_v12  ;;  %v8166_v7 = vld [vmem:[%s13312_s3 + $0x270] sm:$0xff]  ;;  %9105 = vmatprep.subr.bf16.mxu0 %v9104_v0 }
 0x154   :  { %1833 = vst.msk [vmem:[#allocation3 + $0x70] sm:$0xff] %vm111_vm2, %v1793_v17  ;;  %v1755_v26 = vadd.f32 %v10570_v42, %v1708_v23  ;;  %1672 = vst.msk [vmem:[#allocation3 + $0xa0] sm:$0xff] %vm111_vm2, %v1632_v19  ;;  %v8985_v28 = vpop.f32.mrb[58].mxu0  ;;  %7995 = vmatmul.mubr.msk.f32.gmra.mrb[54].mxu1 %vm111_vm2, %v10682_v24  ;;  %8053 = vmatmul.mubr.msk.f32.gmra.mrb[90].mxu0 %vm111_vm2, %v10682_v24  ;;  %v9106_v11 = vpack.c.bf16 %v8166_v7, %v8164_v1  ;;  %v10757_v21 = vld [vmem:[#allocation3 + $0x50] sm:$0xff]  ;;  %v1169_v23 = vld [vmem:[#allocation3 + $0xe8] sm:$0xff] }
 0x155   :  { %v1796_v30 = vmax.f32 %v1756_v22, 0.0  ;;  %v1635_v32 = vadd.f32 %v8985_v28, %v1163_v27  ;;  %v1507_v34 = vpop.f32.mrb[59].mxu0  ;;  %2155 = vmatprep.mubr.f32.mxu1 %v9738_v3  ;;  %2790 = vmatprep.mubr.f32.mxu0 %v9738_v3  ;;  %v1168_v28 = vld [vmem:[#allocation3 + $0xe0] sm:$0xff] }
 0x156   :  { %v1795_v37 = vmax.f32 %v1755_v26, 0.0  ;;  %v1711_v38 = vld [vmem:[#allocation3 + $0x98] sm:$0xff]  ;;  %v1634_v39 = vadd.f32 %v1507_v34, %v1162_v33  ;;  %9107 = vmatpush1.bf16.msra.mxu0 %v9106_v11  ;;  %v1172_v58 = vld [vmem:[#allocation3 + $0x100] sm:$0xff]  ;;  %v10799_v1 = vld [vmem:[#allocation3 + $0x68] sm:$0xff] }
 0x157   :  { %1836 = vst.msk [vmem:[#allocation3 + $0x88] sm:$0xff] %vm111_vm2, %v1796_v30  ;;  %v1758_v43 = vadd.f32 %v10570_v42, %v1711_v38  ;;  %v1710_v44 = vld [vmem:[#allocation3 + $0x90] sm:$0xff]  ;;  %1675 = vst.msk [vmem:[#allocation3 + $0xb8] sm:$0xff] %vm111_vm2, %v1635_v32  ;;  %v1171_v38 = vld [vmem:[#allocation3 + $0xf8] sm:$0xff] }
 0x158   :  { %1835 = vst.msk [vmem:[#allocation3 + $0x80] sm:$0xff] %vm111_vm2, %v1795_v37  ;;  %v1757_v47 = vadd.f32 %v10570_v42, %v1710_v44  ;;  %1674 = vst.msk [vmem:[#allocation3 + $0xb0] sm:$0xff] %vm111_vm2, %v1634_v39  ;;  %v8988_v50 = vpop.f32.mrb[60].mxu0  ;;  %7996 = vmatmul.mubr.msk.f32.gmra.mrb[56].mxu1 %vm111_vm2, %v10708_v45  ;;  %8054 = vmatmul.mubr.msk.f32.gmra.mrb[92].mxu0 %vm111_vm2, %v10708_v45  ;;  %v10785_v52 = vld [vmem:[#allocation3 + $0x60] sm:$0xff] }
 0x159   :  { %v1798_v54 = vmax.f32 %v1758_v43, 0.0  ;;  %v1637_v55 = vadd.f32 %v8988_v50, %v1165_v48  ;;  %v1517_v57 = vpop.f32.mrb[61].mxu0  ;;  %2161 = vmatprep.mubr.f32.mxu1 %v9738_v3  ;;  %2796 = vmatprep.mubr.f32.mxu0 %v9738_v3  ;;  %v1170_v43 = vld [vmem:[#allocation3 + $0xf0] sm:$0xff] }
 0x15a   :  { %v1797_v61 = vmax.f32 %v1757_v47, 0.0  ;;  %v1713_v62 = vld [vmem:[#allocation3 + $0xa8] sm:$0xff]  ;;  %v1636_v63 = vadd.f32 %v1517_v57, %v1164_v56 }
 0x15b   :  { %1838 = vst.msk [vmem:[#allocation3 + $0x98] sm:$0xff] %vm111_vm2, %v1798_v54  ;;  %v1760_v2 = vadd.f32 %v10570_v42, %v1713_v62  ;;  %v1712_v4 = vld [vmem:[#allocation3 + $0xa0] sm:$0xff]  ;;  %1677 = vst.msk [vmem:[#allocation3 + $0xc8] sm:$0xff] %vm111_vm2, %v1637_v55  ;;  %v1173_v54 = vld [vmem:[#allocation3 + $0x108] sm:$0xff] }
 0x15c   :  { %1837 = vst.msk [vmem:[#allocation3 + $0x90] sm:$0xff] %vm111_vm2, %v1797_v61  ;;  %v1759_v8 = vadd.f32 %v10570_v42, %v1712_v4  ;;  %1676 = vst.msk [vmem:[#allocation3 + $0xc0] sm:$0xff] %vm111_vm2, %v1636_v63  ;;  %v8991_v10 = vpop.f32.mrb[62].mxu0  ;;  %7997 = vmatmul.mubr.msk.f32.gmra.mrb[58].mxu1 %vm111_vm2, %v10740_v6  ;;  %8055 = vmatmul.mubr.msk.f32.gmra.mrb[94].mxu0 %vm111_vm2, %v10740_v6  ;;  %v1175_v4 = vld [vmem:[#allocation3 + $0x118] sm:$0xff] }
 0x15d   :  { %v1800_v12 = vmax.f32 %v1760_v2, 0.0  ;;  %v1639_v13 = vadd.f32 %v8991_v10, %v1167_v9  ;;  %v1527_v15 = vpop.f32.mrb[63].mxu0  ;;  %2167 = vmatprep.mubr.f32.mxu1 %v9738_v3  ;;  %2802 = vmatprep.mubr.f32.mxu0 %v9738_v3  ;;  %v1174_v10 = vld [vmem:[#allocation3 + $0x110] sm:$0xff] }
 0x15e   :  { %v1799_v16 = vmax.f32 %v1759_v8, 0.0  ;;  %v1715_v17 = vld [vmem:[#allocation3 + $0xb8] sm:$0xff]  ;;  %v1638_v18 = vadd.f32 %v1527_v15, %v1166_v14 }
 0x15f   :  { %1840 = vst.msk [vmem:[#allocation3 + $0xa8] sm:$0xff] %vm111_vm2, %v1800_v12  ;;  %v1762_v19 = vadd.f32 %v10570_v42, %v1715_v17  ;;  %v1714_v20 = vld [vmem:[#allocation3 + $0xb0] sm:$0xff]  ;;  %1679 = vst.msk [vmem:[#allocation3 + $0xd8] sm:$0xff] %vm111_vm2, %v1639_v13 }
 0x160   :  { %1839 = vst.msk [vmem:[#allocation3 + $0xa0] sm:$0xff] %vm111_vm2, %v1799_v16  ;;  %v1761_v22 = vadd.f32 %v10570_v42, %v1714_v20  ;;  %1678 = vst.msk [vmem:[#allocation3 + $0xd0] sm:$0xff] %vm111_vm2, %v1638_v18  ;;  %v8994_v25 = vpop.f32.mrb[64].mxu0  ;;  %7998 = vmatmul.mubr.msk.f32.gmra.mrb[60].mxu1 %vm111_vm2, %v10757_v21  ;;  %8056 = vmatmul.mubr.msk.f32.gmra.mrb[96].mxu0 %vm111_vm2, %v10757_v21  ;;  %v10813_v17 = vld [vmem:[#allocation3 + $0x70] sm:$0xff] }
 0x161   :  { %v1802_v26 = vmax.f32 %v1762_v19, 0.0  ;;  %v1641_v27 = vadd.f32 %v8994_v25, %v1169_v23  ;;  %v1537_v29 = vpop.f32.mrb[65].mxu0  ;;  %2173 = vmatprep.mubr.f32.mxu1 %v9738_v3  ;;  %2808 = vmatprep.mubr.f32.mxu0 %v9738_v3  ;;  %v1177_v19 = vld [vmem:[#allocation3 + $0x128] sm:$0xff]  ;;  %v1176_v25 = vld [vmem:[#allocation3 + $0x120] sm:$0xff] }
 0x162   :  { %v1801_v30 = vmax.f32 %v1761_v22, 0.0  ;;  %v1717_v32 = vld [vmem:[#allocation3 + $0xc8] sm:$0xff]  ;;  %v1640_v33 = vadd.f32 %v1537_v29, %v1168_v28 }
 0x163   :  { %1842 = vst.msk [vmem:[#allocation3 + $0xb8] sm:$0xff] %vm111_vm2, %v1802_v26  ;;  %v1764_v34 = vadd.f32 %v10570_v42, %v1717_v32  ;;  %v1716_v35 = vld [vmem:[#allocation3 + $0xc0] sm:$0xff]  ;;  %1681 = vst.msk [vmem:[#allocation3 + $0xe8] sm:$0xff] %vm111_vm2, %v1641_v27 }
 0x164   :  { %1841 = vst.msk [vmem:[#allocation3 + $0xb0] sm:$0xff] %vm111_vm2, %v1801_v30  ;;  %v1763_v37 = vadd.f32 %v10570_v42, %v1716_v35  ;;  %1680 = vst.msk [vmem:[#allocation3 + $0xe0] sm:$0xff] %vm111_vm2, %v1640_v33  ;;  %v8997_v39 = vpop.f32.mrb[66].mxu0  ;;  %7999 = vmatmul.mubr.msk.f32.gmra.mrb[62].mxu1 %vm111_vm2, %v10771_v36  ;;  %8057 = vmatmul.mubr.msk.f32.gmra.mrb[98].mxu0 %vm111_vm2, %v10771_v36  ;;  %v10827_v33 = vld [vmem:[#allocation3 + $0x78] sm:$0xff] }
 0x165   :  { %v1804_v40 = vmax.f32 %v1764_v34, 0.0  ;;  %v1643_v41 = vadd.f32 %v8997_v39, %v1171_v38  ;;  %v1547_v44 = vpop.f32.mrb[67].mxu0  ;;  %2179 = vmatprep.mubr.f32.mxu1 %v9738_v3  ;;  %2814 = vmatprep.mubr.f32.mxu0 %v9738_v3  ;;  %v1179_v35 = vld [vmem:[#allocation3 + $0x138] sm:$0xff] }
 0x166   :  { %v1803_v46 = vmax.f32 %v1763_v37, 0.0  ;;  %v1719_v47 = vld [vmem:[#allocation3 + $0xd8] sm:$0xff]  ;;  %v1642_v48 = vadd.f32 %v1547_v44, %v1170_v43 }
 0x167   :  { %1844 = vst.msk [vmem:[#allocation3 + $0xc8] sm:$0xff] %vm111_vm2, %v1804_v40  ;;  %v1766_v50 = vadd.f32 %v10570_v42, %v1719_v47  ;;  %v1718_v51 = vld [vmem:[#allocation3 + $0xd0] sm:$0xff]  ;;  %1683 = vst.msk [vmem:[#allocation3 + $0xf8] sm:$0xff] %vm111_vm2, %v1643_v41 }
 0x168   :  { %1843 = vst.msk [vmem:[#allocation3 + $0xc0] sm:$0xff] %vm111_vm2, %v1803_v46  ;;  %v1765_v53 = vadd.f32 %v10570_v42, %v1718_v51  ;;  %1682 = vst.msk [vmem:[#allocation3 + $0xf0] sm:$0xff] %vm111_vm2, %v1642_v48  ;;  %v9000_v55 = vpop.f32.mrb[68].mxu0  ;;  %8000 = vmatmul.mubr.msk.f32.gmra.mrb[64].mxu1 %vm111_vm2, %v10785_v52  ;;  %8058 = vmatmul.mubr.msk.f32.gmra.mrb[100].mxu0 %vm111_vm2, %v10785_v52  ;;  %v1178_v40 = vld [vmem:[#allocation3 + $0x130] sm:$0xff] }
 0x169   :  { %v1806_v56 = vmax.f32 %v1766_v50, 0.0  ;;  %v1645_v57 = vadd.f32 %v9000_v55, %v1173_v54  ;;  %v1557_v59 = vpop.f32.mrb[69].mxu0  ;;  %2185 = vmatprep.mubr.f32.mxu1 %v9738_v3  ;;  %2820 = vmatprep.mubr.f32.mxu0 %v9738_v3  ;;  %v10841_v50 = vld [vmem:[#allocation3 + $0x80] sm:$0xff] }
 0x16a   :  { %v1805_v60 = vmax.f32 %v1765_v53, 0.0  ;;  %v1721_v61 = vld [vmem:[#allocation3 + $0xe8] sm:$0xff]  ;;  %v1644_v62 = vadd.f32 %v1557_v59, %v1172_v58 }
 0x16b   :  { %1846 = vst.msk [vmem:[#allocation3 + $0xd8] sm:$0xff] %vm111_vm2, %v1806_v56  ;;  %v1768_v63 = vadd.f32 %v10570_v42, %v1721_v61  ;;  %v1720_v0 = vld [vmem:[#allocation3 + $0xe0] sm:$0xff]  ;;  %1685 = vst.msk [vmem:[#allocation3 + $0x108] sm:$0xff] %vm111_vm2, %v1645_v57  ;;  %v1181_v53 = vld [vmem:[#allocation3 + $0x148] sm:$0xff] }
 0x16c   :  { %1845 = vst.msk [vmem:[#allocation3 + $0xd0] sm:$0xff] %vm111_vm2, %v1805_v60  ;;  %v1767_v2 = vadd.f32 %v10570_v42, %v1720_v0  ;;  %1684 = vst.msk [vmem:[#allocation3 + $0x100] sm:$0xff] %vm111_vm2, %v1644_v62  ;;  %v9003_v7 = vpop.f32.mrb[70].mxu0  ;;  %8001 = vmatmul.mubr.msk.f32.gmra.mrb[66].mxu1 %vm111_vm2, %v10799_v1  ;;  %8059 = vmatmul.mubr.msk.f32.gmra.mrb[102].mxu0 %vm111_vm2, %v10799_v1  ;;  %v1180_v57 = vld [vmem:[#allocation3 + $0x140] sm:$0xff]  ;;  %v10855_v0 = vld [vmem:[#allocation3 + $0x88] sm:$0xff] }
 0x16d   :  { %v1808_v8 = vmax.f32 %v1768_v63, 0.0  ;;  %v1647_v9 = vadd.f32 %v9003_v7, %v1175_v4  ;;  %v1567_v11 = vpop.f32.mrb[71].mxu0  ;;  %2191 = vmatprep.mubr.f32.mxu1 %v9738_v3  ;;  %2826 = vmatprep.mubr.f32.mxu0 %v9738_v3  ;;  %v1183_v4 = vld [vmem:[#allocation3 + $0x158] sm:$0xff] }
 0x16e   :  { %v1807_v12 = vmax.f32 %v1767_v2, 0.0  ;;  %v1723_v13 = vld [vmem:[#allocation3 + $0xf8] sm:$0xff]  ;;  %v1646_v14 = vadd.f32 %v1567_v11, %v1174_v10  ;;  %v1182_v10 = vld [vmem:[#allocation3 + $0x150] sm:$0xff] }
 0x16f   :  { %1848 = vst.msk [vmem:[#allocation3 + $0xe8] sm:$0xff] %vm111_vm2, %v1808_v8  ;;  %v1770_v15 = vadd.f32 %v10570_v42, %v1723_v13  ;;  %v1722_v16 = vld [vmem:[#allocation3 + $0xf0] sm:$0xff]  ;;  %1687 = vst.msk [vmem:[#allocation3 + $0x118] sm:$0xff] %vm111_vm2, %v1647_v9 }
 0x170   :  { %1847 = vst.msk [vmem:[#allocation3 + $0xe0] sm:$0xff] %vm111_vm2, %v1807_v12  ;;  %v1769_v18 = vadd.f32 %v10570_v42, %v1722_v16  ;;  %1686 = vst.msk [vmem:[#allocation3 + $0x110] sm:$0xff] %vm111_vm2, %v1646_v14  ;;  %v9006_v20 = vpop.f32.mrb[72].mxu0  ;;  %8002 = vmatmul.mubr.msk.f32.gmra.mrb[68].mxu1 %vm111_vm2, %v10813_v17  ;;  %8060 = vmatmul.mubr.msk.f32.gmra.mrb[104].mxu0 %vm111_vm2, %v10813_v17 }
 0x171   :  { %v1810_v22 = vmax.f32 %v1770_v15, 0.0  ;;  %v1649_v23 = vadd.f32 %v9006_v20, %v1177_v19  ;;  %v1577_v26 = vpop.f32.mrb[73].mxu0  ;;  %2197 = vmatprep.mubr.f32.mxu1 %v9738_v3  ;;  %2832 = vmatprep.mubr.f32.mxu0 %v9738_v3 }
 0x172   :  { %v1809_v27 = vmax.f32 %v1769_v18, 0.0  ;;  %v1725_v28 = vld [vmem:[#allocation3 + $0x108] sm:$0xff]  ;;  %v1648_v29 = vadd.f32 %v1577_v26, %v1176_v25  ;;  %v10869_v18 = vld [vmem:[#allocation3 + $0x90] sm:$0xff] }
 0x173   :  { %1850 = vst.msk [vmem:[#allocation3 + $0xf8] sm:$0xff] %vm111_vm2, %v1810_v22  ;;  %v1772_v30 = vadd.f32 %v10570_v42, %v1725_v28  ;;  %v1724_v32 = vld [vmem:[#allocation3 + $0x100] sm:$0xff]  ;;  %1689 = vst.msk [vmem:[#allocation3 + $0x128] sm:$0xff] %vm111_vm2, %v1649_v23 }
 0x174   :  { %1849 = vst.msk [vmem:[#allocation3 + $0xf0] sm:$0xff] %vm111_vm2, %v1809_v27  ;;  %v1771_v34 = vadd.f32 %v10570_v42, %v1724_v32  ;;  %1688 = vst.msk [vmem:[#allocation3 + $0x120] sm:$0xff] %vm111_vm2, %v1648_v29  ;;  %v9009_v37 = vpop.f32.mrb[74].mxu0  ;;  %8003 = vmatmul.mubr.msk.f32.gmra.mrb[70].mxu1 %vm111_vm2, %v10827_v33  ;;  %8061 = vmatmul.mubr.msk.f32.gmra.mrb[106].mxu0 %vm111_vm2, %v10827_v33  ;;  %v10882_v27 = vld [vmem:[#allocation3 + $0x98] sm:$0xff] }
 0x175   :  { %v1812_v38 = vmax.f32 %v1772_v30, 0.0  ;;  %v1651_v39 = vadd.f32 %v9009_v37, %v1179_v35  ;;  %v1587_v41 = vpop.f32.mrb[75].mxu0  ;;  %2203 = vmatprep.mubr.f32.mxu1 %v9738_v3  ;;  %2838 = vmatprep.mubr.f32.mxu0 %v9738_v3  ;;  %v10894_v37 = vld [vmem:[#allocation3 + $0xa0] sm:$0xff] }
 0x176   :  { %v1811_v43 = vmax.f32 %v1771_v34, 0.0  ;;  %v1727_v44 = vld [vmem:[#allocation3 + $0x118] sm:$0xff]  ;;  %v1650_v46 = vadd.f32 %v1587_v41, %v1178_v40 }
 0x177   :  { %1852 = vst.msk [vmem:[#allocation3 + $0x108] sm:$0xff] %vm111_vm2, %v1812_v38  ;;  %v1774_v47 = vadd.f32 %v10570_v42, %v1727_v44  ;;  %v1726_v48 = vld [vmem:[#allocation3 + $0x110] sm:$0xff]  ;;  %1691 = vst.msk [vmem:[#allocation3 + $0x138] sm:$0xff] %vm111_vm2, %v1651_v39 }
 0x178   :  { %1851 = vst.msk [vmem:[#allocation3 + $0x100] sm:$0xff] %vm111_vm2, %v1811_v43  ;;  %v1773_v51 = vadd.f32 %v10570_v42, %v1726_v48  ;;  %1690 = vst.msk [vmem:[#allocation3 + $0x130] sm:$0xff] %vm111_vm2, %v1650_v46  ;;  %v9012_v54 = vpop.f32.mrb[76].mxu0  ;;  %8004 = vmatmul.mubr.msk.f32.gmra.mrb[72].mxu1 %vm111_vm2, %v10841_v50  ;;  %8062 = vmatmul.mubr.msk.f32.gmra.mrb[108].mxu0 %vm111_vm2, %v10841_v50  ;;  %v10905_v43 = vld [vmem:[#allocation3 + $0xa8] sm:$0xff] }
 0x179   :  { %v1814_v55 = vmax.f32 %v1774_v47, 0.0  ;;  %v1653_v56 = vadd.f32 %v9012_v54, %v1181_v53  ;;  %v1597_v58 = vpop.f32.mrb[77].mxu0  ;;  %2209 = vmatprep.mubr.f32.mxu1 %v9738_v3  ;;  %2844 = vmatprep.mubr.f32.mxu0 %v9738_v3  ;;  %v2109_v41 = vpop.f32.mrb[40].mxu1 }
 0x17a   :  { %v1813_v59 = vmax.f32 %v1773_v51, 0.0  ;;  %v1729_v60 = vld [vmem:[#allocation3 + $0x128] sm:$0xff]  ;;  %v1652_v61 = vadd.f32 %v1597_v58, %v1180_v57  ;;  %v2111_v44 = vpop.f32.mrb[41].mxu1  ;;  %v10915_v51 = vld [vmem:[#allocation3 + $0xb0] sm:$0xff]  ;;  %v10926_v57 = vld [vmem:[#allocation3 + $0xb8] sm:$0xff] }
 0x17b   :  { %1854 = vst.msk [vmem:[#allocation3 + $0x118] sm:$0xff] %vm111_vm2, %v1814_v55  ;;  %v1776_v62 = vadd.f32 %v10570_v42, %v1729_v60  ;;  %v1728_v63 = vld [vmem:[#allocation3 + $0x120] sm:$0xff]  ;;  %1693 = vst.msk [vmem:[#allocation3 + $0x148] sm:$0xff] %vm111_vm2, %v1653_v56 }
 0x17c   :  { %1853 = vst.msk [vmem:[#allocation3 + $0x110] sm:$0xff] %vm111_vm2, %v1813_v59  ;;  %v1775_v2 = vadd.f32 %v10570_v42, %v1728_v63  ;;  %1692 = vst.msk [vmem:[#allocation3 + $0x140] sm:$0xff] %vm111_vm2, %v1652_v61  ;;  %v9015_v7 = vpop.f32.mrb[78].mxu0  ;;  %8005 = vmatmul.mubr.msk.f32.gmra.mrb[74].mxu1 %vm111_vm2, %v10855_v0  ;;  %8063 = vmatmul.mubr.msk.f32.gmra.mrb[110].mxu0 %vm111_vm2, %v10855_v0  ;;  %v10938_v63 = vld [vmem:[#allocation3 + $0xc0] sm:$0xff] }
 0x17d   :  { %v1816_v8 = vmax.f32 %v1776_v62, 0.0  ;;  %v1655_v9 = vadd.f32 %v9015_v7, %v1183_v4  ;;  %v1607_v11 = vpop.f32.mrb[79].mxu0  ;;  %2215 = vmatprep.mubr.f32.mxu1 %v9738_v3  ;;  %2850 = vmatprep.mubr.f32.mxu0 %v9738_v3  ;;  %2350 = vst.msk [vmem:[#allocation4 + $0x8] sm:$0xff] %vm2349_vm3, %v2111_v44  ;;  %v2115_v47 = vpop.f32.mrb[42].mxu1  ;;  %v8219_v44 = vld [vmem:[%s13312_s3 + $0x2d8] sm:$0xff] }
 0x17e   :  { %v1815_v12 = vmax.f32 %v1775_v2, 0.0  ;;  %v1731_v13 = vld [vmem:[#allocation3 + $0x138] sm:$0xff]  ;;  %v1654_v14 = vadd.f32 %v1607_v11, %v1182_v10  ;;  %v2117_v53 = vpop.f32.mrb[43].mxu1  ;;  %v10972_v11 = vld [vmem:[#allocation3 + $0xe0] sm:$0xff] }
 0x17f   :  { %1856 = vst.msk [vmem:[#allocation3 + $0x128] sm:$0xff] %vm111_vm2, %v1816_v8  ;;  %v1778_v15 = vadd.f32 %v10570_v42, %v1731_v13  ;;  %v1730_v16 = vld [vmem:[#allocation3 + $0x130] sm:$0xff]  ;;  %1695 = vst.msk [vmem:[#allocation3 + $0x158] sm:$0xff] %vm111_vm2, %v1655_v9  ;;  %v10948_v8 = vld [vmem:[#allocation3 + $0xc8] sm:$0xff] }
 0x180   :  { %1855 = vst.msk [vmem:[#allocation3 + $0x120] sm:$0xff] %vm111_vm2, %v1815_v12  ;;  %v1777_v19 = vadd.f32 %v10570_v42, %v1730_v16  ;;  %1694 = vst.msk [vmem:[#allocation3 + $0x150] sm:$0xff] %vm111_vm2, %v1654_v14  ;;  %8006 = vmatmul.mubr.msk.f32.gmra.mrb[76].mxu1 %vm111_vm2, %v10869_v18  ;;  %8064 = vmatmul.mubr.msk.f32.gmra.mrb[112].mxu0 %vm111_vm2, %v10869_v18  ;;  %v10956_v9 = vld [vmem:[#allocation3 + $0xd0] sm:$0xff]  ;;  %v10964_v10 = vld [vmem:[#allocation3 + $0xd8] sm:$0xff] }
 0x181   :  { %v1818_v20 = vmax.f32 %v1778_v15, 0.0  ;;  %2221 = vmatprep.mubr.f32.mxu1 %v9738_v3  ;;  %2856 = vmatprep.mubr.f32.mxu0 %v9738_v3  ;;  %2352 = vst.msk [vmem:[#allocation4 + $0x18] sm:$0xff] %vm2349_vm3, %v2117_v53  ;;  %v10924_v56 = vpop.f32.mrb[44].mxu1  ;;  %v10980_v12 = vld [vmem:[#allocation3 + $0xe8] sm:$0xff]  ;;  %v10988_v13 = vld [vmem:[#allocation3 + $0xf0] sm:$0xff]  ;;  %v10996_v14 = vld [vmem:[#allocation3 + $0xf8] sm:$0xff] }
 0x182   :  { %v1817_v22 = vmax.f32 %v1777_v19, 0.0  ;;  %v1733_v23 = vld [vmem:[#allocation3 + $0x148] sm:$0xff]  ;;  %v2123_v58 = vpop.f32.mrb[45].mxu1  ;;  %v11004_v15 = vld [vmem:[#allocation3 + $0x100] sm:$0xff] }
 0x183   :  { %1858 = vst.msk [vmem:[#allocation3 + $0x138] sm:$0xff] %vm111_vm2, %v1818_v20  ;;  %v1780_v25 = vadd.f32 %v10570_v42, %v1733_v23  ;;  %v1732_v26 = vld [vmem:[#allocation3 + $0x140] sm:$0xff]  ;;  %v11012_v16 = vld [vmem:[#allocation3 + $0x108] sm:$0xff]  ;;  %v11020_v19 = vld [vmem:[#allocation3 + $0x110] sm:$0xff] }
 0x184   :  { %1857 = vst.msk [vmem:[#allocation3 + $0x130] sm:$0xff] %vm111_vm2, %v1817_v22  ;;  %v1779_v28 = vadd.f32 %v10570_v42, %v1732_v26  ;;  %8007 = vmatmul.mubr.msk.f32.gmra.mrb[78].mxu1 %vm111_vm2, %v10882_v27  ;;  %8065 = vmatmul.mubr.msk.f32.gmra.mrb[114].mxu0 %vm111_vm2, %v10882_v27  ;;  %v2430_v59 = vld [vmem:[#allocation4 + $0x8] sm:$0xff]  ;;  %v11028_v20 = vld [vmem:[#allocation3 + $0x118] sm:$0xff]  ;;  %v8221_v53 = vld [vmem:[%s13312_s3 + $0x2e8] sm:$0xff] }
 0x185   :  { %v1820_v29 = vmax.f32 %v1780_v25, 0.0  ;;  %2227 = vmatprep.mubr.f32.mxu1 %v9738_v3  ;;  %2862 = vmatprep.mubr.f32.mxu0 %v9738_v3  ;;  %2354 = vst.msk [vmem:[#allocation4 + $0x28] sm:$0xff] %vm2349_vm3, %v2123_v58  ;;  %v10936_v62 = vpop.f32.mrb[46].mxu1  ;;  %v8208_v26 = vld [vmem:[%s13312_s3 + $0x280] sm:$0xff] }
 0x186   :  { %v1819_v30 = vmax.f32 %v1779_v28, 0.0  ;;  %v1735_v32 = vld [vmem:[#allocation3 + $0x158] sm:$0xff]  ;;  %v2129_v2 = vpop.f32.mrb[47].mxu1  ;;  %v1900_v23 = vld [vmem:[#allocation3 + $0x128] sm:$0xff] }
 0x187   :  { %1860 = vst.msk [vmem:[#allocation3 + $0x148] sm:$0xff] %vm111_vm2, %v1820_v29  ;;  %v1782_v34 = vadd.f32 %v10570_v42, %v1735_v32  ;;  %v1734_v35 = vld [vmem:[#allocation3 + $0x150] sm:$0xff]  ;;  %v1899_v22 = vld [vmem:[#allocation3 + $0x120] sm:$0xff]  ;;  %v8210_v28 = vld [vmem:[%s13312_s3 + $0x290] sm:$0xff] }
 0x188   :  { %1859 = vst.msk [vmem:[#allocation3 + $0x140] sm:$0xff] %vm111_vm2, %v1819_v30  ;;  %v1781_v38 = vadd.f32 %v10570_v42, %v1734_v35  ;;  %8008 = vmatmul.mubr.msk.f32.gmra.mrb[80].mxu1 %vm111_vm2, %v10894_v37  ;;  %8066 = vmatmul.mubr.msk.f32.gmra.mrb[116].mxu0 %vm111_vm2, %v10894_v37  ;;  %v2756_v42 = vpop.f32.mrb[80].mxu0  ;;  %v2432_v4 = vld [vmem:[#allocation4 + $0x18] sm:$0xff]  ;;  %v8213_v30 = vld [vmem:[%s13312_s3 + $0x2a8] sm:$0xff]  ;;  %v8215_v32 = vld [vmem:[%s13312_s3 + $0x2b8] sm:$0xff] }
 0x189   :  { %v1822_v39 = vmax.f32 %v1782_v34, 0.0  ;;  %2233 = vmatprep.mubr.f32.mxu1 %v9738_v3  ;;  %2868 = vmatprep.mubr.f32.mxu0 %v9738_v3  ;;  %v2995_v46 = vadd.f32 %v2756_v42, %v2109_v41  ;;  %v2758_v48 = vpop.f32.mrb[81].mxu0  ;;  %2356 = vst.msk [vmem:[#allocation4 + $0x38] sm:$0xff] %vm2349_vm3, %v2129_v2  ;;  %v9110_v34 = vpack.c.bf16 %v8210_v28, %v8208_v26  ;;  %v8217_v41 = vld [vmem:[%s13312_s3 + $0x2c8] sm:$0xff] }
 0x18a   :  { %v1821_v40 = vmax.f32 %v1781_v38, 0.0  ;;  %v2762_v54 = vpop.f32.mrb[82].mxu0  ;;  %v2996_v60 = vadd.f32 %v2758_v48, %v2430_v59  ;;  %v1902_v29 = vld [vmem:[#allocation3 + $0x138] sm:$0xff]  ;;  %v9112_v35 = vpack.c.bf16 %v8215_v32, %v8213_v30  ;;  %v8218_v48 = vld [vmem:[%s13312_s3 + $0x2d0] sm:$0xff] }
 0x18b   :  { %1862 = vst.msk [vmem:[#allocation3 + $0x158] sm:$0xff] %vm111_vm2, %v1822_v39  ;;  %3075 = vst [vmem:[#allocation4] sm:$0xff] %v2995_v46  ;;  %v2997_v55 = vadd.f32 %v2762_v54, %v2115_v47  ;;  %v2764_v61 = vpop.f32.mrb[83].mxu0  ;;  %v1901_v25 = vld [vmem:[#allocation3 + $0x130] sm:$0xff]  ;;  %v8212_v39 = vld [vmem:[%s13312_s3 + $0x2a0] sm:$0xff]  ;;  %v9116_v47 = vpack.c.bf16 %v8219_v44, %v8217_v41 }
 0x18c   :  { %1861 = vst.msk [vmem:[#allocation3 + $0x150] sm:$0xff] %vm111_vm2, %v1821_v40  ;;  %8009 = vmatmul.mubr.msk.f32.gmra.mrb[82].mxu1 %vm111_vm2, %v10905_v43  ;;  %8067 = vmatmul.mubr.msk.f32.gmra.mrb[118].mxu0 %vm111_vm2, %v10905_v43  ;;  %v2998_v7 = vadd.f32 %v2764_v61, %v2432_v4  ;;  %v8214_v40 = vld [vmem:[%s13312_s3 + $0x2b0] sm:$0xff]  ;;  %v8223_v54 = vld [vmem:[%s13312_s3 + $0x2f8] sm:$0xff] }
 0x18d   :  { %2239 = vmatprep.mubr.f32.mxu1 %v9738_v3  ;;  %2874 = vmatprep.mubr.f32.mxu0 %v9738_v3  ;;  %3077 = vst [vmem:[#allocation4 + $0x10] sm:$0xff] %v2997_v55  ;;  %3076 = vst.msk [vmem:[#allocation4 + $0x8] sm:$0xff] %vm2349_vm3, %v2996_v60  ;;  %v9114_v42 = vpack.c.bf16 %v8214_v40, %v8212_v39  ;;  %v9120_v58 = vpack.c.bf16 %v8223_v54, %v8221_v53  ;;  %v8222_v59 = vld [vmem:[%s13312_s3 + $0x2f0] sm:$0xff]  ;;  %v8225_v60 = vld [vmem:[%s13312_s3 + $0x308] sm:$0xff] }
 0x18e   :  { %3078 = vst.msk [vmem:[#allocation4 + $0x18] sm:$0xff] %vm2349_vm3, %v2998_v7  ;;  %v2548_v46 = vld [vmem:[#allocation3 + $0x148] sm:$0xff]  ;;  %v8227_v61 = vld [vmem:[%s13312_s3 + $0x318] sm:$0xff] }
 0x18f   :  { %v2547_v38 = vld [vmem:[#allocation3 + $0x140] sm:$0xff]  ;;  %v9124_v4 = vpack.c.bf16 %v8227_v61, %v8225_v60  ;;  %v8226_v7 = vld [vmem:[%s13312_s3 + $0x310] sm:$0xff] }
 0x190   :  { %8010 = vmatmul.mubr.msk.f32.gmra.mrb[84].mxu1 %vm111_vm2, %v10915_v51  ;;  %8068 = vmatmul.mubr.msk.f32.gmra.mrb[120].mxu0 %vm111_vm2, %v10915_v51 }
 0x191   :  { %2245 = vmatprep.mubr.f32.mxu1 %v9738_v3  ;;  %2880 = vmatprep.mubr.f32.mxu0 %v9738_v3 }
 0x194   :  { %8011 = vmatmul.mubr.msk.f32.gmra.mrb[86].mxu1 %vm111_vm2, %v10926_v57  ;;  %8069 = vmatmul.mubr.msk.f32.gmra.mrb[122].mxu0 %vm111_vm2, %v10926_v57 }
 0x195   :  { %2251 = vmatprep.mubr.f32.mxu1 %v9738_v3  ;;  %2886 = vmatprep.mubr.f32.mxu0 %v9738_v3 }
 0x198   :  { %8012 = vmatmul.mubr.msk.f32.gmra.mrb[88].mxu1 %vm111_vm2, %v10938_v63  ;;  %8070 = vmatmul.mubr.msk.f32.gmra.mrb[124].mxu0 %vm111_vm2, %v10938_v63 }
 0x199   :  { %2257 = vmatprep.mubr.f32.mxu1 %v9738_v3  ;;  %2892 = vmatprep.mubr.f32.mxu0 %v9738_v3 }
 0x19c   :  { %8013 = vmatmul.mubr.msk.f32.gmra.mrb[90].mxu1 %vm111_vm2, %v10948_v8  ;;  %8071 = vmatmul.mubr.msk.f32.gmra.mrb[126].mxu0 %vm111_vm2, %v10948_v8 }
 0x19d   :  { %2263 = vmatprep.mubr.f32.mxu1 %v9738_v3  ;;  %2898 = vmatprep.mubr.f32.mxu0 %v9738_v3 }
 0x1a0   :  { %8014 = vmatmul.mubr.msk.f32.gmra.mrb[92].mxu1 %vm111_vm2, %v10956_v9  ;;  %8072 = vmatmul.mubr.msk.f32.gmra.mrb[128].mxu0 %vm111_vm2, %v10956_v9 }
 0x1a1   :  { %2269 = vmatprep.mubr.f32.mxu1 %v9738_v3  ;;  %2904 = vmatprep.mubr.f32.mxu0 %v9738_v3 }
 0x1a4   :  { %8015 = vmatmul.mubr.msk.f32.gmra.mrb[94].mxu1 %vm111_vm2, %v10964_v10  ;;  %8073 = vmatmul.mubr.msk.f32.gmra.mrb[130].mxu0 %vm111_vm2, %v10964_v10 }
 0x1a5   :  { %2275 = vmatprep.mubr.f32.mxu1 %v9738_v3  ;;  %2910 = vmatprep.mubr.f32.mxu0 %v9738_v3 }
 0x1a8   :  { %8016 = vmatmul.mubr.msk.f32.gmra.mrb[96].mxu1 %vm111_vm2, %v10972_v11  ;;  %8074 = vmatmul.mubr.msk.f32.gmra.mrb[132].mxu0 %vm111_vm2, %v10972_v11 }
 0x1a9   :  { %2281 = vmatprep.mubr.f32.mxu1 %v9738_v3  ;;  %2916 = vmatprep.mubr.f32.mxu0 %v9738_v3 }
 0x1ac   :  { %8017 = vmatmul.mubr.msk.f32.gmra.mrb[98].mxu1 %vm111_vm2, %v10980_v12  ;;  %8075 = vmatmul.mubr.msk.f32.gmra.mrb[134].mxu0 %vm111_vm2, %v10980_v12 }
 0x1ad   :  { %2287 = vmatprep.mubr.f32.mxu1 %v9738_v3  ;;  %2922 = vmatprep.mubr.f32.mxu0 %v9738_v3 }
 0x1b0   :  { %8018 = vmatmul.mubr.msk.f32.gmra.mrb[100].mxu1 %vm111_vm2, %v10988_v13  ;;  %8076 = vmatmul.mubr.msk.f32.gmra.mrb[136].mxu0 %vm111_vm2, %v10988_v13 }
 0x1b1   :  { %2293 = vmatprep.mubr.f32.mxu1 %v9738_v3  ;;  %2928 = vmatprep.mubr.f32.mxu0 %v9738_v3 }
 0x1b4   :  { %8019 = vmatmul.mubr.msk.f32.gmra.mrb[102].mxu1 %vm111_vm2, %v10996_v14  ;;  %8077 = vmatmul.mubr.msk.f32.gmra.mrb[138].mxu0 %vm111_vm2, %v10996_v14 }
 0x1b5   :  { %2299 = vmatprep.mubr.f32.mxu1 %v9738_v3  ;;  %2934 = vmatprep.mubr.f32.mxu0 %v9738_v3 }
 0x1b8   :  { %8020 = vmatmul.mubr.msk.f32.gmra.mrb[104].mxu1 %vm111_vm2, %v11004_v15  ;;  %8078 = vmatmul.mubr.msk.f32.gmra.mrb[140].mxu0 %vm111_vm2, %v11004_v15 }
 0x1b9   :  { %2305 = vmatprep.mubr.f32.mxu1 %v9738_v3  ;;  %2940 = vmatprep.mubr.f32.mxu0 %v9738_v3 }
 0x1bc   :  { %8021 = vmatmul.mubr.msk.f32.gmra.mrb[106].mxu1 %vm111_vm2, %v11012_v16  ;;  %8079 = vmatmul.mubr.msk.f32.gmra.mrb[142].mxu0 %vm111_vm2, %v11012_v16 }
 0x1bd   :  { %2311 = vmatprep.mubr.f32.mxu1 %v9738_v3  ;;  %2946 = vmatprep.mubr.f32.mxu0 %v9738_v3 }
 0x1c0   :  { %8022 = vmatmul.mubr.msk.f32.gmra.mrb[108].mxu1 %vm111_vm2, %v11020_v19  ;;  %8080 = vmatmul.mubr.msk.f32.gmra.mrb[144].mxu0 %vm111_vm2, %v11020_v19 }
 0x1c1   :  { %2317 = vmatprep.mubr.f32.mxu1 %v9738_v3  ;;  %2952 = vmatprep.mubr.f32.mxu0 %v9738_v3 }
 0x1c4   :  { %8023 = vmatmul.mubr.msk.f32.gmra.mrb[110].mxu1 %vm111_vm2, %v11028_v20  ;;  %8081 = vmatmul.mubr.msk.f32.gmra.mrb[146].mxu0 %vm111_vm2, %v11028_v20 }
 0x1c5   :  { %2323 = vmatprep.mubr.f32.mxu1 %v9738_v3  ;;  %2958 = vmatprep.mubr.f32.mxu0 %v9738_v3 }
 0x1c8   :  { %8024 = vmatmul.mubr.msk.f32.gmra.mrb[112].mxu1 %vm111_vm2, %v1899_v22  ;;  %8082 = vmatmul.mubr.msk.f32.gmra.mrb[148].mxu0 %vm111_vm2, %v1899_v22 }
 0x1c9   :  { %2329 = vmatprep.mubr.f32.mxu1 %v9738_v3  ;;  %2964 = vmatprep.mubr.f32.mxu0 %v9738_v3 }
 0x1cc   :  { %8025 = vmatmul.mubr.msk.f32.gmra.mrb[114].mxu1 %vm111_vm2, %v1900_v23  ;;  %8083 = vmatmul.mubr.msk.f32.gmra.mrb[150].mxu0 %vm111_vm2, %v1900_v23 }
 0x1cd   :  { %2335 = vmatprep.mubr.f32.mxu1 %v9738_v3  ;;  %2970 = vmatprep.mubr.f32.mxu0 %v9738_v3 }
 0x1d0   :  { %8026 = vmatmul.mubr.msk.f32.gmra.mrb[116].mxu1 %vm111_vm2, %v1901_v25  ;;  %8084 = vmatmul.mubr.msk.f32.gmra.mrb[152].mxu0 %vm111_vm2, %v1901_v25 }
 0x1d1   :  { %2341 = vmatprep.mubr.f32.mxu1 %v9738_v3  ;;  %2976 = vmatprep.mubr.f32.mxu0 %v9738_v3 }
 0x1d4   :  { %8027 = vmatmul.mubr.msk.f32.gmra.mrb[118].mxu1 %vm111_vm2, %v1902_v29  ;;  %8085 = vmatmul.mubr.msk.f32.gmra.mrb[154].mxu0 %vm111_vm2, %v1902_v29 }
 0x1d5   :  { %2982 = vmatprep.mubr.f32.mxu0 %v9738_v3  ;;  %3480 = vmatprep.mubr.f32.mxu1 %v9738_v3 }
 0x1d8   :  { %8086 = vmatmul.mubr.msk.f32.gmra.mrb[156].mxu0 %vm111_vm2, %v2547_v38  ;;  %8108 = vmatmul.mubr.msk.f32.vlgmr.msra.gmra.mrb[120].mxu1 %vm111_vm2, %v10607_v31  ;;  %v8216_v31 = vld [vmem:[%s13312_s3 + $0x2c0] sm:$0xff] }
 0x1d9   :  { %9111 = vmatpush1.bf16.msra.mxu1 %v9110_v34  ;;  %2988 = vmatprep.mubr.f32.mxu0 %v9738_v3  ;;  %v9118_v55 = vpack.c.bf16 %v8218_v48, %v8216_v31 }
 0x1da   :  { %3486 = vmatprep.mubr.f32.mxu1 %v9738_v3  ;;  %9113 = vmatprep.subr.bf16.mxu1 %v9112_v35 }
 0x1dc   :  { %8087 = vmatmul.mubr.msk.f32.gmra.mrb[158].mxu0 %vm111_vm2, %v2548_v46  ;;  %8109 = vmatmul.mubr.msk.f32.gmra.mrb[122].mxu1 %vm111_vm2, %v10630_v49  ;;  %v8220_v49 = vld [vmem:[%s13312_s3 + $0x2e0] sm:$0xff] }
 0x1dd   :  { %3492 = vmatprep.mubr.f32.mxu1 %v9738_v3  ;;  %4206 = vmatprep.mubr.f32.mxu0 %v9738_v3  ;;  %v9122_v2 = vpack.c.bf16 %v8222_v59, %v8220_v49 }
 0x1de   :  { %9115 = vmatpush1.bf16.msra.mxu1 %v9114_v42 }
 0x1df   :  { %9117 = vmatprep.subr.bf16.mxu1 %v9116_v47 }
 0x1e0   :  { %8110 = vmatmul.mubr.msk.f32.gmra.mrb[124].mxu1 %vm111_vm2, %v10656_v5  ;;  %8168 = vmatmul.mubr.msk.f32.vlgmr.msra.gmra.mrb[160].mxu0 %vm111_vm2, %v10656_v5  ;;  %v8224_v5 = vld [vmem:[%s13312_s3 + $0x300] sm:$0xff] }
 0x1e1   :  { %3498 = vmatprep.mubr.f32.mxu1 %v9738_v3  ;;  %4212 = vmatprep.mubr.f32.mxu0 %v9738_v3  ;;  %v9126_v22 = vpack.c.bf16 %v8226_v7, %v8224_v5 }
 0x1e2   :  { %9119 = vmatpush1.bf16.msra.mxu1 %v9118_v55 }
 0x1e3   :  { %9121 = vmatprep.subr.bf16.mxu1 %v9120_v58 }
 0x1e4   :  { %8111 = vmatmul.mubr.msk.f32.gmra.mrb[126].mxu1 %vm111_vm2, %v10682_v24  ;;  %8169 = vmatmul.mubr.msk.f32.gmra.mrb[162].mxu0 %vm111_vm2, %v10682_v24  ;;  %v2434_v24 = vld [vmem:[#allocation4 + $0x28] sm:$0xff] }
 0x1e5   :  { %3504 = vmatprep.mubr.f32.mxu1 %v9738_v3  ;;  %4218 = vmatprep.mubr.f32.mxu0 %v9738_v3 }
 0x1e6   :  { %9123 = vmatpush1.bf16.msra.mxu1 %v9122_v2 }
 0x1e7   :  { %9125 = vmatprep.subr.bf16.mxu1 %v9124_v4 }
 0x1e8   :  { %8112 = vmatmul.mubr.msk.f32.gmra.mrb[128].mxu1 %vm111_vm2, %v10708_v45  ;;  %8170 = vmatmul.mubr.msk.f32.gmra.mrb[164].mxu0 %vm111_vm2, %v10708_v45 }
 0x1e9   :  { %3510 = vmatprep.mubr.f32.mxu1 %v9738_v3  ;;  %4224 = vmatprep.mubr.f32.mxu0 %v9738_v3 }
 0x1ea   :  { %9127 = vmatpush1.bf16.msra.mxu1 %v9126_v22 }
 0x1ec   :  { %8113 = vmatmul.mubr.msk.f32.gmra.mrb[130].mxu1 %vm111_vm2, %v10740_v6  ;;  %8171 = vmatmul.mubr.msk.f32.gmra.mrb[166].mxu0 %vm111_vm2, %v10740_v6 }
 0x1ed   :  { %3516 = vmatprep.mubr.f32.mxu1 %v9738_v3  ;;  %4230 = vmatprep.mubr.f32.mxu0 %v9738_v3 }
 0x1f0   :  { %8114 = vmatmul.mubr.msk.f32.gmra.mrb[132].mxu1 %vm111_vm2, %v10757_v21  ;;  %8172 = vmatmul.mubr.msk.f32.gmra.mrb[168].mxu0 %vm111_vm2, %v10757_v21 }
 0x1f1   :  { %3522 = vmatprep.mubr.f32.mxu1 %v9738_v3  ;;  %4236 = vmatprep.mubr.f32.mxu0 %v9738_v3 }
 0x1f4   :  { %8115 = vmatmul.mubr.msk.f32.gmra.mrb[134].mxu1 %vm111_vm2, %v10771_v36  ;;  %8173 = vmatmul.mubr.msk.f32.gmra.mrb[170].mxu0 %vm111_vm2, %v10771_v36 }
 0x1f5   :  { %3528 = vmatprep.mubr.f32.mxu1 %v9738_v3  ;;  %4242 = vmatprep.mubr.f32.mxu0 %v9738_v3 }
 0x1f8   :  { %8116 = vmatmul.mubr.msk.f32.gmra.mrb[136].mxu1 %vm111_vm2, %v10785_v52  ;;  %8174 = vmatmul.mubr.msk.f32.gmra.mrb[172].mxu0 %vm111_vm2, %v10785_v52 }
 0x1f9   :  { %3534 = vmatprep.mubr.f32.mxu1 %v9738_v3  ;;  %4248 = vmatprep.mubr.f32.mxu0 %v9738_v3 }
 0x1fc   :  { %8117 = vmatmul.mubr.msk.f32.gmra.mrb[138].mxu1 %vm111_vm2, %v10799_v1  ;;  %8175 = vmatmul.mubr.msk.f32.gmra.mrb[174].mxu0 %vm111_vm2, %v10799_v1 }
 0x1fd   :  { %3540 = vmatprep.mubr.f32.mxu1 %v9738_v3  ;;  %4254 = vmatprep.mubr.f32.mxu0 %v9738_v3 }
 0x200   :  { %8118 = vmatmul.mubr.msk.f32.gmra.mrb[140].mxu1 %vm111_vm2, %v10813_v17  ;;  %8176 = vmatmul.mubr.msk.f32.gmra.mrb[176].mxu0 %vm111_vm2, %v10813_v17  ;;  %v2436_v17 = vld [vmem:[#allocation4 + $0x38] sm:$0xff] }
 0x201   :  { %3546 = vmatprep.mubr.f32.mxu1 %v9738_v3  ;;  %4260 = vmatprep.mubr.f32.mxu0 %v9738_v3 }
 0x204   :  { %8119 = vmatmul.mubr.msk.f32.gmra.mrb[142].mxu1 %vm111_vm2, %v10827_v33  ;;  %8177 = vmatmul.mubr.msk.f32.gmra.mrb[178].mxu0 %vm111_vm2, %v10827_v33 }
 0x205   :  { %3552 = vmatprep.mubr.f32.mxu1 %v9738_v3  ;;  %4266 = vmatprep.mubr.f32.mxu0 %v9738_v3 }
 0x208   :  { %8120 = vmatmul.mubr.msk.f32.gmra.mrb[144].mxu1 %vm111_vm2, %v10841_v50  ;;  %8178 = vmatmul.mubr.msk.f32.gmra.mrb[180].mxu0 %vm111_vm2, %v10841_v50 }
 0x209   :  { %3558 = vmatprep.mubr.f32.mxu1 %v9738_v3  ;;  %4272 = vmatprep.mubr.f32.mxu0 %v9738_v3 }
 0x20c   :  { %8121 = vmatmul.mubr.msk.f32.gmra.mrb[146].mxu1 %vm111_vm2, %v10855_v0  ;;  %8179 = vmatmul.mubr.msk.f32.gmra.mrb[182].mxu0 %vm111_vm2, %v10855_v0 }
 0x20d   :  { %3564 = vmatprep.mubr.f32.mxu1 %v9738_v3  ;;  %4278 = vmatprep.mubr.f32.mxu0 %v9738_v3 }
 0x210   :  { %8122 = vmatmul.mubr.msk.f32.gmra.mrb[148].mxu1 %vm111_vm2, %v10869_v18  ;;  %8180 = vmatmul.mubr.msk.f32.gmra.mrb[184].mxu0 %vm111_vm2, %v10869_v18 }
 0x211   :  { %3570 = vmatprep.mubr.f32.mxu1 %v9738_v3  ;;  %4284 = vmatprep.mubr.f32.mxu0 %v9738_v3 }
 0x214   :  { %8123 = vmatmul.mubr.msk.f32.gmra.mrb[150].mxu1 %vm111_vm2, %v10882_v27  ;;  %8181 = vmatmul.mubr.msk.f32.gmra.mrb[186].mxu0 %vm111_vm2, %v10882_v27 }
 0x215   :  { %3576 = vmatprep.mubr.f32.mxu1 %v9738_v3  ;;  %4290 = vmatprep.mubr.f32.mxu0 %v9738_v3 }
 0x218   :  { %8124 = vmatmul.mubr.msk.f32.gmra.mrb[152].mxu1 %vm111_vm2, %v10894_v37  ;;  %8182 = vmatmul.mubr.msk.f32.gmra.mrb[188].mxu0 %vm111_vm2, %v10894_v37 }
 0x219   :  { %3582 = vmatprep.mubr.f32.mxu1 %v9738_v3  ;;  %4296 = vmatprep.mubr.f32.mxu0 %v9738_v3 }
 0x21b   :  { %v2133_v45 = vpop.f32.mrb[48].mxu1  ;;  %v2768_v6 = vpop.f32.mrb[84].mxu0 }
 0x21c   :  { %v2999_v21 = vadd.f32 %v2768_v6, %v10924_v56  ;;  %v2135_v36 = vpop.f32.mrb[49].mxu1  ;;  %v2770_v52 = vpop.f32.mrb[85].mxu0  ;;  %8125 = vmatmul.mubr.msk.f32.gmra.mrb[154].mxu1 %vm111_vm2, %v10905_v43  ;;  %8183 = vmatmul.mubr.msk.f32.gmra.mrb[190].mxu0 %vm111_vm2, %v10905_v43 }
 0x21d   :  { %2358 = vst.msk [vmem:[#allocation4 + $0x48] sm:$0xff] %vm2349_vm3, %v2135_v36  ;;  %v3000_v1 = vadd.f32 %v2770_v52, %v2434_v24  ;;  %3588 = vmatprep.mubr.f32.mxu1 %v9738_v3  ;;  %4302 = vmatprep.mubr.f32.mxu0 %v9738_v3 }
 0x21e   :  { %3079 = vst [vmem:[#allocation4 + $0x20] sm:$0xff] %v2999_v21 }
 0x21f   :  { %3080 = vst.msk [vmem:[#allocation4 + $0x28] sm:$0xff] %vm2349_vm3, %v3000_v1  ;;  %v2139_v33 = vpop.f32.mrb[50].mxu1  ;;  %v2774_v50 = vpop.f32.mrb[86].mxu0 }
 0x220   :  { %v3001_v0 = vadd.f32 %v2774_v50, %v10936_v62  ;;  %v2141_v18 = vpop.f32.mrb[51].mxu1  ;;  %v2776_v27 = vpop.f32.mrb[87].mxu0  ;;  %8126 = vmatmul.mubr.msk.f32.gmra.mrb[156].mxu1 %vm111_vm2, %v10915_v51  ;;  %8184 = vmatmul.mubr.msk.f32.gmra.mrb[192].mxu0 %vm111_vm2, %v10915_v51 }
 0x221   :  { %2360 = vst.msk [vmem:[#allocation4 + $0x58] sm:$0xff] %vm2349_vm3, %v2141_v18  ;;  %v3002_v37 = vadd.f32 %v2776_v27, %v2436_v17  ;;  %3594 = vmatprep.mubr.f32.mxu1 %v9738_v3  ;;  %4308 = vmatprep.mubr.f32.mxu0 %v9738_v3 }
 0x222   :  { %3081 = vst [vmem:[#allocation4 + $0x30] sm:$0xff] %v3001_v0 }
 0x223   :  { %3082 = vst.msk [vmem:[#allocation4 + $0x38] sm:$0xff] %vm2349_vm3, %v3002_v37  ;;  %v2145_v43 = vpop.f32.mrb[52].mxu1  ;;  %v2780_v56 = vpop.f32.mrb[88].mxu0 }
 0x224   :  { %v3003_v62 = vadd.f32 %v2780_v56, %v2133_v45  ;;  %v2147_v23 = vpop.f32.mrb[53].mxu1  ;;  %v2438_v25 = vld [vmem:[#allocation4 + $0x48] sm:$0xff]  ;;  %v2782_v26 = vpop.f32.mrb[89].mxu0  ;;  %8127 = vmatmul.mubr.msk.f32.gmra.mrb[158].mxu1 %vm111_vm2, %v10926_v57  ;;  %8185 = vmatmul.mubr.msk.f32.gmra.mrb[194].mxu0 %vm111_vm2, %v10926_v57 }
 0x225   :  { %2362 = vst.msk [vmem:[#allocation4 + $0x68] sm:$0xff] %vm2349_vm3, %v2147_v23  ;;  %v3004_v51 = vadd.f32 %v2782_v26, %v2438_v25  ;;  %3600 = vmatprep.mubr.f32.mxu1 %v9738_v3  ;;  %4314 = vmatprep.mubr.f32.mxu0 %v9738_v3 }
 0x226   :  { %3083 = vst [vmem:[#allocation4 + $0x40] sm:$0xff] %v3003_v62 }
 0x227   :  { %3084 = vst.msk [vmem:[#allocation4 + $0x48] sm:$0xff] %vm2349_vm3, %v3004_v51  ;;  %v2151_v28 = vpop.f32.mrb[54].mxu1  ;;  %v2786_v29 = vpop.f32.mrb[90].mxu0 }
 0x228   :  { %v3005_v30 = vadd.f32 %v2786_v29, %v2139_v33  ;;  %v2153_v32 = vpop.f32.mrb[55].mxu1  ;;  %v2440_v34 = vld [vmem:[#allocation4 + $0x58] sm:$0xff]  ;;  %v2788_v35 = vpop.f32.mrb[91].mxu0  ;;  %8128 = vmatmul.mubr.msk.f32.gmra.mrb[160].mxu1 %vm111_vm2, %v10938_v63  ;;  %8186 = vmatmul.mubr.msk.f32.gmra.mrb[196].mxu0 %vm111_vm2, %v10938_v63 }
 0x229   :  { %2364 = vst.msk [vmem:[#allocation4 + $0x78] sm:$0xff] %vm2349_vm3, %v2153_v32  ;;  %v3006_v57 = vadd.f32 %v2788_v35, %v2440_v34  ;;  %3606 = vmatprep.mubr.f32.mxu1 %v9738_v3  ;;  %4320 = vmatprep.mubr.f32.mxu0 %v9738_v3 }
 0x22a   :  { %3085 = vst [vmem:[#allocation4 + $0x50] sm:$0xff] %v3005_v30 }
 0x22b   :  { %3086 = vst.msk [vmem:[#allocation4 + $0x58] sm:$0xff] %vm2349_vm3, %v3006_v57  ;;  %v2157_v38 = vpop.f32.mrb[56].mxu1  ;;  %v2792_v39 = vpop.f32.mrb[92].mxu0 }
 0x22c   :  { %v3007_v40 = vadd.f32 %v2792_v39, %v2145_v43  ;;  %v2159_v41 = vpop.f32.mrb[57].mxu1  ;;  %v2442_v44 = vld [vmem:[#allocation4 + $0x68] sm:$0xff]  ;;  %v2794_v42 = vpop.f32.mrb[93].mxu0  ;;  %8129 = vmatmul.mubr.msk.f32.gmra.mrb[162].mxu1 %vm111_vm2, %v10948_v8  ;;  %8187 = vmatmul.mubr.msk.f32.gmra.mrb[198].mxu0 %vm111_vm2, %v10948_v8 }
 0x22d   :  { %2366 = vst.msk [vmem:[#allocation4 + $0x88] sm:$0xff] %vm2349_vm3, %v2159_v41  ;;  %v3008_v63 = vadd.f32 %v2794_v42, %v2442_v44  ;;  %3612 = vmatprep.mubr.f32.mxu1 %v9738_v3  ;;  %4326 = vmatprep.mubr.f32.mxu0 %v9738_v3 }
 0x22e   :  { %3087 = vst [vmem:[#allocation4 + $0x60] sm:$0xff] %v3007_v40 }
 0x22f   :  { %3088 = vst.msk [vmem:[#allocation4 + $0x68] sm:$0xff] %vm2349_vm3, %v3008_v63  ;;  %v2163_v46 = vpop.f32.mrb[58].mxu1  ;;  %v2798_v47 = vpop.f32.mrb[94].mxu0 }
 0x230   :  { %v3009_v31 = vadd.f32 %v2798_v47, %v2151_v28  ;;  %v2165_v48 = vpop.f32.mrb[59].mxu1  ;;  %v2444_v53 = vld [vmem:[#allocation4 + $0x78] sm:$0xff]  ;;  %v2800_v54 = vpop.f32.mrb[95].mxu0  ;;  %8130 = vmatmul.mubr.msk.f32.gmra.mrb[164].mxu1 %vm111_vm2, %v10956_v9  ;;  %8188 = vmatmul.mubr.msk.f32.gmra.mrb[200].mxu0 %vm111_vm2, %v10956_v9 }
 0x231   :  { %2368 = vst.msk [vmem:[#allocation4 + $0x98] sm:$0xff] %vm2349_vm3, %v2165_v48  ;;  %v3010_v8 = vadd.f32 %v2800_v54, %v2444_v53  ;;  %3618 = vmatprep.mubr.f32.mxu1 %v9738_v3  ;;  %4332 = vmatprep.mubr.f32.mxu0 %v9738_v3  ;;  %v8268_v48 = vld [vmem:[%s13314_s5 + $0xa0] sm:$0xff]  ;;  %v8269_v53 = vld [vmem:[%s13314_s5 + $0xa8] sm:$0xff] }
 0x232   :  { %3089 = vst [vmem:[#allocation4 + $0x70] sm:$0xff] %v3009_v31  ;;  %v9739_v31 = vmov 0.0|0.0  }
 0x233   :  { %3090 = vst.msk [vmem:[#allocation4 + $0x78] sm:$0xff] %vm2349_vm3, %v3010_v8  ;;  %v2169_v55 = vpop.f32.mrb[60].mxu1  ;;  %v2804_v58 = vpop.f32.mrb[96].mxu0  ;;  %9128 = vmatprep.subr.bf16.mxu0 %v9739_v31  ;;  %9218 = vmatprep.subr.bf16.mxu1 %v9739_v31  ;;  %v9129_v8 = vpack.c.bf16 %v8269_v53, %v8268_v48  ;;  %v3273_v53 = vld [vmem:[#allocation3 + $0x150] sm:$0xff] }
 0x234   :  { %v3011_v49 = vadd.f32 %v2804_v58, %v2157_v38  ;;  %v2171_v59 = vpop.f32.mrb[61].mxu1  ;;  %v2446_v60 = vld [vmem:[#allocation4 + $0x88] sm:$0xff]  ;;  %v2806_v61 = vpop.f32.mrb[97].mxu0  ;;  %8131 = vmatmul.mubr.msk.f32.gmra.mrb[166].mxu1 %vm111_vm2, %v10964_v10  ;;  %8189 = vmatmul.mubr.msk.f32.gmra.mrb[202].mxu0 %vm111_vm2, %v10964_v10 }
 0x235   :  { %2370 = vst.msk [vmem:[#allocation4 + $0xa8] sm:$0xff] %vm2349_vm3, %v2171_v59  ;;  %v3012_v9 = vadd.f32 %v2806_v61, %v2446_v60  ;;  %3624 = vmatprep.mubr.f32.mxu1 %v9738_v3  ;;  %4338 = vmatprep.mubr.f32.mxu0 %v9738_v3 }
 0x236   :  { %3091 = vst [vmem:[#allocation4 + $0x80] sm:$0xff] %v3011_v49  ;;  %9130 = vmatpush1.bf16.msra.mxu0 %v9129_v8 }
 0x237   :  { %3092 = vst.msk [vmem:[#allocation4 + $0x88] sm:$0xff] %vm2349_vm3, %v3012_v9  ;;  %v2175_v2 = vpop.f32.mrb[62].mxu1  ;;  %v2810_v4 = vpop.f32.mrb[98].mxu0  ;;  %9131 = vmatprep.subr.bf16.mxu0 %v9739_v31 }
 0x238   :  { %v3013_v5 = vadd.f32 %v2810_v4, %v2163_v46  ;;  %v2177_v7 = vpop.f32.mrb[63].mxu1  ;;  %v2448_v22 = vld [vmem:[#allocation4 + $0x98] sm:$0xff]  ;;  %v2812_v24 = vpop.f32.mrb[99].mxu0  ;;  %8132 = vmatmul.mubr.msk.f32.gmra.mrb[168].mxu1 %vm111_vm2, %v10972_v11  ;;  %8190 = vmatmul.mubr.msk.f32.gmra.mrb[204].mxu0 %vm111_vm2, %v10972_v11 }
 0x239   :  { %2372 = vst.msk [vmem:[#allocation4 + $0xb8] sm:$0xff] %vm2349_vm3, %v2177_v7  ;;  %v3014_v10 = vadd.f32 %v2812_v24, %v2448_v22  ;;  %3630 = vmatprep.mubr.f32.mxu1 %v9738_v3  ;;  %4344 = vmatprep.mubr.f32.mxu0 %v9738_v3 }
 0x23a   :  { %3093 = vst [vmem:[#allocation4 + $0x90] sm:$0xff] %v3013_v5 }
 0x23b   :  { %3094 = vst.msk [vmem:[#allocation4 + $0x98] sm:$0xff] %vm2349_vm3, %v3014_v10  ;;  %v2181_v45 = vpop.f32.mrb[64].mxu1  ;;  %v2816_v6 = vpop.f32.mrb[100].mxu0 }
 0x23c   :  { %v3015_v21 = vadd.f32 %v2816_v6, %v2169_v55  ;;  %v2183_v36 = vpop.f32.mrb[65].mxu1  ;;  %v2450_v52 = vld [vmem:[#allocation4 + $0xa8] sm:$0xff]  ;;  %v2818_v1 = vpop.f32.mrb[101].mxu0  ;;  %8133 = vmatmul.mubr.msk.f32.gmra.mrb[170].mxu1 %vm111_vm2, %v10980_v12  ;;  %8191 = vmatmul.mubr.msk.f32.gmra.mrb[206].mxu0 %vm111_vm2, %v10980_v12 }
 0x23d   :  { %2374 = vst.msk [vmem:[#allocation4 + $0xc8] sm:$0xff] %vm2349_vm3, %v2183_v36  ;;  %v3016_v11 = vadd.f32 %v2818_v1, %v2450_v52  ;;  %3636 = vmatprep.mubr.f32.mxu1 %v9738_v3  ;;  %4350 = vmatprep.mubr.f32.mxu0 %v9738_v3 }
 0x23e   :  { %3095 = vst [vmem:[#allocation4 + $0xa0] sm:$0xff] %v3015_v21 }
 0x23f   :  { %3096 = vst.msk [vmem:[#allocation4 + $0xa8] sm:$0xff] %vm2349_vm3, %v3016_v11  ;;  %v2187_v17 = vpop.f32.mrb[66].mxu1  ;;  %v2822_v33 = vpop.f32.mrb[102].mxu0 }
 0x240   :  { %v3017_v50 = vadd.f32 %v2822_v33, %v2175_v2  ;;  %v2189_v0 = vpop.f32.mrb[67].mxu1  ;;  %v2452_v18 = vld [vmem:[#allocation4 + $0xb8] sm:$0xff]  ;;  %v2824_v27 = vpop.f32.mrb[103].mxu0  ;;  %8134 = vmatmul.mubr.msk.f32.gmra.mrb[172].mxu1 %vm111_vm2, %v10988_v13  ;;  %8192 = vmatmul.mubr.msk.f32.gmra.mrb[208].mxu0 %vm111_vm2, %v10988_v13  ;;  %v3267_v2 = vld [vmem:[#allocation3 + $0x120] sm:$0xff]  ;;  %v3269_v33 = vld [vmem:[#allocation3 + $0x130] sm:$0xff] }
 0x241   :  { %2376 = vst.msk [vmem:[#allocation4 + $0xd8] sm:$0xff] %vm2349_vm3, %v2189_v0  ;;  %v3018_v12 = vadd.f32 %v2824_v27, %v2452_v18  ;;  %3642 = vmatprep.mubr.f32.mxu1 %v9738_v3  ;;  %4356 = vmatprep.mubr.f32.mxu0 %v9738_v3 }
 0x242   :  { %3097 = vst [vmem:[#allocation4 + $0xb0] sm:$0xff] %v3017_v50 }
 0x243   :  { %3098 = vst.msk [vmem:[#allocation4 + $0xb8] sm:$0xff] %vm2349_vm3, %v3018_v12  ;;  %v2193_v37 = vpop.f32.mrb[68].mxu1  ;;  %v2828_v43 = vpop.f32.mrb[104].mxu0 }
 0x244   :  { %v3019_v56 = vadd.f32 %v2828_v43, %v2181_v45  ;;  %v2195_v62 = vpop.f32.mrb[69].mxu1  ;;  %v2454_v23 = vld [vmem:[#allocation4 + $0xc8] sm:$0xff]  ;;  %v2830_v25 = vpop.f32.mrb[105].mxu0  ;;  %8135 = vmatmul.mubr.msk.f32.gmra.mrb[174].mxu1 %vm111_vm2, %v10996_v14  ;;  %8193 = vmatmul.mubr.msk.f32.gmra.mrb[210].mxu0 %vm111_vm2, %v10996_v14  ;;  %v8271_v43 = vld [vmem:[%s13314_s5 + $0xb8] sm:$0xff] }
 0x245   :  { %2378 = vst.msk [vmem:[#allocation4 + $0xe8] sm:$0xff] %vm2349_vm3, %v2195_v62  ;;  %v3020_v13 = vadd.f32 %v2830_v25, %v2454_v23  ;;  %3648 = vmatprep.mubr.f32.mxu1 %v9738_v3  ;;  %4362 = vmatprep.mubr.f32.mxu0 %v9738_v3  ;;  %v3268_v45 = vld [vmem:[#allocation3 + $0x128] sm:$0xff]  ;;  %v3270_v25 = vld [vmem:[#allocation3 + $0x138] sm:$0xff] }
 0x246   :  { %3099 = vst [vmem:[#allocation4 + $0xc0] sm:$0xff] %v3019_v56 }
 0x247   :  { %3100 = vst.msk [vmem:[#allocation4 + $0xc8] sm:$0xff] %vm2349_vm3, %v3020_v13  ;;  %v2199_v26 = vpop.f32.mrb[70].mxu1  ;;  %v2834_v51 = vpop.f32.mrb[106].mxu0 }
 0x248   :  { %v3021_v28 = vadd.f32 %v2834_v51, %v2187_v17  ;;  %v2201_v29 = vpop.f32.mrb[71].mxu1  ;;  %v2456_v30 = vld [vmem:[#allocation4 + $0xd8] sm:$0xff]  ;;  %v2836_v32 = vpop.f32.mrb[107].mxu0  ;;  %8136 = vmatmul.mubr.msk.f32.gmra.mrb[176].mxu1 %vm111_vm2, %v11004_v15  ;;  %8194 = vmatmul.mubr.msk.f32.gmra.mrb[212].mxu0 %vm111_vm2, %v11004_v15 }
 0x249   :  { %2380 = vst.msk [vmem:[#allocation4 + $0xf8] sm:$0xff] %vm2349_vm3, %v2201_v29  ;;  %v3022_v14 = vadd.f32 %v2836_v32, %v2456_v30  ;;  %3654 = vmatprep.mubr.f32.mxu1 %v9738_v3  ;;  %4368 = vmatprep.mubr.f32.mxu0 %v9738_v3 }
 0x24a   :  { %3101 = vst [vmem:[#allocation4 + $0xd0] sm:$0xff] %v3021_v28 }
 0x24b   :  { %3102 = vst.msk [vmem:[#allocation4 + $0xd8] sm:$0xff] %vm2349_vm3, %v3022_v14  ;;  %v2205_v34 = vpop.f32.mrb[72].mxu1  ;;  %v2840_v35 = vpop.f32.mrb[108].mxu0  ;;  %v3271_v14 = vld [vmem:[#allocation3 + $0x140] sm:$0xff] }
 0x24c   :  { %v3023_v57 = vadd.f32 %v2840_v35, %v2193_v37  ;;  %v2207_v38 = vpop.f32.mrb[73].mxu1  ;;  %v2458_v39 = vld [vmem:[#allocation4 + $0xe8] sm:$0xff]  ;;  %v2842_v40 = vpop.f32.mrb[109].mxu0  ;;  %8137 = vmatmul.mubr.msk.f32.gmra.mrb[178].mxu1 %vm111_vm2, %v11012_v16  ;;  %8195 = vmatmul.mubr.msk.f32.gmra.mrb[214].mxu0 %vm111_vm2, %v11012_v16 }
 0x24d   :  { %2382 = vst.msk [vmem:[#allocation4 + $0x108] sm:$0xff] %vm2349_vm3, %v2207_v38  ;;  %v3024_v15 = vadd.f32 %v2842_v40, %v2458_v39  ;;  %3660 = vmatprep.mubr.f32.mxu1 %v9738_v3  ;;  %4374 = vmatprep.mubr.f32.mxu0 %v9738_v3  ;;  %v8270_v37 = vld [vmem:[%s13314_s5 + $0xb0] sm:$0xff] }
 0x24e   :  { %3103 = vst [vmem:[#allocation4 + $0xe0] sm:$0xff] %v3023_v57  ;;  %v9132_v56 = vpack.c.bf16 %v8271_v43, %v8270_v37 }
 0x24f   :  { %3104 = vst.msk [vmem:[#allocation4 + $0xe8] sm:$0xff] %vm2349_vm3, %v3024_v15  ;;  %v2211_v41 = vpop.f32.mrb[74].mxu1  ;;  %v2846_v44 = vpop.f32.mrb[110].mxu0 }
 0x250   :  { %v3025_v42 = vadd.f32 %v2846_v44, %v2199_v26  ;;  %v2213_v63 = vpop.f32.mrb[75].mxu1  ;;  %v2460_v46 = vld [vmem:[#allocation4 + $0xf8] sm:$0xff]  ;;  %v2848_v47 = vpop.f32.mrb[111].mxu0  ;;  %8138 = vmatmul.mubr.msk.f32.gmra.mrb[180].mxu1 %vm111_vm2, %v11020_v19  ;;  %8196 = vmatmul.mubr.msk.f32.gmra.mrb[216].mxu0 %vm111_vm2, %v11020_v19 }
 0x251   :  { %2384 = vst.msk [vmem:[#allocation4 + $0x118] sm:$0xff] %vm2349_vm3, %v2213_v63  ;;  %v3026_v16 = vadd.f32 %v2848_v47, %v2460_v46  ;;  %3666 = vmatprep.mubr.f32.mxu1 %v9738_v3  ;;  %4380 = vmatprep.mubr.f32.mxu0 %v9738_v3 }
 0x252   :  { %3105 = vst [vmem:[#allocation4 + $0xf0] sm:$0xff] %v3025_v42  ;;  %9133 = vmatpush1.bf16.msra.mxu0 %v9132_v56 }
 0x253   :  { %3106 = vst.msk [vmem:[#allocation4 + $0xf8] sm:$0xff] %vm2349_vm3, %v3026_v16  ;;  %v2217_v19 = vpop.f32.mrb[76].mxu1  ;;  %v2852_v54 = vpop.f32.mrb[112].mxu0  ;;  %9134 = vmatprep.subr.bf16.mxu0 %v9739_v31 }
 0x254   :  { %v3027_v55 = vadd.f32 %v2852_v54, %v2205_v34  ;;  %v2219_v58 = vpop.f32.mrb[77].mxu1  ;;  %v2462_v49 = vld [vmem:[#allocation4 + $0x108] sm:$0xff]  ;;  %v2854_v59 = vpop.f32.mrb[113].mxu0  ;;  %8139 = vmatmul.mubr.msk.f32.gmra.mrb[182].mxu1 %vm111_vm2, %v11028_v20  ;;  %8197 = vmatmul.mubr.msk.f32.gmra.mrb[218].mxu0 %vm111_vm2, %v11028_v20 }
 0x255   :  { %2386 = vst.msk [vmem:[#allocation4 + $0x128] sm:$0xff] %vm2349_vm3, %v2219_v58  ;;  %v3028_v60 = vadd.f32 %v2854_v59, %v2462_v49  ;;  %3672 = vmatprep.mubr.f32.mxu1 %v9738_v3  ;;  %4386 = vmatprep.mubr.f32.mxu0 %v9738_v3  ;;  %v8272_v49 = vld [vmem:[%s13314_s5 + $0xc0] sm:$0xff]  ;;  %v8273_v59 = vld [vmem:[%s13314_s5 + $0xc8] sm:$0xff] }
 0x256   :  { %3107 = vst [vmem:[#allocation4 + $0x100] sm:$0xff] %v3027_v55 }
 0x257   :  { %3108 = vst.msk [vmem:[#allocation4 + $0x108] sm:$0xff] %vm2349_vm3, %v3028_v60  ;;  %v2223_v61 = vpop.f32.mrb[78].mxu1  ;;  %v2858_v9 = vpop.f32.mrb[114].mxu0  ;;  %v9135_v60 = vpack.c.bf16 %v8273_v59, %v8272_v49 }
 0x258   :  { %v3029_v4 = vadd.f32 %v2858_v9, %v2211_v41  ;;  %v2225_v5 = vpop.f32.mrb[79].mxu1  ;;  %v2464_v7 = vld [vmem:[#allocation4 + $0x118] sm:$0xff]  ;;  %v2860_v20 = vpop.f32.mrb[115].mxu0  ;;  %8140 = vmatmul.mubr.msk.f32.gmra.mrb[184].mxu1 %vm111_vm2, %v3267_v2  ;;  %8198 = vmatmul.mubr.msk.f32.gmra.mrb[220].mxu0 %vm111_vm2, %v3267_v2  ;;  %v3272_v41 = vld [vmem:[#allocation3 + $0x148] sm:$0xff] }
 0x259   :  { %2388 = vst.msk [vmem:[#allocation4 + $0x138] sm:$0xff] %vm2349_vm3, %v2225_v5  ;;  %v3030_v22 = vadd.f32 %v2860_v20, %v2464_v7  ;;  %3678 = vmatprep.mubr.f32.mxu1 %v9738_v3  ;;  %4392 = vmatprep.mubr.f32.mxu0 %v9738_v3  ;;  %v3274_v2 = vld [vmem:[#allocation3 + $0x158] sm:$0xff] }
 0x25a   :  { %3109 = vst [vmem:[#allocation4 + $0x110] sm:$0xff] %v3029_v4  ;;  %9136 = vmatpush1.bf16.msra.mxu0 %v9135_v60 }
 0x25b   :  { %3110 = vst.msk [vmem:[#allocation4 + $0x118] sm:$0xff] %vm2349_vm3, %v3030_v22  ;;  %v2229_v24 = vpop.f32.mrb[80].mxu1  ;;  %v2864_v10 = vpop.f32.mrb[116].mxu0  ;;  %9137 = vmatprep.subr.bf16.mxu0 %v9739_v31 }
 0x25c   :  { %v3031_v6 = vadd.f32 %v2864_v10, %v2217_v19  ;;  %v2231_v21 = vpop.f32.mrb[81].mxu1  ;;  %v2466_v36 = vld [vmem:[#allocation4 + $0x128] sm:$0xff]  ;;  %v2866_v52 = vpop.f32.mrb[117].mxu0  ;;  %8141 = vmatmul.mubr.msk.f32.gmra.mrb[186].mxu1 %vm111_vm2, %v3268_v45  ;;  %8199 = vmatmul.mubr.msk.f32.gmra.mrb[222].mxu0 %vm111_vm2, %v3268_v45 }
 0x25d   :  { %2390 = vst.msk [vmem:[#allocation4 + $0x148] sm:$0xff] %vm2349_vm3, %v2231_v21  ;;  %v3032_v1 = vadd.f32 %v2866_v52, %v2466_v36  ;;  %3684 = vmatprep.mubr.f32.mxu1 %v9738_v3  ;;  %4398 = vmatprep.mubr.f32.mxu0 %v9738_v3 }
 0x25e   :  { %3111 = vst [vmem:[#allocation4 + $0x120] sm:$0xff] %v3031_v6  ;;  %v4687_v6 = vld [vmem:[#allocation3 + $0x40] sm:$0xff] }
 0x25f   :  { %3112 = vst.msk [vmem:[#allocation4 + $0x128] sm:$0xff] %vm2349_vm3, %v3032_v1  ;;  %v2235_v11 = vpop.f32.mrb[82].mxu1  ;;  %v2870_v17 = vpop.f32.mrb[118].mxu0 }
 0x260   :  { %v3033_v50 = vadd.f32 %v2870_v17, %v2223_v61  ;;  %v2237_v0 = vpop.f32.mrb[83].mxu1  ;;  %v2468_v18 = vld [vmem:[#allocation4 + $0x138] sm:$0xff]  ;;  %v2872_v27 = vpop.f32.mrb[119].mxu0  ;;  %8142 = vmatmul.mubr.msk.f32.gmra.mrb[188].mxu1 %vm111_vm2, %v3269_v33  ;;  %8200 = vmatmul.mubr.msk.f32.gmra.mrb[224].mxu0 %vm111_vm2, %v3269_v33  ;;  %v4000_v17 = vld [vmem:[#allocation3 + $0x168] sm:$0xff] }
 0x261   :  { %2392 = vst.msk [vmem:[#allocation4 + $0x158] sm:$0xff] %vm2349_vm3, %v2237_v0  ;;  %v3034_v12 = vadd.f32 %v2872_v27, %v2468_v18  ;;  %3690 = vmatprep.mubr.f32.mxu1 %v9738_v3  ;;  %4404 = vmatprep.mubr.f32.mxu0 %v9738_v3  ;;  %v4688_v0 = vld [vmem:[#allocation3 + $0x48] sm:$0xff] }
 0x262   :  { %3113 = vst [vmem:[#allocation4 + $0x130] sm:$0xff] %v3033_v50 }
 0x263   :  { %3114 = vst.msk [vmem:[#allocation4 + $0x138] sm:$0xff] %vm2349_vm3, %v3034_v12  ;;  %v2241_v62 = vpop.f32.mrb[84].mxu1  ;;  %v2876_v23 = vpop.f32.mrb[120].mxu0 }
 0x264   :  { %v3035_v13 = vadd.f32 %v2876_v23, %v2229_v24  ;;  %v2243_v26 = vpop.f32.mrb[85].mxu1  ;;  %v2470_v51 = vld [vmem:[#allocation4 + $0x148] sm:$0xff]  ;;  %v2878_v28 = vpop.f32.mrb[121].mxu0  ;;  %8143 = vmatmul.mubr.msk.f32.gmra.mrb[190].mxu1 %vm111_vm2, %v3270_v25  ;;  %8201 = vmatmul.mubr.msk.f32.gmra.mrb[226].mxu0 %vm111_vm2, %v3270_v25  ;;  %v3999_v24 = vld [vmem:[#allocation3 + $0x160] sm:$0xff]  ;;  %v4689_v23 = vld [vmem:[#allocation3 + $0x50] sm:$0xff] }
 0x265   :  { %2394 = vst.msk [vmem:[#allocation4 + $0x168] sm:$0xff] %vm2349_vm3, %v2243_v26  ;;  %v3036_v29 = vadd.f32 %v2878_v28, %v2470_v51  ;;  %3696 = vmatprep.mubr.f32.mxu1 %v9738_v3  ;;  %4410 = vmatprep.mubr.f32.mxu0 %v9738_v3 }
 0x266   :  { %3115 = vst [vmem:[#allocation4 + $0x140] sm:$0xff] %v3035_v13 }
 0x267   :  { %3116 = vst.msk [vmem:[#allocation4 + $0x148] sm:$0xff] %vm2349_vm3, %v3036_v29  ;;  %v2247_v30 = vpop.f32.mrb[86].mxu1  ;;  %v2882_v32 = vpop.f32.mrb[122].mxu0  ;;  %v8274_v29 = vld [vmem:[%s13314_s5 + $0xd0] sm:$0xff] }
 0x268   :  { %v3037_v34 = vadd.f32 %v2882_v32, %v2235_v11  ;;  %v2249_v35 = vpop.f32.mrb[87].mxu1  ;;  %v2472_v57 = vld [vmem:[#allocation4 + $0x158] sm:$0xff]  ;;  %v2884_v38 = vpop.f32.mrb[123].mxu0  ;;  %8144 = vmatmul.mubr.msk.f32.gmra.mrb[192].mxu1 %vm111_vm2, %v3271_v14  ;;  %8202 = vmatmul.mubr.msk.f32.gmra.mrb[228].mxu0 %vm111_vm2, %v3271_v14 }
 0x269   :  { %2396 = vst.msk [vmem:[#allocation4 + $0x178] sm:$0xff] %vm2349_vm3, %v2249_v35  ;;  %v3038_v39 = vadd.f32 %v2884_v38, %v2472_v57  ;;  %3702 = vmatprep.mubr.f32.mxu1 %v9738_v3  ;;  %4416 = vmatprep.mubr.f32.mxu0 %v9738_v3  ;;  %v4690_v35 = vld [vmem:[#allocation3 + $0x58] sm:$0xff] }
 0x26a   :  { %3117 = vst [vmem:[#allocation4 + $0x150] sm:$0xff] %v3037_v34 }
 0x26b   :  { %3118 = vst.msk [vmem:[#allocation4 + $0x158] sm:$0xff] %vm2349_vm3, %v3038_v39  ;;  %v2253_v40 = vpop.f32.mrb[88].mxu1  ;;  %v2888_v15 = vpop.f32.mrb[124].mxu0 }
 0x26c   :  { %v3039_v44 = vadd.f32 %v2888_v15, %v2241_v62  ;;  %v2255_v42 = vpop.f32.mrb[89].mxu1  ;;  %v2474_v63 = vld [vmem:[#allocation4 + $0x168] sm:$0xff]  ;;  %v2890_v46 = vpop.f32.mrb[125].mxu0  ;;  %8145 = vmatmul.mubr.msk.f32.gmra.mrb[194].mxu1 %vm111_vm2, %v3272_v41  ;;  %8203 = vmatmul.mubr.msk.f32.gmra.mrb[230].mxu0 %vm111_vm2, %v3272_v41 }
 0x26d   :  { %2398 = vst.msk [vmem:[#allocation4 + $0x188] sm:$0xff] %vm2349_vm3, %v2255_v42  ;;  %v3040_v47 = vadd.f32 %v2890_v46, %v2474_v63  ;;  %3708 = vmatprep.mubr.f32.mxu1 %v9738_v3  ;;  %4422 = vmatprep.mubr.f32.mxu0 %v9738_v3  ;;  %v4691_v42 = vld [vmem:[#allocation3 + $0x60] sm:$0xff] }
 0x26e   :  { %3119 = vst [vmem:[#allocation4 + $0x160] sm:$0xff] %v3039_v44 }
 0x26f   :  { %3120 = vst.msk [vmem:[#allocation4 + $0x168] sm:$0xff] %vm2349_vm3, %v3040_v47  ;;  %v2259_v16 = vpop.f32.mrb[90].mxu1  ;;  %v2894_v48 = vpop.f32.mrb[126].mxu0 }
 0x270   :  { %v3041_v19 = vadd.f32 %v2894_v48, %v2247_v30  ;;  %v2261_v54 = vpop.f32.mrb[91].mxu1  ;;  %v2476_v8 = vld [vmem:[#allocation4 + $0x178] sm:$0xff]  ;;  %v2896_v55 = vpop.f32.mrb[127].mxu0  ;;  %8146 = vmatmul.mubr.msk.f32.gmra.mrb[196].mxu1 %vm111_vm2, %v3273_v53  ;;  %8204 = vmatmul.mubr.msk.f32.gmra.mrb[232].mxu0 %vm111_vm2, %v3273_v53  ;;  %v8275_v30 = vld [vmem:[%s13314_s5 + $0xd8] sm:$0xff] }
 0x271   :  { %2400 = vst.msk [vmem:[#allocation4 + $0x198] sm:$0xff] %vm2349_vm3, %v2261_v54  ;;  %v3042_v58 = vadd.f32 %v2896_v55, %v2476_v8  ;;  %3714 = vmatprep.mubr.f32.mxu1 %v9738_v3  ;;  %4428 = vmatprep.mubr.f32.mxu0 %v9738_v3  ;;  %v9138_v32 = vpack.c.bf16 %v8275_v30, %v8274_v29  ;;  %v4692_v54 = vld [vmem:[#allocation3 + $0x68] sm:$0xff] }
 0x272   :  { %3121 = vst [vmem:[#allocation4 + $0x170] sm:$0xff] %v3041_v19 }
 0x273   :  { %3122 = vst.msk [vmem:[#allocation4 + $0x178] sm:$0xff] %vm2349_vm3, %v3042_v58  ;;  %v2265_v61 = vpop.f32.mrb[92].mxu1  ;;  %v2900_v9 = vpop.f32.mrb[128].mxu0  ;;  %9139 = vmatpush1.bf16.msra.mxu0 %v9138_v32  ;;  %v4697_v32 = vld [vmem:[#allocation3 + $0x90] sm:$0xff] }
 0x274   :  { %v3043_v4 = vadd.f32 %v2900_v9, %v2253_v40  ;;  %v2267_v5 = vpop.f32.mrb[93].mxu1  ;;  %v2478_v7 = vld [vmem:[#allocation4 + $0x188] sm:$0xff]  ;;  %v2902_v20 = vpop.f32.mrb[129].mxu0  ;;  %8147 = vmatmul.mubr.msk.f32.gmra.mrb[198].mxu1 %vm111_vm2, %v3274_v2  ;;  %8205 = vmatmul.mubr.msk.f32.gmra.mrb[234].mxu0 %vm111_vm2, %v3274_v2  ;;  %v4693_v9 = vld [vmem:[#allocation3 + $0x70] sm:$0xff] }
 0x275   :  { %2402 = vst.msk [vmem:[#allocation4 + $0x1a8] sm:$0xff] %vm2349_vm3, %v2267_v5  ;;  %v3044_v22 = vadd.f32 %v2902_v20, %v2478_v7  ;;  %4932 = vmatprep.mubr.f32.mxu1 %v9738_v3  ;;  %4434 = vmatprep.mubr.f32.mxu0 %v9738_v3 }
 0x276   :  { %3123 = vst [vmem:[#allocation4 + $0x180] sm:$0xff] %v3043_v4  ;;  %9140 = vmatprep.subr.bf16.mxu0 %v9739_v31 }
 0x277   :  { %3124 = vst.msk [vmem:[#allocation4 + $0x188] sm:$0xff] %vm2349_vm3, %v3044_v22  ;;  %v2271_v10 = vpop.f32.mrb[94].mxu1  ;;  %v2906_v45 = vpop.f32.mrb[130].mxu0  ;;  %v8276_v22 = vld [vmem:[%s13314_s5 + $0xe0] sm:$0xff] }
 0x278   :  { %v3045_v21 = vadd.f32 %v2906_v45, %v2259_v16  ;;  %v2273_v36 = vpop.f32.mrb[95].mxu1  ;;  %v2480_v52 = vld [vmem:[#allocation4 + $0x198] sm:$0xff]  ;;  %v2908_v1 = vpop.f32.mrb[131].mxu0  ;;  %8228 = vmatmul.mubr.msk.f32.vlgmr.msra.gmra.mrb[200].mxu1 %vm111_vm2, %v4687_v6  ;;  %8206 = vmatmul.mubr.msk.f32.gmra.mrb[236].mxu0 %vm111_vm2, %v3999_v24  ;;  %v8277_v24 = vld [vmem:[%s13314_s5 + $0xe8] sm:$0xff] }
 0x279   :  { %2404 = vst.msk [vmem:[#allocation4 + $0x1b8] sm:$0xff] %vm2349_vm3, %v2273_v36  ;;  %v3046_v11 = vadd.f32 %v2908_v1, %v2480_v52  ;;  %4938 = vmatprep.mubr.f32.mxu1 %v9738_v3  ;;  %4440 = vmatprep.mubr.f32.mxu0 %v9738_v3 }
 0x27a   :  { %3125 = vst [vmem:[#allocation4 + $0x190] sm:$0xff] %v3045_v21  ;;  %v4694_v21 = vld [vmem:[#allocation3 + $0x78] sm:$0xff] }
 0x27b   :  { %3126 = vst.msk [vmem:[#allocation4 + $0x198] sm:$0xff] %vm2349_vm3, %v3046_v11  ;;  %v2277_v33 = vpop.f32.mrb[96].mxu1  ;;  %v2912_v50 = vpop.f32.mrb[132].mxu0 }
 0x27c   :  { %v3047_v18 = vadd.f32 %v2912_v50, %v2265_v61  ;;  %v2279_v27 = vpop.f32.mrb[97].mxu1  ;;  %v2482_v12 = vld [vmem:[#allocation4 + $0x1a8] sm:$0xff]  ;;  %v2914_v37 = vpop.f32.mrb[133].mxu0  ;;  %8229 = vmatmul.mubr.msk.f32.gmra.mrb[202].mxu1 %vm111_vm2, %v4688_v0  ;;  %8207 = vmatmul.mubr.msk.f32.gmra.mrb[238].mxu0 %vm111_vm2, %v4000_v17  ;;  %v4695_v0 = vld [vmem:[#allocation3 + $0x80] sm:$0xff] }
 0x27d   :  { %2406 = vst.msk [vmem:[#allocation4 + $0x1c8] sm:$0xff] %vm2349_vm3, %v2279_v27  ;;  %v3048_v43 = vadd.f32 %v2914_v37, %v2482_v12  ;;  %4944 = vmatprep.mubr.f32.mxu1 %v9738_v3 }
 0x27e   :  { %3127 = vst [vmem:[#allocation4 + $0x1a0] sm:$0xff] %v3047_v18 }
 0x27f   :  { %3128 = vst.msk [vmem:[#allocation4 + $0x1a8] sm:$0xff] %vm2349_vm3, %v3048_v43  ;;  %v2283_v56 = vpop.f32.mrb[98].mxu1  ;;  %v2918_v62 = vpop.f32.mrb[134].mxu0 }
 0x280   :  { %v3049_v25 = vadd.f32 %v2918_v62, %v2271_v10  ;;  %v2285_v13 = vpop.f32.mrb[99].mxu1  ;;  %v2484_v26 = vld [vmem:[#allocation4 + $0x1b8] sm:$0xff]  ;;  %v2920_v51 = vpop.f32.mrb[135].mxu0  ;;  %8230 = vmatmul.mubr.msk.f32.gmra.mrb[204].mxu1 %vm111_vm2, %v4689_v23  ;;  %v9141_v10 = vpack.c.bf16 %v8277_v24, %v8276_v22  ;;  %v4696_v23 = vld [vmem:[#allocation3 + $0x88] sm:$0xff] }
 0x281   :  { %2408 = vst.msk [vmem:[#allocation4 + $0x1d8] sm:$0xff] %vm2349_vm3, %v2285_v13  ;;  %v3050_v28 = vadd.f32 %v2920_v51, %v2484_v26  ;;  %4950 = vmatprep.mubr.f32.mxu1 %v9738_v3  ;;  %v3156_v24 = vld [vmem:[#allocation4 + $0x8] sm:$0xff] }
 0x282   :  { %3129 = vst [vmem:[#allocation4 + $0x1b0] sm:$0xff] %v3049_v25  ;;  %9142 = vmatpush1.bf16.msra.mxu0 %v9141_v10 }
 0x283   :  { %3130 = vst.msk [vmem:[#allocation4 + $0x1b8] sm:$0xff] %vm2349_vm3, %v3050_v28  ;;  %v2289_v14 = vpop.f32.mrb[100].mxu1  ;;  %v2924_v34 = vpop.f32.mrb[136].mxu0  ;;  %9143 = vmatprep.subr.bf16.mxu0 %v9739_v31 }
 0x284   :  { %v3051_v57 = vadd.f32 %v2924_v34, %v2277_v33  ;;  %v2291_v38 = vpop.f32.mrb[101].mxu1  ;;  %v2486_v39 = vld [vmem:[#allocation4 + $0x1c8] sm:$0xff]  ;;  %v2926_v40 = vpop.f32.mrb[137].mxu0  ;;  %8231 = vmatmul.mubr.msk.f32.gmra.mrb[206].mxu1 %vm111_vm2, %v4690_v35 }
 0x285   :  { %2410 = vst.msk [vmem:[#allocation4 + $0x1e8] sm:$0xff] %vm2349_vm3, %v2291_v38  ;;  %v3052_v15 = vadd.f32 %v2926_v40, %v2486_v39  ;;  %4956 = vmatprep.mubr.f32.mxu1 %v9738_v3  ;;  %v8278_v39 = vld [vmem:[%s13314_s5 + $0xf0] sm:$0xff]  ;;  %v8279_v40 = vld [vmem:[%s13314_s5 + $0xf8] sm:$0xff] }
 0x286   :  { %3131 = vst [vmem:[#allocation4 + $0x1c0] sm:$0xff] %v3051_v57 }
 0x287   :  { %3132 = vst.msk [vmem:[#allocation4 + $0x1c8] sm:$0xff] %vm2349_vm3, %v3052_v15  ;;  %v2295_v41 = vpop.f32.mrb[102].mxu1  ;;  %v2930_v44 = vpop.f32.mrb[138].mxu0  ;;  %v9144_v15 = vpack.c.bf16 %v8279_v40, %v8278_v39 }
 0x288   :  { %v3053_v63 = vadd.f32 %v2930_v44, %v2283_v56  ;;  %v2297_v46 = vpop.f32.mrb[103].mxu1  ;;  %v2488_v47 = vld [vmem:[#allocation4 + $0x1d8] sm:$0xff]  ;;  %v2932_v16 = vpop.f32.mrb[139].mxu0  ;;  %8232 = vmatmul.mubr.msk.f32.gmra.mrb[208].mxu1 %vm111_vm2, %v4691_v42  ;;  %v8315_v44 = vld [vmem:[%s13314_s5 + $0x1e8] sm:$0xff] }
 0x289   :  { %2412 = vst.msk [vmem:[#allocation4 + $0x1f8] sm:$0xff] %vm2349_vm3, %v2297_v46  ;;  %v3054_v48 = vadd.f32 %v2932_v16, %v2488_v47  ;;  %4962 = vmatprep.mubr.f32.mxu1 %v9738_v3  ;;  %v4698_v46 = vld [vmem:[#allocation3 + $0x98] sm:$0xff]  ;;  %9145 = vmatpush1.bf16.msra.mxu0 %v9144_v15  ;;  %v4703_v15 = vld [vmem:[#allocation3 + $0xc0] sm:$0xff] }
 0x28a   :  { %3133 = vst [vmem:[#allocation4 + $0x1d0] sm:$0xff] %v3053_v63  ;;  %9146 = vmatprep.subr.bf16.mxu0 %v9739_v31 }
 0x28b   :  { %3134 = vst.msk [vmem:[#allocation4 + $0x1d8] sm:$0xff] %vm2349_vm3, %v3054_v48  ;;  %v2301_v53 = vpop.f32.mrb[104].mxu1  ;;  %v2936_v19 = vpop.f32.mrb[140].mxu0 }
 0x28c   :  { %v3055_v8 = vadd.f32 %v2936_v19, %v2289_v14  ;;  %v2303_v55 = vpop.f32.mrb[105].mxu1  ;;  %v2490_v58 = vld [vmem:[#allocation4 + $0x1e8] sm:$0xff]  ;;  %v2938_v49 = vpop.f32.mrb[141].mxu0  ;;  %8233 = vmatmul.mubr.msk.f32.gmra.mrb[210].mxu1 %vm111_vm2, %v4692_v54 }
 0x28d   :  { %2414 = vst.msk [vmem:[#allocation4 + $0x208] sm:$0xff] %vm2349_vm3, %v2303_v55  ;;  %v3056_v59 = vadd.f32 %v2938_v49, %v2490_v58  ;;  %4968 = vmatprep.mubr.f32.mxu1 %v9738_v3  ;;  %v4699_v58 = vld [vmem:[#allocation3 + $0xa0] sm:$0xff] }
 0x28e   :  { %3135 = vst [vmem:[#allocation4 + $0x1e0] sm:$0xff] %v3055_v8 }
 0x28f   :  { %3136 = vst.msk [vmem:[#allocation4 + $0x1e8] sm:$0xff] %vm2349_vm3, %v3056_v59  ;;  %v2307_v60 = vpop.f32.mrb[106].mxu1  ;;  %v2942_v61 = vpop.f32.mrb[142].mxu0 }
 0x290   :  { %v3057_v2 = vadd.f32 %v2942_v61, %v2295_v41  ;;  %v2309_v4 = vpop.f32.mrb[107].mxu1  ;;  %v2492_v5 = vld [vmem:[#allocation4 + $0x1f8] sm:$0xff]  ;;  %v2944_v7 = vpop.f32.mrb[143].mxu0  ;;  %8234 = vmatmul.mubr.msk.f32.gmra.mrb[212].mxu1 %vm111_vm2, %v4693_v9 }
 0x291   :  { %2416 = vst.msk [vmem:[#allocation4 + $0x218] sm:$0xff] %vm2349_vm3, %v2309_v4  ;;  %v3058_v20 = vadd.f32 %v2944_v7, %v2492_v5  ;;  %4974 = vmatprep.mubr.f32.mxu1 %v9738_v3  ;;  %v8314_v41 = vld [vmem:[%s13314_s5 + $0x1e0] sm:$0xff]  ;;  %v4700_v5 = vld [vmem:[#allocation3 + $0xa8] sm:$0xff] }
 0x292   :  { %3137 = vst [vmem:[#allocation4 + $0x1f0] sm:$0xff] %v3057_v2  ;;  %v9219_v47 = vpack.c.bf16 %v8315_v44, %v8314_v41  ;;  %v3162_v44 = vld [vmem:[#allocation4 + $0x38] sm:$0xff] }
 0x293   :  { %3138 = vst.msk [vmem:[#allocation4 + $0x1f8] sm:$0xff] %vm2349_vm3, %v3058_v20  ;;  %v2313_v45 = vpop.f32.mrb[108].mxu1  ;;  %v2948_v6 = vpop.f32.mrb[144].mxu0 }
 0x294   :  { %v3059_v36 = vadd.f32 %v2948_v6, %v2301_v53  ;;  %v2315_v52 = vpop.f32.mrb[109].mxu1  ;;  %v2494_v1 = vld [vmem:[#allocation4 + $0x208] sm:$0xff]  ;;  %v2950_v11 = vpop.f32.mrb[145].mxu0  ;;  %8235 = vmatmul.mubr.msk.f32.gmra.mrb[214].mxu1 %vm111_vm2, %v4694_v21 }
 0x295   :  { %2418 = vst.msk [vmem:[#allocation4 + $0x228] sm:$0xff] %vm2349_vm3, %v2315_v52  ;;  %v3060_v17 = vadd.f32 %v2950_v11, %v2494_v1  ;;  %4980 = vmatprep.mubr.f32.mxu1 %v9738_v3  ;;  %9220 = vmatpush1.bf16.msra.mxu1 %v9219_v47  ;;  %v4701_v52 = vld [vmem:[#allocation3 + $0xb0] sm:$0xff] }
 0x296   :  { %3139 = vst [vmem:[#allocation4 + $0x200] sm:$0xff] %v3059_v36  ;;  %9221 = vmatprep.subr.bf16.mxu1 %v9739_v31 }
 0x297   :  { %3140 = vst.msk [vmem:[#allocation4 + $0x208] sm:$0xff] %vm2349_vm3, %v3060_v17  ;;  %v2319_v33 = vpop.f32.mrb[110].mxu1  ;;  %v2954_v50 = vpop.f32.mrb[146].mxu0 }
 0x298   :  { %v3061_v18 = vadd.f32 %v2954_v50, %v2307_v60  ;;  %v2321_v27 = vpop.f32.mrb[111].mxu1  ;;  %v2496_v12 = vld [vmem:[#allocation4 + $0x218] sm:$0xff]  ;;  %v2956_v37 = vpop.f32.mrb[147].mxu0  ;;  %8236 = vmatmul.mubr.msk.f32.gmra.mrb[216].mxu1 %vm111_vm2, %v4695_v0  ;;  %v3155_v0 = vld [vmem:[#allocation4] sm:$0xff] }
 0x299   :  { %2420 = vst.msk [vmem:[#allocation4 + $0x238] sm:$0xff] %vm2349_vm3, %v2321_v27  ;;  %v3062_v43 = vadd.f32 %v2956_v37, %v2496_v12  ;;  %4986 = vmatprep.mubr.f32.mxu1 %v9738_v3  ;;  %v8280_v12 = vld [vmem:[%s13314_s5 + $0x100] sm:$0xff]  ;;  %v8281_v37 = vld [vmem:[%s13314_s5 + $0x108] sm:$0xff] }
 0x29a   :  { %3141 = vst [vmem:[#allocation4 + $0x210] sm:$0xff] %v3061_v18 }
 0x29b   :  { %3142 = vst.msk [vmem:[#allocation4 + $0x218] sm:$0xff] %vm2349_vm3, %v3062_v43  ;;  %v2325_v56 = vpop.f32.mrb[112].mxu1  ;;  %v2960_v62 = vpop.f32.mrb[148].mxu0 }
 0x29c   :  { %v3063_v25 = vadd.f32 %v2960_v62, %v2313_v45  ;;  %v2327_v13 = vpop.f32.mrb[113].mxu1  ;;  %v2498_v26 = vld [vmem:[#allocation4 + $0x228] sm:$0xff]  ;;  %v2962_v51 = vpop.f32.mrb[149].mxu0  ;;  %8237 = vmatmul.mubr.msk.f32.gmra.mrb[218].mxu1 %vm111_vm2, %v4696_v23  ;;  %v8317_v23 = vld [vmem:[%s13314_s5 + $0x1f8] sm:$0xff] }
 0x29d   :  { %2422 = vst.msk [vmem:[#allocation4 + $0x248] sm:$0xff] %vm2349_vm3, %v2327_v13  ;;  %v3064_v28 = vadd.f32 %v2962_v51, %v2498_v26  ;;  %4992 = vmatprep.mubr.f32.mxu1 %v9738_v3  ;;  %v8316_v62 = vld [vmem:[%s13314_s5 + $0x1f0] sm:$0xff]  ;;  %v4702_v26 = vld [vmem:[#allocation3 + $0xb8] sm:$0xff] }
 0x29e   :  { %3143 = vst [vmem:[#allocation4 + $0x220] sm:$0xff] %v3063_v25  ;;  %v9222_v51 = vpack.c.bf16 %v8317_v23, %v8316_v62 }
 0x29f   :  { %3144 = vst.msk [vmem:[#allocation4 + $0x228] sm:$0xff] %vm2349_vm3, %v3064_v28  ;;  %v2331_v29 = vpop.f32.mrb[114].mxu1  ;;  %v2966_v30 = vpop.f32.mrb[150].mxu0 }
 0x2a0   :  { %v3065_v14 = vadd.f32 %v2966_v30, %v2319_v33  ;;  %v2333_v34 = vpop.f32.mrb[115].mxu1  ;;  %v2500_v35 = vld [vmem:[#allocation4 + $0x238] sm:$0xff]  ;;  %v2968_v57 = vpop.f32.mrb[151].mxu0  ;;  %8238 = vmatmul.mubr.msk.f32.gmra.mrb[220].mxu1 %vm111_vm2, %v4697_v32 }
 0x2a1   :  { %2424 = vst.msk [vmem:[#allocation4 + $0x258] sm:$0xff] %vm2349_vm3, %v2333_v34  ;;  %v3066_v38 = vadd.f32 %v2968_v57, %v2500_v35  ;;  %4998 = vmatprep.mubr.f32.mxu1 %v9738_v3  ;;  %v3158_v33 = vld [vmem:[#allocation4 + $0x18] sm:$0xff]  ;;  %9223 = vmatpush1.bf16.msra.mxu1 %v9222_v51 }
 0x2a2   :  { %3145 = vst [vmem:[#allocation4 + $0x230] sm:$0xff] %v3065_v14  ;;  %v3157_v14 = vld [vmem:[#allocation4 + $0x10] sm:$0xff]  ;;  %9224 = vmatprep.subr.bf16.mxu1 %v9739_v31 }
 0x2a3   :  { %3146 = vst.msk [vmem:[#allocation4 + $0x238] sm:$0xff] %vm2349_vm3, %v3066_v38  ;;  %v2337_v42 = vpop.f32.mrb[116].mxu1  ;;  %v2972_v63 = vpop.f32.mrb[152].mxu0 }
 0x2a4   :  { %v3067_v16 = vadd.f32 %v2972_v63, %v2325_v56  ;;  %v2339_v48 = vpop.f32.mrb[117].mxu1  ;;  %v2502_v53 = vld [vmem:[#allocation4 + $0x248] sm:$0xff]  ;;  %v2974_v19 = vpop.f32.mrb[153].mxu0  ;;  %8239 = vmatmul.mubr.msk.f32.gmra.mrb[222].mxu1 %vm111_vm2, %v4698_v46  ;;  %v9147_v56 = vpack.c.bf16 %v8281_v37, %v8280_v12  ;;  %v3159_v46 = vld [vmem:[#allocation4 + $0x20] sm:$0xff]  ;;  %v4706_v12 = vld [vmem:[#allocation3 + $0xd8] sm:$0xff] }
 0x2a5   :  { %2426 = vst.msk [vmem:[#allocation4 + $0x268] sm:$0xff] %vm2349_vm3, %v2339_v48  ;;  %v3068_v54 = vadd.f32 %v2974_v19, %v2502_v53  ;;  %5004 = vmatprep.mubr.f32.mxu1 %v9738_v3 }
 0x2a6   :  { %3147 = vst [vmem:[#allocation4 + $0x240] sm:$0xff] %v3067_v16  ;;  %9148 = vmatpush1.bf16.msra.mxu0 %v9147_v56  ;;  %v3168_v56 = vld [vmem:[#allocation4 + $0x68] sm:$0xff] }
 0x2a7   :  { %3148 = vst.msk [vmem:[#allocation4 + $0x248] sm:$0xff] %vm2349_vm3, %v3068_v54  ;;  %v2343_v8 = vpop.f32.mrb[118].mxu1  ;;  %v2978_v55 = vpop.f32.mrb[154].mxu0  ;;  %9149 = vmatprep.subr.bf16.mxu0 %v9739_v31 }
 0x2a8   :  { %v3069_v49 = vadd.f32 %v2978_v55, %v2331_v29  ;;  %v2345_v59 = vpop.f32.mrb[119].mxu1  ;;  %v2504_v60 = vld [vmem:[#allocation4 + $0x258] sm:$0xff]  ;;  %v2980_v61 = vpop.f32.mrb[155].mxu0  ;;  %8240 = vmatmul.mubr.msk.f32.gmra.mrb[224].mxu1 %vm111_vm2, %v4699_v58  ;;  %v3160_v29 = vld [vmem:[#allocation4 + $0x28] sm:$0xff] }
 0x2a9   :  { %2428 = vst.msk [vmem:[#allocation4 + $0x278] sm:$0xff] %vm2349_vm3, %v2345_v59  ;;  %v3070_v9 = vadd.f32 %v2980_v61, %v2504_v60  ;;  %5010 = vmatprep.mubr.f32.mxu1 %v9738_v3  ;;  %v3164_v58 = vld [vmem:[#allocation4 + $0x48] sm:$0xff]  ;;  %v3161_v60 = vld [vmem:[#allocation4 + $0x30] sm:$0xff] }
 0x2aa   :  { %3149 = vst [vmem:[#allocation4 + $0x250] sm:$0xff] %v3069_v49 }
 0x2ab   :  { %3150 = vst.msk [vmem:[#allocation4 + $0x258] sm:$0xff] %vm2349_vm3, %v3070_v9  ;;  %v2984_v2 = vpop.f32.mrb[156].mxu0  ;;  %v3482_v4 = vpop.f32.mrb[120].mxu1 }
 0x2ac   :  { %v3071_v7 = vadd.f32 %v2984_v2, %v2337_v42  ;;  %v2506_v20 = vld [vmem:[#allocation4 + $0x268] sm:$0xff]  ;;  %v2986_v22 = vpop.f32.mrb[157].mxu0  ;;  %v3484_v10 = vpop.f32.mrb[121].mxu1  ;;  %8241 = vmatmul.mubr.msk.f32.gmra.mrb[226].mxu1 %vm111_vm2, %v4700_v5  ;;  %v3721_v43 = vadd.f32 %v3482_v4, %v3155_v0 }
 0x2ad   :  { %v3072_v45 = vadd.f32 %v2986_v22, %v2506_v20  ;;  %v3722_v6 = vadd.f32 %v3484_v10, %v3156_v24  ;;  %5016 = vmatprep.mubr.f32.mxu1 %v9738_v3  ;;  %v4705_v20 = vld [vmem:[#allocation3 + $0xd0] sm:$0xff]  ;;  %v3166_v24 = vld [vmem:[#allocation4 + $0x58] sm:$0xff] }
 0x2ae   :  { %3151 = vst [vmem:[#allocation4 + $0x260] sm:$0xff] %v3071_v7 }
 0x2af   :  { %3152 = vst.msk [vmem:[#allocation4 + $0x268] sm:$0xff] %vm2349_vm3, %v3072_v45  ;;  %3802 = vst.msk [vmem:[#allocation4 + $0x8] sm:$0xff] %vm2349_vm3, %v3722_v6  ;;  %v2990_v21 = vpop.f32.mrb[158].mxu0  ;;  %v3488_v36 = vpop.f32.mrb[122].mxu1  ;;  %v3163_v6 = vld [vmem:[#allocation4 + $0x40] sm:$0xff] }
 0x2b0   :  { %v3073_v1 = vadd.f32 %v2990_v21, %v2343_v8  ;;  %v2508_v11 = vld [vmem:[#allocation4 + $0x278] sm:$0xff]  ;;  %v2992_v17 = vpop.f32.mrb[159].mxu0  ;;  %v3490_v50 = vpop.f32.mrb[123].mxu1  ;;  %8242 = vmatmul.mubr.msk.f32.gmra.mrb[228].mxu1 %vm111_vm2, %v4701_v52  ;;  %v3723_v35 = vadd.f32 %v3488_v36, %v3157_v14  ;;  %v4704_v8 = vld [vmem:[#allocation3 + $0xc8] sm:$0xff]  ;;  %v8283_v52 = vld [vmem:[%s13314_s5 + $0x118] sm:$0xff] }
 0x2b1   :  { %v3074_v18 = vadd.f32 %v2992_v17, %v2508_v11  ;;  %v3724_v27 = vadd.f32 %v3490_v50, %v3158_v33  ;;  %5022 = vmatprep.mubr.f32.mxu1 %v9738_v3  ;;  %v8282_v36 = vld [vmem:[%s13314_s5 + $0x110] sm:$0xff]  ;;  %v8318_v33 = vld [vmem:[%s13314_s5 + $0x200] sm:$0xff]  ;;  %v8319_v50 = vld [vmem:[%s13314_s5 + $0x208] sm:$0xff] }
 0x2b2   :  { %3153 = vst [vmem:[#allocation4 + $0x270] sm:$0xff] %v3073_v1  ;;  %v9150_v17 = vpack.c.bf16 %v8283_v52, %v8282_v36  ;;  %v9225_v37 = vpack.c.bf16 %v8319_v50, %v8318_v33 }
 0x2b3   :  { %3154 = vst.msk [vmem:[#allocation4 + $0x278] sm:$0xff] %vm2349_vm3, %v3074_v18  ;;  %3804 = vst.msk [vmem:[#allocation4 + $0x18] sm:$0xff] %vm2349_vm3, %v3724_v27  ;;  %v3494_v25 = vpop.f32.mrb[124].mxu1  ;;  %v4208_v13 = vpop.f32.mrb[160].mxu0 }
 0x2b4   :  { %v4447_v28 = vadd.f32 %v4208_v13, %v3721_v43  ;;  %v3496_v30 = vpop.f32.mrb[125].mxu1  ;;  %v4210_v32 = vpop.f32.mrb[161].mxu0  ;;  %8243 = vmatmul.mubr.msk.f32.gmra.mrb[230].mxu1 %vm111_vm2, %v4702_v26  ;;  %v3725_v16 = vadd.f32 %v3494_v25, %v3159_v46  ;;  %9151 = vmatpush1.bf16.msra.mxu0 %v9150_v17  ;;  %v3165_v25 = vld [vmem:[#allocation4 + $0x50] sm:$0xff] }
 0x2b5   :  { %v3726_v34 = vadd.f32 %v3496_v30, %v3160_v29  ;;  %5028 = vmatprep.mubr.f32.mxu1 %v9738_v3  ;;  %9226 = vmatpush1.bf16.msra.mxu1 %v9225_v37  ;;  %v3178_v37 = vld [vmem:[#allocation4 + $0xb8] sm:$0xff] }
 0x2b6   :  { %4527 = vst [vmem:[#allocation4] sm:$0xff] %v4447_v28  ;;  %v3882_v57 = vld [vmem:[#allocation4 + $0x8] sm:$0xff]  ;;  %9152 = vmatprep.subr.bf16.mxu0 %v9739_v31  ;;  %9227 = vmatprep.subr.bf16.mxu1 %v9739_v31 }
 0x2b7   :  { %3806 = vst.msk [vmem:[#allocation4 + $0x28] sm:$0xff] %vm2349_vm3, %v3726_v34  ;;  %v4448_v38 = vadd.f32 %v4210_v32, %v3882_v57  ;;  %v3500_v39 = vpop.f32.mrb[126].mxu1  ;;  %v4214_v40 = vpop.f32.mrb[162].mxu0  ;;  %v4707_v32 = vld [vmem:[#allocation3 + $0xe0] sm:$0xff]  ;;  %v3170_v34 = vld [vmem:[#allocation4 + $0x78] sm:$0xff] }
 0x2b8   :  { %v4449_v41 = vadd.f32 %v4214_v40, %v3723_v35  ;;  %v3502_v42 = vpop.f32.mrb[127].mxu1  ;;  %v4216_v63 = vpop.f32.mrb[163].mxu0  ;;  %8244 = vmatmul.mubr.msk.f32.gmra.mrb[232].mxu1 %vm111_vm2, %v4703_v15  ;;  %v3727_v9 = vadd.f32 %v3500_v39, %v3161_v60 }
 0x2b9   :  { %4528 = vst.msk [vmem:[#allocation4 + $0x8] sm:$0xff] %vm2349_vm3, %v4448_v38  ;;  %v3728_v47 = vadd.f32 %v3502_v42, %v3162_v44  ;;  %5034 = vmatprep.mubr.f32.mxu1 %v9738_v3  ;;  %v3167_v38 = vld [vmem:[#allocation4 + $0x60] sm:$0xff] }
 0x2ba   :  { %4529 = vst [vmem:[#allocation4 + $0x10] sm:$0xff] %v4449_v41  ;;  %v3884_v48 = vld [vmem:[#allocation4 + $0x18] sm:$0xff] }
 0x2bb   :  { %3808 = vst.msk [vmem:[#allocation4 + $0x38] sm:$0xff] %vm2349_vm3, %v3728_v47  ;;  %v4450_v53 = vadd.f32 %v4216_v63, %v3884_v48  ;;  %v3506_v19 = vpop.f32.mrb[128].mxu1  ;;  %v4220_v54 = vpop.f32.mrb[164].mxu0  ;;  %v4708_v63 = vld [vmem:[#allocation3 + $0xe8] sm:$0xff] }
 0x2bc   :  { %v4451_v55 = vadd.f32 %v4220_v54, %v3725_v16  ;;  %v3508_v49 = vpop.f32.mrb[129].mxu1  ;;  %v4222_v59 = vpop.f32.mrb[165].mxu0  ;;  %8245 = vmatmul.mubr.msk.f32.gmra.mrb[234].mxu1 %vm111_vm2, %v4704_v8  ;;  %v3729_v1 = vadd.f32 %v3506_v19, %v3163_v6  ;;  %v3172_v47 = vld [vmem:[#allocation4 + $0x88] sm:$0xff] }
 0x2bd   :  { %4530 = vst.msk [vmem:[#allocation4 + $0x18] sm:$0xff] %vm2349_vm3, %v4450_v53  ;;  %v3730_v61 = vadd.f32 %v3508_v49, %v3164_v58  ;;  %5040 = vmatprep.mubr.f32.mxu1 %v9738_v3  ;;  %v3169_v53 = vld [vmem:[#allocation4 + $0x70] sm:$0xff] }
 0x2be   :  { %4531 = vst [vmem:[#allocation4 + $0x20] sm:$0xff] %v4451_v55  ;;  %v3886_v2 = vld [vmem:[#allocation4 + $0x28] sm:$0xff] }
 0x2bf   :  { %3810 = vst.msk [vmem:[#allocation4 + $0x48] sm:$0xff] %vm2349_vm3, %v3730_v61  ;;  %v4452_v4 = vadd.f32 %v4222_v59, %v3886_v2  ;;  %v3512_v5 = vpop.f32.mrb[130].mxu1  ;;  %v4226_v7 = vpop.f32.mrb[166].mxu0  ;;  %v4709_v59 = vld [vmem:[#allocation3 + $0xf0] sm:$0xff]  ;;  %v3174_v61 = vld [vmem:[#allocation4 + $0x98] sm:$0xff] }
 0x2c0   :  { %v4453_v22 = vadd.f32 %v4226_v7, %v3727_v9  ;;  %v3514_v10 = vpop.f32.mrb[131].mxu1  ;;  %v4228_v45 = vpop.f32.mrb[167].mxu0  ;;  %8246 = vmatmul.mubr.msk.f32.gmra.mrb[236].mxu1 %vm111_vm2, %v4705_v20  ;;  %v3731_v26 = vadd.f32 %v3512_v5, %v3165_v25 }
 0x2c1   :  { %4532 = vst.msk [vmem:[#allocation4 + $0x28] sm:$0xff] %vm2349_vm3, %v4452_v4  ;;  %v3732_v21 = vadd.f32 %v3514_v10, %v3166_v24  ;;  %5046 = vmatprep.mubr.f32.mxu1 %v9738_v3  ;;  %v3171_v4 = vld [vmem:[#allocation4 + $0x80] sm:$0xff] }
 0x2c2   :  { %4533 = vst [vmem:[#allocation4 + $0x30] sm:$0xff] %v4453_v22  ;;  %v3888_v11 = vld [vmem:[#allocation4 + $0x38] sm:$0xff] }
 0x2c3   :  { %3812 = vst.msk [vmem:[#allocation4 + $0x58] sm:$0xff] %vm2349_vm3, %v3732_v21  ;;  %v4454_v0 = vadd.f32 %v4228_v45, %v3888_v11  ;;  %v3518_v18 = vpop.f32.mrb[132].mxu1  ;;  %v4232_v27 = vpop.f32.mrb[168].mxu0  ;;  %v4710_v45 = vld [vmem:[#allocation3 + $0xf8] sm:$0xff]  ;;  %v3176_v21 = vld [vmem:[#allocation4 + $0xa8] sm:$0xff] }
 0x2c4   :  { %v4455_v43 = vadd.f32 %v4232_v27, %v3729_v1  ;;  %v3520_v62 = vpop.f32.mrb[133].mxu1  ;;  %v4234_v23 = vpop.f32.mrb[169].mxu0  ;;  %8247 = vmatmul.mubr.msk.f32.gmra.mrb[238].mxu1 %vm111_vm2, %v4706_v12  ;;  %v3733_v40 = vadd.f32 %v3518_v18, %v3167_v38  ;;  %v3173_v1 = vld [vmem:[#allocation4 + $0x90] sm:$0xff]  ;;  %v4711_v27 = vld [vmem:[#allocation3 + $0x100] sm:$0xff] }
 0x2c5   :  { %4534 = vst.msk [vmem:[#allocation4 + $0x38] sm:$0xff] %vm2349_vm3, %v4454_v0  ;;  %v3734_v13 = vadd.f32 %v3520_v62, %v3168_v56  ;;  %5052 = vmatprep.mubr.f32.mxu1 %v9738_v3  ;;  %v3175_v62 = vld [vmem:[#allocation4 + $0xa0] sm:$0xff] }
 0x2c6   :  { %4535 = vst [vmem:[#allocation4 + $0x40] sm:$0xff] %v4455_v43  ;;  %v3890_v51 = vld [vmem:[#allocation4 + $0x48] sm:$0xff] }
 0x2c7   :  { %3814 = vst.msk [vmem:[#allocation4 + $0x68] sm:$0xff] %vm2349_vm3, %v3734_v13  ;;  %v4456_v28 = vadd.f32 %v4234_v23, %v3890_v51  ;;  %v3524_v29 = vpop.f32.mrb[134].mxu1  ;;  %v4238_v30 = vpop.f32.mrb[170].mxu0 }
 0x2c8   :  { %v4457_v14 = vadd.f32 %v4238_v30, %v3731_v26  ;;  %v3526_v35 = vpop.f32.mrb[135].mxu1  ;;  %v4240_v57 = vpop.f32.mrb[171].mxu0  ;;  %8248 = vmatmul.mubr.msk.f32.gmra.mrb[240].mxu1 %vm111_vm2, %v4707_v32  ;;  %v3735_v54 = vadd.f32 %v3524_v29, %v3169_v53  ;;  %v4712_v26 = vld [vmem:[#allocation3 + $0x108] sm:$0xff]  ;;  %v8284_v30 = vld [vmem:[%s13314_s5 + $0x120] sm:$0xff]  ;;  %v8285_v32 = vld [vmem:[%s13314_s5 + $0x128] sm:$0xff] }
 0x2c9   :  { %4536 = vst.msk [vmem:[#allocation4 + $0x48] sm:$0xff] %vm2349_vm3, %v4456_v28  ;;  %v3736_v39 = vadd.f32 %v3526_v35, %v3170_v34  ;;  %5058 = vmatprep.mubr.f32.mxu1 %v9738_v3  ;;  %v3180_v35 = vld [vmem:[#allocation4 + $0xc8] sm:$0xff] }
 0x2ca   :  { %4537 = vst [vmem:[#allocation4 + $0x50] sm:$0xff] %v4457_v14  ;;  %v3892_v15 = vld [vmem:[#allocation4 + $0x58] sm:$0xff]  ;;  %v8320_v14 = vld [vmem:[%s13314_s5 + $0x210] sm:$0xff] }
 0x2cb   :  { %3816 = vst.msk [vmem:[#allocation4 + $0x78] sm:$0xff] %vm2349_vm3, %v3736_v39  ;;  %v4458_v41 = vadd.f32 %v4240_v57, %v3892_v15  ;;  %v3530_v44 = vpop.f32.mrb[136].mxu1  ;;  %v4244_v42 = vpop.f32.mrb[172].mxu0  ;;  %v9153_v39 = vpack.c.bf16 %v8285_v32, %v8284_v30  ;;  %v3177_v15 = vld [vmem:[#allocation4 + $0xb0] sm:$0xff] }
 0x2cc   :  { %v4459_v46 = vadd.f32 %v4244_v42, %v3733_v40  ;;  %v3532_v16 = vpop.f32.mrb[137].mxu1  ;;  %v4246_v48 = vpop.f32.mrb[173].mxu0  ;;  %8249 = vmatmul.mubr.msk.f32.gmra.mrb[242].mxu1 %vm111_vm2, %v4708_v63  ;;  %v3737_v7 = vadd.f32 %v3530_v44, %v3171_v4  ;;  %v8321_v40 = vld [vmem:[%s13314_s5 + $0x218] sm:$0xff] }
 0x2cd   :  { %4538 = vst.msk [vmem:[#allocation4 + $0x58] sm:$0xff] %vm2349_vm3, %v4458_v41  ;;  %v3738_v19 = vadd.f32 %v3532_v16, %v3172_v47  ;;  %5064 = vmatprep.mubr.f32.mxu1 %v9738_v3  ;;  %v9228_v44 = vpack.c.bf16 %v8321_v40, %v8320_v14  ;;  %9154 = vmatpush1.bf16.msra.mxu0 %v9153_v39 }
 0x2ce   :  { %4539 = vst [vmem:[#allocation4 + $0x60] sm:$0xff] %v4459_v46  ;;  %v3894_v8 = vld [vmem:[#allocation4 + $0x68] sm:$0xff]  ;;  %9155 = vmatprep.subr.bf16.mxu0 %v9739_v31 }
 0x2cf   :  { %3818 = vst.msk [vmem:[#allocation4 + $0x88] sm:$0xff] %vm2349_vm3, %v3738_v19  ;;  %v4460_v55 = vadd.f32 %v4246_v48, %v3894_v8  ;;  %v3536_v58 = vpop.f32.mrb[138].mxu1  ;;  %v4250_v49 = vpop.f32.mrb[174].mxu0  ;;  %v4713_v48 = vld [vmem:[#allocation3 + $0x110] sm:$0xff]  ;;  %9229 = vmatpush1.bf16.msra.mxu1 %v9228_v44  ;;  %v3182_v19 = vld [vmem:[#allocation4 + $0xd8] sm:$0xff] }
 0x2d0   :  { %v4461_v60 = vadd.f32 %v4250_v49, %v3735_v54  ;;  %v3538_v9 = vpop.f32.mrb[139].mxu1  ;;  %v4252_v2 = vpop.f32.mrb[175].mxu0  ;;  %8250 = vmatmul.mubr.msk.f32.gmra.mrb[244].mxu1 %vm111_vm2, %v4709_v59  ;;  %v3739_v17 = vadd.f32 %v3536_v58, %v3173_v1  ;;  %9230 = vmatprep.subr.bf16.mxu1 %v9739_v31  ;;  %v8322_v1 = vld [vmem:[%s13314_s5 + $0x220] sm:$0xff] }
 0x2d1   :  { %4540 = vst.msk [vmem:[#allocation4 + $0x68] sm:$0xff] %vm2349_vm3, %v4460_v55  ;;  %v3740_v5 = vadd.f32 %v3538_v9, %v3174_v61  ;;  %5070 = vmatprep.mubr.f32.mxu1 %v9738_v3  ;;  %v3179_v55 = vld [vmem:[#allocation4 + $0xc0] sm:$0xff] }
 0x2d2   :  { %4541 = vst [vmem:[#allocation4 + $0x70] sm:$0xff] %v4461_v60  ;;  %v3896_v20 = vld [vmem:[#allocation4 + $0x78] sm:$0xff] }
 0x2d3   :  { %3820 = vst.msk [vmem:[#allocation4 + $0x98] sm:$0xff] %vm2349_vm3, %v3740_v5  ;;  %v4462_v22 = vadd.f32 %v4252_v2, %v3896_v20  ;;  %v3542_v24 = vpop.f32.mrb[140].mxu1  ;;  %v4256_v10 = vpop.f32.mrb[176].mxu0  ;;  %v4714_v2 = vld [vmem:[#allocation3 + $0x118] sm:$0xff]  ;;  %v3184_v5 = vld [vmem:[#allocation4 + $0xe8] sm:$0xff] }
 0x2d4   :  { %v4463_v6 = vadd.f32 %v4256_v10, %v3737_v7  ;;  %v3544_v36 = vpop.f32.mrb[141].mxu1  ;;  %v4258_v52 = vpop.f32.mrb[177].mxu0  ;;  %8251 = vmatmul.mubr.msk.f32.gmra.mrb[246].mxu1 %vm111_vm2, %v4710_v45  ;;  %v3741_v25 = vadd.f32 %v3542_v24, %v3175_v62 }
 0x2d5   :  { %4542 = vst.msk [vmem:[#allocation4 + $0x78] sm:$0xff] %vm2349_vm3, %v4462_v22  ;;  %v3742_v11 = vadd.f32 %v3544_v36, %v3176_v21  ;;  %5076 = vmatprep.mubr.f32.mxu1 %v9738_v3  ;;  %v3181_v22 = vld [vmem:[#allocation4 + $0xd0] sm:$0xff] }
 0x2d6   :  { %4543 = vst [vmem:[#allocation4 + $0x80] sm:$0xff] %v4463_v6  ;;  %v3898_v33 = vld [vmem:[#allocation4 + $0x88] sm:$0xff] }
 0x2d7   :  { %3822 = vst.msk [vmem:[#allocation4 + $0xa8] sm:$0xff] %vm2349_vm3, %v3742_v11  ;;  %v4464_v50 = vadd.f32 %v4258_v52, %v3898_v33  ;;  %v3548_v0 = vpop.f32.mrb[142].mxu1  ;;  %v4262_v18 = vpop.f32.mrb[178].mxu0  ;;  %v4715_v52 = vld [vmem:[#allocation3 + $0x120] sm:$0xff]  ;;  %v3186_v33 = vld [vmem:[#allocation4 + $0xf8] sm:$0xff] }
 0x2d8   :  { %v4465_v12 = vadd.f32 %v4262_v18, %v3739_v17  ;;  %v3550_v43 = vpop.f32.mrb[143].mxu1  ;;  %v4264_v56 = vpop.f32.mrb[179].mxu0  ;;  %8252 = vmatmul.mubr.msk.f32.gmra.mrb[248].mxu1 %vm111_vm2, %v4711_v27  ;;  %v3743_v42 = vadd.f32 %v3548_v0, %v3177_v15  ;;  %v8323_v11 = vld [vmem:[%s13314_s5 + $0x228] sm:$0xff] }
 0x2d9   :  { %4544 = vst.msk [vmem:[#allocation4 + $0x88] sm:$0xff] %vm2349_vm3, %v4464_v50  ;;  %v3744_v23 = vadd.f32 %v3550_v43, %v3178_v37  ;;  %5082 = vmatprep.mubr.f32.mxu1 %v9738_v3  ;;  %v9231_v18 = vpack.c.bf16 %v8323_v11, %v8322_v1  ;;  %v3183_v27 = vld [vmem:[#allocation4 + $0xe0] sm:$0xff]  ;;  %v8330_v11 = vld [vmem:[%s13314_s5 + $0x260] sm:$0xff] }
 0x2da   :  { %4545 = vst [vmem:[#allocation4 + $0x90] sm:$0xff] %v4465_v12  ;;  %v3900_v13 = vld [vmem:[#allocation4 + $0x98] sm:$0xff]  ;;  %v4719_v1 = vld [vmem:[#allocation3 + $0x140] sm:$0xff] }
 0x2db   :  { %3824 = vst.msk [vmem:[#allocation4 + $0xb8] sm:$0xff] %vm2349_vm3, %v3744_v23  ;;  %v4466_v51 = vadd.f32 %v4264_v56, %v3900_v13  ;;  %v3554_v28 = vpop.f32.mrb[144].mxu1  ;;  %v4268_v29 = vpop.f32.mrb[180].mxu0  ;;  %v4716_v56 = vld [vmem:[#allocation3 + $0x128] sm:$0xff]  ;;  %9232 = vmatpush1.bf16.msra.mxu1 %v9231_v18  ;;  %v8331_v18 = vld [vmem:[%s13314_s5 + $0x268] sm:$0xff] }
 0x2dc   :  { %v4467_v34 = vadd.f32 %v4268_v29, %v3741_v25  ;;  %v3556_v57 = vpop.f32.mrb[145].mxu1  ;;  %v4270_v38 = vpop.f32.mrb[181].mxu0  ;;  %8253 = vmatmul.mubr.msk.f32.gmra.mrb[250].mxu1 %vm111_vm2, %v4712_v26  ;;  %v3745_v49 = vadd.f32 %v3554_v28, %v3179_v55  ;;  %v8286_v13 = vld [vmem:[%s13314_s5 + $0x130] sm:$0xff]  ;;  %v8287_v26 = vld [vmem:[%s13314_s5 + $0x138] sm:$0xff]  ;;  %9233 = vmatprep.subr.bf16.mxu1 %v9739_v31 }
 0x2dd   :  { %4546 = vst.msk [vmem:[#allocation4 + $0x98] sm:$0xff] %vm2349_vm3, %v4466_v51  ;;  %v3746_v41 = vadd.f32 %v3556_v57, %v3180_v35  ;;  %5088 = vmatprep.mubr.f32.mxu1 %v9738_v3  ;;  %v8324_v51 = vld [vmem:[%s13314_s5 + $0x230] sm:$0xff]  ;;  %v9156_v14 = vpack.c.bf16 %v8287_v26, %v8286_v13  ;;  %v3185_v35 = vld [vmem:[#allocation4 + $0xf0] sm:$0xff] }
 0x2de   :  { %4547 = vst [vmem:[#allocation4 + $0xa0] sm:$0xff] %v4467_v34  ;;  %v3902_v63 = vld [vmem:[#allocation4 + $0xa8] sm:$0xff]  ;;  %v8325_v34 = vld [vmem:[%s13314_s5 + $0x238] sm:$0xff] }
 0x2df   :  { %3826 = vst.msk [vmem:[#allocation4 + $0xc8] sm:$0xff] %vm2349_vm3, %v3746_v41  ;;  %v4468_v46 = vadd.f32 %v4270_v38, %v3902_v63  ;;  %v3560_v47 = vpop.f32.mrb[146].mxu1  ;;  %v4274_v16 = vpop.f32.mrb[182].mxu0  ;;  %v3188_v29 = vld [vmem:[#allocation4 + $0x108] sm:$0xff]  ;;  %v9234_v38 = vpack.c.bf16 %v8325_v34, %v8324_v51  ;;  %9157 = vmatpush1.bf16.msra.mxu0 %v9156_v14  ;;  %v8326_v63 = vld [vmem:[%s13314_s5 + $0x240] sm:$0xff]  ;;  %v3193_v14 = vld [vmem:[#allocation4 + $0x130] sm:$0xff] }
 0x2e0   :  { %v4469_v53 = vadd.f32 %v4274_v16, %v3743_v42  ;;  %v3562_v54 = vpop.f32.mrb[147].mxu1  ;;  %v4276_v8 = vpop.f32.mrb[183].mxu0  ;;  %8254 = vmatmul.mubr.msk.f32.gmra.mrb[252].mxu1 %vm111_vm2, %v4713_v48  ;;  %v3747_v10 = vadd.f32 %v3560_v47, %v3181_v22  ;;  %v4717_v42 = vld [vmem:[#allocation3 + $0x130] sm:$0xff]  ;;  %9158 = vmatprep.subr.bf16.mxu0 %v9739_v31  ;;  %v3190_v47 = vld [vmem:[#allocation4 + $0x118] sm:$0xff]  ;;  %v4720_v13 = vld [vmem:[#allocation3 + $0x148] sm:$0xff] }
 0x2e1   :  { %4548 = vst.msk [vmem:[#allocation4 + $0xa8] sm:$0xff] %vm2349_vm3, %v4468_v46  ;;  %v3748_v58 = vadd.f32 %v3562_v54, %v3182_v19  ;;  %5094 = vmatprep.mubr.f32.mxu1 %v9738_v3  ;;  %9235 = vmatpush1.bf16.msra.mxu1 %v9234_v38  ;;  %v3187_v19 = vld [vmem:[#allocation4 + $0x100] sm:$0xff]  ;;  %v3189_v22 = vld [vmem:[#allocation4 + $0x110] sm:$0xff]  ;;  %v8332_v26 = vld [vmem:[%s13314_s5 + $0x270] sm:$0xff] }
 0x2e2   :  { %4549 = vst [vmem:[#allocation4 + $0xb0] sm:$0xff] %v4469_v53  ;;  %v3904_v59 = vld [vmem:[#allocation4 + $0xb8] sm:$0xff]  ;;  %9236 = vmatprep.subr.bf16.mxu1 %v9739_v31  ;;  %v8327_v53 = vld [vmem:[%s13314_s5 + $0x248] sm:$0xff] }
 0x2e3   :  { %3828 = vst.msk [vmem:[#allocation4 + $0xd8] sm:$0xff] %vm2349_vm3, %v3748_v58  ;;  %v4470_v60 = vadd.f32 %v4276_v8, %v3904_v59  ;;  %v3566_v61 = vpop.f32.mrb[148].mxu1  ;;  %v4280_v9 = vpop.f32.mrb[184].mxu0  ;;  %v9237_v8 = vpack.c.bf16 %v8327_v53, %v8326_v63 }
 0x2e4   :  { %v4471_v4 = vadd.f32 %v4280_v9, %v3745_v49  ;;  %v3568_v7 = vpop.f32.mrb[149].mxu1  ;;  %v4282_v20 = vpop.f32.mrb[185].mxu0  ;;  %8255 = vmatmul.mubr.msk.f32.gmra.mrb[254].mxu1 %vm111_vm2, %v4714_v2  ;;  %v3749_v37 = vadd.f32 %v3566_v61, %v3183_v27  ;;  %v4718_v61 = vld [vmem:[#allocation3 + $0x138] sm:$0xff]  ;;  %v8328_v9 = vld [vmem:[%s13314_s5 + $0x250] sm:$0xff]  ;;  %v3191_v27 = vld [vmem:[#allocation4 + $0x120] sm:$0xff] }
 0x2e5   :  { %4550 = vst.msk [vmem:[#allocation4 + $0xb8] sm:$0xff] %vm2349_vm3, %v4470_v60  ;;  %v3750_v24 = vadd.f32 %v3568_v7, %v3184_v5  ;;  %5100 = vmatprep.mubr.f32.mxu1 %v9738_v3  ;;  %9238 = vmatpush1.bf16.msra.mxu1 %v9237_v8 }
 0x2e6   :  { %4551 = vst [vmem:[#allocation4 + $0xc0] sm:$0xff] %v4471_v4  ;;  %v3906_v45 = vld [vmem:[#allocation4 + $0xc8] sm:$0xff]  ;;  %9239 = vmatprep.subr.bf16.mxu1 %v9739_v31 }
 0x2e7   :  { %3830 = vst.msk [vmem:[#allocation4 + $0xe8] sm:$0xff] %vm2349_vm3, %v3750_v24  ;;  %v4472_v6 = vadd.f32 %v4282_v20, %v3906_v45  ;;  %v3572_v21 = vpop.f32.mrb[150].mxu1  ;;  %v4286_v36 = vpop.f32.mrb[186].mxu0  ;;  %v3192_v4 = vld [vmem:[#allocation4 + $0x128] sm:$0xff]  ;;  %v8329_v20 = vld [vmem:[%s13314_s5 + $0x258] sm:$0xff] }
 0x2e8   :  { %v4473_v17 = vadd.f32 %v4286_v36, %v3747_v10  ;;  %v3574_v50 = vpop.f32.mrb[151].mxu1  ;;  %v4288_v0 = vpop.f32.mrb[187].mxu0  ;;  %8256 = vmatmul.mubr.msk.f32.gmra.mrb[0].mxu1 %vm111_vm2, %v4715_v52  ;;  %v3751_v39 = vadd.f32 %v3572_v21, %v3185_v35  ;;  %v9240_v10 = vpack.c.bf16 %v8329_v20, %v8328_v9 }
 0x2e9   :  { %4552 = vst.msk [vmem:[#allocation4 + $0xc8] sm:$0xff] %vm2349_vm3, %v4472_v6  ;;  %v3752_v12 = vadd.f32 %v3574_v50, %v3186_v33  ;;  %5106 = vmatprep.mubr.f32.mxu1 %v9738_v3  ;;  %v3194_v33 = vld [vmem:[#allocation4 + $0x138] sm:$0xff] }
 0x2ea   :  { %4553 = vst [vmem:[#allocation4 + $0xd0] sm:$0xff] %v4473_v17  ;;  %v3908_v43 = vld [vmem:[#allocation4 + $0xd8] sm:$0xff]  ;;  %9241 = vmatpush1.bf16.msra.mxu1 %v9240_v10 }
 0x2eb   :  { %3832 = vst.msk [vmem:[#allocation4 + $0xf8] sm:$0xff] %vm2349_vm3, %v3752_v12  ;;  %v4474_v62 = vadd.f32 %v4288_v0, %v3908_v43  ;;  %v3578_v23 = vpop.f32.mrb[152].mxu1  ;;  %v4292_v25 = vpop.f32.mrb[188].mxu0  ;;  %9242 = vmatprep.subr.bf16.mxu1 %v9739_v31  ;;  %v3202_v10 = vld [vmem:[#allocation4 + $0x178] sm:$0xff] }
 0x2ec   :  { %v4475_v28 = vadd.f32 %v4292_v25, %v3749_v37  ;;  %v3580_v30 = vpop.f32.mrb[153].mxu1  ;;  %v4294_v32 = vpop.f32.mrb[189].mxu0  ;;  %8257 = vmatmul.mubr.msk.f32.gmra.mrb[2].mxu1 %vm111_vm2, %v4716_v56  ;;  %v3753_v55 = vadd.f32 %v3578_v23, %v3187_v19  ;;  %v9243_v37 = vpack.c.bf16 %v8331_v18, %v8330_v11  ;;  %v3204_v18 = vld [vmem:[#allocation4 + $0x188] sm:$0xff] }
 0x2ed   :  { %4554 = vst.msk [vmem:[#allocation4 + $0xd8] sm:$0xff] %vm2349_vm3, %v4474_v62  ;;  %v3754_v57 = vadd.f32 %v3580_v30, %v3188_v29  ;;  %5112 = vmatprep.mubr.f32.mxu1 %v9738_v3 }
 0x2ee   :  { %4555 = vst [vmem:[#allocation4 + $0xe0] sm:$0xff] %v4475_v28  ;;  %v3910_v40 = vld [vmem:[#allocation4 + $0xe8] sm:$0xff]  ;;  %9244 = vmatpush1.bf16.msra.mxu1 %v9243_v37  ;;  %v3201_v37 = vld [vmem:[#allocation4 + $0x170] sm:$0xff] }
 0x2ef   :  { %3834 = vst.msk [vmem:[#allocation4 + $0x108] sm:$0xff] %vm2349_vm3, %v3754_v57  ;;  %v4476_v15 = vadd.f32 %v4294_v32, %v3910_v40  ;;  %v3584_v41 = vpop.f32.mrb[154].mxu1  ;;  %v4298_v44 = vpop.f32.mrb[190].mxu0  ;;  %v3196_v28 = vld [vmem:[#allocation4 + $0x148] sm:$0xff]  ;;  %9245 = vmatprep.subr.bf16.mxu1 %v9739_v31  ;;  %v8333_v32 = vld [vmem:[%s13314_s5 + $0x278] sm:$0xff] }
 0x2f0   :  { %v4477_v46 = vadd.f32 %v4298_v44, %v3751_v39  ;;  %v3586_v16 = vpop.f32.mrb[155].mxu1  ;;  %v4300_v48 = vpop.f32.mrb[191].mxu0  ;;  %8258 = vmatmul.mubr.msk.f32.gmra.mrb[4].mxu1 %vm111_vm2, %v4717_v42  ;;  %v3755_v45 = vadd.f32 %v3584_v41, %v3189_v22  ;;  %v9246_v35 = vpack.c.bf16 %v8333_v32, %v8332_v26  ;;  %v4721_v41 = vld [vmem:[#allocation3 + $0x150] sm:$0xff]  ;;  %v3198_v42 = vld [vmem:[#allocation4 + $0x158] sm:$0xff]  ;;  %v3203_v32 = vld [vmem:[#allocation4 + $0x180] sm:$0xff] }
 0x2f1   :  { %4556 = vst.msk [vmem:[#allocation4 + $0xe8] sm:$0xff] %vm2349_vm3, %v4476_v15  ;;  %v3756_v54 = vadd.f32 %v3586_v16, %v3190_v47  ;;  %5118 = vmatprep.mubr.f32.mxu1 %v9738_v3  ;;  %v3195_v47 = vld [vmem:[#allocation4 + $0x140] sm:$0xff] }
 0x2f2   :  { %4557 = vst [vmem:[#allocation4 + $0xf0] sm:$0xff] %v4477_v46  ;;  %v3912_v58 = vld [vmem:[#allocation4 + $0xf8] sm:$0xff]  ;;  %9247 = vmatpush1.bf16.msra.mxu1 %v9246_v35 }
 0x2f3   :  { %3836 = vst.msk [vmem:[#allocation4 + $0x118] sm:$0xff] %vm2349_vm3, %v3756_v54  ;;  %v4478_v49 = vadd.f32 %v4300_v48, %v3912_v58  ;;  %v3590_v59 = vpop.f32.mrb[156].mxu1  ;;  %v4304_v60 = vpop.f32.mrb[192].mxu0  ;;  %9278 = vmatprep.subr.bf16.mxu1 %v9739_v31 }
 0x2f4   :  { %v4479_v2 = vadd.f32 %v4304_v60, %v3753_v55  ;;  %v3592_v5 = vpop.f32.mrb[157].mxu1  ;;  %v4306_v7 = vpop.f32.mrb[193].mxu0  ;;  %8259 = vmatmul.mubr.msk.f32.gmra.mrb[6].mxu1 %vm111_vm2, %v4718_v61  ;;  %v3757_v43 = vadd.f32 %v3590_v59, %v3191_v27  ;;  %v4722_v55 = vld [vmem:[#allocation3 + $0x158] sm:$0xff]  ;;  %v3197_v61 = vld [vmem:[#allocation4 + $0x150] sm:$0xff] }
 0x2f5   :  { %4558 = vst.msk [vmem:[#allocation4 + $0xf8] sm:$0xff] %vm2349_vm3, %v4478_v49  ;;  %v3758_v24 = vadd.f32 %v3592_v5, %v3192_v4  ;;  %5124 = vmatprep.mubr.f32.mxu1 %v9738_v3  ;;  %v3200_v49 = vld [vmem:[#allocation4 + $0x168] sm:$0xff] }
 0x2f6   :  { %4559 = vst [vmem:[#allocation4 + $0x100] sm:$0xff] %v4479_v2  ;;  %v3914_v6 = vld [vmem:[#allocation4 + $0x108] sm:$0xff]  ;;  %v4723_v2 = vld [vmem:[#allocation3 + $0x160] sm:$0xff] }
 0x2f7   :  { %3838 = vst.msk [vmem:[#allocation4 + $0x128] sm:$0xff] %vm2349_vm3, %v3758_v24  ;;  %v4480_v21 = vadd.f32 %v4306_v7, %v3914_v6  ;;  %v3596_v36 = vpop.f32.mrb[158].mxu1  ;;  %v4310_v52 = vpop.f32.mrb[194].mxu0 }
 0x2f8   :  { %v4481_v17 = vadd.f32 %v4310_v52, %v3755_v45  ;;  %v3598_v50 = vpop.f32.mrb[159].mxu1  ;;  %v4312_v0 = vpop.f32.mrb[195].mxu0  ;;  %8260 = vmatmul.mubr.msk.f32.gmra.mrb[8].mxu1 %vm111_vm2, %v4719_v1  ;;  %v3759_v57 = vadd.f32 %v3596_v36, %v3193_v14  ;;  %v4724_v52 = vld [vmem:[#allocation3 + $0x168] sm:$0xff] }
 0x2f9   :  { %4560 = vst.msk [vmem:[#allocation4 + $0x108] sm:$0xff] %vm2349_vm3, %v4480_v21  ;;  %v3760_v12 = vadd.f32 %v3598_v50, %v3194_v33  ;;  %5130 = vmatprep.mubr.f32.mxu1 %v9738_v3  ;;  %v3199_v21 = vld [vmem:[#allocation4 + $0x160] sm:$0xff] }
 0x2fa   :  { %4561 = vst [vmem:[#allocation4 + $0x110] sm:$0xff] %v4481_v17  ;;  %v3916_v56 = vld [vmem:[#allocation4 + $0x118] sm:$0xff] }
 0x2fb   :  { %3840 = vst.msk [vmem:[#allocation4 + $0x138] sm:$0xff] %vm2349_vm3, %v3760_v12  ;;  %v4482_v62 = vadd.f32 %v4312_v0, %v3916_v56  ;;  %v3602_v23 = vpop.f32.mrb[160].mxu1  ;;  %v4316_v25 = vpop.f32.mrb[196].mxu0  ;;  %v4725_v56 = vld [vmem:[#allocation3 + $0x170] sm:$0xff] }
 0x2fc   :  { %v4483_v51 = vadd.f32 %v4316_v25, %v3757_v43  ;;  %v3604_v29 = vpop.f32.mrb[161].mxu1  ;;  %v4318_v30 = vpop.f32.mrb[197].mxu0  ;;  %8261 = vmatmul.mubr.msk.f32.gmra.mrb[10].mxu1 %vm111_vm2, %v4720_v13  ;;  %v3761_v48 = vadd.f32 %v3602_v23, %v3195_v47 }
 0x2fd   :  { %4562 = vst.msk [vmem:[#allocation4 + $0x118] sm:$0xff] %vm2349_vm3, %v4482_v62  ;;  %v3762_v34 = vadd.f32 %v3604_v29, %v3196_v28  ;;  %5136 = vmatprep.mubr.f32.mxu1 %v9738_v3  ;;  %v3206_v28 = vld [vmem:[#allocation4 + $0x198] sm:$0xff] }
 0x2fe   :  { %4563 = vst [vmem:[#allocation4 + $0x120] sm:$0xff] %v4483_v51  ;;  %v3918_v38 = vld [vmem:[#allocation4 + $0x128] sm:$0xff] }
 0x2ff   :  { %3842 = vst.msk [vmem:[#allocation4 + $0x148] sm:$0xff] %vm2349_vm3, %v3762_v34  ;;  %v4484_v39 = vadd.f32 %v4318_v30, %v3918_v38  ;;  %v3608_v40 = vpop.f32.mrb[162].mxu1  ;;  %v4322_v15 = vpop.f32.mrb[198].mxu0  ;;  %v4726_v34 = vld [vmem:[#allocation3 + $0x178] sm:$0xff] }
 0x300   :  { %v4485_v44 = vadd.f32 %v4322_v15, %v3759_v57  ;;  %v3610_v63 = vpop.f32.mrb[163].mxu1  ;;  %v4324_v46 = vpop.f32.mrb[199].mxu0  ;;  %8262 = vmatmul.mubr.msk.f32.gmra.mrb[12].mxu1 %vm111_vm2, %v4721_v41  ;;  %v3763_v4 = vadd.f32 %v3608_v40, %v3197_v61  ;;  %v3208_v41 = vld [vmem:[#allocation4 + $0x1a8] sm:$0xff] }
 0x301   :  { %4564 = vst.msk [vmem:[#allocation4 + $0x128] sm:$0xff] %vm2349_vm3, %v4484_v39  ;;  %v3764_v16 = vadd.f32 %v3610_v63, %v3198_v42  ;;  %5142 = vmatprep.mubr.f32.mxu1 %v9738_v3  ;;  %v3205_v63 = vld [vmem:[#allocation4 + $0x190] sm:$0xff] }
 0x302   :  { %4565 = vst [vmem:[#allocation4 + $0x130] sm:$0xff] %v4485_v44  ;;  %v3920_v53 = vld [vmem:[#allocation4 + $0x138] sm:$0xff] }
 0x303   :  { %3844 = vst.msk [vmem:[#allocation4 + $0x158] sm:$0xff] %vm2349_vm3, %v3764_v16  ;;  %v4486_v19 = vadd.f32 %v4324_v46, %v3920_v53  ;;  %v3614_v54 = vpop.f32.mrb[164].mxu1  ;;  %v4328_v8 = vpop.f32.mrb[200].mxu0 }
 0x304   :  { %v4487_v58 = vadd.f32 %v4328_v8, %v3761_v48  ;;  %v3616_v59 = vpop.f32.mrb[165].mxu1  ;;  %v4330_v60 = vpop.f32.mrb[201].mxu0  ;;  %8263 = vmatmul.mubr.msk.f32.gmra.mrb[14].mxu1 %vm111_vm2, %v4722_v55  ;;  %v3765_v1 = vadd.f32 %v3614_v54, %v3199_v21  ;;  %v3210_v54 = vld [vmem:[#allocation4 + $0x1b8] sm:$0xff] }
 0x305   :  { %4566 = vst.msk [vmem:[#allocation4 + $0x138] sm:$0xff] %vm2349_vm3, %v4486_v19  ;;  %v3766_v9 = vadd.f32 %v3616_v59, %v3200_v49  ;;  %5148 = vmatprep.mubr.f32.mxu1 %v9738_v3 }
 0x306   :  { %4567 = vst [vmem:[#allocation4 + $0x140] sm:$0xff] %v4487_v58  ;;  %v3922_v5 = vld [vmem:[#allocation4 + $0x148] sm:$0xff]  ;;  %v3207_v58 = vld [vmem:[#allocation4 + $0x1a0] sm:$0xff] }
 0x307   :  { %3846 = vst.msk [vmem:[#allocation4 + $0x168] sm:$0xff] %vm2349_vm3, %v3766_v9  ;;  %v4488_v7 = vadd.f32 %v4330_v60, %v3922_v5  ;;  %v3620_v20 = vpop.f32.mrb[166].mxu1  ;;  %v4334_v22 = vpop.f32.mrb[202].mxu0  ;;  %v3212_v5 = vld [vmem:[#allocation4 + $0x1c8] sm:$0xff] }
 0x308   :  { %v4489_v24 = vadd.f32 %v4334_v22, %v3763_v4  ;;  %v3622_v45 = vpop.f32.mrb[167].mxu1  ;;  %v4336_v6 = vpop.f32.mrb[203].mxu0  ;;  %8264 = vmatmul.mubr.msk.f32.gmra.mrb[16].mxu1 %vm111_vm2, %v4723_v2  ;;  %v3767_v62 = vadd.f32 %v3620_v20, %v3201_v37  ;;  %v3209_v22 = vld [vmem:[#allocation4 + $0x1b0] sm:$0xff] }
 0x309   :  { %4568 = vst.msk [vmem:[#allocation4 + $0x148] sm:$0xff] %vm2349_vm3, %v4488_v7  ;;  %v3768_v36 = vadd.f32 %v3622_v45, %v3202_v10  ;;  %5154 = vmatprep.mubr.f32.mxu1 %v9738_v3 }
 0x30a   :  { %4569 = vst [vmem:[#allocation4 + $0x150] sm:$0xff] %v4489_v24  ;;  %v3924_v11 = vld [vmem:[#allocation4 + $0x158] sm:$0xff] }
 0x30b   :  { %3848 = vst.msk [vmem:[#allocation4 + $0x178] sm:$0xff] %vm2349_vm3, %v3768_v36  ;;  %v4490_v17 = vadd.f32 %v4336_v6, %v3924_v11  ;;  %v3626_v33 = vpop.f32.mrb[168].mxu1  ;;  %v4340_v50 = vpop.f32.mrb[204].mxu0 }
 0x30c   :  { %v4491_v0 = vadd.f32 %v4340_v50, %v3765_v1  ;;  %v3628_v27 = vpop.f32.mrb[169].mxu1  ;;  %v4342_v12 = vpop.f32.mrb[205].mxu0  ;;  %8265 = vmatmul.mubr.msk.f32.gmra.mrb[18].mxu1 %vm111_vm2, %v4724_v52  ;;  %v3769_v35 = vadd.f32 %v3626_v33, %v3203_v32  ;;  %v3214_v1 = vld [vmem:[#allocation4 + $0x1d8] sm:$0xff]  ;;  %v3211_v33 = vld [vmem:[#allocation4 + $0x1c0] sm:$0xff] }
 0x30d   :  { %4570 = vst.msk [vmem:[#allocation4 + $0x158] sm:$0xff] %vm2349_vm3, %v4490_v17  ;;  %v3770_v43 = vadd.f32 %v3628_v27, %v3204_v18  ;;  %5160 = vmatprep.mubr.f32.mxu1 %v9738_v3 }
 0x30e   :  { %4571 = vst [vmem:[#allocation4 + $0x160] sm:$0xff] %v4491_v0  ;;  %v3926_v23 = vld [vmem:[#allocation4 + $0x168] sm:$0xff] }
 0x30f   :  { %3850 = vst.msk [vmem:[#allocation4 + $0x188] sm:$0xff] %vm2349_vm3, %v3770_v43  ;;  %v4492_v25 = vadd.f32 %v4342_v12, %v3926_v23  ;;  %v3632_v13 = vpop.f32.mrb[170].mxu1  ;;  %v4346_v26 = vpop.f32.mrb[206].mxu0 }
 0x310   :  { %v4493_v51 = vadd.f32 %v4346_v26, %v3767_v62  ;;  %v3634_v29 = vpop.f32.mrb[171].mxu1  ;;  %v4348_v30 = vpop.f32.mrb[207].mxu0  ;;  %8266 = vmatmul.mubr.msk.f32.gmra.mrb[20].mxu1 %vm111_vm2, %v4725_v56  ;;  %v3216_v56 = vld [vmem:[#allocation4 + $0x1e8] sm:$0xff] }
 0x311   :  { %4572 = vst.msk [vmem:[#allocation4 + $0x168] sm:$0xff] %vm2349_vm3, %v4492_v25  ;;  %v3772_v14 = vadd.f32 %v3634_v29, %v3206_v28  ;;  %5166 = vmatprep.mubr.f32.mxu1 %v9738_v3  ;;  %v3771_v3 = vadd.f32 %v3632_v13, %v3205_v63  ;;  %v3213_v25 = vld [vmem:[#allocation4 + $0x1d0] sm:$0xff]  ;;  %v3220_v63 = vld [vmem:[#allocation4 + $0x208] sm:$0xff] }
 0x312   :  { %4573 = vst [vmem:[#allocation4 + $0x170] sm:$0xff] %v4493_v51  ;;  %v3928_v57 = vld [vmem:[#allocation4 + $0x178] sm:$0xff] }
 0x313   :  { %3852 = vst.msk [vmem:[#allocation4 + $0x198] sm:$0xff] %vm2349_vm3, %v3772_v14  ;;  %v4494_v38 = vadd.f32 %v4348_v30, %v3928_v57  ;;  %v3638_v39 = vpop.f32.mrb[172].mxu1  ;;  %v4352_v40 = vpop.f32.mrb[208].mxu0  ;;  %v3218_v14 = vld [vmem:[#allocation4 + $0x1f8] sm:$0xff]  ;;  %v3215_v57 = vld [vmem:[#allocation4 + $0x1e0] sm:$0xff] }
 0x314   :  { %v4495_v15 = vadd.f32 %v4352_v40, %v3769_v35  ;;  %v3640_v44 = vpop.f32.mrb[173].mxu1  ;;  %v4354_v42 = vpop.f32.mrb[209].mxu0  ;;  %8267 = vmatmul.mubr.msk.f32.gmra.mrb[22].mxu1 %vm111_vm2, %v4726_v34  ;;  %v3773_v59 = vadd.f32 %v3638_v39, %v3207_v58  ;;  %v3222_v58 = vld [vmem:[#allocation4 + $0x218] sm:$0xff] }
 0x315   :  { %4574 = vst.msk [vmem:[#allocation4 + $0x178] sm:$0xff] %vm2349_vm3, %v4494_v38  ;;  %v3774_v46 = vadd.f32 %v3640_v44, %v3208_v41 }
 0x316   :  { %4575 = vst [vmem:[#allocation4 + $0x180] sm:$0xff] %v4495_v15  ;;  %v3930_v47 = vld [vmem:[#allocation4 + $0x188] sm:$0xff] }
 0x317   :  { %3854 = vst.msk [vmem:[#allocation4 + $0x1a8] sm:$0xff] %vm2349_vm3, %v3774_v46  ;;  %v4496_v16 = vadd.f32 %v4354_v42, %v3930_v47  ;;  %v3644_v48 = vpop.f32.mrb[174].mxu1  ;;  %v4358_v53 = vpop.f32.mrb[210].mxu0  ;;  %v3217_v47 = vld [vmem:[#allocation4 + $0x1f0] sm:$0xff] }
 0x318   :  { %v4497_v19 = vadd.f32 %v4358_v53, %v3771_v3  ;;  %v3646_v8 = vpop.f32.mrb[175].mxu1  ;;  %v4360_v55 = vpop.f32.mrb[211].mxu0  ;;  %v3775_v10 = vadd.f32 %v3644_v48, %v3209_v22  ;;  %v3224_v22 = vld [vmem:[#allocation4 + $0x228] sm:$0xff] }
 0x319   :  { %4576 = vst.msk [vmem:[#allocation4 + $0x188] sm:$0xff] %vm2349_vm3, %v4496_v16  ;;  %v3776_v49 = vadd.f32 %v3646_v8, %v3210_v54 }
 0x31a   :  { %4577 = vst [vmem:[#allocation4 + $0x190] sm:$0xff] %v4497_v19  ;;  %v3932_v60 = vld [vmem:[#allocation4 + $0x198] sm:$0xff] }
 0x31b   :  { %3856 = vst.msk [vmem:[#allocation4 + $0x1b8] sm:$0xff] %vm2349_vm3, %v3776_v49  ;;  %v4498_v61 = vadd.f32 %v4360_v55, %v3932_v60  ;;  %v3650_v9 = vpop.f32.mrb[176].mxu1  ;;  %v4364_v2 = vpop.f32.mrb[212].mxu0  ;;  %v3219_v60 = vld [vmem:[#allocation4 + $0x200] sm:$0xff] }
 0x31c   :  { %v4499_v4 = vadd.f32 %v4364_v2, %v3773_v59  ;;  %v3652_v7 = vpop.f32.mrb[177].mxu1  ;;  %v4366_v20 = vpop.f32.mrb[213].mxu0  ;;  %v3777_v0 = vadd.f32 %v3650_v9, %v3211_v33  ;;  %v3226_v33 = vld [vmem:[#allocation4 + $0x238] sm:$0xff] }
 0x31d   :  { %4578 = vst.msk [vmem:[#allocation4 + $0x198] sm:$0xff] %vm2349_vm3, %v4498_v61  ;;  %v3778_v24 = vadd.f32 %v3652_v7, %v3212_v5 }
 0x31e   :  { %4579 = vst [vmem:[#allocation4 + $0x1a0] sm:$0xff] %v4499_v4  ;;  %v3934_v45 = vld [vmem:[#allocation4 + $0x1a8] sm:$0xff] }
 0x31f   :  { %3858 = vst.msk [vmem:[#allocation4 + $0x1c8] sm:$0xff] %vm2349_vm3, %v3778_v24  ;;  %v4500_v6 = vadd.f32 %v4366_v20, %v3934_v45  ;;  %v3656_v21 = vpop.f32.mrb[178].mxu1  ;;  %v4370_v36 = vpop.f32.mrb[214].mxu0  ;;  %v3221_v45 = vld [vmem:[#allocation4 + $0x210] sm:$0xff] }
 0x320   :  { %v4501_v52 = vadd.f32 %v4370_v36, %v3775_v10  ;;  %v3658_v11 = vpop.f32.mrb[179].mxu1  ;;  %v4372_v17 = vpop.f32.mrb[215].mxu0  ;;  %v3779_v26 = vadd.f32 %v3656_v21, %v3213_v25  ;;  %v3228_v25 = vld [vmem:[#allocation4 + $0x248] sm:$0xff] }
 0x321   :  { %4580 = vst.msk [vmem:[#allocation4 + $0x1a8] sm:$0xff] %vm2349_vm3, %v4500_v6  ;;  %v3780_v50 = vadd.f32 %v3658_v11, %v3214_v1 }
 0x322   :  { %4581 = vst [vmem:[#allocation4 + $0x1b0] sm:$0xff] %v4501_v52  ;;  %v3936_v18 = vld [vmem:[#allocation4 + $0x1b8] sm:$0xff] }
 0x323   :  { %3860 = vst.msk [vmem:[#allocation4 + $0x1d8] sm:$0xff] %vm2349_vm3, %v3780_v50  ;;  %v4502_v27 = vadd.f32 %v4372_v17, %v3936_v18  ;;  %v3662_v12 = vpop.f32.mrb[180].mxu1  ;;  %v4376_v37 = vpop.f32.mrb[216].mxu0  ;;  %v3223_v18 = vld [vmem:[#allocation4 + $0x220] sm:$0xff] }
 0x324   :  { %v4503_v43 = vadd.f32 %v4376_v37, %v3777_v0  ;;  %v3664_v62 = vpop.f32.mrb[181].mxu1  ;;  %v4378_v23 = vpop.f32.mrb[217].mxu0  ;;  %v3781_v39 = vadd.f32 %v3662_v12, %v3215_v57 }
 0x325   :  { %4582 = vst.msk [vmem:[#allocation4 + $0x1b8] sm:$0xff] %vm2349_vm3, %v4502_v27  ;;  %v3782_v13 = vadd.f32 %v3664_v62, %v3216_v56 }
 0x326   :  { %4583 = vst [vmem:[#allocation4 + $0x1c0] sm:$0xff] %v4503_v43  ;;  %v3938_v51 = vld [vmem:[#allocation4 + $0x1c8] sm:$0xff] }
 0x327   :  { %3862 = vst.msk [vmem:[#allocation4 + $0x1e8] sm:$0xff] %vm2349_vm3, %v3782_v13  ;;  %v4504_v28 = vadd.f32 %v4378_v23, %v3938_v51  ;;  %v3668_v29 = vpop.f32.mrb[182].mxu1  ;;  %v4382_v30 = vpop.f32.mrb[218].mxu0  ;;  %v3225_v51 = vld [vmem:[#allocation4 + $0x230] sm:$0xff] }
 0x328   :  { %v4505_v32 = vadd.f32 %v4382_v30, %v3779_v26  ;;  %v3670_v34 = vpop.f32.mrb[183].mxu1  ;;  %v4384_v35 = vpop.f32.mrb[219].mxu0  ;;  %v3783_v48 = vadd.f32 %v3668_v29, %v3217_v47 }
 0x329   :  { %4584 = vst.msk [vmem:[#allocation4 + $0x1c8] sm:$0xff] %vm2349_vm3, %v4504_v28  ;;  %v3784_v38 = vadd.f32 %v3670_v34, %v3218_v14 }
 0x32a   :  { %4585 = vst [vmem:[#allocation4 + $0x1d0] sm:$0xff] %v4505_v32  ;;  %v3940_v40 = vld [vmem:[#allocation4 + $0x1d8] sm:$0xff]  ;;  %v5415_v32 = vlaneseq }
 0x32b   :  { %3864 = vst.msk [vmem:[#allocation4 + $0x1f8] sm:$0xff] %vm2349_vm3, %v3784_v38  ;;  %v4506_v15 = vadd.f32 %v4384_v35, %v3940_v40  ;;  %v3674_v41 = vpop.f32.mrb[184].mxu1  ;;  %v4388_v44 = vpop.f32.mrb[220].mxu0  ;;  %v3230_v38 = vld [vmem:[#allocation4 + $0x258] sm:$0xff] }
 0x32c   :  { %v4507_v42 = vadd.f32 %v4388_v44, %v3781_v39  ;;  %v3676_v46 = vpop.f32.mrb[185].mxu1  ;;  %v4390_v3 = vpop.f32.mrb[221].mxu0  ;;  %v3785_v9 = vadd.f32 %v3674_v41, %v3219_v60 }
 0x32d   :  { %4586 = vst.msk [vmem:[#allocation4 + $0x1d8] sm:$0xff] %vm2349_vm3, %v4506_v15  ;;  %v3786_v16 = vadd.f32 %v3676_v46, %v3220_v63  ;;  %v3227_v15 = vld [vmem:[#allocation4 + $0x240] sm:$0xff]  ;;  %v11700_v63 = vshrl.u32 %v5415_v32, 7 }
 0x32e   :  { %4587 = vst [vmem:[#allocation4 + $0x1e0] sm:$0xff] %v4507_v42  ;;  %v3942_v53 = vld [vmem:[#allocation4 + $0x1e8] sm:$0xff] }
 0x32f   :  { %3866 = vst.msk [vmem:[#allocation4 + $0x208] sm:$0xff] %vm2349_vm3, %v3786_v16  ;;  %v4508_v19 = vadd.f32 %v4390_v3, %v3942_v53  ;;  %v3680_v54 = vpop.f32.mrb[186].mxu1  ;;  %v4394_v8 = vpop.f32.mrb[222].mxu0 }
 0x330   :  { %v4509_v55 = vadd.f32 %v4394_v8, %v3783_v48  ;;  %v3682_v49 = vpop.f32.mrb[187].mxu1  ;;  %v4396_v59 = vpop.f32.mrb[223].mxu0  ;;  %v3787_v21 = vadd.f32 %v3680_v54, %v3221_v45  ;;  %v3232_v48 = vld [vmem:[#allocation4 + $0x268] sm:$0xff]  ;;  %v3229_v54 = vld [vmem:[#allocation4 + $0x250] sm:$0xff] }
 0x331   :  { %4588 = vst.msk [vmem:[#allocation4 + $0x1e8] sm:$0xff] %vm2349_vm3, %v4508_v19  ;;  %v3788_v61 = vadd.f32 %v3682_v49, %v3222_v58  ;;  %v5417_v49 = vsub.s32 0, %v11700_v63 }
 0x332   :  { %4589 = vst [vmem:[#allocation4 + $0x1f0] sm:$0xff] %v4509_v55  ;;  %v3944_v2 = vld [vmem:[#allocation4 + $0x1f8] sm:$0xff] }
 0x333   :  { %3868 = vst.msk [vmem:[#allocation4 + $0x218] sm:$0xff] %vm2349_vm3, %v3788_v61  ;;  %v4510_v4 = vadd.f32 %v4396_v59, %v3944_v2  ;;  %v3686_v5 = vpop.f32.mrb[188].mxu1  ;;  %v4400_v7 = vpop.f32.mrb[224].mxu0 }
 0x334   :  { %v4511_v20 = vadd.f32 %v4400_v7, %v3785_v9  ;;  %v3688_v24 = vpop.f32.mrb[189].mxu1  ;;  %v4402_v10 = vpop.f32.mrb[225].mxu0  ;;  %v3789_v12 = vadd.f32 %v3686_v5, %v3223_v18  ;;  %v5413_v9 = vld [vmem:[%s13315_s4] sm:$0x3] }
 0x335   :  { %4590 = vst.msk [vmem:[#allocation4 + $0x1f8] sm:$0xff] %vm2349_vm3, %v4510_v4  ;;  %v3790_v6 = vadd.f32 %v3688_v24, %v3224_v22  ;;  %v3234_v4 = vld [vmem:[#allocation4 + $0x278] sm:$0xff]  ;;  %v11710_v45 = vrot.slane %v5413_v9, %v5417_v49 }
 0x336   :  { %4591 = vst [vmem:[#allocation4 + $0x200] sm:$0xff] %v4511_v20  ;;  %v3946_v36 = vld [vmem:[#allocation4 + $0x208] sm:$0xff]  ;;  %v3231_v20 = vld [vmem:[#allocation4 + $0x260] sm:$0xff] }
 0x337   :  { %3870 = vst.msk [vmem:[#allocation4 + $0x228] sm:$0xff] %vm2349_vm3, %v3790_v6  ;;  %v4512_v52 = vadd.f32 %v4402_v10, %v3946_v36  ;;  %v3692_v1 = vpop.f32.mrb[190].mxu1  ;;  %v4406_v11 = vpop.f32.mrb[226].mxu0 }
 0x338   :  { %v4513_v17 = vadd.f32 %v4406_v11, %v3787_v21  ;;  %v3694_v50 = vpop.f32.mrb[191].mxu1  ;;  %v4408_v0 = vpop.f32.mrb[227].mxu0  ;;  %v3791_v29 = vadd.f32 %v3692_v1, %v3225_v51  ;;  %v4607_v21 = vld [vmem:[#allocation4] sm:$0xff]  ;;  %v4608_v11 = vld [vmem:[#allocation4 + $0x8] sm:$0xff]  ;;  %v4610_v51 = vld [vmem:[#allocation4 + $0x18] sm:$0xff] }
 0x339   :  { %4592 = vst.msk [vmem:[#allocation4 + $0x208] sm:$0xff] %vm2349_vm3, %v4512_v52  ;;  %v3792_v27 = vadd.f32 %v3694_v50, %v3226_v33 }
 0x33a   :  { %4593 = vst [vmem:[#allocation4 + $0x210] sm:$0xff] %v4513_v17  ;;  %v3948_v37 = vld [vmem:[#allocation4 + $0x218] sm:$0xff] }
 0x33b   :  { %3872 = vst.msk [vmem:[#allocation4 + $0x238] sm:$0xff] %vm2349_vm3, %v3792_v27  ;;  %v4514_v43 = vadd.f32 %v4408_v0, %v3948_v37  ;;  %v3698_v56 = vpop.f32.mrb[192].mxu1  ;;  %v4412_v62 = vpop.f32.mrb[228].mxu0  ;;  %v3233_v0 = vld [vmem:[#allocation4 + $0x270] sm:$0xff] }
 0x33c   :  { %v4515_v23 = vadd.f32 %v4412_v62, %v3789_v12  ;;  %v3700_v13 = vpop.f32.mrb[193].mxu1  ;;  %v4414_v26 = vpop.f32.mrb[229].mxu0  ;;  %v3793_v44 = vadd.f32 %v3698_v56, %v3227_v15  ;;  %v4609_v62 = vld [vmem:[#allocation4 + $0x10] sm:$0xff] }
 0x33d   :  { %4594 = vst.msk [vmem:[#allocation4 + $0x218] sm:$0xff] %vm2349_vm3, %v4514_v43  ;;  %v3794_v28 = vadd.f32 %v3700_v13, %v3228_v25  ;;  %v5421_v43 = vsub.s32 1, %v11700_v63 }
 0x33e   :  { %4595 = vst [vmem:[#allocation4 + $0x220] sm:$0xff] %v4515_v23  ;;  %v3950_v30 = vld [vmem:[#allocation4 + $0x228] sm:$0xff] }
 0x33f   :  { %3874 = vst.msk [vmem:[#allocation4 + $0x248] sm:$0xff] %vm2349_vm3, %v3794_v28  ;;  %v4516_v14 = vadd.f32 %v4414_v26, %v3950_v30  ;;  %v3704_v34 = vpop.f32.mrb[194].mxu1  ;;  %v4418_v35 = vpop.f32.mrb[230].mxu0 }
 0x340   :  { %v4517_v57 = vadd.f32 %v4418_v35, %v3791_v29  ;;  %v3706_v39 = vpop.f32.mrb[195].mxu1  ;;  %v4420_v40 = vpop.f32.mrb[231].mxu0  ;;  %v3795_v55 = vadd.f32 %v3704_v34, %v3229_v54  ;;  %v11726_v35 = vrot.slane %v5413_v9, %v5421_v43 }
 0x341   :  { %4596 = vst.msk [vmem:[#allocation4 + $0x228] sm:$0xff] %vm2349_vm3, %v4516_v14  ;;  %v3796_v41 = vadd.f32 %v3706_v39, %v3230_v38  ;;  %v4611_v38 = vld [vmem:[#allocation4 + $0x20] sm:$0xff] }
 0x342   :  { %4597 = vst [vmem:[#allocation4 + $0x230] sm:$0xff] %v4517_v57  ;;  %v3952_v42 = vld [vmem:[#allocation4 + $0x238] sm:$0xff] }
 0x343   :  { %3876 = vst.msk [vmem:[#allocation4 + $0x258] sm:$0xff] %vm2349_vm3, %v3796_v41  ;;  %v4518_v46 = vadd.f32 %v4420_v40, %v3952_v42  ;;  %v3710_v3 = vpop.f32.mrb[196].mxu1  ;;  %v4424_v47 = vpop.f32.mrb[232].mxu0  ;;  %v4612_v41 = vld [vmem:[#allocation4 + $0x28] sm:$0xff] }
 0x344   :  { %v4519_v16 = vadd.f32 %v4424_v47, %v3793_v44  ;;  %v3712_v53 = vpop.f32.mrb[197].mxu1  ;;  %v4426_v19 = vpop.f32.mrb[233].mxu0  ;;  %v3797_v24 = vadd.f32 %v3710_v3, %v3231_v20  ;;  %v4613_v47 = vld [vmem:[#allocation4 + $0x30] sm:$0xff] }
 0x345   :  { %4598 = vst.msk [vmem:[#allocation4 + $0x238] sm:$0xff] %vm2349_vm3, %v4518_v46  ;;  %v3798_v8 = vadd.f32 %v3712_v53, %v3232_v48 }
 0x346   :  { %4599 = vst [vmem:[#allocation4 + $0x240] sm:$0xff] %v4519_v16  ;;  %v3954_v58 = vld [vmem:[#allocation4 + $0x248] sm:$0xff] }
 0x347   :  { %3878 = vst.msk [vmem:[#allocation4 + $0x268] sm:$0xff] %vm2349_vm3, %v3798_v8  ;;  %v4520_v59 = vadd.f32 %v4426_v19, %v3954_v58  ;;  %v3716_v60 = vpop.f32.mrb[198].mxu1  ;;  %v4430_v61 = vpop.f32.mrb[234].mxu0  ;;  %v4614_v19 = vld [vmem:[#allocation4 + $0x38] sm:$0xff] }
 0x348   :  { %v4521_v2 = vadd.f32 %v4430_v61, %v3795_v55  ;;  %v3718_v5 = vpop.f32.mrb[199].mxu1  ;;  %v4432_v7 = vpop.f32.mrb[235].mxu0  ;;  %v3799_v27 = vadd.f32 %v3716_v60, %v3233_v0  ;;  %v4615_v60 = vld [vmem:[#allocation4 + $0x40] sm:$0xff] }
 0x349   :  { %4600 = vst.msk [vmem:[#allocation4 + $0x248] sm:$0xff] %vm2349_vm3, %v4520_v59  ;;  %v3800_v22 = vadd.f32 %v3718_v5, %v3234_v4  ;;  %v4616_v4 = vld [vmem:[#allocation4 + $0x48] sm:$0xff] }
 0x34a   :  { %4601 = vst [vmem:[#allocation4 + $0x250] sm:$0xff] %v4521_v2  ;;  %v3956_v10 = vld [vmem:[#allocation4 + $0x258] sm:$0xff] }
 0x34b   :  { %3880 = vst.msk [vmem:[#allocation4 + $0x278] sm:$0xff] %vm2349_vm3, %v3800_v22  ;;  %v4522_v6 = vadd.f32 %v4432_v7, %v3956_v10  ;;  %v4934_v36 = vpop.f32.mrb[200].mxu1  ;;  %v4436_v52 = vpop.f32.mrb[236].mxu0 }
 0x34c   :  { %v5173_v1 = vadd.f32 %v4934_v36, %v4607_v21  ;;  %v4936_v17 = vpop.f32.mrb[201].mxu1  ;;  %v4523_v33 = vadd.f32 %v4436_v52, %v3797_v24  ;;  %v4438_v50 = vpop.f32.mrb[237].mxu0 }
 0x34d   :  { %4602 = vst.msk [vmem:[#allocation4 + $0x258] sm:$0xff] %vm2349_vm3, %v4522_v6  ;;  %v5174_v18 = vadd.f32 %v4936_v17, %v4608_v11  ;;  %v4617_v6 = vld [vmem:[#allocation4 + $0x50] sm:$0xff] }
 0x34e   :  { %v11715_v12 = vadd.f32 %v11710_v45, %v5173_v1  ;;  %4603 = vst [vmem:[#allocation4 + $0x260] sm:$0xff] %v4523_v33  ;;  %v3958_v37 = vld [vmem:[#allocation4 + $0x268] sm:$0xff]  ;;  %v4618_v1 = vld [vmem:[#allocation4 + $0x58] sm:$0xff] }
 0x34f   :  { %5254 = vst.msk [vmem:[#allocation4 + $0x8] sm:$0xff] %vm2349_vm3, %v5174_v18  ;;  %v4524_v56 = vadd.f32 %v4438_v50, %v3958_v37  ;;  %v4940_v23 = vpop.f32.mrb[202].mxu1  ;;  %v4442_v25 = vpop.f32.mrb[238].mxu0 }
 0x350   :  { %v5505_v13 = vmax.f32 %v11715_v12, 0.0  ;;  %v5175_v26 = vadd.f32 %v4940_v23, %v4609_v62  ;;  %v4942_v28 = vpop.f32.mrb[203].mxu1  ;;  %v4525_v29 = vadd.f32 %v4442_v25, %v3799_v27  ;;  %v4444_v30 = vpop.f32.mrb[239].mxu0  ;;  %v4619_v27 = vld [vmem:[#allocation4 + $0x60] sm:$0xff]  ;;  %v4620_v62 = vld [vmem:[#allocation4 + $0x68] sm:$0xff]  ;;  %v8296_v12 = vld [vmem:[%s13314_s5 + $0x160] sm:$0xff] }
 0x351   :  { %4604 = vst.msk [vmem:[#allocation4 + $0x268] sm:$0xff] %vm2349_vm3, %v4524_v56  ;;  %v5176_v32 = vadd.f32 %v4942_v28, %v4610_v51 }
 0x352   :  { %5585 = vst [vmem:[#allocation4] sm:$0xff] %v5505_v13  ;;  %v11724_v14 = vadd.f32 %v11710_v45, %v5175_v26  ;;  %4605 = vst [vmem:[#allocation4 + $0x270] sm:$0xff] %v4525_v29  ;;  %v3960_v34 = vld [vmem:[#allocation4 + $0x278] sm:$0xff] }
 0x353   :  { %5256 = vst.msk [vmem:[#allocation4 + $0x18] sm:$0xff] %vm2349_vm3, %v5176_v32  ;;  %v4526_v57 = vadd.f32 %v4444_v30, %v3960_v34  ;;  %v4946_v39 = vpop.f32.mrb[204].mxu1  ;;  %v5669_v29 = vld [vmem:[%s13314_s5] sm:$0xff]  ;;  %v5670_v30 = vld [vmem:[%s13314_s5 + $0x8] sm:$0xff]  ;;  %v4621_v34 = vld [vmem:[#allocation4 + $0x70] sm:$0xff] }
 0x354   :  { %v5507_v40 = vmax.f32 %v11724_v14, 0.0  ;;  %v5177_v15 = vadd.f32 %v4946_v39, %v4611_v38  ;;  %v4948_v44 = vpop.f32.mrb[205].mxu1  ;;  %v8298_v14 = vld [vmem:[%s13314_s5 + $0x170] sm:$0xff] }
 0x355   :  { %4606 = vst.msk [vmem:[#allocation4 + $0x278] sm:$0xff] %vm2349_vm3, %v4526_v57  ;;  %v5178_v42 = vadd.f32 %v4948_v44, %v4612_v41 }
 0x356   :  { %v5334_v63 = vld [vmem:[#allocation4 + $0x8] sm:$0xff]  ;;  %5587 = vst [vmem:[#allocation4 + $0x10] sm:$0xff] %v5507_v40  ;;  %v11734_v46 = vadd.f32 %v11710_v45, %v5177_v15  ;;  %v4622_v15 = vld [vmem:[#allocation4 + $0x78] sm:$0xff] }
 0x357   :  { %v5426_v3 = vadd.f32 %v11726_v35, %v5334_v63  ;;  %5258 = vst.msk [vmem:[#allocation4 + $0x28] sm:$0xff] %vm2349_vm3, %v5178_v42  ;;  %v4952_v16 = vpop.f32.mrb[206].mxu1  ;;  %v9159_v63 = vpack.c.bf16 %v5670_v30, %v5669_v29  ;;  %v5677_v30 = vld [vmem:[%s13314_s5 + $0x40] sm:$0xff] }
 0x358   :  { %v5509_v48 = vmax.f32 %v11734_v46, 0.0  ;;  %v5179_v53 = vadd.f32 %v4952_v16, %v4613_v47  ;;  %v4954_v54 = vpop.f32.mrb[207].mxu1  ;;  %v5674_v46 = vld [vmem:[%s13314_s5 + $0x28] sm:$0xff] }
 0x359   :  { %v5506_v8 = vmax.f32 %v5426_v3, 0.0  ;;  %v5180_v55 = vadd.f32 %v4954_v54, %v4614_v19  ;;  %v5671_v3 = vld [vmem:[%s13314_s5 + $0x10] sm:$0xff]  ;;  %v5672_v19 = vld [vmem:[%s13314_s5 + $0x18] sm:$0xff] }
 0x35a   :  { %v5336_v58 = vld [vmem:[#allocation4 + $0x18] sm:$0xff]  ;;  %5589 = vst [vmem:[#allocation4 + $0x20] sm:$0xff] %v5509_v48  ;;  %v11742_v49 = vadd.f32 %v11710_v45, %v5179_v53 }
 0x35b   :  { %5586 = vst.msk [vmem:[#allocation4 + $0x8] sm:$0xff] %vm2349_vm3, %v5506_v8  ;;  %v5428_v59 = vadd.f32 %v11726_v35, %v5336_v58  ;;  %5260 = vst.msk [vmem:[#allocation4 + $0x38] sm:$0xff] %vm2349_vm3, %v5180_v55  ;;  %v4958_v61 = vpop.f32.mrb[208].mxu1  ;;  %v4623_v8 = vld [vmem:[#allocation4 + $0x80] sm:$0xff] }
 0x35c   :  { %v5511_v9 = vmax.f32 %v11742_v49, 0.0  ;;  %v5181_v2 = vadd.f32 %v4958_v61, %v4615_v60  ;;  %v4960_v5 = vpop.f32.mrb[209].mxu1  ;;  %v4624_v60 = vld [vmem:[#allocation4 + $0x88] sm:$0xff]  ;;  %v5676_v49 = vld [vmem:[%s13314_s5 + $0x38] sm:$0xff] }
 0x35d   :  { %v5508_v7 = vmax.f32 %v5428_v59, 0.0  ;;  %v5182_v20 = vadd.f32 %v4960_v5, %v4616_v4  ;;  %v9162_v5 = vpack.c.bf16 %v5672_v19, %v5671_v3 }
 0x35e   :  { %v5338_v22 = vld [vmem:[#allocation4 + $0x28] sm:$0xff]  ;;  %5591 = vst [vmem:[#allocation4 + $0x30] sm:$0xff] %v5511_v9  ;;  %v5433_v24 = vadd.f32 %v11710_v45, %v5181_v2 }
 0x35f   :  { %5588 = vst.msk [vmem:[#allocation4 + $0x18] sm:$0xff] %vm2349_vm3, %v5508_v7  ;;  %v5430_v10 = vadd.f32 %v11726_v35, %v5338_v22  ;;  %5262 = vst.msk [vmem:[#allocation4 + $0x48] sm:$0xff] %vm2349_vm3, %v5182_v20  ;;  %v4964_v21 = vpop.f32.mrb[210].mxu1  ;;  %v5673_v7 = vld [vmem:[%s13314_s5 + $0x20] sm:$0xff] }
 0x360   :  { %v5513_v36 = vmax.f32 %v5433_v24, 0.0  ;;  %v5183_v52 = vadd.f32 %v4964_v21, %v4617_v6  ;;  %v4966_v11 = vpop.f32.mrb[211].mxu1 }
 0x361   :  { %v5510_v17 = vmax.f32 %v5430_v10, 0.0  ;;  %v5184_v33 = vadd.f32 %v4966_v11, %v4618_v1  ;;  %v4625_v10 = vld [vmem:[#allocation4 + $0x90] sm:$0xff] }
 0x362   :  { %v5340_v50 = vld [vmem:[#allocation4 + $0x38] sm:$0xff]  ;;  %5593 = vst [vmem:[#allocation4 + $0x40] sm:$0xff] %v5513_v36  ;;  %v5435_v0 = vadd.f32 %v11710_v45, %v5183_v52  ;;  %v5666_v11 = vld [vmem:[#allocation4 + $0x8] sm:$0xff] }
 0x363   :  { %5590 = vst.msk [vmem:[#allocation4 + $0x28] sm:$0xff] %vm2349_vm3, %v5510_v17  ;;  %v5432_v18 = vadd.f32 %v11726_v35, %v5340_v50  ;;  %5264 = vst.msk [vmem:[#allocation4 + $0x58] sm:$0xff] %vm2349_vm3, %v5184_v33  ;;  %v4970_v37 = vpop.f32.mrb[212].mxu1  ;;  %v4626_v52 = vld [vmem:[#allocation4 + $0x98] sm:$0xff]  ;;  %v9165_v50 = vpack.c.bf16 %v5674_v46, %v5673_v7  ;;  %v8361_v7 = vld [vmem:[%s13314_s5 + $0x338] sm:$0xff] }
 0x364   :  { %v5515_v43 = vmax.f32 %v5435_v0, 0.0  ;;  %v5185_v56 = vadd.f32 %v4970_v37, %v4619_v27  ;;  %v4972_v23 = vpop.f32.mrb[213].mxu1  ;;  %v5675_v27 = vld [vmem:[%s13314_s5 + $0x30] sm:$0xff]  ;;  %v4627_v37 = vld [vmem:[#allocation4 + $0xa0] sm:$0xff] }
 0x365   :  { %v5512_v25 = vmax.f32 %v5432_v18, 0.0  ;;  %v5186_v26 = vadd.f32 %v4972_v23, %v4620_v62  ;;  %v4628_v23 = vld [vmem:[#allocation4 + $0xa8] sm:$0xff]  ;;  %v9168_v29 = vpack.c.bf16 %v5676_v49, %v5675_v27  ;;  %v4633_v27 = vld [vmem:[#allocation4 + $0xd0] sm:$0xff] }
 0x366   :  { %v5342_v51 = vld [vmem:[#allocation4 + $0x48] sm:$0xff]  ;;  %5595 = vst [vmem:[#allocation4 + $0x50] sm:$0xff] %v5515_v43  ;;  %v11759_v28 = vadd.f32 %v11710_v45, %v5185_v56 }
 0x367   :  { %5592 = vst.msk [vmem:[#allocation4 + $0x38] sm:$0xff] %vm2349_vm3, %v5512_v25  ;;  %v5434_v32 = vadd.f32 %v11726_v35, %v5342_v51  ;;  %5266 = vst.msk [vmem:[#allocation4 + $0x68] sm:$0xff] %vm2349_vm3, %v5186_v26  ;;  %v4976_v57 = vpop.f32.mrb[214].mxu1 }
 0x368   :  { %v5517_v38 = vmax.f32 %v11759_v28, 0.0  ;;  %v5187_v39 = vadd.f32 %v4976_v57, %v4621_v34  ;;  %v4978_v41 = vpop.f32.mrb[215].mxu1 }
 0x369   :  { %v5514_v44 = vmax.f32 %v5434_v32, 0.0  ;;  %v5188_v42 = vadd.f32 %v4978_v41, %v4622_v15  ;;  %v5678_v32 = vld [vmem:[%s13314_s5 + $0x48] sm:$0xff] }
 0x36a   :  { %v5344_v47 = vld [vmem:[#allocation4 + $0x58] sm:$0xff]  ;;  %5597 = vst [vmem:[#allocation4 + $0x60] sm:$0xff] %v5517_v38  ;;  %v11777_v16 = vadd.f32 %v11710_v45, %v5187_v39  ;;  %v5690_v53 = vld [vmem:[#allocation4 + $0x28] sm:$0xff]  ;;  %v8359_v15 = vld [vmem:[%s13314_s5 + $0x328] sm:$0xff] }
 0x36b   :  { %5594 = vst.msk [vmem:[#allocation4 + $0x48] sm:$0xff] %vm2349_vm3, %v5514_v44  ;;  %v5436_v54 = vadd.f32 %v11726_v35, %v5344_v47  ;;  %5268 = vst.msk [vmem:[#allocation4 + $0x78] sm:$0xff] %vm2349_vm3, %v5188_v42  ;;  %v4982_v55 = vpop.f32.mrb[216].mxu1  ;;  %8288 = vmatprep.mubr.msk.f32.mxu0 %vm2349_vm3, %v5690_v53  ;;  %v8358_v39 = vld [vmem:[%s13314_s5 + $0x320] sm:$0xff]  ;;  %v4629_v44 = vld [vmem:[#allocation4 + $0xb0] sm:$0xff] }
 0x36c   :  { %v5519_v58 = vmax.f32 %v11777_v16, 0.0  ;;  %v5189_v59 = vadd.f32 %v4982_v55, %v4623_v8  ;;  %v4984_v61 = vpop.f32.mrb[217].mxu1  ;;  %5785 = vmatmul.mubr.f32.vlgmr.msra.gmra.mrb[240].mxu0 %v5509_v48  ;;  %v4630_v47 = vld [vmem:[#allocation4 + $0xb8] sm:$0xff]  ;;  %v9171_v8 = vpack.c.bf16 %v5678_v32, %v5677_v30  ;;  %v9279_v55 = vpack.c.bf16 %v8359_v15, %v8358_v39  ;;  %v8364_v16 = vld [vmem:[%s13314_s5 + $0x350] sm:$0xff]  ;;  %v4635_v39 = vld [vmem:[#allocation4 + $0xe0] sm:$0xff] }
 0x36d   :  { %v5516_v2 = vmax.f32 %v5436_v54, 0.0  ;;  %v5190_v4 = vadd.f32 %v4984_v61, %v4624_v60  ;;  %9160 = vmatpush1.bf16.msra.mxu0 %v9159_v63  ;;  %v5680_v60 = vld [vmem:[%s13314_s5 + $0x58] sm:$0xff]  ;;  %v8360_v61 = vld [vmem:[%s13314_s5 + $0x330] sm:$0xff] }
 0x36e   :  { %v5346_v20 = vld [vmem:[#allocation4 + $0x68] sm:$0xff]  ;;  %5599 = vst [vmem:[#allocation4 + $0x70] sm:$0xff] %v5519_v58  ;;  %v5441_v22 = vadd.f32 %v11710_v45, %v5189_v59  ;;  %v5692_v24 = vld [vmem:[#allocation4 + $0x38] sm:$0xff]  ;;  %9161 = vmatprep.subr.bf16.mxu0 %v9739_v31 }
 0x36f   :  { %5596 = vst.msk [vmem:[#allocation4 + $0x58] sm:$0xff] %vm2349_vm3, %v5516_v2  ;;  %v5438_v48 = vadd.f32 %v11726_v35, %v5346_v20  ;;  %5270 = vst.msk [vmem:[#allocation4 + $0x88] sm:$0xff] %vm2349_vm3, %v5190_v4  ;;  %v4988_v6 = vpop.f32.mrb[218].mxu1  ;;  %8289 = vmatprep.mubr.msk.f32.mxu0 %vm2349_vm3, %v5692_v24  ;;  %v5679_v59 = vld [vmem:[%s13314_s5 + $0x50] sm:$0xff] }
 0x370   :  { %v5521_v21 = vmax.f32 %v5441_v22, 0.0  ;;  %v5191_v36 = vadd.f32 %v4988_v6, %v4625_v10  ;;  %v4990_v1 = vpop.f32.mrb[219].mxu1  ;;  %5790 = vmatmul.mubr.f32.gmra.mrb[242].mxu0 %v5511_v9  ;;  %v4631_v22 = vld [vmem:[#allocation4 + $0xc0] sm:$0xff]  ;;  %v4632_v10 = vld [vmem:[#allocation4 + $0xc8] sm:$0xff] }
 0x371   :  { %v5518_v17 = vmax.f32 %v5438_v48, 0.0  ;;  %v5192_v33 = vadd.f32 %v4990_v1, %v4626_v52  ;;  %9163 = vmatpush1.bf16.msra.mxu0 %v9162_v5  ;;  %8290 = vmatprep.mubr.msk.f32.mxu0 %vm2349_vm3, %v5666_v11  ;;  %v9174_v52 = vpack.c.bf16 %v5680_v60, %v5679_v59  ;;  %v9282_v1 = vpack.c.bf16 %v8361_v7, %v8360_v61  ;;  %v5681_v11 = vld [vmem:[%s13314_s5 + $0x60] sm:$0xff]  ;;  %v4637_v7 = vld [vmem:[#allocation4 + $0xf0] sm:$0xff] }
 0x372   :  { %v5348_v0 = vld [vmem:[#allocation4 + $0x78] sm:$0xff]  ;;  %5601 = vst [vmem:[#allocation4 + $0x80] sm:$0xff] %v5521_v21  ;;  %v5443_v18 = vadd.f32 %v11710_v45, %v5191_v36  ;;  %9164 = vmatprep.subr.bf16.mxu0 %v9739_v31 }
 0x373   :  { %5598 = vst.msk [vmem:[#allocation4 + $0x68] sm:$0xff] %vm2349_vm3, %v5518_v17  ;;  %v5440_v9 = vadd.f32 %v11726_v35, %v5348_v0  ;;  %5272 = vst.msk [vmem:[#allocation4 + $0x98] sm:$0xff] %vm2349_vm3, %v5192_v33  ;;  %v4994_v43 = vpop.f32.mrb[220].mxu1  ;;  %v5682_v17 = vld [vmem:[%s13314_s5 + $0x68] sm:$0xff]  ;;  %v8362_v33 = vld [vmem:[%s13314_s5 + $0x340] sm:$0xff] }
 0x374   :  { %v5523_v56 = vmax.f32 %v5443_v18, 0.0  ;;  %v5193_v62 = vadd.f32 %v4994_v43, %v4627_v37  ;;  %v4996_v25 = vpop.f32.mrb[221].mxu1  ;;  %v8363_v0 = vld [vmem:[%s13314_s5 + $0x348] sm:$0xff]  ;;  %v4634_v43 = vld [vmem:[#allocation4 + $0xd8] sm:$0xff] }
 0x375   :  { %v5520_v26 = vmax.f32 %v5440_v9, 0.0  ;;  %v5194_v51 = vadd.f32 %v4996_v25, %v4628_v23  ;;  %9166 = vmatpush1.bf16.msra.mxu0 %v9165_v50  ;;  %v9177_v25 = vpack.c.bf16 %v5682_v17, %v5681_v11  ;;  %v8366_v61 = vld [vmem:[%s13314_s5 + $0x360] sm:$0xff]  ;;  %v5688_v11 = vld [vmem:[%s13314_s5 + $0x98] sm:$0xff]  ;;  %v8368_v17 = vld [vmem:[%s13314_s5 + $0x370] sm:$0xff] }
 0x376   :  { %v5350_v34 = vld [vmem:[#allocation4 + $0x88] sm:$0xff]  ;;  %5603 = vst [vmem:[#allocation4 + $0x90] sm:$0xff] %v5523_v56  ;;  %v11824_v57 = vadd.f32 %v11710_v45, %v5193_v62  ;;  %9167 = vmatprep.subr.bf16.mxu0 %v9739_v31 }
 0x377   :  { %5600 = vst.msk [vmem:[#allocation4 + $0x78] sm:$0xff] %vm2349_vm3, %v5520_v26  ;;  %v5442_v41 = vadd.f32 %v11726_v35, %v5350_v34  ;;  %5274 = vst.msk [vmem:[#allocation4 + $0xa8] sm:$0xff] %vm2349_vm3, %v5194_v51  ;;  %v5000_v42 = vpop.f32.mrb[222].mxu1  ;;  %v9285_v26 = vpack.c.bf16 %v8363_v0, %v8362_v33  ;;  %v5683_v51 = vld [vmem:[%s13314_s5 + $0x70] sm:$0xff] }
 0x378   :  { %v5525_v63 = vmax.f32 %v11824_v57, 0.0  ;;  %v5195_v3 = vadd.f32 %v5000_v42, %v4629_v44  ;;  %v5002_v53 = vpop.f32.mrb[223].mxu1  ;;  %v4636_v42 = vld [vmem:[#allocation4 + $0xe8] sm:$0xff]  ;;  %v8305_v57 = vld [vmem:[%s13314_s5 + $0x1a8] sm:$0xff] }
 0x379   :  { %v5522_v19 = vmax.f32 %v5442_v41, 0.0  ;;  %v5196_v54 = vadd.f32 %v5002_v53, %v4630_v47  ;;  %9169 = vmatpush1.bf16.msra.mxu0 %v9168_v29  ;;  %v5684_v29 = vld [vmem:[%s13314_s5 + $0x78] sm:$0xff] }
 0x37a   :  { %v5352_v2 = vld [vmem:[#allocation4 + $0x98] sm:$0xff]  ;;  %5605 = vst [vmem:[#allocation4 + $0xa0] sm:$0xff] %v5525_v63  ;;  %v11849_v4 = vadd.f32 %v11710_v45, %v5195_v3  ;;  %9170 = vmatprep.subr.bf16.mxu0 %v9739_v31  ;;  %v5985_v5 = vld [vmem:[#allocation4 + $0x68] sm:$0xff] }
 0x37b   :  { %5602 = vst.msk [vmem:[#allocation4 + $0x88] sm:$0xff] %vm2349_vm3, %v5522_v19  ;;  %v5444_v20 = vadd.f32 %v11726_v35, %v5352_v2  ;;  %5276 = vst.msk [vmem:[#allocation4 + $0xb8] sm:$0xff] %vm2349_vm3, %v5196_v54  ;;  %v5006_v24 = vpop.f32.mrb[224].mxu1  ;;  %8334 = vmatprep.mubr.msk.f32.mxu1 %vm2349_vm3, %v5985_v5  ;;  %v9180_v19 = vpack.c.bf16 %v5684_v29, %v5683_v51  ;;  %v8367_v2 = vld [vmem:[%s13314_s5 + $0x368] sm:$0xff]  ;;  %v8292_v29 = vld [vmem:[%s13314_s5 + $0x140] sm:$0xff] }
 0x37c   :  { %v5527_v46 = vmax.f32 %v11849_v4, 0.0  ;;  %v5197_v48 = vadd.f32 %v5006_v24, %v4631_v22  ;;  %v5008_v6 = vpop.f32.mrb[225].mxu1  ;;  %6080 = vmatmul.mubr.f32.vlgmr.msra.gmra.mrb[24].mxu1 %v5517_v38  ;;  %v8307_v4 = vld [vmem:[%s13314_s5 + $0x1b8] sm:$0xff] }
 0x37d   :  { %v5524_v21 = vmax.f32 %v5444_v20, 0.0  ;;  %v5198_v36 = vadd.f32 %v5008_v6, %v4632_v10  ;;  %9172 = vmatpush1.bf16.msra.mxu0 %v9171_v8  ;;  %9280 = vmatpush1.bf16.msra.mxu1 %v9279_v55  ;;  %v5685_v8 = vld [vmem:[%s13314_s5 + $0x80] sm:$0xff]  ;;  %v5686_v55 = vld [vmem:[%s13314_s5 + $0x88] sm:$0xff] }
 0x37e   :  { %v5354_v28 = vld [vmem:[#allocation4 + $0xa8] sm:$0xff]  ;;  %5607 = vst [vmem:[#allocation4 + $0xb0] sm:$0xff] %v5527_v46  ;;  %v5449_v38 = vadd.f32 %v11710_v45, %v5197_v48  ;;  %9173 = vmatprep.subr.bf16.mxu0 %v9739_v31  ;;  %v5987_v50 = vld [vmem:[#allocation4 + $0x78] sm:$0xff]  ;;  %9281 = vmatprep.subr.bf16.mxu1 %v9739_v31 }
 0x37f   :  { %5604 = vst.msk [vmem:[#allocation4 + $0x98] sm:$0xff] %vm2349_vm3, %v5524_v21  ;;  %v5446_v18 = vadd.f32 %v11726_v35, %v5354_v28  ;;  %5278 = vst.msk [vmem:[#allocation4 + $0xc8] sm:$0xff] %vm2349_vm3, %v5198_v36  ;;  %v5012_v49 = vpop.f32.mrb[226].mxu1  ;;  %8335 = vmatprep.mubr.msk.f32.mxu1 %vm2349_vm3, %v5987_v50  ;;  %v4638_v48 = vld [vmem:[#allocation4 + $0xf8] sm:$0xff]  ;;  %v9183_v36 = vpack.c.bf16 %v5686_v55, %v5685_v8  ;;  %v8369_v50 = vld [vmem:[%s13314_s5 + $0x378] sm:$0xff] }
 0x380   :  { %v5529_v9 = vmax.f32 %v5449_v38, 0.0  ;;  %v5199_v37 = vadd.f32 %v5012_v49, %v4633_v27  ;;  %v5014_v56 = vpop.f32.mrb[227].mxu1  ;;  %6085 = vmatmul.mubr.f32.gmra.mrb[26].mxu1 %v5519_v58  ;;  %v8365_v58 = vld [vmem:[%s13314_s5 + $0x358] sm:$0xff]  ;;  %v8294_v55 = vld [vmem:[%s13314_s5 + $0x150] sm:$0xff] }
 0x381   :  { %v5526_v62 = vmax.f32 %v5446_v18, 0.0  ;;  %v5200_v23 = vadd.f32 %v5014_v56, %v4634_v43  ;;  %9175 = vmatpush1.bf16.msra.mxu0 %v9174_v52  ;;  %9283 = vmatpush1.bf16.msra.mxu1 %v9282_v1  ;;  %v9288_v54 = vpack.c.bf16 %v8365_v58, %v8364_v16  ;;  %v9291_v52 = vpack.c.bf16 %v8367_v2, %v8366_v61  ;;  %v5687_v1 = vld [vmem:[%s13314_s5 + $0x90] sm:$0xff]  ;;  %v4639_v18 = vld [vmem:[#allocation4 + $0x100] sm:$0xff]  ;;  %v4641_v16 = vld [vmem:[#allocation4 + $0x110] sm:$0xff] }
 0x382   :  { %v5356_v30 = vld [vmem:[#allocation4 + $0xb8] sm:$0xff]  ;;  %5609 = vst [vmem:[#allocation4 + $0xc0] sm:$0xff] %v5529_v9  ;;  %v5451_v32 = vadd.f32 %v11710_v45, %v5199_v37  ;;  %9176 = vmatprep.subr.bf16.mxu0 %v9739_v31  ;;  %9284 = vmatprep.subr.bf16.mxu1 %v9739_v31  ;;  %v4640_v37 = vld [vmem:[#allocation4 + $0x108] sm:$0xff]  ;;  %v4643_v2 = vld [vmem:[#allocation4 + $0x120] sm:$0xff] }
 0x383   :  { %5606 = vst.msk [vmem:[#allocation4 + $0xa8] sm:$0xff] %vm2349_vm3, %v5526_v62  ;;  %v5448_v34 = vadd.f32 %v11726_v35, %v5356_v30  ;;  %5280 = vst.msk [vmem:[#allocation4 + $0xd8] sm:$0xff] %vm2349_vm3, %v5200_v23  ;;  %v5018_v15 = vpop.f32.mrb[228].mxu1  ;;  %v9186_v23 = vpack.c.bf16 %v5688_v11, %v5687_v1  ;;  %v8293_v30 = vld [vmem:[%s13314_s5 + $0x148] sm:$0xff] }
 0x384   :  { %v5531_v41 = vmax.f32 %v5451_v32, 0.0  ;;  %v5201_v44 = vadd.f32 %v5018_v15, %v4635_v39  ;;  %v5020_v3 = vpop.f32.mrb[229].mxu1  ;;  %v8371_v39 = vld [vmem:[%s13314_s5 + $0x388] sm:$0xff] }
 0x385   :  { %v5528_v47 = vmax.f32 %v5448_v34, 0.0  ;;  %v5202_v53 = vadd.f32 %v5020_v3, %v4636_v42  ;;  %9178 = vmatpush1.bf16.msra.mxu0 %v9177_v25  ;;  %9286 = vmatpush1.bf16.msra.mxu1 %v9285_v26  ;;  %v9294_v25 = vpack.c.bf16 %v8369_v50, %v8368_v17  ;;  %v8370_v34 = vld [vmem:[%s13314_s5 + $0x380] sm:$0xff]  ;;  %v4645_v50 = vld [vmem:[#allocation4 + $0x130] sm:$0xff] }
 0x386   :  { %v5358_v59 = vld [vmem:[#allocation4 + $0xc8] sm:$0xff]  ;;  %5611 = vst [vmem:[#allocation4 + $0xd0] sm:$0xff] %v5531_v41  ;;  %v11910_v60 = vadd.f32 %v11710_v45, %v5201_v44  ;;  %9179 = vmatprep.subr.bf16.mxu0 %v9739_v31  ;;  %9287 = vmatprep.subr.bf16.mxu1 %v9739_v31  ;;  %v4642_v44 = vld [vmem:[#allocation4 + $0x118] sm:$0xff]  ;;  %v9297_v8 = vpack.c.bf16 %v8371_v39, %v8370_v34  ;;  %v8377_v39 = vld [vmem:[%s13314_s5 + $0x3b8] sm:$0xff] }
 0x387   :  { %5608 = vst.msk [vmem:[#allocation4 + $0xb8] sm:$0xff] %vm2349_vm3, %v5528_v47  ;;  %v5450_v5 = vadd.f32 %v11726_v35, %v5358_v59  ;;  %5282 = vst.msk [vmem:[#allocation4 + $0xe8] sm:$0xff] %vm2349_vm3, %v5202_v53  ;;  %v5024_v20 = vpop.f32.mrb[230].mxu1  ;;  %v9189_v53 = vpack.c.bf16 %v8293_v30, %v8292_v29  ;;  %v8295_v59 = vld [vmem:[%s13314_s5 + $0x158] sm:$0xff]  ;;  %v8376_v34 = vld [vmem:[%s13314_s5 + $0x3b0] sm:$0xff] }
 0x388   :  { %v5533_v22 = vmax.f32 %v11910_v60, 0.0  ;;  %v5203_v24 = vadd.f32 %v5024_v20, %v4637_v7  ;;  %v5026_v10 = vpop.f32.mrb[231].mxu1  ;;  %v8372_v7 = vld [vmem:[%s13314_s5 + $0x390] sm:$0xff]  ;;  %v8373_v20 = vld [vmem:[%s13314_s5 + $0x398] sm:$0xff]  ;;  %v9192_v1 = vpack.c.bf16 %v8295_v59, %v8294_v55  ;;  %v8300_v55 = vld [vmem:[%s13314_s5 + $0x180] sm:$0xff] }
 0x389   :  { %v5530_v6 = vmax.f32 %v5450_v5, 0.0  ;;  %v5204_v21 = vadd.f32 %v5026_v10, %v4638_v48  ;;  %9181 = vmatpush1.bf16.msra.mxu0 %v9180_v19  ;;  %9289 = vmatpush1.bf16.msra.mxu1 %v9288_v54  ;;  %v4644_v10 = vld [vmem:[#allocation4 + $0x128] sm:$0xff]  ;;  %v8301_v59 = vld [vmem:[%s13314_s5 + $0x188] sm:$0xff] }
 0x38a   :  { %v5360_v33 = vld [vmem:[#allocation4 + $0xd8] sm:$0xff]  ;;  %5613 = vst [vmem:[#allocation4 + $0xe0] sm:$0xff] %v5533_v22  ;;  %v11936_v28 = vadd.f32 %v11710_v45, %v5203_v24  ;;  %9182 = vmatprep.subr.bf16.mxu0 %v9739_v31  ;;  %9290 = vmatprep.subr.bf16.mxu1 %v9739_v31  ;;  %v6201_v38 = vld [vmem:[#allocation4 + $0xa8] sm:$0xff]  ;;  %v8349_v60 = vld [vmem:[%s13314_s5 + $0x2e8] sm:$0xff] }
 0x38b   :  { %5610 = vst.msk [vmem:[#allocation4 + $0xc8] sm:$0xff] %vm2349_vm3, %v5530_v6  ;;  %v5452_v0 = vadd.f32 %v11726_v35, %v5360_v33  ;;  %5284 = vst.msk [vmem:[#allocation4 + $0xf8] sm:$0xff] %vm2349_vm3, %v5204_v21  ;;  %v5030_v27 = vpop.f32.mrb[232].mxu1  ;;  %8378 = vmatprep.mubr.msk.f32.mxu1 %vm2349_vm3, %v6201_v38  ;;  %v5668_v21 = vld [vmem:[#allocation4 + $0x18] sm:$0xff]  ;;  %v9300_v33 = vpack.c.bf16 %v8373_v20, %v8372_v7  ;;  %v8403_v20 = vld [vmem:[%s13314_s5 + $0x468] sm:$0xff] }
 0x38c   :  { %v5535_v49 = vmax.f32 %v11936_v28, 0.0  ;;  %v5205_v9 = vadd.f32 %v5030_v27, %v4639_v18  ;;  %v5032_v43 = vpop.f32.mrb[233].mxu1  ;;  %v8374_v18 = vld [vmem:[%s13314_s5 + $0x3a0] sm:$0xff]  ;;  %v8375_v27 = vld [vmem:[%s13314_s5 + $0x3a8] sm:$0xff]  ;;  %v8351_v28 = vld [vmem:[%s13314_s5 + $0x2f8] sm:$0xff] }
 0x38d   :  { %v5532_v56 = vmax.f32 %v5452_v0, 0.0  ;;  %v5206_v62 = vadd.f32 %v5032_v43, %v4640_v37  ;;  %9184 = vmatpush1.bf16.msra.mxu0 %v9183_v36  ;;  %9292 = vmatpush1.bf16.msra.mxu1 %v9291_v52  ;;  %v4646_v43 = vld [vmem:[#allocation4 + $0x138] sm:$0xff]  ;;  %v9303_v30 = vpack.c.bf16 %v8375_v27, %v8374_v18  ;;  %v8405_v18 = vld [vmem:[%s13314_s5 + $0x478] sm:$0xff] }
 0x38e   :  { %v5362_v26 = vld [vmem:[#allocation4 + $0xe8] sm:$0xff]  ;;  %5615 = vst [vmem:[#allocation4 + $0xf0] sm:$0xff] %v5535_v49  ;;  %v5457_v51 = vadd.f32 %v11710_v45, %v5205_v9  ;;  %9185 = vmatprep.subr.bf16.mxu0 %v9739_v31  ;;  %9293 = vmatprep.subr.bf16.mxu1 %v9739_v31  ;;  %v8402_v7 = vld [vmem:[%s13314_s5 + $0x460] sm:$0xff] }
 0x38f   :  { %5612 = vst.msk [vmem:[#allocation4 + $0xd8] sm:$0xff] %vm2349_vm3, %v5532_v56  ;;  %v5454_v32 = vadd.f32 %v11726_v35, %v5362_v26  ;;  %5286 = vst.msk [vmem:[#allocation4 + $0x108] sm:$0xff] %vm2349_vm3, %v5206_v62  ;;  %v5036_v58 = vpop.f32.mrb[234].mxu1  ;;  %v5877_v62 = vld [vmem:[#allocation4 + $0x48] sm:$0xff] }
 0x390   :  { %v5537_v15 = vmax.f32 %v5457_v51, 0.0  ;;  %v5207_v41 = vadd.f32 %v5036_v58, %v4641_v16  ;;  %v5038_v42 = vpop.f32.mrb[235].mxu1  ;;  %v4647_v16 = vld [vmem:[#allocation4 + $0x140] sm:$0xff] }
 0x391   :  { %v5534_v3 = vmax.f32 %v5454_v32, 0.0  ;;  %v5208_v47 = vadd.f32 %v5038_v42, %v4642_v44  ;;  %9187 = vmatpush1.bf16.msra.mxu0 %v9186_v23  ;;  %9295 = vmatpush1.bf16.msra.mxu1 %v9294_v25  ;;  %v4648_v44 = vld [vmem:[#allocation4 + $0x148] sm:$0xff] }
 0x392   :  { %v5364_v19 = vld [vmem:[#allocation4 + $0xf8] sm:$0xff]  ;;  %5617 = vst [vmem:[#allocation4 + $0x100] sm:$0xff] %v5537_v15  ;;  %v5459_v54 = vadd.f32 %v11710_v45, %v5207_v41  ;;  %9188 = vmatprep.subr.bf16.mxu0 %v9739_v31  ;;  %9296 = vmatprep.subr.bf16.mxu1 %v9739_v31 }
 0x393   :  { %5614 = vst.msk [vmem:[#allocation4 + $0xe8] sm:$0xff] %vm2349_vm3, %v5534_v3  ;;  %v5456_v61 = vadd.f32 %v11726_v35, %v5364_v19  ;;  %5288 = vst.msk [vmem:[#allocation4 + $0x118] sm:$0xff] %vm2349_vm3, %v5208_v47  ;;  %v5042_v5 = vpop.f32.mrb[236].mxu1 }
 0x394   :  { %v5539_v24 = vmax.f32 %v5459_v54, 0.0  ;;  %v5209_v48 = vadd.f32 %v5042_v5, %v4643_v2  ;;  %5866 = vmatmul.mubr.f32.vlgmr.msra.gmra.mrb[244].mxu0 %v5505_v13  ;;  %v5044_v6 = vpop.f32.mrb[237].mxu1  ;;  %v8297_v13 = vld [vmem:[%s13314_s5 + $0x168] sm:$0xff]  ;;  %v4649_v2 = vld [vmem:[#allocation4 + $0x150] sm:$0xff] }
 0x395   :  { %v5536_v36 = vmax.f32 %v5456_v61, 0.0  ;;  %v5210_v52 = vadd.f32 %v5044_v6, %v4644_v10  ;;  %8291 = vmatprep.mubr.msk.f32.mxu0 %vm2349_vm3, %v5668_v21  ;;  %9190 = vmatpush1.bf16.msra.mxu0 %v9189_v53  ;;  %v9195_v26 = vpack.c.bf16 %v8297_v13, %v8296_v12  ;;  %v4650_v10 = vld [vmem:[#allocation4 + $0x158] sm:$0xff]  ;;  %v8303_v12 = vld [vmem:[%s13314_s5 + $0x198] sm:$0xff] }
 0x396   :  { %v5366_v11 = vld [vmem:[#allocation4 + $0x108] sm:$0xff]  ;;  %5619 = vst [vmem:[#allocation4 + $0x110] sm:$0xff] %v5539_v24  ;;  %v5461_v17 = vadd.f32 %v11710_v45, %v5209_v48  ;;  %9298 = vmatpush1.bf16.msra.mxu1 %v9297_v8  ;;  %9191 = vmatprep.subr.bf16.mxu0 %v9739_v31  ;;  %v9306_v8 = vpack.c.bf16 %v8377_v39, %v8376_v34  ;;  %v4654_v39 = vld [vmem:[#allocation4 + $0x178] sm:$0xff] }
 0x397   :  { %5616 = vst.msk [vmem:[#allocation4 + $0xf8] sm:$0xff] %vm2349_vm3, %v5536_v36  ;;  %v5458_v38 = vadd.f32 %v11726_v35, %v5366_v11  ;;  %5290 = vst.msk [vmem:[#allocation4 + $0x128] sm:$0xff] %vm2349_vm3, %v5210_v52  ;;  %v5048_v0 = vpop.f32.mrb[238].mxu1  ;;  %9299 = vmatprep.subr.bf16.mxu1 %v9739_v31  ;;  %v9201_v52 = vpack.c.bf16 %v8301_v59, %v8300_v55  ;;  %v8408_v59 = vld [vmem:[%s13314_s5 + $0x490] sm:$0xff] }
 0x398   :  { %v5541_v9 = vmax.f32 %v5461_v17, 0.0  ;;  %v5211_v37 = vadd.f32 %v5048_v0, %v4645_v50  ;;  %5871 = vmatmul.mubr.f32.gmra.mrb[246].mxu0 %v5507_v40  ;;  %v5050_v56 = vpop.f32.mrb[239].mxu1  ;;  %v8299_v40 = vld [vmem:[%s13314_s5 + $0x178] sm:$0xff]  ;;  %v9339_v17 = vpack.c.bf16 %v8403_v20, %v8402_v7  ;;  %v8404_v0 = vld [vmem:[%s13314_s5 + $0x470] sm:$0xff] }
 0x399   :  { %v5538_v23 = vmax.f32 %v5458_v38, 0.0  ;;  %v5212_v25 = vadd.f32 %v5050_v56, %v4646_v43  ;;  %9193 = vmatpush1.bf16.msra.mxu0 %v9192_v1  ;;  %8312 = vmatprep.mubr.msk.f32.mxu0 %vm2349_vm3, %v5877_v62  ;;  %v9198_v53 = vpack.c.bf16 %v8299_v40, %v8298_v14  ;;  %v4651_v38 = vld [vmem:[#allocation4 + $0x160] sm:$0xff]  ;;  %v4653_v14 = vld [vmem:[#allocation4 + $0x170] sm:$0xff]  ;;  %v4656_v7 = vld [vmem:[#allocation4 + $0x188] sm:$0xff] }
 0x39a   :  { %v5368_v51 = vld [vmem:[#allocation4 + $0x118] sm:$0xff]  ;;  %5621 = vst [vmem:[#allocation4 + $0x120] sm:$0xff] %v5541_v9  ;;  %v5463_v29 = vadd.f32 %v11710_v45, %v5211_v37  ;;  %9301 = vmatpush1.bf16.msra.mxu1 %v9300_v33  ;;  %9194 = vmatprep.subr.bf16.mxu0 %v9739_v31  ;;  %v8302_v33 = vld [vmem:[%s13314_s5 + $0x190] sm:$0xff] }
 0x39b   :  { %5618 = vst.msk [vmem:[#allocation4 + $0x108] sm:$0xff] %vm2349_vm3, %v5538_v23  ;;  %v5460_v32 = vadd.f32 %v11726_v35, %v5368_v51  ;;  %5292 = vst.msk [vmem:[#allocation4 + $0x138] sm:$0xff] %vm2349_vm3, %v5212_v25  ;;  %v5054_v58 = vpop.f32.mrb[240].mxu1  ;;  %9302 = vmatprep.subr.bf16.mxu1 %v9739_v31  ;;  %v4652_v37 = vld [vmem:[#allocation4 + $0x168] sm:$0xff]  ;;  %v6203_v23 = vld [vmem:[#allocation4 + $0xb8] sm:$0xff]  ;;  %v9204_v25 = vpack.c.bf16 %v8303_v12, %v8302_v33 }
 0x39c   :  { %v5543_v15 = vmax.f32 %v5463_v29, 0.0  ;;  %v5213_v41 = vadd.f32 %v5054_v58, %v4647_v16  ;;  %v5056_v42 = vpop.f32.mrb[241].mxu1  ;;  %v9342_v29 = vpack.c.bf16 %v8405_v18, %v8404_v0  ;;  %v8407_v16 = vld [vmem:[%s13314_s5 + $0x488] sm:$0xff]  ;;  %v8410_v12 = vld [vmem:[%s13314_s5 + $0x4a0] sm:$0xff] }
 0x39d   :  { %v5540_v3 = vmax.f32 %v5460_v32, 0.0  ;;  %v5214_v47 = vadd.f32 %v5056_v42, %v4648_v44  ;;  %9196 = vmatpush1.bf16.msra.mxu0 %v9195_v26  ;;  %v8406_v32 = vld [vmem:[%s13314_s5 + $0x480] sm:$0xff]  ;;  %v6417_v42 = vld [vmem:[#allocation4 + $0xe8] sm:$0xff] }
 0x39e   :  { %v5370_v19 = vld [vmem:[#allocation4 + $0x128] sm:$0xff]  ;;  %5623 = vst [vmem:[#allocation4 + $0x130] sm:$0xff] %v5543_v15  ;;  %v5465_v54 = vadd.f32 %v11710_v45, %v5213_v41  ;;  %9304 = vmatpush1.bf16.msra.mxu1 %v9303_v30  ;;  %9197 = vmatprep.subr.bf16.mxu0 %v9739_v31  ;;  %v8304_v30 = vld [vmem:[%s13314_s5 + $0x1a0] sm:$0xff] }
 0x39f   :  { %5620 = vst.msk [vmem:[#allocation4 + $0x118] sm:$0xff] %vm2349_vm3, %v5540_v3  ;;  %v5462_v61 = vadd.f32 %v11726_v35, %v5370_v19  ;;  %5294 = vst.msk [vmem:[#allocation4 + $0x148] sm:$0xff] %vm2349_vm3, %v5214_v47  ;;  %v5060_v5 = vpop.f32.mrb[242].mxu1  ;;  %9305 = vmatprep.subr.bf16.mxu1 %v9739_v31  ;;  %v9207_v3 = vpack.c.bf16 %v8305_v57, %v8304_v30  ;;  %v9345_v19 = vpack.c.bf16 %v8407_v16, %v8406_v32  ;;  %v4658_v0 = vld [vmem:[#allocation4 + $0x198] sm:$0xff]  ;;  %v8412_v30 = vld [vmem:[%s13314_s5 + $0x4b0] sm:$0xff] }
 0x3a0   :  { %v5545_v24 = vmax.f32 %v5465_v54, 0.0  ;;  %v5215_v48 = vadd.f32 %v5060_v5, %v4649_v2  ;;  %v5062_v6 = vpop.f32.mrb[243].mxu1  ;;  %v8306_v54 = vld [vmem:[%s13314_s5 + $0x1b0] sm:$0xff]  ;;  %v8413_v57 = vld [vmem:[%s13314_s5 + $0x4b8] sm:$0xff] }
 0x3a1   :  { %v5542_v21 = vmax.f32 %v5462_v61, 0.0  ;;  %v5216_v36 = vadd.f32 %v5062_v6, %v4650_v10  ;;  %9199 = vmatpush1.bf16.msra.mxu0 %v9198_v53  ;;  %v8409_v61 = vld [vmem:[%s13314_s5 + $0x498] sm:$0xff]  ;;  %v9210_v10 = vpack.c.bf16 %v8307_v4, %v8306_v54  ;;  %v8415_v54 = vld [vmem:[%s13314_s5 + $0x4c8] sm:$0xff] }
 0x3a2   :  { %v5372_v1 = vld [vmem:[#allocation4 + $0x138] sm:$0xff]  ;;  %5625 = vst [vmem:[#allocation4 + $0x140] sm:$0xff] %v5545_v24  ;;  %v5467_v11 = vadd.f32 %v11710_v45, %v5215_v48  ;;  %9307 = vmatpush1.bf16.msra.mxu1 %v9306_v8  ;;  %9200 = vmatprep.subr.bf16.mxu0 %v9739_v31  ;;  %v4655_v8 = vld [vmem:[#allocation4 + $0x180] sm:$0xff] }
 0x3a3   :  { %5622 = vst.msk [vmem:[#allocation4 + $0x128] sm:$0xff] %vm2349_vm3, %v5542_v21  ;;  %v5464_v13 = vadd.f32 %v11726_v35, %v5372_v1  ;;  %5296 = vst.msk [vmem:[#allocation4 + $0x158] sm:$0xff] %vm2349_vm3, %v5216_v36  ;;  %v5066_v50 = vpop.f32.mrb[244].mxu1  ;;  %9338 = vmatprep.subr.bf16.mxu1 %v9739_v31  ;;  %v9348_v36 = vpack.c.bf16 %v8409_v61, %v8408_v59  ;;  %v8309_v1 = vld [vmem:[%s13314_s5 + $0x1c8] sm:$0xff] }
 0x3a4   :  { %v5547_v27 = vmax.f32 %v5467_v11, 0.0  ;;  %v5217_v9 = vadd.f32 %v5066_v50, %v4651_v38  ;;  %v5068_v43 = vpop.f32.mrb[245].mxu1 }
 0x3a5   :  { %v5544_v56 = vmax.f32 %v5464_v13, 0.0  ;;  %6296 = vmatmul.mubr.f32.vlgmr.msra.gmra.mrb[28].mxu1 %v5525_v63  ;;  %v5218_v62 = vadd.f32 %v5068_v43, %v4652_v37  ;;  %9202 = vmatpush1.bf16.msra.mxu0 %v9201_v52  ;;  %v8308_v52 = vld [vmem:[%s13314_s5 + $0x1c0] sm:$0xff]  ;;  %v8411_v13 = vld [vmem:[%s13314_s5 + $0x4a8] sm:$0xff] }
 0x3a6   :  { %v5374_v26 = vld [vmem:[#allocation4 + $0x148] sm:$0xff]  ;;  %5627 = vst [vmem:[#allocation4 + $0x150] sm:$0xff] %v5547_v27  ;;  %v5469_v51 = vadd.f32 %v11710_v45, %v5217_v9  ;;  %8379 = vmatprep.mubr.msk.f32.mxu1 %vm2349_vm3, %v6203_v23  ;;  %9340 = vmatpush1.bf16.msra.mxu1 %v9339_v17  ;;  %v4657_v17 = vld [vmem:[#allocation4 + $0x190] sm:$0xff]  ;;  %v9213_v37 = vpack.c.bf16 %v8309_v1, %v8308_v52 }
 0x3a7   :  { %5624 = vst.msk [vmem:[#allocation4 + $0x138] sm:$0xff] %vm2349_vm3, %v5544_v56  ;;  %v5466_v63 = vadd.f32 %v11726_v35, %v5374_v26  ;;  %5298 = vst.msk [vmem:[#allocation4 + $0x168] sm:$0xff] %vm2349_vm3, %v5218_v62  ;;  %v5072_v40 = vpop.f32.mrb[246].mxu1  ;;  %9203 = vmatprep.subr.bf16.mxu0 %v9739_v31  ;;  %9341 = vmatprep.subr.bf16.mxu1 %v9739_v31  ;;  %v9351_v62 = vpack.c.bf16 %v8411_v13, %v8410_v12  ;;  %v8310_v23 = vld [vmem:[%s13314_s5 + $0x1d0] sm:$0xff]  ;;  %v8417_v1 = vld [vmem:[%s13314_s5 + $0x4d8] sm:$0xff] }
 0x3a8   :  { %v5549_v58 = vmax.f32 %v5469_v51, 0.0  ;;  %v5219_v34 = vadd.f32 %v5072_v40, %v4653_v14  ;;  %v5074_v15 = vpop.f32.mrb[247].mxu1  ;;  %v4659_v51 = vld [vmem:[#allocation4 + $0x1a0] sm:$0xff]  ;;  %v4660_v40 = vld [vmem:[#allocation4 + $0x1a8] sm:$0xff]  ;;  %v5879_v13 = vld [vmem:[#allocation4 + $0x58] sm:$0xff] }
 0x3a9   :  { %v5546_v41 = vmax.f32 %v5466_v63, 0.0  ;;  %6301 = vmatmul.mubr.f32.gmra.mrb[30].mxu1 %v5527_v46  ;;  %v5220_v44 = vadd.f32 %v5074_v15, %v4654_v39  ;;  %9205 = vmatpush1.bf16.msra.mxu0 %v9204_v25  ;;  %v8311_v25 = vld [vmem:[%s13314_s5 + $0x1d8] sm:$0xff]  ;;  %v8416_v52 = vld [vmem:[%s13314_s5 + $0x4d0] sm:$0xff] }
 0x3aa   :  { %v5376_v47 = vld [vmem:[#allocation4 + $0x158] sm:$0xff]  ;;  %5629 = vst [vmem:[#allocation4 + $0x160] sm:$0xff] %v5549_v58  ;;  %v5471_v53 = vadd.f32 %v11710_v45, %v5219_v34  ;;  %9343 = vmatpush1.bf16.msra.mxu1 %v9342_v29  ;;  %8422 = vmatprep.mubr.msk.f32.mxu1 %vm2349_vm3, %v6417_v42  ;;  %v9216_v34 = vpack.c.bf16 %v8311_v25, %v8310_v23  ;;  %v8337_v42 = vld [vmem:[%s13314_s5 + $0x288] sm:$0xff]  ;;  %v5878_v25 = vld [vmem:[#allocation4 + $0x50] sm:$0xff] }
 0x3ab   :  { %5626 = vst.msk [vmem:[#allocation4 + $0x148] sm:$0xff] %vm2349_vm3, %v5546_v41  ;;  %v5468_v46 = vadd.f32 %v11726_v35, %v5376_v47  ;;  %5300 = vst.msk [vmem:[#allocation4 + $0x178] sm:$0xff] %vm2349_vm3, %v5220_v44  ;;  %v5078_v55 = vpop.f32.mrb[248].mxu1  ;;  %9206 = vmatprep.subr.bf16.mxu0 %v9739_v31  ;;  %9344 = vmatprep.subr.bf16.mxu1 %v9739_v31  ;;  %v9354_v41 = vpack.c.bf16 %v8413_v57, %v8412_v30  ;;  %v8336_v44 = vld [vmem:[%s13314_s5 + $0x280] sm:$0xff]  ;;  %v4661_v47 = vld [vmem:[#allocation4 + $0x1b0] sm:$0xff] }
 0x3ac   :  { %v5551_v2 = vmax.f32 %v5471_v53, 0.0  ;;  %v5221_v5 = vadd.f32 %v5078_v55, %v4655_v8  ;;  %v5080_v20 = vpop.f32.mrb[249].mxu1  ;;  %v4662_v8 = vld [vmem:[#allocation4 + $0x1b8] sm:$0xff] }
 0x3ad   :  { %v5548_v24 = vmax.f32 %v5468_v46, 0.0  ;;  %v5222_v48 = vadd.f32 %v5080_v20, %v4656_v7  ;;  %9208 = vmatpush1.bf16.msra.mxu0 %v9207_v3  ;;  %v4666_v57 = vld [vmem:[#allocation4 + $0x1d8] sm:$0xff] }
 0x3ae   :  { %v5378_v6 = vld [vmem:[#allocation4 + $0x168] sm:$0xff]  ;;  %5631 = vst [vmem:[#allocation4 + $0x170] sm:$0xff] %v5551_v2  ;;  %v5473_v21 = vadd.f32 %v11710_v45, %v5221_v5  ;;  %9346 = vmatpush1.bf16.msra.mxu1 %v9345_v19  ;;  %9209 = vmatprep.subr.bf16.mxu0 %v9739_v31  ;;  %v8414_v19 = vld [vmem:[%s13314_s5 + $0x4c0] sm:$0xff]  ;;  %v4663_v2 = vld [vmem:[#allocation4 + $0x1c0] sm:$0xff]  ;;  %v9249_v5 = vpack.c.bf16 %v8337_v42, %v8336_v44 }
 0x3af   :  { %5628 = vst.msk [vmem:[#allocation4 + $0x158] sm:$0xff] %vm2349_vm3, %v5548_v24  ;;  %v5470_v11 = vadd.f32 %v11726_v35, %v5378_v6  ;;  %5302 = vst.msk [vmem:[#allocation4 + $0x188] sm:$0xff] %vm2349_vm3, %v5222_v48  ;;  %v5084_v33 = vpop.f32.mrb[250].mxu1  ;;  %9347 = vmatprep.subr.bf16.mxu1 %v9739_v31  ;;  %v9357_v24 = vpack.c.bf16 %v8415_v54, %v8414_v19  ;;  %v8338_v48 = vld [vmem:[%s13314_s5 + $0x290] sm:$0xff]  ;;  %v4667_v42 = vld [vmem:[#allocation4 + $0x1e0] sm:$0xff] }
 0x3b0   :  { %v5553_v38 = vmax.f32 %v5473_v21, 0.0  ;;  %v5223_v50 = vadd.f32 %v5084_v33, %v4657_v17  ;;  %v5086_v18 = vpop.f32.mrb[251].mxu1  ;;  %v4664_v33 = vld [vmem:[#allocation4 + $0x1c8] sm:$0xff] }
 0x3b1   :  { %v5550_v27 = vmax.f32 %v5470_v11, 0.0  ;;  %v5224_v9 = vadd.f32 %v5086_v18, %v4658_v0  ;;  %9211 = vmatpush1.bf16.msra.mxu0 %v9210_v10  ;;  %v8339_v10 = vld [vmem:[%s13314_s5 + $0x298] sm:$0xff] }
 0x3b2   :  { %v5380_v43 = vld [vmem:[#allocation4 + $0x178] sm:$0xff]  ;;  %5633 = vst [vmem:[#allocation4 + $0x180] sm:$0xff] %v5553_v38  ;;  %v5475_v56 = vadd.f32 %v11710_v45, %v5223_v50  ;;  %9349 = vmatpush1.bf16.msra.mxu1 %v9348_v36  ;;  %9212 = vmatprep.subr.bf16.mxu0 %v9739_v31  ;;  %v5876_v36 = vld [vmem:[#allocation4 + $0x40] sm:$0xff]  ;;  %v4665_v0 = vld [vmem:[#allocation4 + $0x1d0] sm:$0xff]  ;;  %v9252_v18 = vpack.c.bf16 %v8339_v10, %v8338_v48 }
 0x3b3   :  { %5630 = vst.msk [vmem:[#allocation4 + $0x168] sm:$0xff] %vm2349_vm3, %v5550_v27  ;;  %v5472_v26 = vadd.f32 %v11726_v35, %v5380_v43  ;;  %5304 = vst.msk [vmem:[#allocation4 + $0x198] sm:$0xff] %vm2349_vm3, %v5224_v9  ;;  %v5090_v29 = vpop.f32.mrb[252].mxu1  ;;  %9350 = vmatprep.subr.bf16.mxu1 %v9739_v31  ;;  %v8340_v43 = vld [vmem:[%s13314_s5 + $0x2a0] sm:$0xff]  ;;  %v4669_v48 = vld [vmem:[#allocation4 + $0x1f0] sm:$0xff] }
 0x3b4   :  { %v5555_v63 = vmax.f32 %v5475_v56, 0.0  ;;  %v5225_v14 = vadd.f32 %v5090_v29, %v4659_v51  ;;  %v5092_v32 = vpop.f32.mrb[253].mxu1  ;;  %v8341_v56 = vld [vmem:[%s13314_s5 + $0x2a8] sm:$0xff] }
 0x3b5   :  { %v5552_v16 = vmax.f32 %v5472_v26, 0.0  ;;  %v5226_v58 = vadd.f32 %v5092_v32, %v4660_v40  ;;  %9214 = vmatpush1.bf16.msra.mxu0 %v9213_v37  ;;  %v9360_v37 = vpack.c.bf16 %v8417_v1, %v8416_v52  ;;  %v8418_v26 = vld [vmem:[%s13314_s5 + $0x4e0] sm:$0xff]  ;;  %v8419_v51 = vld [vmem:[%s13314_s5 + $0x4e8] sm:$0xff] }
 0x3b6   :  { %v5382_v39 = vld [vmem:[#allocation4 + $0x188] sm:$0xff]  ;;  %5635 = vst [vmem:[#allocation4 + $0x190] sm:$0xff] %v5555_v63  ;;  %v5477_v15 = vadd.f32 %v11710_v45, %v5225_v14  ;;  %9352 = vmatpush1.bf16.msra.mxu1 %v9351_v62  ;;  %9215 = vmatprep.subr.bf16.mxu0 %v9739_v31  ;;  %v4670_v1 = vld [vmem:[#allocation4 + $0x1f8] sm:$0xff] }
 0x3b7   :  { %5632 = vst.msk [vmem:[#allocation4 + $0x178] sm:$0xff] %vm2349_vm3, %v5552_v16  ;;  %v5474_v3 = vadd.f32 %v11726_v35, %v5382_v39  ;;  %5306 = vst.msk [vmem:[#allocation4 + $0x1a8] sm:$0xff] %vm2349_vm3, %v5226_v58  ;;  %v5096_v53 = vpop.f32.mrb[254].mxu1  ;;  %9353 = vmatprep.subr.bf16.mxu1 %v9739_v31  ;;  %v6093_v14 = vld [vmem:[#allocation4 + $0x88] sm:$0xff]  ;;  %v9255_v16 = vpack.c.bf16 %v8341_v56, %v8340_v43  ;;  %v9363_v39 = vpack.c.bf16 %v8419_v51, %v8418_v26  ;;  %v8449_v56 = vld [vmem:[%s13314_s5 + $0x5b8] sm:$0xff] }
 0x3b8   :  { %v5557_v4 = vmax.f32 %v5477_v15, 0.0  ;;  %v5227_v46 = vadd.f32 %v5096_v53, %v4661_v47  ;;  %v5098_v55 = vpop.f32.mrb[255].mxu1  ;;  %v8342_v15 = vld [vmem:[%s13314_s5 + $0x2b0] sm:$0xff]  ;;  %v8421_v53 = vld [vmem:[%s13314_s5 + $0x4f8] sm:$0xff] }
 0x3b9   :  { %v5554_v59 = vmax.f32 %v5474_v3, 0.0  ;;  %v5228_v61 = vadd.f32 %v5098_v55, %v4662_v8  ;;  %9217 = vmatpush1.bf16.msra.mxu0 %v9216_v34  ;;  %v8420_v47 = vld [vmem:[%s13314_s5 + $0x4f0] sm:$0xff] }
 0x3ba   :  { %v5384_v7 = vld [vmem:[#allocation4 + $0x198] sm:$0xff]  ;;  %5637 = vst [vmem:[#allocation4 + $0x1a0] sm:$0xff] %v5557_v4  ;;  %v5479_v20 = vadd.f32 %v11710_v45, %v5227_v46  ;;  %9355 = vmatpush1.bf16.msra.mxu1 %v9354_v41  ;;  %9248 = vmatprep.subr.bf16.mxu0 %v9739_v31  ;;  %v8343_v41 = vld [vmem:[%s13314_s5 + $0x2b8] sm:$0xff]  ;;  %v4668_v4 = vld [vmem:[#allocation4 + $0x1e8] sm:$0xff] }
 0x3bb   :  { %5634 = vst.msk [vmem:[#allocation4 + $0x188] sm:$0xff] %vm2349_vm3, %v5554_v59  ;;  %v5476_v6 = vadd.f32 %v11726_v35, %v5384_v7  ;;  %5308 = vst.msk [vmem:[#allocation4 + $0x1b8] sm:$0xff] %vm2349_vm3, %v5228_v61  ;;  %v5102_v21 = vpop.f32.mrb[0].mxu1  ;;  %9356 = vmatprep.subr.bf16.mxu1 %v9739_v31  ;;  %v9258_v59 = vpack.c.bf16 %v8343_v41, %v8342_v15  ;;  %v8344_v7 = vld [vmem:[%s13314_s5 + $0x2c0] sm:$0xff]  ;;  %v8448_v43 = vld [vmem:[%s13314_s5 + $0x5b0] sm:$0xff] }
 0x3bc   :  { %v5559_v11 = vmax.f32 %v5479_v20, 0.0  ;;  %v5229_v17 = vadd.f32 %v5102_v21, %v4663_v2  ;;  %5972 = vmatmul.mubr.f32.vlgmr.msra.gmra.mrb[248].mxu0 %v5876_v36  ;;  %v5104_v12 = vpop.f32.mrb[1].mxu1  ;;  %v8345_v20 = vld [vmem:[%s13314_s5 + $0x2c8] sm:$0xff] }
 0x3bd   :  { %v5556_v38 = vmax.f32 %v5476_v6, 0.0  ;;  %v5230_v50 = vadd.f32 %v5104_v12, %v4664_v33  ;;  %8313 = vmatprep.mubr.msk.f32.mxu0 %vm2349_vm3, %v5879_v13  ;;  %9250 = vmatpush1.bf16.msra.mxu0 %v9249_v5  ;;  %v9366_v5 = vpack.c.bf16 %v8421_v53, %v8420_v47  ;;  %v8446_v6 = vld [vmem:[%s13314_s5 + $0x5a0] sm:$0xff]  ;;  %v8447_v21 = vld [vmem:[%s13314_s5 + $0x5a8] sm:$0xff]  ;;  %v9261_v12 = vpack.c.bf16 %v8345_v20, %v8344_v7  ;;  %v6633_v53 = vld [vmem:[#allocation4 + $0x128] sm:$0xff] }
 0x3be   :  { %v5386_v27 = vld [vmem:[#allocation4 + $0x1a8] sm:$0xff]  ;;  %5639 = vst [vmem:[#allocation4 + $0x1b0] sm:$0xff] %v5559_v11  ;;  %v5481_v9 = vadd.f32 %v11710_v45, %v5229_v17  ;;  %9358 = vmatpush1.bf16.msra.mxu1 %v9357_v24  ;;  %9251 = vmatprep.subr.bf16.mxu0 %v9739_v31 }
 0x3bf   :  { %5636 = vst.msk [vmem:[#allocation4 + $0x198] sm:$0xff] %vm2349_vm3, %v5556_v38  ;;  %v5478_v62 = vadd.f32 %v11726_v35, %v5386_v27  ;;  %5310 = vst.msk [vmem:[#allocation4 + $0x1c8] sm:$0xff] %vm2349_vm3, %v5230_v50  ;;  %v5108_v23 = vpop.f32.mrb[2].mxu1  ;;  %9359 = vmatprep.subr.bf16.mxu1 %v9739_v31  ;;  %v9399_v50 = vpack.c.bf16 %v8447_v21, %v8446_v6  ;;  %v4676_v20 = vld [vmem:[#allocation4 + $0x228] sm:$0xff] }
 0x3c0   :  { %v5561_v29 = vmax.f32 %v5481_v9, 0.0  ;;  %v5231_v30 = vadd.f32 %v5108_v23, %v4665_v0  ;;  %5977 = vmatmul.mubr.f32.gmra.mrb[250].mxu0 %v5878_v25  ;;  %v5110_v63 = vpop.f32.mrb[3].mxu1  ;;  %v8346_v0 = vld [vmem:[%s13314_s5 + $0x2d0] sm:$0xff]  ;;  %v4671_v9 = vld [vmem:[#allocation4 + $0x200] sm:$0xff] }
 0x3c1   :  { %v5558_v40 = vmax.f32 %v5478_v62, 0.0  ;;  %v5232_v32 = vadd.f32 %v5110_v63, %v4666_v57  ;;  %9253 = vmatpush1.bf16.msra.mxu0 %v9252_v18  ;;  %8356 = vmatprep.mubr.msk.f32.mxu0 %vm2349_vm3, %v6093_v14  ;;  %v8347_v18 = vld [vmem:[%s13314_s5 + $0x2d8] sm:$0xff]  ;;  %v4672_v25 = vld [vmem:[#allocation4 + $0x208] sm:$0xff] }
 0x3c2   :  { %v5388_v58 = vld [vmem:[#allocation4 + $0x1b8] sm:$0xff]  ;;  %5641 = vst [vmem:[#allocation4 + $0x1c0] sm:$0xff] %v5561_v29  ;;  %v5483_v34 = vadd.f32 %v11710_v45, %v5231_v30  ;;  %9361 = vmatpush1.bf16.msra.mxu1 %v9360_v37  ;;  %9254 = vmatprep.subr.bf16.mxu0 %v9739_v31  ;;  %v9264_v57 = vpack.c.bf16 %v8347_v18, %v8346_v0 }
 0x3c3   :  { %5638 = vst.msk [vmem:[#allocation4 + $0x1a8] sm:$0xff] %vm2349_vm3, %v5558_v40  ;;  %v5480_v44 = vadd.f32 %v11726_v35, %v5388_v58  ;;  %5312 = vst.msk [vmem:[#allocation4 + $0x1d8] sm:$0xff] %vm2349_vm3, %v5232_v32  ;;  %v5114_v3 = vpop.f32.mrb[4].mxu1  ;;  %9362 = vmatprep.subr.bf16.mxu1 %v9739_v31  ;;  %v6419_v30 = vld [vmem:[#allocation4 + $0xf8] sm:$0xff]  ;;  %v9402_v40 = vpack.c.bf16 %v8449_v56, %v8448_v43 }
 0x3c4   :  { %v5563_v19 = vmax.f32 %v5483_v34, 0.0  ;;  %v5233_v54 = vadd.f32 %v5114_v3, %v4667_v42  ;;  %v5116_v46 = vpop.f32.mrb[5].mxu1  ;;  %v8348_v32 = vld [vmem:[%s13314_s5 + $0x2e0] sm:$0xff] }
 0x3c5   :  { %v5560_v8 = vmax.f32 %v5480_v44, 0.0  ;;  %v5234_v55 = vadd.f32 %v5116_v46, %v4668_v4  ;;  %9256 = vmatpush1.bf16.msra.mxu0 %v9255_v16  ;;  %v4673_v16 = vld [vmem:[#allocation4 + $0x210] sm:$0xff]  ;;  %v8450_v34 = vld [vmem:[%s13314_s5 + $0x5c0] sm:$0xff] }
 0x3c6   :  { %v5390_v61 = vld [vmem:[#allocation4 + $0x1c8] sm:$0xff]  ;;  %5643 = vst [vmem:[#allocation4 + $0x1d0] sm:$0xff] %v5563_v19  ;;  %v5485_v2 = vadd.f32 %v11710_v45, %v5233_v54  ;;  %9364 = vmatpush1.bf16.msra.mxu1 %v9363_v39  ;;  %9257 = vmatprep.subr.bf16.mxu0 %v9739_v31  ;;  %v8451_v39 = vld [vmem:[%s13314_s5 + $0x5c8] sm:$0xff]  ;;  %v4674_v44 = vld [vmem:[#allocation4 + $0x218] sm:$0xff]  ;;  %v9267_v19 = vpack.c.bf16 %v8349_v60, %v8348_v32 }
 0x3c7   :  { %5640 = vst.msk [vmem:[#allocation4 + $0x1b8] sm:$0xff] %vm2349_vm3, %v5560_v8  ;;  %v5482_v24 = vadd.f32 %v11726_v35, %v5390_v61  ;;  %5314 = vst.msk [vmem:[#allocation4 + $0x1e8] sm:$0xff] %vm2349_vm3, %v5234_v55  ;;  %v5120_v10 = vpop.f32.mrb[6].mxu1  ;;  %9365 = vmatprep.subr.bf16.mxu1 %v9739_v31  ;;  %v9405_v46 = vpack.c.bf16 %v8451_v39, %v8450_v34  ;;  %v8350_v8 = vld [vmem:[%s13314_s5 + $0x2f0] sm:$0xff]  ;;  %v4675_v55 = vld [vmem:[#allocation4 + $0x220] sm:$0xff] }
 0x3c8   :  { %v5565_v36 = vmax.f32 %v5485_v2, 0.0  ;;  %v5235_v52 = vadd.f32 %v5120_v10, %v4669_v48  ;;  %v5122_v11 = vpop.f32.mrb[7].mxu1  ;;  %v8452_v61 = vld [vmem:[%s13314_s5 + $0x5d0] sm:$0xff]  ;;  %v8453_v2 = vld [vmem:[%s13314_s5 + $0x5d8] sm:$0xff]  ;;  %v9270_v6 = vpack.c.bf16 %v8351_v28, %v8350_v8  ;;  %v4678_v18 = vld [vmem:[#allocation4 + $0x238] sm:$0xff] }
 0x3c9   :  { %v5562_v17 = vmax.f32 %v5482_v24, 0.0  ;;  %v5236_v33 = vadd.f32 %v5122_v11, %v4670_v1  ;;  %9259 = vmatpush1.bf16.msra.mxu0 %v9258_v59  ;;  %v8352_v1 = vld [vmem:[%s13314_s5 + $0x300] sm:$0xff]  ;;  %v8353_v11 = vld [vmem:[%s13314_s5 + $0x308] sm:$0xff]  ;;  %v4680_v32 = vld [vmem:[#allocation4 + $0x248] sm:$0xff] }
 0x3ca   :  { %v5392_v13 = vld [vmem:[#allocation4 + $0x1d8] sm:$0xff]  ;;  %5645 = vst [vmem:[#allocation4 + $0x1e0] sm:$0xff] %v5565_v36  ;;  %v5487_v38 = vadd.f32 %v11710_v45, %v5235_v52  ;;  %9367 = vmatpush1.bf16.msra.mxu1 %v9366_v5  ;;  %9260 = vmatprep.subr.bf16.mxu0 %v9739_v31  ;;  %v9408_v52 = vpack.c.bf16 %v8453_v2, %v8452_v61 }
 0x3cb   :  { %5642 = vst.msk [vmem:[#allocation4 + $0x1c8] sm:$0xff] %vm2349_vm3, %v5562_v17  ;;  %v5484_v27 = vadd.f32 %v11726_v35, %v5392_v13  ;;  %5316 = vst.msk [vmem:[#allocation4 + $0x1f8] sm:$0xff] %vm2349_vm3, %v5236_v33  ;;  %v5126_v37 = vpop.f32.mrb[8].mxu1  ;;  %9398 = vmatprep.subr.bf16.mxu1 %v9739_v31  ;;  %v4677_v33 = vld [vmem:[#allocation4 + $0x230] sm:$0xff]  ;;  %v8454_v13 = vld [vmem:[%s13314_s5 + $0x5e0] sm:$0xff]  ;;  %v9273_v43 = vpack.c.bf16 %v8353_v11, %v8352_v1 }
 0x3cc   :  { %v5567_v62 = vmax.f32 %v5487_v38, 0.0  ;;  %v5237_v23 = vadd.f32 %v5126_v37, %v4671_v9  ;;  %v5128_v26 = vpop.f32.mrb[9].mxu1  ;;  %v8455_v38 = vld [vmem:[%s13314_s5 + $0x5e8] sm:$0xff]  ;;  %v4684_v1 = vld [vmem:[#allocation4 + $0x268] sm:$0xff] }
 0x3cd   :  { %v5564_v51 = vmax.f32 %v5484_v27, 0.0  ;;  %6512 = vmatmul.mubr.f32.vlgmr.msra.gmra.mrb[32].mxu1 %v5533_v22  ;;  %v5238_v29 = vadd.f32 %v5128_v26, %v4672_v25  ;;  %9262 = vmatpush1.bf16.msra.mxu0 %v9261_v12  ;;  %v8354_v25 = vld [vmem:[%s13314_s5 + $0x310] sm:$0xff]  ;;  %v8355_v26 = vld [vmem:[%s13314_s5 + $0x318] sm:$0xff] }
 0x3ce   :  { %v5394_v63 = vld [vmem:[#allocation4 + $0x1e8] sm:$0xff]  ;;  %5647 = vst [vmem:[#allocation4 + $0x1f0] sm:$0xff] %v5567_v62  ;;  %v5489_v14 = vadd.f32 %v11710_v45, %v5237_v23  ;;  %8423 = vmatprep.mubr.msk.f32.mxu1 %vm2349_vm3, %v6419_v30  ;;  %9400 = vmatpush1.bf16.msra.mxu1 %v9399_v50  ;;  %v9411_v23 = vpack.c.bf16 %v8455_v38, %v8454_v13  ;;  %v4685_v13 = vld [vmem:[#allocation4 + $0x270] sm:$0xff] }
 0x3cf   :  { %5644 = vst.msk [vmem:[#allocation4 + $0x1d8] sm:$0xff] %vm2349_vm3, %v5564_v51  ;;  %v5486_v22 = vadd.f32 %v11726_v35, %v5394_v63  ;;  %5318 = vst.msk [vmem:[#allocation4 + $0x208] sm:$0xff] %vm2349_vm3, %v5238_v29  ;;  %v5132_v58 = vpop.f32.mrb[10].mxu1  ;;  %9263 = vmatprep.subr.bf16.mxu0 %v9739_v31  ;;  %9401 = vmatprep.subr.bf16.mxu1 %v9739_v31  ;;  %v4679_v29 = vld [vmem:[#allocation4 + $0x240] sm:$0xff]  ;;  %v8457_v63 = vld [vmem:[%s13314_s5 + $0x5f8] sm:$0xff] }
 0x3d0   :  { %v5569_v15 = vmax.f32 %v5489_v14, 0.0  ;;  %v5239_v41 = vadd.f32 %v5132_v58, %v4673_v16  ;;  %v5134_v42 = vpop.f32.mrb[11].mxu1  ;;  %v9276_v58 = vpack.c.bf16 %v8355_v26, %v8354_v25 }
 0x3d1   :  { %v5566_v3 = vmax.f32 %v5486_v22, 0.0  ;;  %6517 = vmatmul.mubr.f32.gmra.mrb[34].mxu1 %v5535_v49  ;;  %v5240_v47 = vadd.f32 %v5134_v42, %v4674_v44  ;;  %9265 = vmatpush1.bf16.msra.mxu0 %v9264_v57  ;;  %v8456_v57 = vld [vmem:[%s13314_s5 + $0x5f0] sm:$0xff]  ;;  %v8381_v44 = vld [vmem:[%s13314_s5 + $0x3c8] sm:$0xff] }
 0x3d2   :  { %v5396_v54 = vld [vmem:[#allocation4 + $0x1f8] sm:$0xff]  ;;  %5649 = vst [vmem:[#allocation4 + $0x200] sm:$0xff] %v5569_v15  ;;  %v5491_v4 = vadd.f32 %v11710_v45, %v5239_v41  ;;  %9403 = vmatpush1.bf16.msra.mxu1 %v9402_v40  ;;  %8466 = vmatprep.mubr.msk.f32.mxu1 %vm2349_vm3, %v6633_v53  ;;  %v9414_v15 = vpack.c.bf16 %v8457_v63, %v8456_v57 }
 0x3d3   :  { %5646 = vst.msk [vmem:[#allocation4 + $0x1e8] sm:$0xff] %vm2349_vm3, %v5566_v3  ;;  %v5488_v49 = vadd.f32 %v11726_v35, %v5396_v54  ;;  %5320 = vst.msk [vmem:[#allocation4 + $0x218] sm:$0xff] %vm2349_vm3, %v5240_v47  ;;  %v5138_v59 = vpop.f32.mrb[12].mxu1  ;;  %9266 = vmatprep.subr.bf16.mxu0 %v9739_v31  ;;  %9404 = vmatprep.subr.bf16.mxu1 %v9739_v31  ;;  %v8380_v41 = vld [vmem:[%s13314_s5 + $0x3c0] sm:$0xff]  ;;  %v4681_v3 = vld [vmem:[#allocation4 + $0x250] sm:$0xff] }
 0x3d4   :  { %v5571_v5 = vmax.f32 %v5491_v4, 0.0  ;;  %v5241_v7 = vadd.f32 %v5138_v59, %v4675_v55  ;;  %v5140_v24 = vpop.f32.mrb[13].mxu1  ;;  %v8458_v53 = vld [vmem:[%s13314_s5 + $0x600] sm:$0xff]  ;;  %v4683_v55 = vld [vmem:[#allocation4 + $0x260] sm:$0xff]  ;;  %v9309_v59 = vpack.c.bf16 %v8381_v44, %v8380_v41 }
 0x3d5   :  { %v5568_v48 = vmax.f32 %v5488_v49, 0.0  ;;  %v5242_v10 = vadd.f32 %v5140_v24, %v4676_v20  ;;  %9268 = vmatpush1.bf16.msra.mxu0 %v9267_v19  ;;  %v8459_v19 = vld [vmem:[%s13314_s5 + $0x608] sm:$0xff]  ;;  %v8383_v20 = vld [vmem:[%s13314_s5 + $0x3d8] sm:$0xff] }
 0x3d6   :  { %v5398_v21 = vld [vmem:[#allocation4 + $0x208] sm:$0xff]  ;;  %5651 = vst [vmem:[#allocation4 + $0x210] sm:$0xff] %v5571_v5  ;;  %v5493_v36 = vadd.f32 %v11710_v45, %v5241_v7  ;;  %9406 = vmatpush1.bf16.msra.mxu1 %v9405_v46  ;;  %9269 = vmatprep.subr.bf16.mxu0 %v9739_v31  ;;  %v4682_v46 = vld [vmem:[#allocation4 + $0x258] sm:$0xff]  ;;  %v9417_v5 = vpack.c.bf16 %v8459_v19, %v8458_v53 }
 0x3d7   :  { %5648 = vst.msk [vmem:[#allocation4 + $0x1f8] sm:$0xff] %vm2349_vm3, %v5568_v48  ;;  %v5490_v17 = vadd.f32 %v11726_v35, %v5398_v21  ;;  %5322 = vst.msk [vmem:[#allocation4 + $0x228] sm:$0xff] %vm2349_vm3, %v5242_v10  ;;  %v5144_v12 = vpop.f32.mrb[14].mxu1  ;;  %9407 = vmatprep.subr.bf16.mxu1 %v9739_v31  ;;  %v8382_v7 = vld [vmem:[%s13314_s5 + $0x3d0] sm:$0xff]  ;;  %v6092_v10 = vld [vmem:[#allocation4 + $0x80] sm:$0xff] }
 0x3d8   :  { %v5573_v50 = vmax.f32 %v5493_v36, 0.0  ;;  %v5243_v0 = vadd.f32 %v5144_v12, %v4677_v33  ;;  %v5146_v27 = vpop.f32.mrb[15].mxu1  ;;  %v8461_v21 = vld [vmem:[%s13314_s5 + $0x618] sm:$0xff]  ;;  %v9312_v38 = vpack.c.bf16 %v8383_v20, %v8382_v7  ;;  %v8490_v19 = vld [vmem:[%s13314_s5 + $0x6e0] sm:$0xff] }
 0x3d9   :  { %v5570_v9 = vmax.f32 %v5490_v17, 0.0  ;;  %v5244_v37 = vadd.f32 %v5146_v27, %v4678_v18  ;;  %9271 = vmatpush1.bf16.msra.mxu0 %v9270_v6  ;;  %v8460_v6 = vld [vmem:[%s13314_s5 + $0x610] sm:$0xff]  ;;  %v6095_v17 = vld [vmem:[#allocation4 + $0x98] sm:$0xff] }
 0x3da   :  { %v5400_v56 = vld [vmem:[#allocation4 + $0x218] sm:$0xff]  ;;  %5653 = vst [vmem:[#allocation4 + $0x220] sm:$0xff] %v5573_v50  ;;  %v5495_v62 = vadd.f32 %v11710_v45, %v5243_v0  ;;  %9409 = vmatpush1.bf16.msra.mxu1 %v9408_v52  ;;  %9272 = vmatprep.subr.bf16.mxu0 %v9739_v31  ;;  %v9420_v18 = vpack.c.bf16 %v8461_v21, %v8460_v6  ;;  %v8495_v21 = vld [vmem:[%s13314_s5 + $0x708] sm:$0xff] }
 0x3db   :  { %5650 = vst.msk [vmem:[#allocation4 + $0x208] sm:$0xff] %vm2349_vm3, %v5570_v9  ;;  %v5492_v51 = vadd.f32 %v11726_v35, %v5400_v56  ;;  %5324 = vst.msk [vmem:[#allocation4 + $0x238] sm:$0xff] %vm2349_vm3, %v5244_v37  ;;  %v5150_v30 = vpop.f32.mrb[16].mxu1  ;;  %9410 = vmatprep.subr.bf16.mxu1 %v9739_v31  ;;  %v8384_v27 = vld [vmem:[%s13314_s5 + $0x3e0] sm:$0xff]  ;;  %v8385_v9 = vld [vmem:[%s13314_s5 + $0x3e8] sm:$0xff] }
 0x3dc   :  { %v5575_v14 = vmax.f32 %v5495_v62, 0.0  ;;  %v5245_v40 = vadd.f32 %v5150_v30, %v4679_v29  ;;  %v5152_v60 = vpop.f32.mrb[17].mxu1  ;;  %v6094_v56 = vld [vmem:[#allocation4 + $0x90] sm:$0xff]  ;;  %v8462_v62 = vld [vmem:[%s13314_s5 + $0x620] sm:$0xff]  ;;  %v6309_v30 = vld [vmem:[#allocation4 + $0xc8] sm:$0xff] }
 0x3dd   :  { %v5572_v22 = vmax.f32 %v5492_v51, 0.0  ;;  %v5246_v16 = vadd.f32 %v5152_v60, %v4680_v32  ;;  %9274 = vmatpush1.bf16.msra.mxu0 %v9273_v43  ;;  %v4686_v51 = vld [vmem:[#allocation4 + $0x278] sm:$0xff] }
 0x3de   :  { %v5402_v34 = vld [vmem:[#allocation4 + $0x228] sm:$0xff]  ;;  %5655 = vst [vmem:[#allocation4 + $0x230] sm:$0xff] %v5575_v14  ;;  %v5497_v39 = vadd.f32 %v11710_v45, %v5245_v40  ;;  %9412 = vmatpush1.bf16.msra.mxu1 %v9411_v23  ;;  %9275 = vmatprep.subr.bf16.mxu0 %v9739_v31  ;;  %v8463_v23 = vld [vmem:[%s13314_s5 + $0x628] sm:$0xff]  ;;  %v9315_v14 = vpack.c.bf16 %v8385_v9, %v8384_v27  ;;  %v6635_v20 = vld [vmem:[#allocation4 + $0x138] sm:$0xff] }
 0x3df   :  { %5652 = vst.msk [vmem:[#allocation4 + $0x218] sm:$0xff] %vm2349_vm3, %v5572_v22  ;;  %v5494_v42 = vadd.f32 %v11726_v35, %v5402_v34  ;;  %5326 = vst.msk [vmem:[#allocation4 + $0x248] sm:$0xff] %vm2349_vm3, %v5246_v16  ;;  %v5156_v47 = vpop.f32.mrb[18].mxu1  ;;  %9413 = vmatprep.subr.bf16.mxu1 %v9739_v31  ;;  %v9423_v60 = vpack.c.bf16 %v8463_v23, %v8462_v62  ;;  %v8386_v22 = vld [vmem:[%s13314_s5 + $0x3f0] sm:$0xff]  ;;  %v8387_v16 = vld [vmem:[%s13314_s5 + $0x3f8] sm:$0xff] }
 0x3e0   :  { %v5577_v54 = vmax.f32 %v5497_v39, 0.0  ;;  %v5247_v4 = vadd.f32 %v5156_v47, %v4681_v3  ;;  %v5158_v8 = vpop.f32.mrb[19].mxu1  ;;  %v8465_v34 = vld [vmem:[%s13314_s5 + $0x638] sm:$0xff]  ;;  %v9318_v41 = vpack.c.bf16 %v8387_v16, %v8386_v22  ;;  %v8388_v3 = vld [vmem:[%s13314_s5 + $0x400] sm:$0xff]  ;;  %v8389_v47 = vld [vmem:[%s13314_s5 + $0x408] sm:$0xff] }
 0x3e1   :  { %v5574_v28 = vmax.f32 %v5494_v42, 0.0  ;;  %v5248_v49 = vadd.f32 %v5158_v8, %v4682_v46  ;;  %9277 = vmatpush1.bf16.msra.mxu0 %v9276_v58  ;;  %v9321_v46 = vpack.c.bf16 %v8389_v47, %v8388_v3  ;;  %v8494_v6 = vld [vmem:[%s13314_s5 + $0x700] sm:$0xff]  ;;  %v8499_v9 = vld [vmem:[%s13314_s5 + $0x728] sm:$0xff]  ;;  %v8399_v62 = vld [vmem:[%s13314_s5 + $0x458] sm:$0xff] }
 0x3e2   :  { %v5404_v61 = vld [vmem:[#allocation4 + $0x238] sm:$0xff]  ;;  %5657 = vst [vmem:[#allocation4 + $0x240] sm:$0xff] %v5577_v54  ;;  %v5499_v2 = vadd.f32 %v11710_v45, %v5247_v4  ;;  %9415 = vmatpush1.bf16.msra.mxu1 %v9414_v15  ;;  %9308 = vmatprep.subr.bf16.mxu0 %v9739_v31  ;;  %v8491_v54 = vld [vmem:[%s13314_s5 + $0x6e8] sm:$0xff]  ;;  %v8500_v23 = vld [vmem:[%s13314_s5 + $0x730] sm:$0xff] }
 0x3e3   :  { %5654 = vst.msk [vmem:[#allocation4 + $0x228] sm:$0xff] %vm2349_vm3, %v5574_v28  ;;  %v5496_v24 = vadd.f32 %v11726_v35, %v5404_v61  ;;  %5328 = vst.msk [vmem:[#allocation4 + $0x258] sm:$0xff] %vm2349_vm3, %v5248_v49  ;;  %v5162_v48 = vpop.f32.mrb[20].mxu1  ;;  %9416 = vmatprep.subr.bf16.mxu1 %v9739_v31  ;;  %v9459_v28 = vpack.c.bf16 %v8491_v54, %v8490_v19  ;;  %v8390_v49 = vld [vmem:[%s13314_s5 + $0x410] sm:$0xff]  ;;  %v8498_v27 = vld [vmem:[%s13314_s5 + $0x720] sm:$0xff] }
 0x3e4   :  { %v5579_v36 = vmax.f32 %v5499_v2, 0.0  ;;  %v5249_v52 = vadd.f32 %v5162_v48, %v4683_v55  ;;  %6188 = vmatmul.mubr.f32.vlgmr.msra.gmra.mrb[252].mxu0 %v6092_v10  ;;  %v5164_v11 = vpop.f32.mrb[21].mxu1  ;;  %v8391_v55 = vld [vmem:[%s13314_s5 + $0x418] sm:$0xff]  ;;  %v8492_v61 = vld [vmem:[%s13314_s5 + $0x6f0] sm:$0xff]  ;;  %v8392_v48 = vld [vmem:[%s13314_s5 + $0x420] sm:$0xff] }
 0x3e5   :  { %v5576_v33 = vmax.f32 %v5496_v24, 0.0  ;;  %v5250_v12 = vadd.f32 %v5164_v11, %v4684_v1  ;;  %8357 = vmatprep.mubr.msk.f32.mxu0 %vm2349_vm3, %v6095_v17  ;;  %9310 = vmatpush1.bf16.msra.mxu0 %v9309_v59  ;;  %v8493_v2 = vld [vmem:[%s13314_s5 + $0x6f8] sm:$0xff]  ;;  %v9324_v24 = vpack.c.bf16 %v8391_v55, %v8390_v49  ;;  %v8393_v10 = vld [vmem:[%s13314_s5 + $0x428] sm:$0xff]  ;;  %v9465_v11 = vpack.c.bf16 %v8495_v21, %v8494_v6  ;;  %v8394_v17 = vld [vmem:[%s13314_s5 + $0x430] sm:$0xff] }
 0x3e6   :  { %v5406_v50 = vld [vmem:[#allocation4 + $0x248] sm:$0xff]  ;;  %5659 = vst [vmem:[#allocation4 + $0x250] sm:$0xff] %v5579_v36  ;;  %v5501_v0 = vadd.f32 %v11710_v45, %v5249_v52  ;;  %9418 = vmatpush1.bf16.msra.mxu1 %v9417_v5  ;;  %9311 = vmatprep.subr.bf16.mxu0 %v9739_v31  ;;  %v6632_v5 = vld [vmem:[#allocation4 + $0x120] sm:$0xff]  ;;  %v6634_v36 = vld [vmem:[#allocation4 + $0x130] sm:$0xff]  ;;  %v9327_v1 = vpack.c.bf16 %v8393_v10, %v8392_v48 }
 0x3e7   :  { %5656 = vst.msk [vmem:[#allocation4 + $0x238] sm:$0xff] %vm2349_vm3, %v5576_v33  ;;  %v5498_v37 = vadd.f32 %v11726_v35, %v5406_v50  ;;  %5330 = vst.msk [vmem:[#allocation4 + $0x268] sm:$0xff] %vm2349_vm3, %v5250_v12  ;;  %v5168_v43 = vpop.f32.mrb[22].mxu1  ;;  %9419 = vmatprep.subr.bf16.mxu1 %v9739_v31  ;;  %v6849_v52 = vld [vmem:[#allocation4 + $0x168] sm:$0xff]  ;;  %v8395_v33 = vld [vmem:[%s13314_s5 + $0x438] sm:$0xff] }
 0x3e8   :  { %v5581_v25 = vmax.f32 %v5501_v0, 0.0  ;;  %v5251_v26 = vadd.f32 %v5168_v43, %v4685_v13  ;;  %6193 = vmatmul.mubr.f32.gmra.mrb[254].mxu0 %v6094_v56  ;;  %v5170_v29 = vpop.f32.mrb[23].mxu1  ;;  %v8496_v12 = vld [vmem:[%s13314_s5 + $0x710] sm:$0xff]  ;;  %v8497_v13 = vld [vmem:[%s13314_s5 + $0x718] sm:$0xff]  ;;  %v8396_v0 = vld [vmem:[%s13314_s5 + $0x440] sm:$0xff]  ;;  %v9471_v43 = vpack.c.bf16 %v8499_v9, %v8498_v27 }
 0x3e9   :  { %v5578_v57 = vmax.f32 %v5498_v37, 0.0  ;;  %v5252_v63 = vadd.f32 %v5170_v29, %v4686_v51  ;;  %9313 = vmatpush1.bf16.msra.mxu0 %v9312_v38  ;;  %8400 = vmatprep.mubr.msk.f32.mxu0 %vm2349_vm3, %v6309_v30  ;;  %v9330_v38 = vpack.c.bf16 %v8395_v33, %v8394_v17  ;;  %v9468_v50 = vpack.c.bf16 %v8497_v13, %v8496_v12  ;;  %v8398_v56 = vld [vmem:[%s13314_s5 + $0x450] sm:$0xff]  ;;  %v8424_v29 = vld [vmem:[%s13314_s5 + $0x500] sm:$0xff]  ;;  %v8425_v30 = vld [vmem:[%s13314_s5 + $0x508] sm:$0xff] }
 0x3ea   :  { %v5408_v40 = vld [vmem:[#allocation4 + $0x258] sm:$0xff]  ;;  %5661 = vst [vmem:[#allocation4 + $0x260] sm:$0xff] %v5581_v25  ;;  %v5503_v32 = vadd.f32 %v11710_v45, %v5251_v26  ;;  %9421 = vmatpush1.bf16.msra.mxu1 %v9420_v18  ;;  %9314 = vmatprep.subr.bf16.mxu0 %v9739_v31  ;;  %v8464_v45 = vld [vmem:[%s13314_s5 + $0x630] sm:$0xff]  ;;  %v8397_v18 = vld [vmem:[%s13314_s5 + $0x448] sm:$0xff]  ;;  %v9336_v26 = vpack.c.bf16 %v8399_v62, %v8398_v56 }
 0x3eb   :  { %5658 = vst.msk [vmem:[#allocation4 + $0x248] sm:$0xff] %vm2349_vm3, %v5578_v57  ;;  %v5500_v58 = vadd.f32 %v11726_v35, %v5408_v40  ;;  %5332 = vst.msk [vmem:[#allocation4 + $0x278] sm:$0xff] %vm2349_vm3, %v5252_v63  ;;  %9422 = vmatprep.subr.bf16.mxu1 %v9739_v31  ;;  %v9426_v42 = vpack.c.bf16 %v8465_v34, %v8464_v45  ;;  %v9333_v37 = vpack.c.bf16 %v8397_v18, %v8396_v0  ;;  %v8501_v25 = vld [vmem:[%s13314_s5 + $0x738] sm:$0xff]  ;;  %v8502_v57 = vld [vmem:[%s13314_s5 + $0x740] sm:$0xff] }
 0x3ec   :  { %v5583_v39 = vmax.f32 %v5503_v32, 0.0  ;;  %v9474_v51 = vpack.c.bf16 %v8501_v25, %v8500_v23  ;;  %v8503_v63 = vld [vmem:[%s13314_s5 + $0x748] sm:$0xff]  ;;  %v8426_v32 = vld [vmem:[%s13314_s5 + $0x510] sm:$0xff]  ;;  %v6311_v45 = vld [vmem:[#allocation4 + $0xd8] sm:$0xff] }
 0x3ed   :  { %v5580_v15 = vmax.f32 %v5500_v58, 0.0  ;;  %9316 = vmatpush1.bf16.msra.mxu0 %v9315_v14  ;;  %v9369_v14 = vpack.c.bf16 %v8425_v30, %v8424_v29  ;;  %v9477_v40 = vpack.c.bf16 %v8503_v63, %v8502_v57  ;;  %v6308_v22 = vld [vmem:[#allocation4 + $0xc0] sm:$0xff]  ;;  %v8504_v16 = vld [vmem:[%s13314_s5 + $0x750] sm:$0xff]  ;;  %v8505_v58 = vld [vmem:[%s13314_s5 + $0x758] sm:$0xff] }
 0x3ee   :  { %v5410_v44 = vld [vmem:[#allocation4 + $0x268] sm:$0xff]  ;;  %5663 = vst [vmem:[#allocation4 + $0x270] sm:$0xff] %v5583_v39  ;;  %9424 = vmatpush1.bf16.msra.mxu1 %v9423_v60  ;;  %9317 = vmatprep.subr.bf16.mxu0 %v9739_v31  ;;  %v8427_v60 = vld [vmem:[%s13314_s5 + $0x518] sm:$0xff]  ;;  %v9480_v39 = vpack.c.bf16 %v8505_v58, %v8504_v16  ;;  %v8507_v3 = vld [vmem:[%s13314_s5 + $0x768] sm:$0xff] }
 0x3ef   :  { %5660 = vst.msk [vmem:[#allocation4 + $0x258] sm:$0xff] %vm2349_vm3, %v5580_v15  ;;  %v5502_v53 = vadd.f32 %v11726_v35, %v5410_v44  ;;  %9425 = vmatprep.subr.bf16.mxu1 %v9739_v31  ;;  %v9372_v34 = vpack.c.bf16 %v8427_v60, %v8426_v32  ;;  %v8428_v15 = vld [vmem:[%s13314_s5 + $0x520] sm:$0xff]  ;;  %v6310_v44 = vld [vmem:[#allocation4 + $0xd0] sm:$0xff]  ;;  %v6525_v47 = vld [vmem:[#allocation4 + $0x108] sm:$0xff] }
 0x3f0   :  { %v8430_v54 = vld [vmem:[%s13314_s5 + $0x530] sm:$0xff]  ;;  %v8432_v55 = vld [vmem:[%s13314_s5 + $0x540] sm:$0xff]  ;;  %v8537_v48 = vld [vmem:[%s13314_s5 + $0x838] sm:$0xff] }
 0x3f1   :  { %v5582_v4 = vmax.f32 %v5502_v53, 0.0  ;;  %9319 = vmatpush1.bf16.msra.mxu0 %v9318_v41  ;;  %v8429_v41 = vld [vmem:[%s13314_s5 + $0x528] sm:$0xff]  ;;  %v6851_v6 = vld [vmem:[#allocation4 + $0x178] sm:$0xff]  ;;  %v6850_v33 = vld [vmem:[#allocation4 + $0x170] sm:$0xff] }
 0x3f2   :  { %v5412_v8 = vld [vmem:[#allocation4 + $0x278] sm:$0xff]  ;;  %9427 = vmatpush1.bf16.msra.mxu1 %v9426_v42  ;;  %9320 = vmatprep.subr.bf16.mxu0 %v9739_v31  ;;  %v9375_v53 = vpack.c.bf16 %v8429_v41, %v8428_v15  ;;  %v6848_v10 = vld [vmem:[#allocation4 + $0x160] sm:$0xff]  ;;  %v7065_v12 = vld [vmem:[#allocation4 + $0x1a8] sm:$0xff] }
 0x3f3   :  { %5662 = vst.msk [vmem:[#allocation4 + $0x268] sm:$0xff] %vm2349_vm3, %v5582_v4  ;;  %v5504_v59 = vadd.f32 %v11726_v35, %v5412_v8  ;;  %9458 = vmatprep.subr.bf16.mxu1 %v9739_v31  ;;  %v9462_v35 = vpack.c.bf16 %v8493_v2, %v8492_v61  ;;  %v8506_v42 = vld [vmem:[%s13314_s5 + $0x760] sm:$0xff]  ;;  %v8431_v4 = vld [vmem:[%s13314_s5 + $0x538] sm:$0xff]  ;;  %v8535_v2 = vld [vmem:[%s13314_s5 + $0x828] sm:$0xff] }
 0x3f4   :  { %v9483_v19 = vpack.c.bf16 %v8507_v3, %v8506_v42  ;;  %v8509_v8 = vld [vmem:[%s13314_s5 + $0x778] sm:$0xff]  ;;  %v8534_v61 = vld [vmem:[%s13314_s5 + $0x820] sm:$0xff]  ;;  %v8539_v17 = vld [vmem:[%s13314_s5 + $0x848] sm:$0xff] }
 0x3f5   :  { %v5584_v7 = vmax.f32 %v5504_v59, 0.0  ;;  %6728 = vmatmul.mubr.f32.vlgmr.msra.gmra.mrb[36].mxu1 %v6632_v5  ;;  %9322 = vmatpush1.bf16.msra.mxu0 %v9321_v46  ;;  %v8508_v46 = vld [vmem:[%s13314_s5 + $0x770] sm:$0xff]  ;;  %v8433_v59 = vld [vmem:[%s13314_s5 + $0x548] sm:$0xff]  ;;  %v8439_v0 = vld [vmem:[%s13314_s5 + $0x578] sm:$0xff] }
 0x3f6   :  { %8467 = vmatprep.mubr.msk.f32.mxu1 %vm2349_vm3, %v6635_v20  ;;  %9460 = vmatpush1.bf16.msra.mxu1 %v9459_v28  ;;  %v9378_v28 = vpack.c.bf16 %v8431_v4, %v8430_v54  ;;  %v9486_v49 = vpack.c.bf16 %v8509_v8, %v8508_v46  ;;  %v9381_v5 = vpack.c.bf16 %v8433_v59, %v8432_v55  ;;  %v8434_v20 = vld [vmem:[%s13314_s5 + $0x550] sm:$0xff]  ;;  %v8541_v27 = vld [vmem:[%s13314_s5 + $0x858] sm:$0xff]  ;;  %v8441_v56 = vld [vmem:[%s13314_s5 + $0x588] sm:$0xff] }
 0x3f7   :  { %5664 = vst.msk [vmem:[#allocation4 + $0x278] sm:$0xff] %vm2349_vm3, %v5584_v7  ;;  %9323 = vmatprep.subr.bf16.mxu0 %v9739_v31  ;;  %9461 = vmatprep.subr.bf16.mxu1 %v9739_v31  ;;  %v9519_v7 = vpack.c.bf16 %v8535_v2, %v8534_v61  ;;  %v8540_v18 = vld [vmem:[%s13314_s5 + $0x850] sm:$0xff]  ;;  %v8542_v62 = vld [vmem:[%s13314_s5 + $0x860] sm:$0xff]  ;;  %v8543_v23 = vld [vmem:[%s13314_s5 + $0x868] sm:$0xff] }
 0x3f8   :  { %v8443_v29 = vld [vmem:[%s13314_s5 + $0x598] sm:$0xff]  ;;  %v8544_v30 = vld [vmem:[%s13314_s5 + $0x870] sm:$0xff]  ;;  %v8469_v32 = vld [vmem:[%s13314_s5 + $0x648] sm:$0xff] }
 0x3f9   :  { %6733 = vmatmul.mubr.f32.gmra.mrb[38].mxu1 %v6634_v36  ;;  %9325 = vmatpush1.bf16.msra.mxu0 %v9324_v24  ;;  %v8435_v24 = vld [vmem:[%s13314_s5 + $0x558] sm:$0xff]  ;;  %v8546_v60 = vld [vmem:[%s13314_s5 + $0x880] sm:$0xff]  ;;  %v8548_v15 = vld [vmem:[%s13314_s5 + $0x890] sm:$0xff] }
 0x3fa   :  { %9463 = vmatpush1.bf16.msra.mxu1 %v9462_v35  ;;  %8510 = vmatprep.mubr.msk.f32.mxu1 %vm2349_vm3, %v6849_v52  ;;  %v8536_v35 = vld [vmem:[%s13314_s5 + $0x830] sm:$0xff]  ;;  %v9384_v21 = vpack.c.bf16 %v8435_v24, %v8434_v20  ;;  %v8436_v52 = vld [vmem:[%s13314_s5 + $0x560] sm:$0xff]  ;;  %v8545_v57 = vld [vmem:[%s13314_s5 + $0x878] sm:$0xff] }
 0x3fb   :  { %9326 = vmatprep.subr.bf16.mxu0 %v9739_v31  ;;  %9464 = vmatprep.subr.bf16.mxu1 %v9739_v31  ;;  %v9522_v36 = vpack.c.bf16 %v8537_v48, %v8536_v35  ;;  %v8549_v41 = vld [vmem:[%s13314_s5 + $0x898] sm:$0xff]  ;;  %v8550_v54 = vld [vmem:[%s13314_s5 + $0x8a0] sm:$0xff]  ;;  %v8551_v4 = vld [vmem:[%s13314_s5 + $0x8a8] sm:$0xff] }
 0x3fc   :  { %v9540_v3 = vpack.c.bf16 %v8549_v41, %v8548_v15  ;;  %v6741_v46 = vld [vmem:[#allocation4 + $0x148] sm:$0xff]  ;;  %v8475_v55 = vld [vmem:[%s13314_s5 + $0x678] sm:$0xff]  ;;  %v8477_v20 = vld [vmem:[%s13314_s5 + $0x688] sm:$0xff] }
 0x3fd   :  { %9328 = vmatpush1.bf16.msra.mxu0 %v9327_v1  ;;  %v8437_v1 = vld [vmem:[%s13314_s5 + $0x568] sm:$0xff]  ;;  %v8552_v59 = vld [vmem:[%s13314_s5 + $0x8b0] sm:$0xff]  ;;  %v8553_v61 = vld [vmem:[%s13314_s5 + $0x8b8] sm:$0xff] }
 0x3fe   :  { %9466 = vmatpush1.bf16.msra.mxu1 %v9465_v11  ;;  %9329 = vmatprep.subr.bf16.mxu0 %v9739_v31  ;;  %v8538_v11 = vld [vmem:[%s13314_s5 + $0x840] sm:$0xff]  ;;  %v9387_v13 = vpack.c.bf16 %v8437_v1, %v8436_v52  ;;  %v8579_v48 = vld [vmem:[%s13314_s5 + $0x968] sm:$0xff]  ;;  %v8479_v52 = vld [vmem:[%s13314_s5 + $0x698] sm:$0xff] }
 0x3ff   :  { %9467 = vmatprep.subr.bf16.mxu1 %v9739_v31  ;;  %v8578_v35 = vld [vmem:[%s13314_s5 + $0x960] sm:$0xff]  ;;  %v8589_v15 = vld [vmem:[%s13314_s5 + $0x9b8] sm:$0xff] }
 0x401   :  { %9331 = vmatpush1.bf16.msra.mxu0 %v9330_v38  ;;  %v9525_v38 = vpack.c.bf16 %v8539_v17, %v8538_v11  ;;  %v8580_v11 = vld [vmem:[%s13314_s5 + $0x970] sm:$0xff]  ;;  %v8581_v17 = vld [vmem:[%s13314_s5 + $0x978] sm:$0xff] }
 0x402   :  { %9469 = vmatpush1.bf16.msra.mxu1 %v9468_v50  ;;  %9332 = vmatprep.subr.bf16.mxu0 %v9739_v31  ;;  %v8438_v50 = vld [vmem:[%s13314_s5 + $0x570] sm:$0xff] }
 0x403   :  { %9470 = vmatprep.subr.bf16.mxu1 %v9739_v31  ;;  %v9390_v9 = vpack.c.bf16 %v8439_v0, %v8438_v50  ;;  %v9582_v50 = vpack.c.bf16 %v8581_v17, %v8580_v11  ;;  %v8480_v0 = vld [vmem:[%s13314_s5 + $0x6a0] sm:$0xff]  ;;  %v8596_v11 = vld [vmem:[%s13314_s5 + $0x9f0] sm:$0xff]  ;;  %v8597_v17 = vld [vmem:[%s13314_s5 + $0x9f8] sm:$0xff] }
 0x405   :  { %9334 = vmatpush1.bf16.msra.mxu0 %v9333_v37  ;;  %v9528_v37 = vpack.c.bf16 %v8541_v27, %v8540_v18  ;;  %v8481_v18 = vld [vmem:[%s13314_s5 + $0x6a8] sm:$0xff]  ;;  %v8582_v27 = vld [vmem:[%s13314_s5 + $0x980] sm:$0xff] }
 0x406   :  { %9472 = vmatpush1.bf16.msra.mxu1 %v9471_v43  ;;  %9335 = vmatprep.subr.bf16.mxu0 %v9739_v31  ;;  %v8440_v43 = vld [vmem:[%s13314_s5 + $0x580] sm:$0xff] }
 0x407   :  { %9473 = vmatprep.subr.bf16.mxu1 %v9739_v31  ;;  %v9393_v25 = vpack.c.bf16 %v8441_v56, %v8440_v43  ;;  %v7281_v43 = vld [vmem:[#allocation4 + $0x1e8] sm:$0xff]  ;;  %v9447_v56 = vpack.c.bf16 %v8481_v18, %v8480_v0  ;;  %v8622_v0 = vld [vmem:[%s13314_s5 + $0xaa0] sm:$0xff]  ;;  %v8623_v18 = vld [vmem:[%s13314_s5 + $0xaa8] sm:$0xff] }
 0x409   :  { %9337 = vmatpush1.bf16.msra.mxu0 %v9336_v26  ;;  %v9531_v26 = vpack.c.bf16 %v8543_v23, %v8542_v62  ;;  %v8482_v23 = vld [vmem:[%s13314_s5 + $0x6b0] sm:$0xff] }
 0x40a   :  { %9475 = vmatpush1.bf16.msra.mxu1 %v9474_v51  ;;  %9368 = vmatprep.subr.bf16.mxu0 %v9739_v31  ;;  %v8442_v51 = vld [vmem:[%s13314_s5 + $0x590] sm:$0xff] }
 0x40b   :  { %9476 = vmatprep.subr.bf16.mxu1 %v9739_v31  ;;  %v9396_v63 = vpack.c.bf16 %v8443_v29, %v8442_v51  ;;  %v8585_v51 = vld [vmem:[%s13314_s5 + $0x998] sm:$0xff] }
 0x40c   :  { %6404 = vmatmul.mubr.f32.vlgmr.msra.gmra.mrb[0].mxu0 %v6308_v22  ;;  %v8547_v22 = vld [vmem:[%s13314_s5 + $0x888] sm:$0xff] }
 0x40d   :  { %8401 = vmatprep.mubr.msk.f32.mxu0 %vm2349_vm3, %v6311_v45  ;;  %9370 = vmatpush1.bf16.msra.mxu0 %v9369_v14  ;;  %v9534_v14 = vpack.c.bf16 %v8545_v57, %v8544_v30  ;;  %v9537_v58 = vpack.c.bf16 %v8547_v22, %v8546_v60  ;;  %v8470_v45 = vld [vmem:[%s13314_s5 + $0x650] sm:$0xff]  ;;  %v8484_v57 = vld [vmem:[%s13314_s5 + $0x6c0] sm:$0xff] }
 0x40e   :  { %9478 = vmatpush1.bf16.msra.mxu1 %v9477_v40  ;;  %9371 = vmatprep.subr.bf16.mxu0 %v9739_v31  ;;  %v8468_v40 = vld [vmem:[%s13314_s5 + $0x640] sm:$0xff] }
 0x40f   :  { %9479 = vmatprep.subr.bf16.mxu1 %v9739_v31  ;;  %v9429_v16 = vpack.c.bf16 %v8469_v32, %v8468_v40  ;;  %v8586_v40 = vld [vmem:[%s13314_s5 + $0x9a0] sm:$0xff]  ;;  %v8587_v32 = vld [vmem:[%s13314_s5 + $0x9a8] sm:$0xff] }
 0x410   :  { %6409 = vmatmul.mubr.f32.gmra.mrb[2].mxu0 %v6310_v44  ;;  %v6527_v44 = vld [vmem:[#allocation4 + $0x118] sm:$0xff] }
 0x411   :  { %9373 = vmatpush1.bf16.msra.mxu0 %v9372_v34  ;;  %8444 = vmatprep.mubr.msk.f32.mxu0 %vm2349_vm3, %v6525_v47  ;;  %v8471_v34 = vld [vmem:[%s13314_s5 + $0x658] sm:$0xff]  ;;  %v8472_v47 = vld [vmem:[%s13314_s5 + $0x660] sm:$0xff] }
 0x412   :  { %9481 = vmatpush1.bf16.msra.mxu1 %v9480_v39  ;;  %9374 = vmatprep.subr.bf16.mxu0 %v9739_v31  ;;  %v6524_v39 = vld [vmem:[#allocation4 + $0x100] sm:$0xff]  ;;  %v9432_v42 = vpack.c.bf16 %v8471_v34, %v8470_v45  ;;  %v8487_v45 = vld [vmem:[%s13314_s5 + $0x6d8] sm:$0xff] }
 0x413   :  { %9482 = vmatprep.subr.bf16.mxu1 %v9739_v31 }
 0x415   :  { %9376 = vmatpush1.bf16.msra.mxu0 %v9375_v53  ;;  %v8473_v53 = vld [vmem:[%s13314_s5 + $0x668] sm:$0xff] }
 0x416   :  { %9484 = vmatpush1.bf16.msra.mxu1 %v9483_v19  ;;  %9377 = vmatprep.subr.bf16.mxu0 %v9739_v31  ;;  %v6526_v19 = vld [vmem:[#allocation4 + $0x110] sm:$0xff]  ;;  %v9435_v8 = vpack.c.bf16 %v8473_v53, %v8472_v47  ;;  %v8513_v47 = vld [vmem:[%s13314_s5 + $0x788] sm:$0xff]  ;;  %v8590_v53 = vld [vmem:[%s13314_s5 + $0x9c0] sm:$0xff] }
 0x417   :  { %9485 = vmatprep.subr.bf16.mxu1 %v9739_v31 }
 0x419   :  { %9379 = vmatpush1.bf16.msra.mxu0 %v9378_v28  ;;  %v9543_v28 = vpack.c.bf16 %v8551_v4, %v8550_v54 }
 0x41a   :  { %9487 = vmatpush1.bf16.msra.mxu1 %v9486_v49  ;;  %9380 = vmatprep.subr.bf16.mxu0 %v9739_v31  ;;  %v8474_v49 = vld [vmem:[%s13314_s5 + $0x670] sm:$0xff] }
 0x41b   :  { %9518 = vmatprep.subr.bf16.mxu1 %v9739_v31  ;;  %v9438_v2 = vpack.c.bf16 %v8475_v55, %v8474_v49  ;;  %v8592_v49 = vld [vmem:[%s13314_s5 + $0x9d0] sm:$0xff]  ;;  %v8593_v55 = vld [vmem:[%s13314_s5 + $0x9d8] sm:$0xff] }
 0x41d   :  { %6944 = vmatmul.mubr.f32.vlgmr.msra.gmra.mrb[40].mxu1 %v6848_v10  ;;  %9382 = vmatpush1.bf16.msra.mxu0 %v9381_v5  ;;  %v9546_v5 = vpack.c.bf16 %v8553_v61, %v8552_v59  ;;  %v6743_v59 = vld [vmem:[#allocation4 + $0x158] sm:$0xff] }
 0x41e   :  { %8511 = vmatprep.mubr.msk.f32.mxu1 %vm2349_vm3, %v6851_v6  ;;  %9520 = vmatpush1.bf16.msra.mxu1 %v9519_v7  ;;  %v8476_v7 = vld [vmem:[%s13314_s5 + $0x680] sm:$0xff] }
 0x41f   :  { %9383 = vmatprep.subr.bf16.mxu0 %v9739_v31  ;;  %9521 = vmatprep.subr.bf16.mxu1 %v9739_v31  ;;  %v9441_v6 = vpack.c.bf16 %v8477_v20, %v8476_v7  ;;  %v8517_v7 = vld [vmem:[%s13314_s5 + $0x7a8] sm:$0xff]  ;;  %v6742_v20 = vld [vmem:[#allocation4 + $0x150] sm:$0xff] }
 0x421   :  { %6949 = vmatmul.mubr.f32.gmra.mrb[42].mxu1 %v6850_v33  ;;  %9385 = vmatpush1.bf16.msra.mxu0 %v9384_v21  ;;  %v9579_v21 = vpack.c.bf16 %v8579_v48, %v8578_v35  ;;  %v7064_v33 = vld [vmem:[#allocation4 + $0x1a0] sm:$0xff]  ;;  %v8594_v35 = vld [vmem:[%s13314_s5 + $0x9e0] sm:$0xff] }
 0x422   :  { %9523 = vmatpush1.bf16.msra.mxu1 %v9522_v36  ;;  %8554 = vmatprep.mubr.msk.f32.mxu1 %vm2349_vm3, %v7065_v12  ;;  %v8478_v36 = vld [vmem:[%s13314_s5 + $0x690] sm:$0xff]  ;;  %v8595_v48 = vld [vmem:[%s13314_s5 + $0x9e8] sm:$0xff] }
 0x423   :  { %9386 = vmatprep.subr.bf16.mxu0 %v9739_v31  ;;  %9524 = vmatprep.subr.bf16.mxu1 %v9739_v31 }
 0x425   :  { %9388 = vmatpush1.bf16.msra.mxu0 %v9387_v13  ;;  %v7067_v13 = vld [vmem:[#allocation4 + $0x1b8] sm:$0xff] }
 0x426   :  { %9526 = vmatpush1.bf16.msra.mxu1 %v9525_v38  ;;  %9389 = vmatprep.subr.bf16.mxu0 %v9739_v31  ;;  %v9444_v38 = vpack.c.bf16 %v8479_v52, %v8478_v36  ;;  %v8518_v36 = vld [vmem:[%s13314_s5 + $0x7b0] sm:$0xff]  ;;  %v8519_v52 = vld [vmem:[%s13314_s5 + $0x7b8] sm:$0xff] }
 0x427   :  { %9527 = vmatprep.subr.bf16.mxu1 %v9739_v31 }
 0x429   :  { %9391 = vmatpush1.bf16.msra.mxu0 %v9390_v9  ;;  %v8583_v9 = vld [vmem:[%s13314_s5 + $0x988] sm:$0xff] }
 0x42a   :  { %9529 = vmatpush1.bf16.msra.mxu1 %v9528_v37  ;;  %9392 = vmatprep.subr.bf16.mxu0 %v9739_v31  ;;  %v7066_v37 = vld [vmem:[#allocation4 + $0x1b0] sm:$0xff]  ;;  %v9585_v62 = vpack.c.bf16 %v8583_v9, %v8582_v27 }
 0x42b   :  { %9530 = vmatprep.subr.bf16.mxu1 %v9739_v31 }
 0x42d   :  { %9394 = vmatpush1.bf16.msra.mxu0 %v9393_v25  ;;  %v8483_v25 = vld [vmem:[%s13314_s5 + $0x6b8] sm:$0xff] }
 0x42e   :  { %9532 = vmatpush1.bf16.msra.mxu1 %v9531_v26  ;;  %9395 = vmatprep.subr.bf16.mxu0 %v9739_v31  ;;  %v8584_v26 = vld [vmem:[%s13314_s5 + $0x990] sm:$0xff]  ;;  %v9450_v29 = vpack.c.bf16 %v8483_v25, %v8482_v23  ;;  %v8625_v25 = vld [vmem:[%s13314_s5 + $0xab8] sm:$0xff] }
 0x42f   :  { %9533 = vmatprep.subr.bf16.mxu1 %v9739_v31  ;;  %v9588_v30 = vpack.c.bf16 %v8585_v51, %v8584_v26 }
 0x431   :  { %9397 = vmatpush1.bf16.msra.mxu0 %v9396_v63  ;;  %v8485_v63 = vld [vmem:[%s13314_s5 + $0x6c8] sm:$0xff] }
 0x432   :  { %9535 = vmatpush1.bf16.msra.mxu1 %v9534_v14  ;;  %9428 = vmatprep.subr.bf16.mxu0 %v9739_v31  ;;  %v9453_v22 = vpack.c.bf16 %v8485_v63, %v8484_v57 }
 0x433   :  { %9536 = vmatprep.subr.bf16.mxu1 %v9739_v31 }
 0x434   :  { %6620 = vmatmul.mubr.f32.vlgmr.msra.gmra.mrb[4].mxu0 %v6524_v39  ;;  %v8588_v39 = vld [vmem:[%s13314_s5 + $0x9b0] sm:$0xff] }
 0x435   :  { %8445 = vmatprep.mubr.msk.f32.mxu0 %vm2349_vm3, %v6527_v44  ;;  %9430 = vmatpush1.bf16.msra.mxu0 %v9429_v16  ;;  %v9591_v16 = vpack.c.bf16 %v8587_v32, %v8586_v40  ;;  %v8524_v40 = vld [vmem:[%s13314_s5 + $0x7e0] sm:$0xff]  ;;  %v8525_v32 = vld [vmem:[%s13314_s5 + $0x7e8] sm:$0xff] }
 0x436   :  { %9538 = vmatpush1.bf16.msra.mxu1 %v9537_v58  ;;  %9431 = vmatprep.subr.bf16.mxu0 %v9739_v31  ;;  %v8486_v58 = vld [vmem:[%s13314_s5 + $0x6d0] sm:$0xff] }
 0x437   :  { %9539 = vmatprep.subr.bf16.mxu1 %v9739_v31  ;;  %v9456_v44 = vpack.c.bf16 %v8487_v45, %v8486_v58  ;;  %v9507_v58 = vpack.c.bf16 %v8525_v32, %v8524_v40  ;;  %v8565_v40 = vld [vmem:[%s13314_s5 + $0x908] sm:$0xff] }
 0x438   :  { %6625 = vmatmul.mubr.f32.gmra.mrb[6].mxu0 %v6526_v19  ;;  %v8591_v19 = vld [vmem:[%s13314_s5 + $0x9c8] sm:$0xff] }
 0x439   :  { %9433 = vmatpush1.bf16.msra.mxu0 %v9432_v42  ;;  %8488 = vmatprep.mubr.msk.f32.mxu0 %vm2349_vm3, %v6741_v46  ;;  %v9594_v42 = vpack.c.bf16 %v8589_v15, %v8588_v39  ;;  %v9597_v4 = vpack.c.bf16 %v8591_v19, %v8590_v53  ;;  %v8514_v46 = vld [vmem:[%s13314_s5 + $0x790] sm:$0xff]  ;;  %v8527_v15 = vld [vmem:[%s13314_s5 + $0x7f8] sm:$0xff]  ;;  %v8529_v53 = vld [vmem:[%s13314_s5 + $0x808] sm:$0xff] }
 0x43a   :  { %9541 = vmatpush1.bf16.msra.mxu1 %v9540_v3  ;;  %9434 = vmatprep.subr.bf16.mxu0 %v9739_v31  ;;  %v8512_v3 = vld [vmem:[%s13314_s5 + $0x780] sm:$0xff]  ;;  %v8526_v39 = vld [vmem:[%s13314_s5 + $0x7f0] sm:$0xff] }
 0x43b   :  { %9542 = vmatprep.subr.bf16.mxu1 %v9739_v31  ;;  %v9489_v54 = vpack.c.bf16 %v8513_v47, %v8512_v3  ;;  %v8528_v47 = vld [vmem:[%s13314_s5 + $0x800] sm:$0xff] }
 0x43c   :  { %v8630_v19 = vld [vmem:[%s13314_s5 + $0xae0] sm:$0xff] }
 0x43d   :  { %9436 = vmatpush1.bf16.msra.mxu0 %v9435_v8  ;;  %v8515_v8 = vld [vmem:[%s13314_s5 + $0x798] sm:$0xff] }
 0x43e   :  { %9544 = vmatpush1.bf16.msra.mxu1 %v9543_v28  ;;  %9437 = vmatprep.subr.bf16.mxu0 %v9739_v31  ;;  %v6740_v28 = vld [vmem:[#allocation4 + $0x140] sm:$0xff]  ;;  %v9492_v61 = vpack.c.bf16 %v8515_v8, %v8514_v46  ;;  %v9513_v8 = vpack.c.bf16 %v8529_v53, %v8528_v47 }
 0x43f   :  { %v12704_v24 = vpop.f32.mrb[240].mxu0  ;;  %9545 = vmatprep.subr.bf16.mxu1 %v9739_v31  ;;  %v7496_v53 = vld [vmem:[#allocation4 + $0x220] sm:$0xff] }
 0x440   :  { %v5788_v10 = vpop.f32.mrb[241].mxu0 }
 0x441   :  { %9439 = vmatpush1.bf16.msra.mxu0 %v9438_v2  ;;  %v9600_v2 = vpack.c.bf16 %v8593_v55, %v8592_v49  ;;  %v6957_v10 = vld [vmem:[#allocation4 + $0x188] sm:$0xff]  ;;  %v8531_v55 = vld [vmem:[%s13314_s5 + $0x818] sm:$0xff] }
 0x442   :  { %9547 = vmatpush1.bf16.msra.mxu1 %v9546_v5  ;;  %9440 = vmatprep.subr.bf16.mxu0 %v9739_v31  ;;  %v8516_v5 = vld [vmem:[%s13314_s5 + $0x7a0] sm:$0xff]  ;;  %v8530_v49 = vld [vmem:[%s13314_s5 + $0x810] sm:$0xff] }
 0x443   :  { %v12720_v1 = vpop.f32.mrb[242].mxu0  ;;  %9578 = vmatprep.subr.bf16.mxu1 %v9739_v31 }
 0x444   :  { %v5793_v12 = vpop.f32.mrb[243].mxu0 }
 0x445   :  { %7160 = vmatmul.mubr.f32.vlgmr.msra.gmra.mrb[44].mxu1 %v7064_v33  ;;  %9442 = vmatpush1.bf16.msra.mxu0 %v9441_v6  ;;  %v9495_v6 = vpack.c.bf16 %v8517_v7, %v8516_v5  ;;  %v9498_v33 = vpack.c.bf16 %v8519_v52, %v8518_v36  ;;  %v9606_v12 = vpack.c.bf16 %v8597_v17, %v8596_v11  ;;  %v8558_v52 = vld [vmem:[%s13314_s5 + $0x8d0] sm:$0xff]  ;;  %v8559_v11 = vld [vmem:[%s13314_s5 + $0x8d8] sm:$0xff]  ;;  %v6956_v17 = vld [vmem:[#allocation4 + $0x180] sm:$0xff] }
 0x446   :  { %8555 = vmatprep.mubr.msk.f32.mxu1 %vm2349_vm3, %v7067_v13  ;;  %9580 = vmatpush1.bf16.msra.mxu1 %v9579_v21  ;;  %v9603_v21 = vpack.c.bf16 %v8595_v48, %v8594_v35  ;;  %v8520_v13 = vld [vmem:[%s13314_s5 + $0x7c0] sm:$0xff]  ;;  %v9516_v7 = vpack.c.bf16 %v8531_v55, %v8530_v49  ;;  %v8557_v48 = vld [vmem:[%s13314_s5 + $0x8c8] sm:$0xff]  ;;  %v7498_v55 = vld [vmem:[#allocation4 + $0x230] sm:$0xff] }
 0x447   :  { %9443 = vmatprep.subr.bf16.mxu0 %v9739_v31  ;;  %9581 = vmatprep.subr.bf16.mxu1 %v9739_v31  ;;  %v8556_v35 = vld [vmem:[%s13314_s5 + $0x8c0] sm:$0xff]  ;;  %v8671_v49 = vld [vmem:[%s13314_s5 + $0xc08] sm:$0xff] }
 0x449   :  { %7165 = vmatmul.mubr.f32.gmra.mrb[46].mxu1 %v7066_v37  ;;  %9445 = vmatpush1.bf16.msra.mxu0 %v9444_v38  ;;  %v8521_v38 = vld [vmem:[%s13314_s5 + $0x7c8] sm:$0xff] }
 0x44a   :  { %9583 = vmatpush1.bf16.msra.mxu1 %v9582_v50  ;;  %8598 = vmatprep.mubr.msk.f32.mxu1 %vm2349_vm3, %v7281_v43  ;;  %v9501_v37 = vpack.c.bf16 %v8521_v38, %v8520_v13  ;;  %v9639_v43 = vpack.c.bf16 %v8623_v18, %v8622_v0  ;;  %v6959_v13 = vld [vmem:[#allocation4 + $0x198] sm:$0xff]  ;;  %v9552_v38 = vpack.c.bf16 %v8559_v11, %v8558_v52  ;;  %v8561_v18 = vld [vmem:[%s13314_s5 + $0x8e8] sm:$0xff] }
 0x44b   :  { %9446 = vmatprep.subr.bf16.mxu0 %v9739_v31  ;;  %9584 = vmatprep.subr.bf16.mxu1 %v9739_v31  ;;  %v8560_v0 = vld [vmem:[%s13314_s5 + $0x8e0] sm:$0xff]  ;;  %v8675_v52 = vld [vmem:[%s13314_s5 + $0xc28] sm:$0xff] }
 0x44d   :  { %9448 = vmatpush1.bf16.msra.mxu0 %v9447_v56  ;;  %v8522_v56 = vld [vmem:[%s13314_s5 + $0x7d0] sm:$0xff] }
 0x44e   :  { %9586 = vmatpush1.bf16.msra.mxu1 %v9585_v62  ;;  %9449 = vmatprep.subr.bf16.mxu0 %v9739_v31  ;;  %v8523_v62 = vld [vmem:[%s13314_s5 + $0x7d8] sm:$0xff] }
 0x44f   :  { %v12766_v14 = vpop.f32.mrb[24].mxu1  ;;  %9587 = vmatprep.subr.bf16.mxu1 %v9739_v31  ;;  %v9504_v57 = vpack.c.bf16 %v8523_v62, %v8522_v56  ;;  %v7173_v56 = vld [vmem:[#allocation4 + $0x1c8] sm:$0xff]  ;;  %v9555_v62 = vpack.c.bf16 %v8561_v18, %v8560_v0  ;;  %v8677_v0 = vld [vmem:[%s13314_s5 + $0xc38] sm:$0xff] }
 0x450   :  { %v6083_v60 = vpop.f32.mrb[25].mxu1 }
 0x451   :  { %9451 = vmatpush1.bf16.msra.mxu0 %v9450_v29  ;;  %v7280_v29 = vld [vmem:[#allocation4 + $0x1e0] sm:$0xff] }
 0x452   :  { %9589 = vmatpush1.bf16.msra.mxu1 %v9588_v30  ;;  %9452 = vmatprep.subr.bf16.mxu0 %v9739_v31  ;;  %v7283_v30 = vld [vmem:[#allocation4 + $0x1f8] sm:$0xff]  ;;  %v8627_v60 = vld [vmem:[%s13314_s5 + $0xac8] sm:$0xff] }
 0x453   :  { %v12782_v34 = vpop.f32.mrb[26].mxu1  ;;  %9590 = vmatprep.subr.bf16.mxu1 %v9739_v31 }
 0x454   :  { %v6088_v41 = vpop.f32.mrb[27].mxu1 }
 0x455   :  { %9454 = vmatpush1.bf16.msra.mxu0 %v9453_v22  ;;  %v7282_v22 = vld [vmem:[#allocation4 + $0x1f0] sm:$0xff]  ;;  %v8628_v41 = vld [vmem:[%s13314_s5 + $0xad0] sm:$0xff] }
 0x456   :  { %9592 = vmatpush1.bf16.msra.mxu1 %v9591_v16  ;;  %9455 = vmatprep.subr.bf16.mxu0 %v9739_v31  ;;  %v7497_v16 = vld [vmem:[#allocation4 + $0x228] sm:$0xff] }
 0x457   :  { %9593 = vmatprep.subr.bf16.mxu1 %v9739_v31 }
 0x459   :  { %9457 = vmatpush1.bf16.msra.mxu0 %v9456_v44  ;;  %v8629_v44 = vld [vmem:[%s13314_s5 + $0xad8] sm:$0xff] }
 0x45a   :  { %9595 = vmatpush1.bf16.msra.mxu1 %v9594_v42  ;;  %9488 = vmatprep.subr.bf16.mxu0 %v9739_v31  ;;  %v9510_v42 = vpack.c.bf16 %v8527_v15, %v8526_v39  ;;  %v9648_v3 = vpack.c.bf16 %v8629_v44, %v8628_v41  ;;  %v8566_v39 = vld [vmem:[%s13314_s5 + $0x910] sm:$0xff]  ;;  %v8567_v15 = vld [vmem:[%s13314_s5 + $0x918] sm:$0xff] }
 0x45b   :  { %9596 = vmatprep.subr.bf16.mxu1 %v9739_v31 }
 0x45c   :  { %6836 = vmatmul.mubr.f32.vlgmr.msra.gmra.mrb[8].mxu0 %v6740_v28 }
 0x45d   :  { %8489 = vmatprep.mubr.msk.f32.mxu0 %vm2349_vm3, %v6743_v59  ;;  %9490 = vmatpush1.bf16.msra.mxu0 %v9489_v54  ;;  %v8631_v54 = vld [vmem:[%s13314_s5 + $0xae8] sm:$0xff]  ;;  %v8632_v59 = vld [vmem:[%s13314_s5 + $0xaf0] sm:$0xff] }
 0x45e   :  { %9598 = vmatpush1.bf16.msra.mxu1 %v9597_v4  ;;  %9491 = vmatprep.subr.bf16.mxu0 %v9739_v31  ;;  %v9651_v28 = vpack.c.bf16 %v8631_v54, %v8630_v19  ;;  %v7499_v19 = vld [vmem:[#allocation4 + $0x238] sm:$0xff] }
 0x45f   :  { %9599 = vmatprep.subr.bf16.mxu1 %v9739_v31 }
 0x460   :  { %6841 = vmatmul.mubr.f32.gmra.mrb[10].mxu0 %v6742_v20 }
 0x461   :  { %9493 = vmatpush1.bf16.msra.mxu0 %v9492_v61  ;;  %8532 = vmatprep.mubr.msk.f32.mxu0 %vm2349_vm3, %v6957_v10  ;;  %v8633_v61 = vld [vmem:[%s13314_s5 + $0xaf8] sm:$0xff]  ;;  %v8634_v10 = vld [vmem:[%s13314_s5 + $0xb00] sm:$0xff] }
 0x462   :  { %9601 = vmatpush1.bf16.msra.mxu1 %v9600_v2  ;;  %9494 = vmatprep.subr.bf16.mxu0 %v9739_v31  ;;  %v9654_v20 = vpack.c.bf16 %v8633_v61, %v8632_v59  ;;  %v7713_v59 = vld [vmem:[#allocation4 + $0x268] sm:$0xff] }
 0x463   :  { %9602 = vmatprep.subr.bf16.mxu1 %v9739_v31 }
 0x465   :  { %9496 = vmatpush1.bf16.msra.mxu0 %v9495_v6  ;;  %v8635_v6 = vld [vmem:[%s13314_s5 + $0xb08] sm:$0xff] }
 0x466   :  { %9604 = vmatpush1.bf16.msra.mxu1 %v9603_v21  ;;  %9497 = vmatprep.subr.bf16.mxu0 %v9739_v31  ;;  %v9549_v21 = vpack.c.bf16 %v8557_v48, %v8556_v35  ;;  %v9657_v36 = vpack.c.bf16 %v8635_v6, %v8634_v10  ;;  %v8673_v35 = vld [vmem:[%s13314_s5 + $0xc18] sm:$0xff]  ;;  %v8572_v6 = vld [vmem:[%s13314_s5 + $0x940] sm:$0xff] }
 0x467   :  { %v5867_v50 = vpop.f32.mrb[244].mxu0  ;;  %9605 = vmatprep.subr.bf16.mxu1 %v9739_v31 }
 0x468   :  { %v12864_v27 = vadd.f32 %v5867_v50, %v12704_v24  ;;  %v5869_v9 = vpop.f32.mrb[245].mxu0  ;;  %v8624_v24 = vld [vmem:[%s13314_s5 + $0xab0] sm:$0xff] }
 0x469   :  { %9499 = vmatpush1.bf16.msra.mxu0 %v9498_v33  ;;  %v9642_v63 = vpack.c.bf16 %v8625_v25, %v8624_v24  ;;  %v8636_v33 = vld [vmem:[%s13314_s5 + $0xb10] sm:$0xff]  ;;  %v6958_v9 = vld [vmem:[#allocation4 + $0x190] sm:$0xff] }
 0x46a   :  { %9607 = vmatpush1.bf16.msra.mxu1 %v9606_v12  ;;  %9500 = vmatprep.subr.bf16.mxu0 %v9739_v31  ;;  %v8637_v12 = vld [vmem:[%s13314_s5 + $0xb18] sm:$0xff]  ;;  %v8562_v24 = vld [vmem:[%s13314_s5 + $0x8f0] sm:$0xff] }
 0x46b   :  { %v5872_v23 = vpop.f32.mrb[246].mxu0  ;;  %9638 = vmatprep.subr.bf16.mxu1 %v9739_v31  ;;  %v9660_v50 = vpack.c.bf16 %v8637_v12, %v8636_v33  ;;  %v8563_v25 = vld [vmem:[%s13314_s5 + $0x8f8] sm:$0xff] }
 0x46c   :  { %v12881_v26 = vadd.f32 %v5872_v23, %v12720_v1  ;;  %v5874_v51 = vpop.f32.mrb[247].mxu0  ;;  %v8626_v1 = vld [vmem:[%s13314_s5 + $0xac0] sm:$0xff] }
 0x46d   :  { %7376 = vmatmul.mubr.f32.vlgmr.msra.gmra.mrb[48].mxu1 %v7280_v29  ;;  %9502 = vmatpush1.bf16.msra.mxu0 %v9501_v37  ;;  %v9645_v45 = vpack.c.bf16 %v8627_v60, %v8626_v1  ;;  %v8638_v37 = vld [vmem:[%s13314_s5 + $0xb20] sm:$0xff]  ;;  %v8640_v51 = vld [vmem:[%s13314_s5 + $0xb30] sm:$0xff]  ;;  %v8641_v29 = vld [vmem:[%s13314_s5 + $0xb38] sm:$0xff] }
 0x46e   :  { %8599 = vmatprep.mubr.msk.f32.mxu1 %vm2349_vm3, %v7283_v30  ;;  %9640 = vmatpush1.bf16.msra.mxu1 %v9639_v43  ;;  %v8639_v43 = vld [vmem:[%s13314_s5 + $0xb28] sm:$0xff]  ;;  %v9558_v30 = vpack.c.bf16 %v8563_v25, %v8562_v24  ;;  %v8666_v1 = vld [vmem:[%s13314_s5 + $0xbe0] sm:$0xff] }
 0x46f   :  { %9503 = vmatprep.subr.bf16.mxu0 %v9739_v31  ;;  %9641 = vmatprep.subr.bf16.mxu1 %v9739_v31  ;;  %v9663_v23 = vpack.c.bf16 %v8639_v43, %v8638_v37  ;;  %v8667_v60 = vld [vmem:[%s13314_s5 + $0xbe8] sm:$0xff] }
 0x470   :  { %v8679_v24 = vld [vmem:[%s13314_s5 + $0xc48] sm:$0xff] }
 0x471   :  { %7381 = vmatmul.mubr.f32.gmra.mrb[50].mxu1 %v7282_v22  ;;  %9505 = vmatpush1.bf16.msra.mxu0 %v9504_v57  ;;  %v9666_v57 = vpack.c.bf16 %v8641_v29, %v8640_v51  ;;  %v8602_v29 = vld [vmem:[%s13314_s5 + $0xa10] sm:$0xff] }
 0x472   :  { %9643 = vmatpush1.bf16.msra.mxu1 %v9642_v63  ;;  %8642 = vmatprep.mubr.msk.f32.mxu1 %vm2349_vm3, %v7497_v16  ;;  %v8564_v63 = vld [vmem:[%s13314_s5 + $0x900] sm:$0xff] }
 0x473   :  { %9506 = vmatprep.subr.bf16.mxu0 %v9739_v31  ;;  %9644 = vmatprep.subr.bf16.mxu1 %v9739_v31 }
 0x475   :  { %9508 = vmatpush1.bf16.msra.mxu0 %v9507_v58  ;;  %v9561_v58 = vpack.c.bf16 %v8565_v40, %v8564_v63  ;;  %v8680_v63 = vld [vmem:[%s13314_s5 + $0xc50] sm:$0xff]  ;;  %v8681_v40 = vld [vmem:[%s13314_s5 + $0xc58] sm:$0xff] }
 0x476   :  { %9646 = vmatpush1.bf16.msra.mxu1 %v9645_v45  ;;  %9509 = vmatprep.subr.bf16.mxu0 %v9739_v31  ;;  %v9699_v45 = vpack.c.bf16 %v8667_v60, %v8666_v1  ;;  %v9720_v60 = vpack.c.bf16 %v8681_v40, %v8680_v63  ;;  %v8649_v63 = vld [vmem:[%s13314_s5 + $0xb68] sm:$0xff]  ;;  %v7390_v40 = vld [vmem:[#allocation4 + $0x210] sm:$0xff] }
 0x477   :  { %9647 = vmatprep.subr.bf16.mxu1 %v9739_v31 }
 0x478   :  { %v12927_v4 = vpop.f32.mrb[28].mxu1 }
 0x479   :  { %v6299_v46 = vpop.f32.mrb[29].mxu1  ;;  %9511 = vmatpush1.bf16.msra.mxu0 %v9510_v42  ;;  %v8669_v42 = vld [vmem:[%s13314_s5 + $0xbf8] sm:$0xff] }
 0x47a   :  { %9649 = vmatpush1.bf16.msra.mxu1 %v9648_v3  ;;  %9512 = vmatprep.subr.bf16.mxu0 %v9739_v31  ;;  %v8568_v46 = vld [vmem:[%s13314_s5 + $0x920] sm:$0xff] }
 0x47b   :  { %9650 = vmatprep.subr.bf16.mxu1 %v9739_v31 }
 0x47c   :  { %v12943_v2 = vpop.f32.mrb[30].mxu1 }
 0x47d   :  { %v6304_v5 = vpop.f32.mrb[31].mxu1  ;;  %9514 = vmatpush1.bf16.msra.mxu0 %v9513_v8  ;;  %v8569_v8 = vld [vmem:[%s13314_s5 + $0x928] sm:$0xff] }
 0x47e   :  { %9652 = vmatpush1.bf16.msra.mxu1 %v9651_v28  ;;  %9515 = vmatprep.subr.bf16.mxu0 %v9739_v31  ;;  %v8670_v28 = vld [vmem:[%s13314_s5 + $0xc00] sm:$0xff]  ;;  %v9567_v61 = vpack.c.bf16 %v8569_v8, %v8568_v46  ;;  %v8570_v5 = vld [vmem:[%s13314_s5 + $0x930] sm:$0xff]  ;;  %v8609_v46 = vld [vmem:[%s13314_s5 + $0xa48] sm:$0xff] }
 0x47f   :  { %9653 = vmatprep.subr.bf16.mxu1 %v9739_v31 }
 0x481   :  { %9517 = vmatpush1.bf16.msra.mxu0 %v9516_v7  ;;  %v8571_v7 = vld [vmem:[%s13314_s5 + $0x938] sm:$0xff] }
 0x482   :  { %9655 = vmatpush1.bf16.msra.mxu1 %v9654_v20  ;;  %9548 = vmatprep.subr.bf16.mxu0 %v9739_v31  ;;  %v8672_v20 = vld [vmem:[%s13314_s5 + $0xc10] sm:$0xff]  ;;  %v9570_v48 = vpack.c.bf16 %v8571_v7, %v8570_v5 }
 0x483   :  { %9656 = vmatprep.subr.bf16.mxu1 %v9739_v31  ;;  %v9708_v10 = vpack.c.bf16 %v8673_v35, %v8672_v20  ;;  %v7712_v20 = vld [vmem:[#allocation4 + $0x260] sm:$0xff]  ;;  %v7715_v35 = vld [vmem:[#allocation4 + $0x278] sm:$0xff] }
 0x484   :  { %7052 = vmatmul.mubr.f32.vlgmr.msra.gmra.mrb[12].mxu0 %v6956_v17 }
 0x485   :  { %8533 = vmatprep.mubr.msk.f32.mxu0 %vm2349_vm3, %v6959_v13  ;;  %9550 = vmatpush1.bf16.msra.mxu0 %v9549_v21  ;;  %v8573_v21 = vld [vmem:[%s13314_s5 + $0x948] sm:$0xff]  ;;  %v8574_v13 = vld [vmem:[%s13314_s5 + $0x950] sm:$0xff] }
 0x486   :  { %9658 = vmatpush1.bf16.msra.mxu1 %v9657_v36  ;;  %9551 = vmatprep.subr.bf16.mxu0 %v9739_v31  ;;  %v8674_v36 = vld [vmem:[%s13314_s5 + $0xc20] sm:$0xff]  ;;  %v9573_v33 = vpack.c.bf16 %v8573_v21, %v8572_v6  ;;  %v7714_v6 = vld [vmem:[#allocation4 + $0x270] sm:$0xff] }
 0x487   :  { %9659 = vmatprep.subr.bf16.mxu1 %v9739_v31  ;;  %v9711_v12 = vpack.c.bf16 %v8675_v52, %v8674_v36  ;;  %v8614_v36 = vld [vmem:[%s13314_s5 + $0xa70] sm:$0xff]  ;;  %v8615_v52 = vld [vmem:[%s13314_s5 + $0xa78] sm:$0xff] }
 0x488   :  { %7057 = vmatmul.mubr.f32.gmra.mrb[14].mxu0 %v6958_v9 }
 0x489   :  { %9553 = vmatpush1.bf16.msra.mxu0 %v9552_v38  ;;  %8576 = vmatprep.mubr.msk.f32.mxu0 %vm2349_vm3, %v7173_v56  ;;  %v8575_v38 = vld [vmem:[%s13314_s5 + $0x958] sm:$0xff]  ;;  %v8600_v56 = vld [vmem:[%s13314_s5 + $0xa00] sm:$0xff] }
 0x48a   :  { %9661 = vmatpush1.bf16.msra.mxu1 %v9660_v50  ;;  %9554 = vmatprep.subr.bf16.mxu0 %v9739_v31  ;;  %v8676_v50 = vld [vmem:[%s13314_s5 + $0xc30] sm:$0xff]  ;;  %v9576_v37 = vpack.c.bf16 %v8575_v38, %v8574_v13 }
 0x48b   :  { %9662 = vmatprep.subr.bf16.mxu1 %v9739_v31  ;;  %v9714_v43 = vpack.c.bf16 %v8677_v0, %v8676_v50  ;;  %v8618_v50 = vld [vmem:[%s13314_s5 + $0xa90] sm:$0xff]  ;;  %v8619_v0 = vld [vmem:[%s13314_s5 + $0xa98] sm:$0xff] }
 0x48d   :  { %9556 = vmatpush1.bf16.msra.mxu0 %v9555_v62  ;;  %v8601_v62 = vld [vmem:[%s13314_s5 + $0xa08] sm:$0xff] }
 0x48e   :  { %9664 = vmatpush1.bf16.msra.mxu1 %v9663_v23  ;;  %9557 = vmatprep.subr.bf16.mxu0 %v9739_v31  ;;  %v8678_v23 = vld [vmem:[%s13314_s5 + $0xc40] sm:$0xff]  ;;  %v9609_v25 = vpack.c.bf16 %v8601_v62, %v8600_v56  ;;  %v8645_v62 = vld [vmem:[%s13314_s5 + $0xb48] sm:$0xff] }
 0x48f   :  { %v5973_v32 = vpop.f32.mrb[248].mxu0  ;;  %9665 = vmatprep.subr.bf16.mxu1 %v9739_v31  ;;  %v9717_v51 = vpack.c.bf16 %v8679_v24, %v8678_v23  ;;  %v8644_v56 = vld [vmem:[%s13314_s5 + $0xb40] sm:$0xff]  ;;  %v8646_v24 = vld [vmem:[%s13314_s5 + $0xb50] sm:$0xff] }
 0x490   :  { %v5982_v22 = vadd.f32 %v5973_v32, %v12864_v27  ;;  %v5975_v16 = vpop.f32.mrb[249].mxu0  ;;  %v8668_v27 = vld [vmem:[%s13314_s5 + $0xbf0] sm:$0xff]  ;;  %v7175_v32 = vld [vmem:[#allocation4 + $0x1d8] sm:$0xff]  ;;  %v9669_v23 = vpack.c.bf16 %v8645_v62, %v8644_v56 }
 0x491   :  { %9559 = vmatpush1.bf16.msra.mxu0 %v9558_v30  ;;  %v9702_v54 = vpack.c.bf16 %v8669_v42, %v8668_v27  ;;  %v8603_v30 = vld [vmem:[%s13314_s5 + $0xa18] sm:$0xff]  ;;  %v8605_v16 = vld [vmem:[%s13314_s5 + $0xa28] sm:$0xff]  ;;  %v8606_v42 = vld [vmem:[%s13314_s5 + $0xa30] sm:$0xff] }
 0x492   :  { %9667 = vmatpush1.bf16.msra.mxu1 %v9666_v57  ;;  %9560 = vmatprep.subr.bf16.mxu0 %v9739_v31  ;;  %v13026_v41 = vadd.f32 %v12766_v14, %v5982_v22  ;;  %v9564_v14 = vpack.c.bf16 %v8567_v15, %v8566_v39  ;;  %v7172_v57 = vld [vmem:[#allocation4 + $0x1c0] sm:$0xff]  ;;  %v9612_v1 = vpack.c.bf16 %v8603_v30, %v8602_v29  ;;  %v8604_v22 = vld [vmem:[%s13314_s5 + $0xa20] sm:$0xff]  ;;  %v7389_v15 = vld [vmem:[#allocation4 + $0x208] sm:$0xff] }
 0x493   :  { %v5978_v44 = vpop.f32.mrb[250].mxu0  ;;  %9698 = vmatprep.subr.bf16.mxu1 %v9739_v31  ;;  %v8683_v39 = vld [vmem:[%s13314_s5 + $0xc68] sm:$0xff]  ;;  %v7391_v29 = vld [vmem:[#allocation4 + $0x218] sm:$0xff] }
 0x494   :  { %v5983_v3 = vadd.f32 %v5978_v44, %v12881_v26  ;;  %v5980_v47 = vpop.f32.mrb[251].mxu0  ;;  %v9615_v44 = vpack.c.bf16 %v8605_v16, %v8604_v22  ;;  %v8651_v22 = vld [vmem:[%s13314_s5 + $0xb78] sm:$0xff] }
 0x495   :  { %7592 = vmatmul.mubr.f32.vlgmr.msra.gmra.mrb[52].mxu1 %v7496_v53  ;;  %9562 = vmatpush1.bf16.msra.mxu0 %v9561_v58  ;;  %v7174_v58 = vld [vmem:[#allocation4 + $0x1d0] sm:$0xff]  ;;  %v8684_v47 = vld [vmem:[%s13314_s5 + $0xc70] sm:$0xff] }
 0x496   :  { %8643 = vmatprep.mubr.msk.f32.mxu1 %vm2349_vm3, %v7499_v19  ;;  %9700 = vmatpush1.bf16.msra.mxu1 %v9699_v45  ;;  %v13044_v26 = vadd.f32 %v12782_v34, %v5983_v3  ;;  %v9705_v34 = vpack.c.bf16 %v8671_v49, %v8670_v28  ;;  %v8682_v45 = vld [vmem:[%s13314_s5 + $0xc60] sm:$0xff]  ;;  %v8607_v3 = vld [vmem:[%s13314_s5 + $0xa38] sm:$0xff] }
 0x497   :  { %9563 = vmatprep.subr.bf16.mxu0 %v9739_v31  ;;  %9701 = vmatprep.subr.bf16.mxu1 %v9739_v31  ;;  %v9723_v27 = vpack.c.bf16 %v8683_v39, %v8682_v45  ;;  %v8685_v53 = vld [vmem:[%s13314_s5 + $0xc78] sm:$0xff]  ;;  %v9618_v19 = vpack.c.bf16 %v8607_v3, %v8606_v42  ;;  %v8653_v45 = vld [vmem:[%s13314_s5 + $0xb88] sm:$0xff]  ;;  %v8654_v42 = vld [vmem:[%s13314_s5 + $0xb90] sm:$0xff] }
 0x498   :  { %v8655_v3 = vld [vmem:[%s13314_s5 + $0xb98] sm:$0xff] }
 0x499   :  { %7597 = vmatmul.mubr.f32.gmra.mrb[54].mxu1 %v7498_v55  ;;  %9565 = vmatpush1.bf16.msra.mxu0 %v9564_v14  ;;  %v9726_v14 = vpack.c.bf16 %v8685_v53, %v8684_v47 }
 0x49a   :  { %9703 = vmatpush1.bf16.msra.mxu1 %v9702_v54  ;;  %8686 = vmatprep.mubr.msk.f32.mxu1 %vm2349_vm3, %v7713_v59  ;;  %v8608_v54 = vld [vmem:[%s13314_s5 + $0xa40] sm:$0xff]  ;;  %v8610_v59 = vld [vmem:[%s13314_s5 + $0xa50] sm:$0xff] }
 0x49b   :  { %9566 = vmatprep.subr.bf16.mxu0 %v9739_v31  ;;  %9704 = vmatprep.subr.bf16.mxu1 %v9739_v31  ;;  %v9621_v55 = vpack.c.bf16 %v8609_v46, %v8608_v54  ;;  %v9684_v54 = vpack.c.bf16 %v8655_v3, %v8654_v42  ;;  %v8656_v46 = vld [vmem:[%s13314_s5 + $0xba0] sm:$0xff] }
 0x49d   :  { %9568 = vmatpush1.bf16.msra.mxu0 %v9567_v61  ;;  %v8611_v61 = vld [vmem:[%s13314_s5 + $0xa58] sm:$0xff] }
 0x49e   :  { %9706 = vmatpush1.bf16.msra.mxu1 %v9705_v34  ;;  %9569 = vmatprep.subr.bf16.mxu0 %v9739_v31 }
 0x49f   :  { %9707 = vmatprep.subr.bf16.mxu1 %v9739_v31 }
 0x4a0   :  { %v13083_v11 = vpop.f32.mrb[32].mxu1 }
 0x4a1   :  { %v6515_v17 = vpop.f32.mrb[33].mxu1  ;;  %9571 = vmatpush1.bf16.msra.mxu0 %v9570_v48  ;;  %v9624_v48 = vpack.c.bf16 %v8611_v61, %v8610_v59  ;;  %v8661_v61 = vld [vmem:[%s13314_s5 + $0xbc8] sm:$0xff] }
 0x4a2   :  { %9709 = vmatpush1.bf16.msra.mxu1 %v9708_v10  ;;  %9572 = vmatprep.subr.bf16.mxu0 %v9739_v31  ;;  %v8612_v10 = vld [vmem:[%s13314_s5 + $0xa60] sm:$0xff]  ;;  %v9630_v17 = vpack.c.bf16 %v8615_v52, %v8614_v36 }
 0x4a3   :  { %9710 = vmatprep.subr.bf16.mxu1 %v9739_v31 }
 0x4a4   :  { %v13099_v18 = vpop.f32.mrb[34].mxu1 }
 0x4a5   :  { %v6520_v9 = vpop.f32.mrb[35].mxu1  ;;  %9574 = vmatpush1.bf16.msra.mxu0 %v9573_v33  ;;  %v8617_v33 = vld [vmem:[%s13314_s5 + $0xa88] sm:$0xff] }
 0x4a6   :  { %9712 = vmatpush1.bf16.msra.mxu1 %v9711_v12  ;;  %9575 = vmatprep.subr.bf16.mxu0 %v9739_v31 }
 0x4a7   :  { %9713 = vmatprep.subr.bf16.mxu1 %v9739_v31 }
 0x4a9   :  { %9577 = vmatpush1.bf16.msra.mxu0 %v9576_v37 }
 0x4aa   :  { %9715 = vmatpush1.bf16.msra.mxu1 %v9714_v43  ;;  %9608 = vmatprep.subr.bf16.mxu0 %v9739_v31  ;;  %v9636_v43 = vpack.c.bf16 %v8619_v0, %v8618_v50 }
 0x4ab   :  { %9716 = vmatprep.subr.bf16.mxu1 %v9739_v31 }
 0x4ac   :  { %7268 = vmatmul.mubr.f32.vlgmr.msra.gmra.mrb[16].mxu0 %v7172_v57  ;;  %v8648_v57 = vld [vmem:[%s13314_s5 + $0xb60] sm:$0xff] }
 0x4ad   :  { %8577 = vmatprep.mubr.msk.f32.mxu0 %vm2349_vm3, %v7175_v32  ;;  %9610 = vmatpush1.bf16.msra.mxu0 %v9609_v25  ;;  %v8647_v25 = vld [vmem:[%s13314_s5 + $0xb58] sm:$0xff]  ;;  %v7605_v32 = vld [vmem:[#allocation4 + $0x248] sm:$0xff] }
 0x4ae   :  { %9718 = vmatpush1.bf16.msra.mxu1 %v9717_v51  ;;  %9611 = vmatprep.subr.bf16.mxu0 %v9739_v31  ;;  %v7388_v51 = vld [vmem:[#allocation4 + $0x200] sm:$0xff]  ;;  %v9672_v30 = vpack.c.bf16 %v8647_v25, %v8646_v24 }
 0x4af   :  { %9719 = vmatprep.subr.bf16.mxu1 %v9739_v31 }
 0x4b0   :  { %7273 = vmatmul.mubr.f32.gmra.mrb[18].mxu0 %v7174_v58  ;;  %v8652_v58 = vld [vmem:[%s13314_s5 + $0xb80] sm:$0xff] }
 0x4b1   :  { %9613 = vmatpush1.bf16.msra.mxu0 %v9612_v1  ;;  %8620 = vmatprep.mubr.msk.f32.mxu0 %vm2349_vm3, %v7389_v15  ;;  %v9675_v1 = vpack.c.bf16 %v8649_v63, %v8648_v57 }
 0x4b2   :  { %9721 = vmatpush1.bf16.msra.mxu1 %v9720_v60  ;;  %9614 = vmatprep.subr.bf16.mxu0 %v9739_v31  ;;  %v8650_v60 = vld [vmem:[%s13314_s5 + $0xb70] sm:$0xff] }
 0x4b3   :  { %9722 = vmatprep.subr.bf16.mxu1 %v9739_v31  ;;  %v9678_v16 = vpack.c.bf16 %v8651_v22, %v8650_v60 }
 0x4b5   :  { %9616 = vmatpush1.bf16.msra.mxu0 %v9615_v44 }
 0x4b6   :  { %9724 = vmatpush1.bf16.msra.mxu1 %v9723_v27  ;;  %9617 = vmatprep.subr.bf16.mxu0 %v9739_v31  ;;  %v9681_v27 = vpack.c.bf16 %v8653_v45, %v8652_v58 }
 0x4b7   :  { %v6189_v8 = vpop.f32.mrb[252].mxu0  ;;  %9725 = vmatprep.subr.bf16.mxu1 %v9739_v31 }
 0x4b8   :  { %v6198_v28 = vadd.f32 %v6189_v8, %v13026_v41  ;;  %v6191_v49 = vpop.f32.mrb[253].mxu0  ;;  %v8657_v8 = vld [vmem:[%s13314_s5 + $0xba8] sm:$0xff] }
 0x4b9   :  { %9619 = vmatpush1.bf16.msra.mxu0 %v9618_v19  ;;  %v8658_v49 = vld [vmem:[%s13314_s5 + $0xbb0] sm:$0xff] }
 0x4ba   :  { %9727 = vmatpush1.bf16.msra.mxu1 %v9726_v14  ;;  %9620 = vmatprep.subr.bf16.mxu0 %v9739_v31  ;;  %v13176_v34 = vadd.f32 %v12927_v4, %v6198_v28  ;;  %v8613_v4 = vld [vmem:[%s13314_s5 + $0xa68] sm:$0xff] }
 0x4bb   :  { %v6194_v5 = vpop.f32.mrb[254].mxu0  ;;  %v9627_v21 = vpack.c.bf16 %v8613_v4, %v8612_v10  ;;  %v7604_v4 = vld [vmem:[#allocation4 + $0x240] sm:$0xff] }
 0x4bc   :  { %v6199_v41 = vadd.f32 %v6194_v5, %v13044_v26  ;;  %v6196_v7 = vpop.f32.mrb[255].mxu0 }
 0x4bd   :  { %7808 = vmatmul.mubr.f32.vlgmr.msra.gmra.mrb[56].mxu1 %v7712_v20  ;;  %9622 = vmatpush1.bf16.msra.mxu0 %v9621_v55  ;;  %v8659_v55 = vld [vmem:[%s13314_s5 + $0xbb8] sm:$0xff]  ;;  %v8662_v7 = vld [vmem:[%s13314_s5 + $0xbd0] sm:$0xff] }
 0x4be   :  { %8687 = vmatprep.mubr.msk.f32.mxu1 %vm2349_vm3, %v7715_v35  ;;  %9623 = vmatprep.subr.bf16.mxu0 %v9739_v31  ;;  %v13188_v26 = vadd.f32 %v12943_v2, %v6199_v41  ;;  %v8616_v2 = vld [vmem:[%s13314_s5 + $0xa80] sm:$0xff]  ;;  %v9690_v59 = vpack.c.bf16 %v8659_v55, %v8658_v49  ;;  %v8663_v20 = vld [vmem:[%s13314_s5 + $0xbd8] sm:$0xff] }
 0x4bf   :  { %v9633_v38 = vpack.c.bf16 %v8617_v33, %v8616_v2  ;;  %v9696_v10 = vpack.c.bf16 %v8663_v20, %v8662_v7 }
 0x4c1   :  { %7813 = vmatmul.mubr.f32.gmra.mrb[58].mxu1 %v7714_v6  ;;  %9625 = vmatpush1.bf16.msra.mxu0 %v9624_v48  ;;  %v7606_v6 = vld [vmem:[#allocation4 + $0x250] sm:$0xff] }
 0x4c2   :  { %9626 = vmatprep.subr.bf16.mxu0 %v9739_v31 }
 0x4c5   :  { %9628 = vmatpush1.bf16.msra.mxu0 %v9627_v21 }
 0x4c6   :  { %9629 = vmatprep.subr.bf16.mxu0 %v9739_v31 }
 0x4c8   :  { %v13204_v12 = vpop.f32.mrb[36].mxu1 }
 0x4c9   :  { %v6731_v13 = vpop.f32.mrb[37].mxu1  ;;  %9631 = vmatpush1.bf16.msra.mxu0 %v9630_v17 }
 0x4ca   :  { %9632 = vmatprep.subr.bf16.mxu0 %v9739_v31 }
 0x4cc   :  { %v13213_v9 = vpop.f32.mrb[38].mxu1 }
 0x4cd   :  { %v6736_v37 = vpop.f32.mrb[39].mxu1  ;;  %9634 = vmatpush1.bf16.msra.mxu0 %v9633_v38 }
 0x4ce   :  { %9635 = vmatprep.subr.bf16.mxu0 %v9739_v31 }
 0x4d1   :  { %9637 = vmatpush1.bf16.msra.mxu0 %v9636_v43 }
 0x4d2   :  { %9668 = vmatprep.subr.bf16.mxu0 %v9739_v31 }
 0x4d4   :  { %7484 = vmatmul.mubr.f32.vlgmr.msra.gmra.mrb[20].mxu0 %v7388_v51 }
 0x4d5   :  { %8621 = vmatprep.mubr.msk.f32.mxu0 %vm2349_vm3, %v7391_v29  ;;  %9670 = vmatpush1.bf16.msra.mxu0 %v9669_v23 }
 0x4d6   :  { %9671 = vmatprep.subr.bf16.mxu0 %v9739_v31 }
 0x4d8   :  { %7489 = vmatmul.mubr.f32.gmra.mrb[22].mxu0 %v7390_v40 }
 0x4d9   :  { %9673 = vmatpush1.bf16.msra.mxu0 %v9672_v30  ;;  %8664 = vmatprep.mubr.msk.f32.mxu0 %vm2349_vm3, %v7605_v32 }
 0x4da   :  { %9674 = vmatprep.subr.bf16.mxu0 %v9739_v31 }
 0x4dd   :  { %9676 = vmatpush1.bf16.msra.mxu0 %v9675_v1 }
 0x4de   :  { %9677 = vmatprep.subr.bf16.mxu0 %v9739_v31 }
 0x4df   :  { %v6405_v39 = vpop.f32.mrb[0].mxu0 }
 0x4e0   :  { %v6414_v15 = vadd.f32 %v6405_v39, %v13176_v34  ;;  %v6407_v44 = vpop.f32.mrb[1].mxu0 }
 0x4e1   :  { %9679 = vmatpush1.bf16.msra.mxu0 %v9678_v16 }
 0x4e2   :  { %9680 = vmatprep.subr.bf16.mxu0 %v9739_v31  ;;  %v6522_v47 = vadd.f32 %v13083_v11, %v6414_v15  ;;  %v9687_v11 = vpack.c.bf16 %v8657_v8, %v8656_v46 }
 0x4e3   :  { %v6410_v53 = vpop.f32.mrb[2].mxu0 }
 0x4e4   :  { %v6415_v19 = vadd.f32 %v6410_v53, %v13188_v26  ;;  %v6412_v14 = vpop.f32.mrb[3].mxu0  ;;  %v7607_v26 = vld [vmem:[#allocation4 + $0x258] sm:$0xff] }
 0x4e5   :  { %9682 = vmatpush1.bf16.msra.mxu0 %v9681_v27 }
 0x4e6   :  { %9683 = vmatprep.subr.bf16.mxu0 %v9739_v31  ;;  %v6523_v28 = vadd.f32 %v13099_v18, %v6415_v19  ;;  %v8660_v18 = vld [vmem:[%s13314_s5 + $0xbc0] sm:$0xff] }
 0x4e7   :  { %v9693_v41 = vpack.c.bf16 %v8661_v61, %v8660_v18 }
 0x4e9   :  { %9685 = vmatpush1.bf16.msra.mxu0 %v9684_v54 }
 0x4ea   :  { %9686 = vmatprep.subr.bf16.mxu0 %v9739_v31 }
 0x4ed   :  { %9688 = vmatpush1.bf16.msra.mxu0 %v9687_v11 }
 0x4ee   :  { %9689 = vmatprep.subr.bf16.mxu0 %v9739_v31 }
 0x4f0   :  { %v6945_v34 = vpop.f32.mrb[40].mxu1 }
 0x4f1   :  { %v6947_v5 = vpop.f32.mrb[41].mxu1  ;;  %9691 = vmatpush1.bf16.msra.mxu0 %v9690_v59 }
 0x4f2   :  { %9692 = vmatprep.subr.bf16.mxu0 %v9739_v31 }
 0x4f4   :  { %v6950_v35 = vpop.f32.mrb[42].mxu1 }
 0x4f5   :  { %v6952_v48 = vpop.f32.mrb[43].mxu1  ;;  %9694 = vmatpush1.bf16.msra.mxu0 %v9693_v41 }
 0x4f6   :  { %9695 = vmatprep.subr.bf16.mxu0 %v9739_v31  ;;  %v8688_v48 = vld [vmem:[%s13316_s6] ss:$0 sm:$0xff] }
 0x4f9   :  { %9697 = vmatpush1.bf16.msra.mxu0 %v9696_v10 }
 0x4fc   :  { %7700 = vmatmul.mubr.f32.vlgmr.msra.gmra.mrb[24].mxu0 %v7604_v4 }
 0x4fd   :  { %8665 = vmatprep.mubr.msk.f32.mxu0 %vm2349_vm3, %v7607_v26 }
 0x500   :  { %7705 = vmatmul.mubr.f32.gmra.mrb[26].mxu0 %v7606_v6 }
 0x507   :  { %v6621_v21 = vpop.f32.mrb[4].mxu0 }
 0x508   :  { %v6630_v36 = vadd.f32 %v6621_v21, %v6522_v47  ;;  %v6623_v52 = vpop.f32.mrb[5].mxu0 }
 0x50a   :  { %v6738_v17 = vadd.f32 %v13204_v12, %v6630_v36 }
 0x50b   :  { %v6626_v2 = vpop.f32.mrb[6].mxu0 }
 0x50c   :  { %v6631_v33 = vadd.f32 %v6626_v2, %v6523_v28  ;;  %v6628_v13 = vpop.f32.mrb[7].mxu0 }
 0x50e   :  { %v6739_v38 = vadd.f32 %v13213_v9, %v6631_v33 }
 0x518   :  { %v7161_v50 = vpop.f32.mrb[44].mxu1 }
 0x519   :  { %v7163_v31 = vpop.f32.mrb[45].mxu1 }
 0x51c   :  { %v7166_v0 = vpop.f32.mrb[46].mxu1 }
 0x51d   :  { %v7168_v37 = vpop.f32.mrb[47].mxu1 }
 0x52f   :  { %v6837_v43 = vpop.f32.mrb[8].mxu0 }
 0x530   :  { %v6846_v56 = vadd.f32 %v6837_v43, %v6738_v17  ;;  %v6839_v62 = vpop.f32.mrb[9].mxu0 }
 0x532   :  { %v6954_v23 = vadd.f32 %v6945_v34, %v6846_v56 }
 0x533   :  { %v6842_v24 = vpop.f32.mrb[10].mxu0 }
 0x534   :  { %v6847_v25 = vadd.f32 %v6842_v24, %v6739_v38  ;;  %v6844_v51 = vpop.f32.mrb[11].mxu0 }
 0x536   :  { %v6955_v29 = vadd.f32 %v6950_v35, %v6847_v25 }
 0x540   :  { %v7377_v30 = vpop.f32.mrb[48].mxu1 }
 0x541   :  { %v7379_v57 = vpop.f32.mrb[49].mxu1 }
 0x544   :  { %v7382_v12 = vpop.f32.mrb[50].mxu1 }
 0x545   :  { %v7384_v63 = vpop.f32.mrb[51].mxu1 }
 0x557   :  { %v7053_v40 = vpop.f32.mrb[12].mxu0 }
 0x558   :  { %v7062_v32 = vadd.f32 %v7053_v40, %v6954_v23  ;;  %v7055_v1 = vpop.f32.mrb[13].mxu0 }
 0x55a   :  { %v7170_v9 = vadd.f32 %v7161_v50, %v7062_v32 }
 0x55b   :  { %v7058_v60 = vpop.f32.mrb[14].mxu0 }
 0x55c   :  { %v7063_v22 = vadd.f32 %v7058_v60, %v6955_v29  ;;  %v7060_v16 = vpop.f32.mrb[15].mxu0 }
 0x55e   :  { %v7171_v58 = vadd.f32 %v7166_v0, %v7063_v22 }
 0x568   :  { %v7593_v45 = vpop.f32.mrb[52].mxu1 }
 0x569   :  { %v7595_v39 = vpop.f32.mrb[53].mxu1 }
 0x56c   :  { %v7598_v15 = vpop.f32.mrb[54].mxu1 }
 0x56d   :  { %v7600_v44 = vpop.f32.mrb[55].mxu1 }
 0x57f   :  { %v7269_v27 = vpop.f32.mrb[16].mxu0 }
 0x580   :  { %v7278_v42 = vadd.f32 %v7269_v27, %v7170_v9  ;;  %v7271_v3 = vpop.f32.mrb[17].mxu0 }
 0x582   :  { %v7386_v47 = vadd.f32 %v7377_v30, %v7278_v42 }
 0x583   :  { %v7274_v53 = vpop.f32.mrb[18].mxu0 }
 0x584   :  { %v7279_v19 = vadd.f32 %v7274_v53, %v7171_v58  ;;  %v7276_v14 = vpop.f32.mrb[19].mxu0 }
 0x586   :  { %v7387_v54 = vadd.f32 %v7382_v12, %v7279_v19 }
 0x590   :  { %v7809_v46 = vpop.f32.mrb[56].mxu1 }
 0x591   :  { %v7811_v8 = vpop.f32.mrb[57].mxu1 }
 0x594   :  { %v7814_v28 = vpop.f32.mrb[58].mxu1 }
 0x595   :  { %v7816_v11 = vpop.f32.mrb[59].mxu1 }
 0x5a7   :  { %v7485_v49 = vpop.f32.mrb[20].mxu0 }
 0x5a8   :  { %v7494_v55 = vadd.f32 %v7485_v49, %v7386_v47  ;;  %v7487_v59 = vpop.f32.mrb[21].mxu0 }
 0x5aa   :  { %v7602_v18 = vadd.f32 %v7593_v45, %v7494_v55 }
 0x5ab   :  { %v7490_v61 = vpop.f32.mrb[22].mxu0 }
 0x5ac   :  { %v7495_v34 = vadd.f32 %v7490_v61, %v7387_v54  ;;  %v7492_v5 = vpop.f32.mrb[23].mxu0 }
 0x5ae   :  { %v7603_v41 = vadd.f32 %v7598_v15, %v7495_v34 }
 0x5cf   :  { %v7701_v7 = vpop.f32.mrb[24].mxu0 }
 0x5d0   :  { %v7710_v20 = vadd.f32 %v7701_v7, %v7602_v18  ;;  %v7703_v35 = vpop.f32.mrb[25].mxu0 }
 0x5d2   :  { %v7818_v10 = vadd.f32 %v7809_v46, %v7710_v20 }
 0x5d3   :  { %v7706_v4 = vpop.f32.mrb[26].mxu0 }
 0x5d4   :  { %v7711_v26 = vadd.f32 %v7706_v4, %v7603_v41  ;;  %v7708_v6 = vpop.f32.mrb[27].mxu0  ;;  %v7827_v21 = vadd.f32 %v8688_v48, %v7818_v10 }
 0x5d6   :  { %v7819_v36 = vadd.f32 %v7814_v28, %v7711_v26  ;;  %v7830_v52 = vsel %vm7829_vm4, %v7827_v21, -inf }
 0x5d7   :  { %7831 = vmax.xlane.f32.xlu0 %v7830_v52 }
 0x5d8   :  { %v7828_v17 = vadd.f32 %v8688_v48, %v7819_v36 }
 0x5da   :  { %v7833_v2 = vsel %vm7829_vm4, %v7828_v17, -inf }
 0x5db   :  { %7834 = vmax.xlane.f32.xlu0 %v7833_v2 }
 0x664   :  { %v7832_v33 = vpop.xlane.xlu0 %7831 }
 0x665   :  { %v7836_v13 = vsub.f32 %v7827_v21, %v7832_v33 }
 0x667   :  { %v7838_v38 = vmul.f32 1.442695, %v7836_v13 }
 0x668   :  { %v7835_v50 = vpop.xlane.xlu0 %7834 }
 0x669   :  { %9730 = vpow2.f32 %v7838_v38  ;;  %v7837_v31 = vsub.f32 %v7828_v17, %v7835_v50 }
 0x66b   :  { %v7840_v0 = vmul.f32 1.442695, %v7837_v31 }
 0x66d   :  { %9732 = vpow2.f32 %v7840_v0 }
 0x673   :  { %v9731_v37 = vpop.eup %9730 }
 0x674   :  { %v7842_v43 = vsel %vm7829_vm4, %v9731_v37, 0.0 }
 0x675   :  { %7843 = vadd.xlane.f32.xlu1 %v7842_v43 }
 0x677   :  { %v9733_v56 = vpop.eup %9732 }
 0x678   :  { %v7845_v62 = vsel %vm7829_vm4, %v9733_v56, 0.0 }
 0x679   :  { %7846 = vadd.xlane.f32.xlu1 %v7845_v62 }
 0x702   :  { %v7844_v23 = vpop.xlane.xlu1 %7843 }
 0x703   :  { %9734 = vrcp.f32 %v7844_v23 }
 0x706   :  { %v7847_v24 = vpop.xlane.xlu1 %7846 }
 0x707   :  { %9736 = vrcp.f32 %v7847_v24 }
 0x70d   :  { %v9735_v25 = vpop.eup %9734 }
 0x70e   :  { %v7849_v51 = vmul.f32 %v9735_v25, %v9731_v37 }
 0x710   :  { %7852 = vst.msk [vmem:[%s13317_s7] sm:$0xff] %vm7829_vm4, %v7849_v51 }
 0x711   :  { %v9737_v29 = vpop.eup %9736 }
 0x712   :  { %v7851_v30 = vmul.f32 %v9737_v29, %v9733_v56 }
 0x714   :  { %7853 = vst.msk [vmem:[%s13317_s7 + $0x8] sm:$0xff] %vm7829_vm4, %v7851_v30 }

</bundles_post_ra>
